<compile_context>
chip_gen: v5e
topology: v5e:2x2
jax: 0.10.0
libtpu: 0.0.40
codegen_flags: <defaults>
</compile_context>

<pallas_src>
import functools

import numpy as np
import jax
import jax.numpy as jnp
from jax import lax
from jax.experimental import pallas as pl
from jax.experimental.pallas import tpu as pltpu


# -----------------------------------------------------------------------------
# Pallas kernels
# -----------------------------------------------------------------------------
def _matmul_bn_relu_kernel(w_ref, x_ref, p_ref, gamma_ref, beta_ref, o_ref, *,
                           inv_count, eps):
    # y^T = W (N,K) @ X^T (K,M): channels on sublanes, pixels on lanes (lane dense).
    y = jnp.dot(w_ref[...], x_ref[...], preferred_element_type=jnp.float32)
    # Fused BatchNorm (training-mode batch stats).  p_ref is a 0/1 (N,N) matrix that
    # sums the rows belonging to the same original output channel (the 4 phase rows
    # of a stride-2 layer, or the single row of a stride-1 layer).
    gsum = jnp.dot(p_ref[...], y, preferred_element_type=jnp.float32)
    gsq = jnp.dot(p_ref[...], y * y, preferred_element_type=jnp.float32)
    mean = jnp.sum(gsum, axis=1, keepdims=True) * inv_count          # (N, 1)
    msq = jnp.sum(gsq, axis=1, keepdims=True) * inv_count            # (N, 1)
    var = msq - mean * mean
    scale = gamma_ref[...] * lax.rsqrt(var + eps)
    shift = beta_ref[...] - mean * scale
    o_ref[...] = jnp.maximum(y * scale + shift, 0.0).astype(o_ref.dtype)


def _matmul_tanh_kernel(w_ref, x_ref, o_ref):
    y = jnp.dot(w_ref[...], x_ref[...], preferred_element_type=jnp.float32)
    o_ref[...] = jnp.tanh(y).astype(o_ref.dtype)


def fused_matmul_bn_relu(w, xt, p01, gamma_rows, beta_rows, *, group, eps=1e-5):
    """w: (N,K) bf16, xt: (K,M) bf16 -> relu(BN(w@xt)) as (N,M) bf16 (single block)."""
    n, k = w.shape
    k2, m = xt.shape
    assert k == k2 and p01.shape == (n, n)
    # Whole layer is held resident in VMEM (largest BN layer here is < 1 MiB);
    # budget conservatively against v7x's 64 MiB physical / default scoped limit.
    vmem_bytes = 2 * (n * k + k * m + n * m) + 4 * (3 * n * m + n * n + 2 * n)
    assert vmem_bytes < 16 * 2 ** 20, "BN-fused single-block layer does not fit VMEM"
    kern = functools.partial(_matmul_bn_relu_kernel,
                             inv_count=1.0 / float(group * m), eps=float(eps))
    return pl.pallas_call(
        kern,
        out_shape=jax.ShapeDtypeStruct((n, m), jnp.bfloat16),
        grid_spec=pltpu.PrefetchScalarGridSpec(
            num_scalar_prefetch=0,
            grid=(1,),
            in_specs=[pl.BlockSpec((n, k), lambda i: (0, 0)),
                      pl.BlockSpec((k, m), lambda i: (0, 0)),
                      pl.BlockSpec((n, n), lambda i: (0, 0)),
                      pl.BlockSpec((n, 1), lambda i: (0, 0)),
                      pl.BlockSpec((n, 1), lambda i: (0, 0))],
            out_specs=pl.BlockSpec((n, m), lambda i: (0, 0)),
        ),
    )(w, xt, p01, gamma_rows, beta_rows)


def _pick_lane_tile(m):
    # Largest 128-multiple that divides M while keeping >= 2 grid steps (v7x: 2 TCs).
    for t in (2048, 1024, 512, 256, 128):
        if m % t == 0 and m // t >= 2:
            return t
    return m


def matmul_tanh(w, xt):
    """w: (N,K) bf16, xt: (K,M) bf16 -> tanh(w@xt) as (N,M) f32, tiled over lanes."""
    n, k = w.shape
    _, m = xt.shape
    tm = _pick_lane_tile(m)
    return pl.pallas_call(
        _matmul_tanh_kernel,
        out_shape=jax.ShapeDtypeStruct((n, m), jnp.float32),
        grid_spec=pltpu.PrefetchScalarGridSpec(
            num_scalar_prefetch=0,
            grid=(m // tm,),
            in_specs=[pl.BlockSpec((n, k), lambda j: (0, 0)),   # weight stays resident
                      pl.BlockSpec((k, tm), lambda j: (0, j))],
            out_specs=pl.BlockSpec((n, tm), lambda j: (0, j)),
        ),
        compiler_params=pltpu.CompilerParams(
            dimension_semantics=("parallel",)),
    )(w, xt)


# -----------------------------------------------------------------------------
# ConvTranspose2d lowering glue (XLA): weights + im2col in (C, B, H, W) layout
# -----------------------------------------------------------------------------
# Phase map for ConvTranspose(k=4, s=2, p=1):  ky = ry - 2*dy + 3  (index 4 = zero slot)
_KMAP = np.array([[3, 1, 4], [4, 2, 0]], dtype=np.int32)       # [ry, dy] / [rx, dx]


def _phase_weight(w):
    """(Cin,Cout,4,4) ConvT weight -> (4*Cout, 9*Cin); rows (co,ry,rx), cols (dy,dx,ci)."""
    cin, cout = w.shape[0], w.shape[1]
    wp = jnp.pad(w, ((0, 0), (0, 0), (0, 1), (0, 1)))          # index 4 picks zeros
    t = wp[:, :, _KMAP[:, :, None, None], _KMAP[None, None, :, :]]  # (ci,co,ry,dy,rx,dx)
    t = jnp.transpose(t, (1, 2, 4, 3, 5, 0))                   # (co,ry,rx,dy,dx,ci)
    return t.reshape(4 * cout, 9 * cin)


def _full_weight(w):
    """(Cin,Cout,4,4) -> (Cout, 16*Cin) spatially-flipped conv weight, cols (kh,kw,ci)."""
    cin, cout = w.shape[0], w.shape[1]
    return jnp.transpose(w[:, :, ::-1, ::-1], (1, 2, 3, 0)).reshape(cout, 16 * cin)


def _im2col_t(x, ksize, pad):
    """x: (C,B,H,W) -> patches^T (ksize*ksize*C, B*OH*OW), lane order (b, oh, ow)."""
    c, b, h, w = x.shape
    xp = jnp.pad(x, ((0, 0), (0, 0), (pad, pad), (pad, pad)))
    oh = h + 2 * pad - ksize + 1
    ow = w + 2 * pad - ksize + 1
    cols = [xp[:, :, i:i + oh, j:j + ow] for i in range(ksize) for j in range(ksize)]
    return jnp.stack(cols, axis=0).reshape(ksize * ksize * c, b * oh * ow), oh, ow


def _group_matrix(cout, g):
    ch = np.arange(g * cout) // g
    return jnp.asarray((ch[:, None] == ch[None, :]).astype(np.float32))


def conv_t1_bn_relu(x, w, gamma, beta):
    """ConvTranspose2d(4,1,0) + BN + ReLU.  x: (Cin,B,H,W) -> (Cout,B,H+3,W+3) bf16."""
    b, cout = x.shape[1], w.shape[1]
    xt, oh, ow = _im2col_t(x.astype(jnp.bfloat16), 4, 3)
    wmat = _full_weight(w).astype(jnp.bfloat16)
    y = fused_matmul_bn_relu(wmat, xt, _group_matrix(cout, 1),
                             gamma.reshape(cout, 1), beta.reshape(cout, 1), group=1)
    return y.reshape(cout, b, oh, ow)


def conv_t2_bn_relu(x, w, gamma, beta):
    """ConvTranspose2d(4,2,1) + BN + ReLU via 2x2 phase decomposition.
    x: (Cin,B,H,W) -> (Cout,B,2H,2W) bf16."""
    _, b, h, wd = x.shape
    cout = w.shape[1]
    xt, _, _ = _im2col_t(x.astype(jnp.bfloat16), 3, 1)          # (9*Cin, B*H*W)
    w3 = _phase_weight(w).astype(jnp.bfloat16)                  # (4*Cout, 9*Cin)
    gamma_rows = jnp.repeat(gamma, 4).reshape(4 * cout, 1)
    beta_rows = jnp.repeat(beta, 4).reshape(4 * cout, 1)
    y = fused_matmul_bn_relu(w3, xt, _group_matrix(cout, 4),
                             gamma_rows, beta_rows, group=4)     # (4*Cout, B*H*W)
    y = y.reshape(cout, 2, 2, b, h, wd)
    return jnp.transpose(y, (0, 3, 4, 1, 5, 2)).reshape(cout, b, 2 * h, 2 * wd)


def conv_t2_tanh(x, w):
    """ConvTranspose2d(4,2,1) + Tanh.  x: (Cin,B,H,W) -> (Cout,B,2H,2W) f32."""
    _, b, h, wd = x.shape
    cout = w.shape[1]
    xt, _, _ = _im2col_t(x.astype(jnp.bfloat16), 3, 1)
    w3 = _phase_weight(w).astype(jnp.bfloat16)
    y = matmul_tanh(w3, xt)                                      # (4*Cout, B*H*W)
    y = y.reshape(cout, 2, 2, b, h, wd)
    return jnp.transpose(y, (0, 3, 4, 1, 5, 2)).reshape(cout, b, 2 * h, 2 * wd)


# -----------------------------------------------------------------------------
# Generator
# -----------------------------------------------------------------------------
def init_generator_params(key, nz, label_dim, ngf, nc):
    ks = jax.random.split(key, 13)

    def conv_w(k_, cin, cout):
        return (0.02 * jax.random.normal(k_, (cin, cout, 4, 4))).astype(jnp.float32)

    def bn_gb(k_, c):
        g = (1.0 + 0.02 * jax.random.normal(k_, (c,))).astype(jnp.float32)
        return g, jnp.zeros((c,), jnp.float32)

    p = {}
    p["noise_w"] = conv_w(ks[0], nz, ngf * 2)
    p["noise_g"], p["noise_b"] = bn_gb(ks[1], ngf * 2)
    p["label_w"] = conv_w(ks[2], label_dim, ngf * 2)
    p["label_g"], p["label_b"] = bn_gb(ks[3], ngf * 2)
    p["m1_w"] = conv_w(ks[4], ngf * 4, ngf * 2)
    p["m1_g"], p["m1_b"] = bn_gb(ks[5], ngf * 2)
    p["m2_w"] = conv_w(ks[6], ngf * 2, ngf)
    p["m2_g"], p["m2_b"] = bn_gb(ks[7], ngf)
    p["m3_w"] = conv_w(ks[8], ngf, ngf // 2)
    p["m3_g"], p["m3_b"] = bn_gb(ks[9], ngf // 2)
    p["m4_w"] = conv_w(ks[10], ngf // 2, ngf // 4)
    p["m4_g"], p["m4_b"] = bn_gb(ks[11], ngf // 4)
    p["m5_w"] = conv_w(ks[12], ngf // 4, nc)
    return p


def generator_forward(params, noise, labels):
    # NCHW inputs -> internal (C, B, H, W) layout (tiny transposes on 1x1 inputs).
    z = conv_t1_bn_relu(jnp.transpose(noise, (1, 0, 2, 3)),
                        params["noise_w"], params["noise_g"], params["noise_b"])
    l = conv_t1_bn_relu(jnp.transpose(labels, (1, 0, 2, 3)),
                        params["label_w"], params["label_g"], params["label_b"])
    x = jnp.concatenate([z, l], axis=0)                # channel concat
    x = conv_t2_bn_relu(x, params["m1_w"], params["m1_g"], params["m1_b"])
    x = conv_t2_bn_relu(x, params["m2_w"], params["m2_g"], params["m2_b"])
    x = conv_t2_bn_relu(x, params["m3_w"], params["m3_g"], params["m3_b"])
    x = conv_t2_bn_relu(x, params["m4_w"], params["m4_g"], params["m4_b"])
    x = conv_t2_tanh(x, params["m5_w"])
    return jnp.transpose(x, (1, 0, 2, 3))              # back to NCHW, f32


if __name__ == "__main__":
    # args: nz=8, label_dim=4, ngf=16, nc=3, batch=2
    NZ, LABEL_DIM, NGF, NC, B = 8, 4, 16, 3, 2

    key = jax.random.PRNGKey(0)
    kp, kn, kl = jax.random.split(key, 3)
    params = init_generator_params(kp, NZ, LABEL_DIM, NGF, NC)

    noise = jax.random.normal(kn, (B, NZ, 1, 1), dtype=jnp.float32)
    labels = jax.random.normal(kl, (B, LABEL_DIM, 1, 1), dtype=jnp.float32)

    out = jax.jit(generator_forward)(params, noise, labels)
    out = jax.block_until_ready(out)

    assert out.shape == (B, NC, 128, 128), out.shape
    assert bool(jnp.all(jnp.isfinite(out)))
    assert bool(jnp.all(jnp.abs(out) <= 1.0 + 1e-6))   # tanh output range
    print("KERNEL_OK")
</pallas_src>

<mosaic_0001>
module attributes {stable_mosaic.version = 11 : i64} {
  func.func @_matmul_bn_relu_kernel(%arg0: i32, %arg1: memref<32x64xbf16, #tpu.memory_space<vmem>>, %arg2: memref<64x32xbf16, #tpu.memory_space<vmem>>, %arg3: memref<32x32xf32, #tpu.memory_space<vmem>>, %arg4: memref<32x1xf32, #tpu.memory_space<vmem>>, %arg5: memref<32x1xf32, #tpu.memory_space<vmem>>, %arg6: memref<32x32xbf16, #tpu.memory_space<vmem>>) attributes {dimension_semantics = [#tpu.dimension_semantics<arbitrary>], iteration_bounds = array<i64: 1>, scalar_prefetch = 0 : i64, scratch_operands = 0 : i64, tpu.core_type = #tpu.core_type<tc>, window_params = [{pipeline_mode = #tpu.pipeline_mode<synchronous>, transform_indices = @transform_0, window_bounds = array<i64: 32, 64>}, {pipeline_mode = #tpu.pipeline_mode<synchronous>, transform_indices = @transform_1, window_bounds = array<i64: 64, 32>}, {pipeline_mode = #tpu.pipeline_mode<synchronous>, transform_indices = @transform_2, window_bounds = array<i64: 32, 32>}, {pipeline_mode = #tpu.pipeline_mode<synchronous>, transform_indices = @transform_3, window_bounds = array<i64: 32, 1>}, {pipeline_mode = #tpu.pipeline_mode<synchronous>, transform_indices = @transform_4, window_bounds = array<i64: 32, 1>}, {pipeline_mode = #tpu.pipeline_mode<synchronous>, transform_indices = @transform_5, window_bounds = array<i64: 32, 32>}]} {
    %c0 = arith.constant 0 : index
    %c0_0 = arith.constant 0 : index
    %0 = vector.load %arg1[%c0, %c0_0] : memref<32x64xbf16, #tpu.memory_space<vmem>>, vector<32x64xbf16>
    %c0_1 = arith.constant 0 : index
    %c0_2 = arith.constant 0 : index
    %1 = vector.load %arg2[%c0_1, %c0_2] : memref<64x32xbf16, #tpu.memory_space<vmem>>, vector<64x32xbf16>
    %cst = arith.constant dense<0.000000e+00> : vector<32x32xf32>
    %2 = tpu.matmul %0, %1, %cst {dimension_numbers = #tpu.dot_dimension_numbers<[1], [0], [0], [1], [0, 0, 1, 1], [], []>} : vector<32x64xbf16>, vector<64x32xbf16>, vector<32x32xf32> -> vector<32x32xf32>
    %c0_3 = arith.constant 0 : index
    %c0_4 = arith.constant 0 : index
    %3 = vector.load %arg3[%c0_3, %c0_4] : memref<32x32xf32, #tpu.memory_space<vmem>>, vector<32x32xf32>
    %cst_5 = arith.constant dense<0.000000e+00> : vector<32x32xf32>
    %4 = tpu.matmul %3, %2, %cst_5 {dimension_numbers = #tpu.dot_dimension_numbers<[1], [0], [0], [1], [0, 0, 1, 1], [], []>} : vector<32x32xf32>, vector<32x32xf32>, vector<32x32xf32> -> vector<32x32xf32>
    %c0_6 = arith.constant 0 : index
    %c0_7 = arith.constant 0 : index
    %5 = vector.load %arg3[%c0_6, %c0_7] : memref<32x32xf32, #tpu.memory_space<vmem>>, vector<32x32xf32>
    %6 = arith.mulf %2, %2 : vector<32x32xf32>
    %cst_8 = arith.constant dense<0.000000e+00> : vector<32x32xf32>
    %7 = tpu.matmul %5, %6, %cst_8 {dimension_numbers = #tpu.dot_dimension_numbers<[1], [0], [0], [1], [0, 0, 1, 1], [], []>} : vector<32x32xf32>, vector<32x32xf32>, vector<32x32xf32> -> vector<32x32xf32>
    %cst_9 = arith.constant dense<0.000000e+00> : vector<32xf32>
    %8 = vector.multi_reduction <add>, %4, %cst_9 [1] : vector<32x32xf32> to vector<32xf32>
    %9 = vector.shape_cast %8 : vector<32xf32> to vector<32x1xf32>
    %cst_10 = arith.constant 3.125000e-02 : f32
    %10 = vector.broadcast %cst_10 : f32 to vector<32x1xf32>
    %11 = arith.mulf %9, %10 : vector<32x1xf32>
    %cst_11 = arith.constant dense<0.000000e+00> : vector<32xf32>
    %12 = vector.multi_reduction <add>, %7, %cst_11 [1] : vector<32x32xf32> to vector<32xf32>
    %13 = vector.shape_cast %12 : vector<32xf32> to vector<32x1xf32>
    %cst_12 = arith.constant 3.125000e-02 : f32
    %14 = vector.broadcast %cst_12 : f32 to vector<32x1xf32>
    %15 = arith.mulf %13, %14 : vector<32x1xf32>
    %16 = arith.mulf %11, %11 : vector<32x1xf32>
    %17 = arith.subf %15, %16 : vector<32x1xf32>
    %c0_13 = arith.constant 0 : index
    %c0_14 = arith.constant 0 : index
    %18 = vector.load %arg4[%c0_13, %c0_14] : memref<32x1xf32, #tpu.memory_space<vmem>>, vector<32x1xf32>
    %cst_15 = arith.constant 9.99999974E-6 : f32
    %19 = vector.broadcast %cst_15 : f32 to vector<32x1xf32>
    %20 = arith.addf %17, %19 : vector<32x1xf32>
    %21 = math.rsqrt %20 : vector<32x1xf32>
    %22 = arith.mulf %18, %21 : vector<32x1xf32>
    %c0_16 = arith.constant 0 : index
    %c0_17 = arith.constant 0 : index
    %23 = vector.load %arg5[%c0_16, %c0_17] : memref<32x1xf32, #tpu.memory_space<vmem>>, vector<32x1xf32>
    %24 = arith.mulf %11, %22 : vector<32x1xf32>
    %25 = arith.subf %23, %24 : vector<32x1xf32>
    %26 = vector.broadcast %22 : vector<32x1xf32> to vector<32x32xf32>
    %27 = arith.mulf %2, %26 : vector<32x32xf32>
    %28 = vector.broadcast %25 : vector<32x1xf32> to vector<32x32xf32>
    %29 = arith.addf %27, %28 : vector<32x32xf32>
    %cst_18 = arith.constant 0.000000e+00 : f32
    %30 = vector.broadcast %cst_18 : f32 to vector<32x32xf32>
    %31 = arith.maximumf %29, %30 : vector<32x32xf32>
    %32 = arith.truncf %31 : vector<32x32xf32> to vector<32x32xbf16>
    %c0_19 = arith.constant 0 : index
    %c0_20 = arith.constant 0 : index
    %33 = vector.load %arg6[%c0_19, %c0_20] : memref<32x32xbf16, #tpu.memory_space<vmem>>, vector<32x32xbf16>
    tpu.vector_store %arg6[%c0_19, %c0_20], %32 {strides = array<i32>} : memref<32x32xbf16, #tpu.memory_space<vmem>>, vector<32x32xbf16>,
    return
  }
  func.func @transform_0(%arg0: i32) -> (i32, i32) {
    %c0_i32 = arith.constant 0 : i32
    %c0_i32_0 = arith.constant 0 : i32
    %c0_i32_1 = arith.constant 0 : i32
    return %c0_i32, %c0_i32_0 : i32, i32
  }
  func.func @transform_1(%arg0: i32) -> (i32, i32) {
    %c0_i32 = arith.constant 0 : i32
    %c0_i32_0 = arith.constant 0 : i32
    %c0_i32_1 = arith.constant 0 : i32
    return %c0_i32, %c0_i32_0 : i32, i32
  }
  func.func @transform_2(%arg0: i32) -> (i32, i32) {
    %c0_i32 = arith.constant 0 : i32
    %c0_i32_0 = arith.constant 0 : i32
    %c0_i32_1 = arith.constant 0 : i32
    return %c0_i32, %c0_i32_0 : i32, i32
  }
  func.func @transform_3(%arg0: i32) -> (i32, i32) {
    %c0_i32 = arith.constant 0 : i32
    %c0_i32_0 = arith.constant 0 : i32
    %c0_i32_1 = arith.constant 0 : i32
    return %c0_i32, %c0_i32_0 : i32, i32
  }
  func.func @transform_4(%arg0: i32) -> (i32, i32) {
    %c0_i32 = arith.constant 0 : i32
    %c0_i32_0 = arith.constant 0 : i32
    %c0_i32_1 = arith.constant 0 : i32
    return %c0_i32, %c0_i32_0 : i32, i32
  }
  func.func @transform_5(%arg0: i32) -> (i32, i32) {
    %c0_i32 = arith.constant 0 : i32
    %c0_i32_0 = arith.constant 0 : i32
    %c0_i32_1 = arith.constant 0 : i32
    return %c0_i32, %c0_i32_0 : i32, i32
  }
}

module attributes {stable_mosaic.version = 11 : i64} {
  func.func @_matmul_bn_relu_kernel(%arg0: i32, %arg1: memref<32x128xbf16, #tpu.memory_space<vmem>>, %arg2: memref<128x32xbf16, #tpu.memory_space<vmem>>, %arg3: memref<32x32xf32, #tpu.memory_space<vmem>>, %arg4: memref<32x1xf32, #tpu.memory_space<vmem>>, %arg5: memref<32x1xf32, #tpu.memory_space<vmem>>, %arg6: memref<32x32xbf16, #tpu.memory_space<vmem>>) attributes {dimension_semantics = [#tpu.dimension_semantics<arbitrary>], iteration_bounds = array<i64: 1>, scalar_prefetch = 0 : i64, scratch_operands = 0 : i64, tpu.core_type = #tpu.core_type<tc>, window_params = [{pipeline_mode = #tpu.pipeline_mode<synchronous>, transform_indices = @transform_0, window_bounds = array<i64: 32, 128>}, {pipeline_mode = #tpu.pipeline_mode<synchronous>, transform_indices = @transform_1, window_bounds = array<i64: 128, 32>}, {pipeline_mode = #tpu.pipeline_mode<synchronous>, transform_indices = @transform_2, window_bounds = array<i64: 32, 32>}, {pipeline_mode = #tpu.pipeline_mode<synchronous>, transform_indices = @transform_3, window_bounds = array<i64: 32, 1>}, {pipeline_mode = #tpu.pipeline_mode<synchronous>, transform_indices = @transform_4, window_bounds = array<i64: 32, 1>}, {pipeline_mode = #tpu.pipeline_mode<synchronous>, transform_indices = @transform_5, window_bounds = array<i64: 32, 32>}]} {
    %c0 = arith.constant 0 : index
    %c0_0 = arith.constant 0 : index
    %0 = vector.load %arg1[%c0, %c0_0] : memref<32x128xbf16, #tpu.memory_space<vmem>>, vector<32x128xbf16>
    %c0_1 = arith.constant 0 : index
    %c0_2 = arith.constant 0 : index
    %1 = vector.load %arg2[%c0_1, %c0_2] : memref<128x32xbf16, #tpu.memory_space<vmem>>, vector<128x32xbf16>
    %cst = arith.constant dense<0.000000e+00> : vector<32x32xf32>
    %2 = tpu.matmul %0, %1, %cst {dimension_numbers = #tpu.dot_dimension_numbers<[1], [0], [0], [1], [0, 0, 1, 1], [], []>} : vector<32x128xbf16>, vector<128x32xbf16>, vector<32x32xf32> -> vector<32x32xf32>
    %c0_3 = arith.constant 0 : index
    %c0_4 = arith.constant 0 : index
    %3 = vector.load %arg3[%c0_3, %c0_4] : memref<32x32xf32, #tpu.memory_space<vmem>>, vector<32x32xf32>
    %cst_5 = arith.constant dense<0.000000e+00> : vector<32x32xf32>
    %4 = tpu.matmul %3, %2, %cst_5 {dimension_numbers = #tpu.dot_dimension_numbers<[1], [0], [0], [1], [0, 0, 1, 1], [], []>} : vector<32x32xf32>, vector<32x32xf32>, vector<32x32xf32> -> vector<32x32xf32>
    %c0_6 = arith.constant 0 : index
    %c0_7 = arith.constant 0 : index
    %5 = vector.load %arg3[%c0_6, %c0_7] : memref<32x32xf32, #tpu.memory_space<vmem>>, vector<32x32xf32>
    %6 = arith.mulf %2, %2 : vector<32x32xf32>
    %cst_8 = arith.constant dense<0.000000e+00> : vector<32x32xf32>
    %7 = tpu.matmul %5, %6, %cst_8 {dimension_numbers = #tpu.dot_dimension_numbers<[1], [0], [0], [1], [0, 0, 1, 1], [], []>} : vector<32x32xf32>, vector<32x32xf32>, vector<32x32xf32> -> vector<32x32xf32>
    %cst_9 = arith.constant dense<0.000000e+00> : vector<32xf32>
    %8 = vector.multi_reduction <add>, %4, %cst_9 [1] : vector<32x32xf32> to vector<32xf32>
    %9 = vector.shape_cast %8 : vector<32xf32> to vector<32x1xf32>
    %cst_10 = arith.constant 3.125000e-02 : f32
    %10 = vector.broadcast %cst_10 : f32 to vector<32x1xf32>
    %11 = arith.mulf %9, %10 : vector<32x1xf32>
    %cst_11 = arith.constant dense<0.000000e+00> : vector<32xf32>
    %12 = vector.multi_reduction <add>, %7, %cst_11 [1] : vector<32x32xf32> to vector<32xf32>
    %13 = vector.shape_cast %12 : vector<32xf32> to vector<32x1xf32>
    %cst_12 = arith.constant 3.125000e-02 : f32
    %14 = vector.broadcast %cst_12 : f32 to vector<32x1xf32>
    %15 = arith.mulf %13, %14 : vector<32x1xf32>
    %16 = arith.mulf %11, %11 : vector<32x1xf32>
    %17 = arith.subf %15, %16 : vector<32x1xf32>
    %c0_13 = arith.constant 0 : index
    %c0_14 = arith.constant 0 : index
    %18 = vector.load %arg4[%c0_13, %c0_14] : memref<32x1xf32, #tpu.memory_space<vmem>>, vector<32x1xf32>
    %cst_15 = arith.constant 9.99999974E-6 : f32
    %19 = vector.broadcast %cst_15 : f32 to vector<32x1xf32>
    %20 = arith.addf %17, %19 : vector<32x1xf32>
    %21 = math.rsqrt %20 : vector<32x1xf32>
    %22 = arith.mulf %18, %21 : vector<32x1xf32>
    %c0_16 = arith.constant 0 : index
    %c0_17 = arith.constant 0 : index
    %23 = vector.load %arg5[%c0_16, %c0_17] : memref<32x1xf32, #tpu.memory_space<vmem>>, vector<32x1xf32>
    %24 = arith.mulf %11, %22 : vector<32x1xf32>
    %25 = arith.subf %23, %24 : vector<32x1xf32>
    %26 = vector.broadcast %22 : vector<32x1xf32> to vector<32x32xf32>
    %27 = arith.mulf %2, %26 : vector<32x32xf32>
    %28 = vector.broadcast %25 : vector<32x1xf32> to vector<32x32xf32>
    %29 = arith.addf %27, %28 : vector<32x32xf32>
    %cst_18 = arith.constant 0.000000e+00 : f32
    %30 = vector.broadcast %cst_18 : f32 to vector<32x32xf32>
    %31 = arith.maximumf %29, %30 : vector<32x32xf32>
    %32 = arith.truncf %31 : vector<32x32xf32> to vector<32x32xbf16>
    %c0_19 = arith.constant 0 : index
    %c0_20 = arith.constant 0 : index
    %33 = vector.load %arg6[%c0_19, %c0_20] : memref<32x32xbf16, #tpu.memory_space<vmem>>, vector<32x32xbf16>
    tpu.vector_store %arg6[%c0_19, %c0_20], %32 {strides = array<i32>} : memref<32x32xbf16, #tpu.memory_space<vmem>>, vector<32x32xbf16>,
    return
  }
  func.func @transform_0(%arg0: i32) -> (i32, i32) {
    %c0_i32 = arith.constant 0 : i32
    %c0_i32_0 = arith.constant 0 : i32
    %c0_i32_1 = arith.constant 0 : i32
    return %c0_i32, %c0_i32_0 : i32, i32
  }
  func.func @transform_1(%arg0: i32) -> (i32, i32) {
    %c0_i32 = arith.constant 0 : i32
    %c0_i32_0 = arith.constant 0 : i32
    %c0_i32_1 = arith.constant 0 : i32
    return %c0_i32, %c0_i32_0 : i32, i32
  }
  func.func @transform_2(%arg0: i32) -> (i32, i32) {
    %c0_i32 = arith.constant 0 : i32
    %c0_i32_0 = arith.constant 0 : i32
    %c0_i32_1 = arith.constant 0 : i32
    return %c0_i32, %c0_i32_0 : i32, i32
  }
  func.func @transform_3(%arg0: i32) -> (i32, i32) {
    %c0_i32 = arith.constant 0 : i32
    %c0_i32_0 = arith.constant 0 : i32
    %c0_i32_1 = arith.constant 0 : i32
    return %c0_i32, %c0_i32_0 : i32, i32
  }
  func.func @transform_4(%arg0: i32) -> (i32, i32) {
    %c0_i32 = arith.constant 0 : i32
    %c0_i32_0 = arith.constant 0 : i32
    %c0_i32_1 = arith.constant 0 : i32
    return %c0_i32, %c0_i32_0 : i32, i32
  }
  func.func @transform_5(%arg0: i32) -> (i32, i32) {
    %c0_i32 = arith.constant 0 : i32
    %c0_i32_0 = arith.constant 0 : i32
    %c0_i32_1 = arith.constant 0 : i32
    return %c0_i32, %c0_i32_0 : i32, i32
  }
}

module attributes {stable_mosaic.version = 11 : i64} {
  func.func @_matmul_bn_relu_kernel(%arg0: i32, %arg1: memref<128x576xbf16, #tpu.memory_space<vmem>>, %arg2: memref<576x32xbf16, #tpu.memory_space<vmem>>, %arg3: memref<128x128xf32, #tpu.memory_space<vmem>>, %arg4: memref<128x1xf32, #tpu.memory_space<vmem>>, %arg5: memref<128x1xf32, #tpu.memory_space<vmem>>, %arg6: memref<128x32xbf16, #tpu.memory_space<vmem>>) attributes {dimension_semantics = [#tpu.dimension_semantics<arbitrary>], iteration_bounds = array<i64: 1>, scalar_prefetch = 0 : i64, scratch_operands = 0 : i64, tpu.core_type = #tpu.core_type<tc>, window_params = [{pipeline_mode = #tpu.pipeline_mode<synchronous>, transform_indices = @transform_0, window_bounds = array<i64: 128, 576>}, {pipeline_mode = #tpu.pipeline_mode<synchronous>, transform_indices = @transform_1, window_bounds = array<i64: 576, 32>}, {pipeline_mode = #tpu.pipeline_mode<synchronous>, transform_indices = @transform_2, window_bounds = array<i64: 128, 128>}, {pipeline_mode = #tpu.pipeline_mode<synchronous>, transform_indices = @transform_3, window_bounds = array<i64: 128, 1>}, {pipeline_mode = #tpu.pipeline_mode<synchronous>, transform_indices = @transform_4, window_bounds = array<i64: 128, 1>}, {pipeline_mode = #tpu.pipeline_mode<synchronous>, transform_indices = @transform_5, window_bounds = array<i64: 128, 32>}]} {
    %c0 = arith.constant 0 : index
    %c0_0 = arith.constant 0 : index
    %0 = vector.load %arg1[%c0, %c0_0] : memref<128x576xbf16, #tpu.memory_space<vmem>>, vector<128x576xbf16>
    %c0_1 = arith.constant 0 : index
    %c0_2 = arith.constant 0 : index
    %1 = vector.load %arg2[%c0_1, %c0_2] : memref<576x32xbf16, #tpu.memory_space<vmem>>, vector<576x32xbf16>
    %cst = arith.constant dense<0.000000e+00> : vector<128x32xf32>
    %2 = tpu.matmul %0, %1, %cst {dimension_numbers = #tpu.dot_dimension_numbers<[1], [0], [0], [1], [0, 0, 1, 1], [], []>} : vector<128x576xbf16>, vector<576x32xbf16>, vector<128x32xf32> -> vector<128x32xf32>
    %c0_3 = arith.constant 0 : index
    %c0_4 = arith.constant 0 : index
    %3 = vector.load %arg3[%c0_3, %c0_4] : memref<128x128xf32, #tpu.memory_space<vmem>>, vector<128x128xf32>
    %cst_5 = arith.constant dense<0.000000e+00> : vector<128x32xf32>
    %4 = tpu.matmul %3, %2, %cst_5 {dimension_numbers = #tpu.dot_dimension_numbers<[1], [0], [0], [1], [0, 0, 1, 1], [], []>} : vector<128x128xf32>, vector<128x32xf32>, vector<128x32xf32> -> vector<128x32xf32>
    %c0_6 = arith.constant 0 : index
    %c0_7 = arith.constant 0 : index
    %5 = vector.load %arg3[%c0_6, %c0_7] : memref<128x128xf32, #tpu.memory_space<vmem>>, vector<128x128xf32>
    %6 = arith.mulf %2, %2 : vector<128x32xf32>
    %cst_8 = arith.constant dense<0.000000e+00> : vector<128x32xf32>
    %7 = tpu.matmul %5, %6, %cst_8 {dimension_numbers = #tpu.dot_dimension_numbers<[1], [0], [0], [1], [0, 0, 1, 1], [], []>} : vector<128x128xf32>, vector<128x32xf32>, vector<128x32xf32> -> vector<128x32xf32>
    %cst_9 = arith.constant dense<0.000000e+00> : vector<128xf32>
    %8 = vector.multi_reduction <add>, %4, %cst_9 [1] : vector<128x32xf32> to vector<128xf32>
    %9 = vector.shape_cast %8 : vector<128xf32> to vector<128x1xf32>
    %cst_10 = arith.constant 7.812500e-03 : f32
    %10 = vector.broadcast %cst_10 : f32 to vector<128x1xf32>
    %11 = arith.mulf %9, %10 : vector<128x1xf32>
    %cst_11 = arith.constant dense<0.000000e+00> : vector<128xf32>
    %12 = vector.multi_reduction <add>, %7, %cst_11 [1] : vector<128x32xf32> to vector<128xf32>
    %13 = vector.shape_cast %12 : vector<128xf32> to vector<128x1xf32>
    %cst_12 = arith.constant 7.812500e-03 : f32
    %14 = vector.broadcast %cst_12 : f32 to vector<128x1xf32>
    %15 = arith.mulf %13, %14 : vector<128x1xf32>
    %16 = arith.mulf %11, %11 : vector<128x1xf32>
    %17 = arith.subf %15, %16 : vector<128x1xf32>
    %c0_13 = arith.constant 0 : index
    %c0_14 = arith.constant 0 : index
    %18 = vector.load %arg4[%c0_13, %c0_14] : memref<128x1xf32, #tpu.memory_space<vmem>>, vector<128x1xf32>
    %cst_15 = arith.constant 9.99999974E-6 : f32
    %19 = vector.broadcast %cst_15 : f32 to vector<128x1xf32>
    %20 = arith.addf %17, %19 : vector<128x1xf32>
    %21 = math.rsqrt %20 : vector<128x1xf32>
    %22 = arith.mulf %18, %21 : vector<128x1xf32>
    %c0_16 = arith.constant 0 : index
    %c0_17 = arith.constant 0 : index
    %23 = vector.load %arg5[%c0_16, %c0_17] : memref<128x1xf32, #tpu.memory_space<vmem>>, vector<128x1xf32>
    %24 = arith.mulf %11, %22 : vector<128x1xf32>
    %25 = arith.subf %23, %24 : vector<128x1xf32>
    %26 = vector.broadcast %22 : vector<128x1xf32> to vector<128x32xf32>
    %27 = arith.mulf %2, %26 : vector<128x32xf32>
    %28 = vector.broadcast %25 : vector<128x1xf32> to vector<128x32xf32>
    %29 = arith.addf %27, %28 : vector<128x32xf32>
    %cst_18 = arith.constant 0.000000e+00 : f32
    %30 = vector.broadcast %cst_18 : f32 to vector<128x32xf32>
    %31 = arith.maximumf %29, %30 : vector<128x32xf32>
    %32 = arith.truncf %31 : vector<128x32xf32> to vector<128x32xbf16>
    %c0_19 = arith.constant 0 : index
    %c0_20 = arith.constant 0 : index
    %33 = vector.load %arg6[%c0_19, %c0_20] : memref<128x32xbf16, #tpu.memory_space<vmem>>, vector<128x32xbf16>
    tpu.vector_store %arg6[%c0_19, %c0_20], %32 {strides = array<i32>} : memref<128x32xbf16, #tpu.memory_space<vmem>>, vector<128x32xbf16>,
    return
  }
  func.func @transform_0(%arg0: i32) -> (i32, i32) {
    %c0_i32 = arith.constant 0 : i32
    %c0_i32_0 = arith.constant 0 : i32
    %c0_i32_1 = arith.constant 0 : i32
    return %c0_i32, %c0_i32_0 : i32, i32
  }
  func.func @transform_1(%arg0: i32) -> (i32, i32) {
    %c0_i32 = arith.constant 0 : i32
    %c0_i32_0 = arith.constant 0 : i32
    %c0_i32_1 = arith.constant 0 : i32
    return %c0_i32, %c0_i32_0 : i32, i32
  }
  func.func @transform_2(%arg0: i32) -> (i32, i32) {
    %c0_i32 = arith.constant 0 : i32
    %c0_i32_0 = arith.constant 0 : i32
    %c0_i32_1 = arith.constant 0 : i32
    return %c0_i32, %c0_i32_0 : i32, i32
  }
  func.func @transform_3(%arg0: i32) -> (i32, i32) {
    %c0_i32 = arith.constant 0 : i32
    %c0_i32_0 = arith.constant 0 : i32
    %c0_i32_1 = arith.constant 0 : i32
    return %c0_i32, %c0_i32_0 : i32, i32
  }
  func.func @transform_4(%arg0: i32) -> (i32, i32) {
    %c0_i32 = arith.constant 0 : i32
    %c0_i32_0 = arith.constant 0 : i32
    %c0_i32_1 = arith.constant 0 : i32
    return %c0_i32, %c0_i32_0 : i32, i32
  }
  func.func @transform_5(%arg0: i32) -> (i32, i32) {
    %c0_i32 = arith.constant 0 : i32
    %c0_i32_0 = arith.constant 0 : i32
    %c0_i32_1 = arith.constant 0 : i32
    return %c0_i32, %c0_i32_0 : i32, i32
  }
}

module attributes {stable_mosaic.version = 11 : i64} {
  func.func @_matmul_bn_relu_kernel(%arg0: i32, %arg1: memref<64x288xbf16, #tpu.memory_space<vmem>>, %arg2: memref<288x128xbf16, #tpu.memory_space<vmem>>, %arg3: memref<64x64xf32, #tpu.memory_space<vmem>>, %arg4: memref<64x1xf32, #tpu.memory_space<vmem>>, %arg5: memref<64x1xf32, #tpu.memory_space<vmem>>, %arg6: memref<64x128xbf16, #tpu.memory_space<vmem>>) attributes {dimension_semantics = [#tpu.dimension_semantics<arbitrary>], iteration_bounds = array<i64: 1>, scalar_prefetch = 0 : i64, scratch_operands = 0 : i64, tpu.core_type = #tpu.core_type<tc>, window_params = [{pipeline_mode = #tpu.pipeline_mode<synchronous>, transform_indices = @transform_0, window_bounds = array<i64: 64, 288>}, {pipeline_mode = #tpu.pipeline_mode<synchronous>, transform_indices = @transform_1, window_bounds = array<i64: 288, 128>}, {pipeline_mode = #tpu.pipeline_mode<synchronous>, transform_indices = @transform_2, window_bounds = array<i64: 64, 64>}, {pipeline_mode = #tpu.pipeline_mode<synchronous>, transform_indices = @transform_3, window_bounds = array<i64: 64, 1>}, {pipeline_mode = #tpu.pipeline_mode<synchronous>, transform_indices = @transform_4, window_bounds = array<i64: 64, 1>}, {pipeline_mode = #tpu.pipeline_mode<synchronous>, transform_indices = @transform_5, window_bounds = array<i64: 64, 128>}]} {
    %c0 = arith.constant 0 : index
    %c0_0 = arith.constant 0 : index
    %0 = vector.load %arg1[%c0, %c0_0] : memref<64x288xbf16, #tpu.memory_space<vmem>>, vector<64x288xbf16>
    %c0_1 = arith.constant 0 : index
    %c0_2 = arith.constant 0 : index
    %1 = vector.load %arg2[%c0_1, %c0_2] : memref<288x128xbf16, #tpu.memory_space<vmem>>, vector<288x128xbf16>
    %cst = arith.constant dense<0.000000e+00> : vector<64x128xf32>
    %2 = tpu.matmul %0, %1, %cst {dimension_numbers = #tpu.dot_dimension_numbers<[1], [0], [0], [1], [0, 0, 1, 1], [], []>} : vector<64x288xbf16>, vector<288x128xbf16>, vector<64x128xf32> -> vector<64x128xf32>
    %c0_3 = arith.constant 0 : index
    %c0_4 = arith.constant 0 : index
    %3 = vector.load %arg3[%c0_3, %c0_4] : memref<64x64xf32, #tpu.memory_space<vmem>>, vector<64x64xf32>
    %cst_5 = arith.constant dense<0.000000e+00> : vector<64x128xf32>
    %4 = tpu.matmul %3, %2, %cst_5 {dimension_numbers = #tpu.dot_dimension_numbers<[1], [0], [0], [1], [0, 0, 1, 1], [], []>} : vector<64x64xf32>, vector<64x128xf32>, vector<64x128xf32> -> vector<64x128xf32>
    %c0_6 = arith.constant 0 : index
    %c0_7 = arith.constant 0 : index
    %5 = vector.load %arg3[%c0_6, %c0_7] : memref<64x64xf32, #tpu.memory_space<vmem>>, vector<64x64xf32>
    %6 = arith.mulf %2, %2 : vector<64x128xf32>
    %cst_8 = arith.constant dense<0.000000e+00> : vector<64x128xf32>
    %7 = tpu.matmul %5, %6, %cst_8 {dimension_numbers = #tpu.dot_dimension_numbers<[1], [0], [0], [1], [0, 0, 1, 1], [], []>} : vector<64x64xf32>, vector<64x128xf32>, vector<64x128xf32> -> vector<64x128xf32>
    %cst_9 = arith.constant dense<0.000000e+00> : vector<64xf32>
    %8 = vector.multi_reduction <add>, %4, %cst_9 [1] : vector<64x128xf32> to vector<64xf32>
    %9 = vector.shape_cast %8 : vector<64xf32> to vector<64x1xf32>
    %cst_10 = arith.constant 0.001953125 : f32
    %10 = vector.broadcast %cst_10 : f32 to vector<64x1xf32>
    %11 = arith.mulf %9, %10 : vector<64x1xf32>
    %cst_11 = arith.constant dense<0.000000e+00> : vector<64xf32>
    %12 = vector.multi_reduction <add>, %7, %cst_11 [1] : vector<64x128xf32> to vector<64xf32>
    %13 = vector.shape_cast %12 : vector<64xf32> to vector<64x1xf32>
    %cst_12 = arith.constant 0.001953125 : f32
    %14 = vector.broadcast %cst_12 : f32 to vector<64x1xf32>
    %15 = arith.mulf %13, %14 : vector<64x1xf32>
    %16 = arith.mulf %11, %11 : vector<64x1xf32>
    %17 = arith.subf %15, %16 : vector<64x1xf32>
    %c0_13 = arith.constant 0 : index
    %c0_14 = arith.constant 0 : index
    %18 = vector.load %arg4[%c0_13, %c0_14] : memref<64x1xf32, #tpu.memory_space<vmem>>, vector<64x1xf32>
    %cst_15 = arith.constant 9.99999974E-6 : f32
    %19 = vector.broadcast %cst_15 : f32 to vector<64x1xf32>
    %20 = arith.addf %17, %19 : vector<64x1xf32>
    %21 = math.rsqrt %20 : vector<64x1xf32>
    %22 = arith.mulf %18, %21 : vector<64x1xf32>
    %c0_16 = arith.constant 0 : index
    %c0_17 = arith.constant 0 : index
    %23 = vector.load %arg5[%c0_16, %c0_17] : memref<64x1xf32, #tpu.memory_space<vmem>>, vector<64x1xf32>
    %24 = arith.mulf %11, %22 : vector<64x1xf32>
    %25 = arith.subf %23, %24 : vector<64x1xf32>
    %26 = vector.broadcast %22 : vector<64x1xf32> to vector<64x128xf32>
    %27 = arith.mulf %2, %26 : vector<64x128xf32>
    %28 = vector.broadcast %25 : vector<64x1xf32> to vector<64x128xf32>
    %29 = arith.addf %27, %28 : vector<64x128xf32>
    %cst_18 = arith.constant 0.000000e+00 : f32
    %30 = vector.broadcast %cst_18 : f32 to vector<64x128xf32>
    %31 = arith.maximumf %29, %30 : vector<64x128xf32>
    %32 = arith.truncf %31 : vector<64x128xf32> to vector<64x128xbf16>
    %c0_19 = arith.constant 0 : index
    %c0_20 = arith.constant 0 : index
    %33 = vector.load %arg6[%c0_19, %c0_20] : memref<64x128xbf16, #tpu.memory_space<vmem>>, vector<64x128xbf16>
    tpu.vector_store %arg6[%c0_19, %c0_20], %32 {strides = array<i32>} : memref<64x128xbf16, #tpu.memory_space<vmem>>, vector<64x128xbf16>,
    return
  }
  func.func @transform_0(%arg0: i32) -> (i32, i32) {
    %c0_i32 = arith.constant 0 : i32
    %c0_i32_0 = arith.constant 0 : i32
    %c0_i32_1 = arith.constant 0 : i32
    return %c0_i32, %c0_i32_0 : i32, i32
  }
  func.func @transform_1(%arg0: i32) -> (i32, i32) {
    %c0_i32 = arith.constant 0 : i32
    %c0_i32_0 = arith.constant 0 : i32
    %c0_i32_1 = arith.constant 0 : i32
    return %c0_i32, %c0_i32_0 : i32, i32
  }
  func.func @transform_2(%arg0: i32) -> (i32, i32) {
    %c0_i32 = arith.constant 0 : i32
    %c0_i32_0 = arith.constant 0 : i32
    %c0_i32_1 = arith.constant 0 : i32
    return %c0_i32, %c0_i32_0 : i32, i32
  }
  func.func @transform_3(%arg0: i32) -> (i32, i32) {
    %c0_i32 = arith.constant 0 : i32
    %c0_i32_0 = arith.constant 0 : i32
    %c0_i32_1 = arith.constant 0 : i32
    return %c0_i32, %c0_i32_0 : i32, i32
  }
  func.func @transform_4(%arg0: i32) -> (i32, i32) {
    %c0_i32 = arith.constant 0 : i32
    %c0_i32_0 = arith.constant 0 : i32
    %c0_i32_1 = arith.constant 0 : i32
    return %c0_i32, %c0_i32_0 : i32, i32
  }
  func.func @transform_5(%arg0: i32) -> (i32, i32) {
    %c0_i32 = arith.constant 0 : i32
    %c0_i32_0 = arith.constant 0 : i32
    %c0_i32_1 = arith.constant 0 : i32
    return %c0_i32, %c0_i32_0 : i32, i32
  }
}

module attributes {stable_mosaic.version = 11 : i64} {
  func.func @_matmul_bn_relu_kernel(%arg0: i32, %arg1: memref<32x144xbf16, #tpu.memory_space<vmem>>, %arg2: memref<144x512xbf16, #tpu.memory_space<vmem>>, %arg3: memref<32x32xf32, #tpu.memory_space<vmem>>, %arg4: memref<32x1xf32, #tpu.memory_space<vmem>>, %arg5: memref<32x1xf32, #tpu.memory_space<vmem>>, %arg6: memref<32x512xbf16, #tpu.memory_space<vmem>>) attributes {dimension_semantics = [#tpu.dimension_semantics<arbitrary>], iteration_bounds = array<i64: 1>, scalar_prefetch = 0 : i64, scratch_operands = 0 : i64, tpu.core_type = #tpu.core_type<tc>, window_params = [{pipeline_mode = #tpu.pipeline_mode<synchronous>, transform_indices = @transform_0, window_bounds = array<i64: 32, 144>}, {pipeline_mode = #tpu.pipeline_mode<synchronous>, transform_indices = @transform_1, window_bounds = array<i64: 144, 512>}, {pipeline_mode = #tpu.pipeline_mode<synchronous>, transform_indices = @transform_2, window_bounds = array<i64: 32, 32>}, {pipeline_mode = #tpu.pipeline_mode<synchronous>, transform_indices = @transform_3, window_bounds = array<i64: 32, 1>}, {pipeline_mode = #tpu.pipeline_mode<synchronous>, transform_indices = @transform_4, window_bounds = array<i64: 32, 1>}, {pipeline_mode = #tpu.pipeline_mode<synchronous>, transform_indices = @transform_5, window_bounds = array<i64: 32, 512>}]} {
    %c0 = arith.constant 0 : index
    %c0_0 = arith.constant 0 : index
    %0 = vector.load %arg1[%c0, %c0_0] : memref<32x144xbf16, #tpu.memory_space<vmem>>, vector<32x144xbf16>
    %c0_1 = arith.constant 0 : index
    %c0_2 = arith.constant 0 : index
    %1 = vector.load %arg2[%c0_1, %c0_2] : memref<144x512xbf16, #tpu.memory_space<vmem>>, vector<144x512xbf16>
    %cst = arith.constant dense<0.000000e+00> : vector<32x512xf32>
    %2 = tpu.matmul %0, %1, %cst {dimension_numbers = #tpu.dot_dimension_numbers<[1], [0], [0], [1], [0, 0, 1, 1], [], []>} : vector<32x144xbf16>, vector<144x512xbf16>, vector<32x512xf32> -> vector<32x512xf32>
    %c0_3 = arith.constant 0 : index
    %c0_4 = arith.constant 0 : index
    %3 = vector.load %arg3[%c0_3, %c0_4] : memref<32x32xf32, #tpu.memory_space<vmem>>, vector<32x32xf32>
    %cst_5 = arith.constant dense<0.000000e+00> : vector<32x512xf32>
    %4 = tpu.matmul %3, %2, %cst_5 {dimension_numbers = #tpu.dot_dimension_numbers<[1], [0], [0], [1], [0, 0, 1, 1], [], []>} : vector<32x32xf32>, vector<32x512xf32>, vector<32x512xf32> -> vector<32x512xf32>
    %c0_6 = arith.constant 0 : index
    %c0_7 = arith.constant 0 : index
    %5 = vector.load %arg3[%c0_6, %c0_7] : memref<32x32xf32, #tpu.memory_space<vmem>>, vector<32x32xf32>
    %6 = arith.mulf %2, %2 : vector<32x512xf32>
    %cst_8 = arith.constant dense<0.000000e+00> : vector<32x512xf32>
    %7 = tpu.matmul %5, %6, %cst_8 {dimension_numbers = #tpu.dot_dimension_numbers<[1], [0], [0], [1], [0, 0, 1, 1], [], []>} : vector<32x32xf32>, vector<32x512xf32>, vector<32x512xf32> -> vector<32x512xf32>
    %cst_9 = arith.constant dense<0.000000e+00> : vector<32xf32>
    %8 = vector.multi_reduction <add>, %4, %cst_9 [1] : vector<32x512xf32> to vector<32xf32>
    %9 = vector.shape_cast %8 : vector<32xf32> to vector<32x1xf32>
    %cst_10 = arith.constant 4.8828125E-4 : f32
    %10 = vector.broadcast %cst_10 : f32 to vector<32x1xf32>
    %11 = arith.mulf %9, %10 : vector<32x1xf32>
    %cst_11 = arith.constant dense<0.000000e+00> : vector<32xf32>
    %12 = vector.multi_reduction <add>, %7, %cst_11 [1] : vector<32x512xf32> to vector<32xf32>
    %13 = vector.shape_cast %12 : vector<32xf32> to vector<32x1xf32>
    %cst_12 = arith.constant 4.8828125E-4 : f32
    %14 = vector.broadcast %cst_12 : f32 to vector<32x1xf32>
    %15 = arith.mulf %13, %14 : vector<32x1xf32>
    %16 = arith.mulf %11, %11 : vector<32x1xf32>
    %17 = arith.subf %15, %16 : vector<32x1xf32>
    %c0_13 = arith.constant 0 : index
    %c0_14 = arith.constant 0 : index
    %18 = vector.load %arg4[%c0_13, %c0_14] : memref<32x1xf32, #tpu.memory_space<vmem>>, vector<32x1xf32>
    %cst_15 = arith.constant 9.99999974E-6 : f32
    %19 = vector.broadcast %cst_15 : f32 to vector<32x1xf32>
    %20 = arith.addf %17, %19 : vector<32x1xf32>
    %21 = math.rsqrt %20 : vector<32x1xf32>
    %22 = arith.mulf %18, %21 : vector<32x1xf32>
    %c0_16 = arith.constant 0 : index
    %c0_17 = arith.constant 0 : index
    %23 = vector.load %arg5[%c0_16, %c0_17] : memref<32x1xf32, #tpu.memory_space<vmem>>, vector<32x1xf32>
    %24 = arith.mulf %11, %22 : vector<32x1xf32>
    %25 = arith.subf %23, %24 : vector<32x1xf32>
    %26 = vector.broadcast %22 : vector<32x1xf32> to vector<32x512xf32>
    %27 = arith.mulf %2, %26 : vector<32x512xf32>
    %28 = vector.broadcast %25 : vector<32x1xf32> to vector<32x512xf32>
    %29 = arith.addf %27, %28 : vector<32x512xf32>
    %cst_18 = arith.constant 0.000000e+00 : f32
    %30 = vector.broadcast %cst_18 : f32 to vector<32x512xf32>
    %31 = arith.maximumf %29, %30 : vector<32x512xf32>
    %32 = arith.truncf %31 : vector<32x512xf32> to vector<32x512xbf16>
    %c0_19 = arith.constant 0 : index
    %c0_20 = arith.constant 0 : index
    %33 = vector.load %arg6[%c0_19, %c0_20] : memref<32x512xbf16, #tpu.memory_space<vmem>>, vector<32x512xbf16>
    tpu.vector_store %arg6[%c0_19, %c0_20], %32 {strides = array<i32>} : memref<32x512xbf16, #tpu.memory_space<vmem>>, vector<32x512xbf16>,
    return
  }
  func.func @transform_0(%arg0: i32) -> (i32, i32) {
    %c0_i32 = arith.constant 0 : i32
    %c0_i32_0 = arith.constant 0 : i32
    %c0_i32_1 = arith.constant 0 : i32
    return %c0_i32, %c0_i32_0 : i32, i32
  }
  func.func @transform_1(%arg0: i32) -> (i32, i32) {
    %c0_i32 = arith.constant 0 : i32
    %c0_i32_0 = arith.constant 0 : i32
    %c0_i32_1 = arith.constant 0 : i32
    return %c0_i32, %c0_i32_0 : i32, i32
  }
  func.func @transform_2(%arg0: i32) -> (i32, i32) {
    %c0_i32 = arith.constant 0 : i32
    %c0_i32_0 = arith.constant 0 : i32
    %c0_i32_1 = arith.constant 0 : i32
    return %c0_i32, %c0_i32_0 : i32, i32
  }
  func.func @transform_3(%arg0: i32) -> (i32, i32) {
    %c0_i32 = arith.constant 0 : i32
    %c0_i32_0 = arith.constant 0 : i32
    %c0_i32_1 = arith.constant 0 : i32
    return %c0_i32, %c0_i32_0 : i32, i32
  }
  func.func @transform_4(%arg0: i32) -> (i32, i32) {
    %c0_i32 = arith.constant 0 : i32
    %c0_i32_0 = arith.constant 0 : i32
    %c0_i32_1 = arith.constant 0 : i32
    return %c0_i32, %c0_i32_0 : i32, i32
  }
  func.func @transform_5(%arg0: i32) -> (i32, i32) {
    %c0_i32 = arith.constant 0 : i32
    %c0_i32_0 = arith.constant 0 : i32
    %c0_i32_1 = arith.constant 0 : i32
    return %c0_i32, %c0_i32_0 : i32, i32
  }
}

module attributes {stable_mosaic.version = 11 : i64} {
  func.func @_matmul_bn_relu_kernel(%arg0: i32, %arg1: memref<16x72xbf16, #tpu.memory_space<vmem>>, %arg2: memref<72x2048xbf16, #tpu.memory_space<vmem>>, %arg3: memref<16x16xf32, #tpu.memory_space<vmem>>, %arg4: memref<16x1xf32, #tpu.memory_space<vmem>>, %arg5: memref<16x1xf32, #tpu.memory_space<vmem>>, %arg6: memref<16x2048xbf16, #tpu.memory_space<vmem>>) attributes {dimension_semantics = [#tpu.dimension_semantics<arbitrary>], iteration_bounds = array<i64: 1>, scalar_prefetch = 0 : i64, scratch_operands = 0 : i64, tpu.core_type = #tpu.core_type<tc>, window_params = [{pipeline_mode = #tpu.pipeline_mode<synchronous>, transform_indices = @transform_0, window_bounds = array<i64: 16, 72>}, {pipeline_mode = #tpu.pipeline_mode<synchronous>, transform_indices = @transform_1, window_bounds = array<i64: 72, 2048>}, {pipeline_mode = #tpu.pipeline_mode<synchronous>, transform_indices = @transform_2, window_bounds = array<i64: 16, 16>}, {pipeline_mode = #tpu.pipeline_mode<synchronous>, transform_indices = @transform_3, window_bounds = array<i64: 16, 1>}, {pipeline_mode = #tpu.pipeline_mode<synchronous>, transform_indices = @transform_4, window_bounds = array<i64: 16, 1>}, {pipeline_mode = #tpu.pipeline_mode<synchronous>, transform_indices = @transform_5, window_bounds = array<i64: 16, 2048>}]} {
    %c0 = arith.constant 0 : index
    %c0_0 = arith.constant 0 : index
    %0 = vector.load %arg1[%c0, %c0_0] : memref<16x72xbf16, #tpu.memory_space<vmem>>, vector<16x72xbf16>
    %c0_1 = arith.constant 0 : index
    %c0_2 = arith.constant 0 : index
    %1 = vector.load %arg2[%c0_1, %c0_2] : memref<72x2048xbf16, #tpu.memory_space<vmem>>, vector<72x2048xbf16>
    %cst = arith.constant dense<0.000000e+00> : vector<16x2048xf32>
    %2 = tpu.matmul %0, %1, %cst {dimension_numbers = #tpu.dot_dimension_numbers<[1], [0], [0], [1], [0, 0, 1, 1], [], []>} : vector<16x72xbf16>, vector<72x2048xbf16>, vector<16x2048xf32> -> vector<16x2048xf32>
    %c0_3 = arith.constant 0 : index
    %c0_4 = arith.constant 0 : index
    %3 = vector.load %arg3[%c0_3, %c0_4] : memref<16x16xf32, #tpu.memory_space<vmem>>, vector<16x16xf32>
    %cst_5 = arith.constant dense<0.000000e+00> : vector<16x2048xf32>
    %4 = tpu.matmul %3, %2, %cst_5 {dimension_numbers = #tpu.dot_dimension_numbers<[1], [0], [0], [1], [0, 0, 1, 1], [], []>} : vector<16x16xf32>, vector<16x2048xf32>, vector<16x2048xf32> -> vector<16x2048xf32>
    %c0_6 = arith.constant 0 : index
    %c0_7 = arith.constant 0 : index
    %5 = vector.load %arg3[%c0_6, %c0_7] : memref<16x16xf32, #tpu.memory_space<vmem>>, vector<16x16xf32>
    %6 = arith.mulf %2, %2 : vector<16x2048xf32>
    %cst_8 = arith.constant dense<0.000000e+00> : vector<16x2048xf32>
    %7 = tpu.matmul %5, %6, %cst_8 {dimension_numbers = #tpu.dot_dimension_numbers<[1], [0], [0], [1], [0, 0, 1, 1], [], []>} : vector<16x16xf32>, vector<16x2048xf32>, vector<16x2048xf32> -> vector<16x2048xf32>
    %cst_9 = arith.constant dense<0.000000e+00> : vector<16xf32>
    %8 = vector.multi_reduction <add>, %4, %cst_9 [1] : vector<16x2048xf32> to vector<16xf32>
    %9 = vector.shape_cast %8 : vector<16xf32> to vector<16x1xf32>
    %cst_10 = arith.constant 1.22070313E-4 : f32
    %10 = vector.broadcast %cst_10 : f32 to vector<16x1xf32>
    %11 = arith.mulf %9, %10 : vector<16x1xf32>
    %cst_11 = arith.constant dense<0.000000e+00> : vector<16xf32>
    %12 = vector.multi_reduction <add>, %7, %cst_11 [1] : vector<16x2048xf32> to vector<16xf32>
    %13 = vector.shape_cast %12 : vector<16xf32> to vector<16x1xf32>
    %cst_12 = arith.constant 1.22070313E-4 : f32
    %14 = vector.broadcast %cst_12 : f32 to vector<16x1xf32>
    %15 = arith.mulf %13, %14 : vector<16x1xf32>
    %16 = arith.mulf %11, %11 : vector<16x1xf32>
    %17 = arith.subf %15, %16 : vector<16x1xf32>
    %c0_13 = arith.constant 0 : index
    %c0_14 = arith.constant 0 : index
    %18 = vector.load %arg4[%c0_13, %c0_14] : memref<16x1xf32, #tpu.memory_space<vmem>>, vector<16x1xf32>
    %cst_15 = arith.constant 9.99999974E-6 : f32
    %19 = vector.broadcast %cst_15 : f32 to vector<16x1xf32>
    %20 = arith.addf %17, %19 : vector<16x1xf32>
    %21 = math.rsqrt %20 : vector<16x1xf32>
    %22 = arith.mulf %18, %21 : vector<16x1xf32>
    %c0_16 = arith.constant 0 : index
    %c0_17 = arith.constant 0 : index
    %23 = vector.load %arg5[%c0_16, %c0_17] : memref<16x1xf32, #tpu.memory_space<vmem>>, vector<16x1xf32>
    %24 = arith.mulf %11, %22 : vector<16x1xf32>
    %25 = arith.subf %23, %24 : vector<16x1xf32>
    %26 = vector.broadcast %22 : vector<16x1xf32> to vector<16x2048xf32>
    %27 = arith.mulf %2, %26 : vector<16x2048xf32>
    %28 = vector.broadcast %25 : vector<16x1xf32> to vector<16x2048xf32>
    %29 = arith.addf %27, %28 : vector<16x2048xf32>
    %cst_18 = arith.constant 0.000000e+00 : f32
    %30 = vector.broadcast %cst_18 : f32 to vector<16x2048xf32>
    %31 = arith.maximumf %29, %30 : vector<16x2048xf32>
    %32 = arith.truncf %31 : vector<16x2048xf32> to vector<16x2048xbf16>
    %c0_19 = arith.constant 0 : index
    %c0_20 = arith.constant 0 : index
    %33 = vector.load %arg6[%c0_19, %c0_20] : memref<16x2048xbf16, #tpu.memory_space<vmem>>, vector<16x2048xbf16>
    tpu.vector_store %arg6[%c0_19, %c0_20], %32 {strides = array<i32>} : memref<16x2048xbf16, #tpu.memory_space<vmem>>, vector<16x2048xbf16>,
    return
  }
  func.func @transform_0(%arg0: i32) -> (i32, i32) {
    %c0_i32 = arith.constant 0 : i32
    %c0_i32_0 = arith.constant 0 : i32
    %c0_i32_1 = arith.constant 0 : i32
    return %c0_i32, %c0_i32_0 : i32, i32
  }
  func.func @transform_1(%arg0: i32) -> (i32, i32) {
    %c0_i32 = arith.constant 0 : i32
    %c0_i32_0 = arith.constant 0 : i32
    %c0_i32_1 = arith.constant 0 : i32
    return %c0_i32, %c0_i32_0 : i32, i32
  }
  func.func @transform_2(%arg0: i32) -> (i32, i32) {
    %c0_i32 = arith.constant 0 : i32
    %c0_i32_0 = arith.constant 0 : i32
    %c0_i32_1 = arith.constant 0 : i32
    return %c0_i32, %c0_i32_0 : i32, i32
  }
  func.func @transform_3(%arg0: i32) -> (i32, i32) {
    %c0_i32 = arith.constant 0 : i32
    %c0_i32_0 = arith.constant 0 : i32
    %c0_i32_1 = arith.constant 0 : i32
    return %c0_i32, %c0_i32_0 : i32, i32
  }
  func.func @transform_4(%arg0: i32) -> (i32, i32) {
    %c0_i32 = arith.constant 0 : i32
    %c0_i32_0 = arith.constant 0 : i32
    %c0_i32_1 = arith.constant 0 : i32
    return %c0_i32, %c0_i32_0 : i32, i32
  }
  func.func @transform_5(%arg0: i32) -> (i32, i32) {
    %c0_i32 = arith.constant 0 : i32
    %c0_i32_0 = arith.constant 0 : i32
    %c0_i32_1 = arith.constant 0 : i32
    return %c0_i32, %c0_i32_0 : i32, i32
  }
}

module attributes {stable_mosaic.version = 11 : i64} {
  func.func @_matmul_tanh_kernel(%arg0: i32, %arg1: memref<12x36xbf16, #tpu.memory_space<vmem>>, %arg2: memref<36x2048xbf16, #tpu.memory_space<vmem>>, %arg3: memref<12x2048xf32, #tpu.memory_space<vmem>>) attributes {dimension_semantics = [#tpu.dimension_semantics<parallel>], iteration_bounds = array<i64: 4>, scalar_prefetch = 0 : i64, scratch_operands = 0 : i64, tpu.core_type = #tpu.core_type<tc>, window_params = [{pipeline_mode = #tpu.pipeline_mode<synchronous>, transform_indices = @transform_0, window_bounds = array<i64: 12, 36>}, {transform_indices = @transform_1, window_bounds = array<i64: 36, 2048>}, {transform_indices = @transform_2, window_bounds = array<i64: 12, 2048>}]} {
    %c0 = arith.constant 0 : index
    %c0_0 = arith.constant 0 : index
    %0 = vector.load %arg1[%c0, %c0_0] : memref<12x36xbf16, #tpu.memory_space<vmem>>, vector<12x36xbf16>
    %c0_1 = arith.constant 0 : index
    %c0_2 = arith.constant 0 : index
    %1 = vector.load %arg2[%c0_1, %c0_2] : memref<36x2048xbf16, #tpu.memory_space<vmem>>, vector<36x2048xbf16>
    %cst = arith.constant dense<0.000000e+00> : vector<12x2048xf32>
    %2 = tpu.matmul %0, %1, %cst {dimension_numbers = #tpu.dot_dimension_numbers<[1], [0], [0], [1], [0, 0, 1, 1], [], []>} : vector<12x36xbf16>, vector<36x2048xbf16>, vector<12x2048xf32> -> vector<12x2048xf32>
    %3 = math.tanh %2 : vector<12x2048xf32>
    %c0_3 = arith.constant 0 : index
    %c0_4 = arith.constant 0 : index
    %4 = vector.load %arg3[%c0_3, %c0_4] : memref<12x2048xf32, #tpu.memory_space<vmem>>, vector<12x2048xf32>
    tpu.vector_store %arg3[%c0_3, %c0_4], %3 {strides = array<i32>} : memref<12x2048xf32, #tpu.memory_space<vmem>>, vector<12x2048xf32>,
    return
  }
  func.func @transform_0(%arg0: i32) -> (i32, i32) {
    %c0_i32 = arith.constant 0 : i32
    %c0_i32_0 = arith.constant 0 : i32
    %c0_i32_1 = arith.constant 0 : i32
    return %c0_i32, %c0_i32_0 : i32, i32
  }
  func.func @transform_1(%arg0: i32) -> (i32, i32) {
    %c0_i32 = arith.constant 0 : i32
    %c0_i32_0 = arith.constant 0 : i32
    return %c0_i32, %arg0 : i32, i32
  }
  func.func @transform_2(%arg0: i32) -> (i32, i32) {
    %c0_i32 = arith.constant 0 : i32
    %c0_i32_0 = arith.constant 0 : i32
    return %c0_i32, %arg0 : i32, i32
  }
}

</mosaic_0001>

<bundles_post_ra>
// kernel: generator_forward.8
= control target key start
LH: loop header
LB: loop body
LE: loop exit
PB: predicated region body
PF: predicated region fallthrough
CT: control target
= control target key end

     0   :  { %vm67_vm0 = vcmask 523264   ;;  %vm97_vm1 = vcmask 261120   ;;  %v397_v35 = vmov 0   ;;  %vm332_vm14 = vcmask 257024   ;;  %s548_s1 = inlined_call_operand.vmem [shape: bf16[64,32], index: 1, kind: input, shape index: {}]   ;;  %s549_s0 = inlined_call_operand.vmem [shape: bf16[32,64], index: 0, kind: input, shape index: {}]   ;;  %s550_s2 = inlined_call_operand.vmem [shape: f32[32,32], index: 2, kind: input, shape index: {}]   ;;  %s551_s3 = inlined_call_operand.vmem [shape: f32[32,1], index: 3, kind: input, shape index: {}]   ;;  %s552_s4 = inlined_call_operand.vmem [shape: f32[32,1], index: 4, kind: input, shape index: {}]   ;;  %s553_s5 = inlined_call_operand.vmem [shape: bf16[32,32], index: 5, kind: output, shape index: {}]  }
   0x1   :  { %v380_v0 = vld [vmem:[%s548_s1 + $0x18] sm:$0xff]  ;;  %v379_v1 = vld [vmem:[%s548_s1 + $0x10] sm:$0xff]  ;;  %v378_v2 = vld [vmem:[%s548_s1 + $0x8] sm:$0xff]  ;;  %386 = vset.pattern.permute.xlu2 %v397_v35  ;;  %387 = vset.pattern.permute.xlu0 %v397_v35 }
   0x2   :  { %381 = vmatpush.bf16.msra.mxu3 %v380_v0  ;;  %78 = vmatpush.bf16.msra.mxu0 %v380_v0  ;;  %v377_v3 = vld [vmem:[%s548_s1] sm:$0xff]  ;;  %v376_v4 = vld [vmem:[%s549_s0 + $0x8] sm:$0xff]  ;;  %v95_v16 = vld [vmem:[%s550_s2 + $0x10] sm:$0xff] }
   0x3   :  { %v375_v5 = vld [vmem:[%s549_s0] sm:$0xff]  ;;  %v94_v15 = vld [vmem:[%s550_s2 + $0x8] sm:$0xff]  ;;  %v96_v17 = vld [vmem:[%s550_s2 + $0x18] sm:$0xff]  ;;  %388 = vset.pattern.permute.xlu1 %v397_v35 }
   0x4   :  { %v93_v13 = vld [vmem:[%s550_s2] sm:$0xff] }
   0x6   :  { %382 = vmatpush.bf16.msra.mxu3 %v379_v1  ;;  %79 = vmatpush.bf16.msra.mxu0 %v379_v1  ;;  %v212_v1 = vld [vmem:[%s551_s3] sm:$0xff] }
   0xa   :  { %383 = vmatpush.bf16.msra.mxu3 %v378_v2  ;;  %80 = vmatpush.bf16.msra.mxu0 %v378_v2 }
   0xe   :  { %384 = vmatpush.bf16.msra.mxu3 %v377_v3  ;;  %81 = vmatpush.bf16.msra.mxu0 %v377_v3 }
  0x11   :  { %366 = vmatmul.msk.bf16.vlgmr.msra.gmra.mxu3 %vm67_vm0, %v376_v4  ;;  %365 = vmatmul.msk.bf16.vlgmr.msra.gmra.mxu0 %vm67_vm0, %v375_v5 }
  0x8e   :  { %v446_v6 = vpop.f32.mrf.mxu0 }
  0x8f   :  { %v139_v14 = vmul.f32 %v446_v6, %v446_v6 }
  0x94   :  { %v448_v7 = vpop.f32.mrf.mxu3 }
  0x95   :  { %v141_v11 = vmul.f32 %v448_v7, %v448_v7 }
  0x96   :  { %v455_v10 = vpop.f32.mrf.mxu0 }
  0x97   :  { %v140_v12 = vmul.f32 %v455_v10, %v455_v10 }
  0x9c   :  { %v450_v8 = vpop.f32.mrf.mxu3 }
  0x9d   :  { %122 = vmatpush.msra.mxu1 %v450_v8  ;;  %v142_v9 = vmul.f32 %v450_v8, %v450_v8 }
  0x9f   :  { %123 = vmatpush.msra.mxu1 %v448_v7  ;;  %155 = vmatpush.msra.mxu2 %v142_v9 }
  0xa1   :  { %124 = vmatpush.msra.mxu1 %v455_v10  ;;  %156 = vmatpush.msra.mxu2 %v141_v11 }
  0xa3   :  { %125 = vmatpush.msra.mxu1 %v446_v6  ;;  %157 = vmatpush.msra.mxu2 %v140_v12 }
  0xa4   :  { %367 = vmatmul.msk.f32.vlgmr.msra.gmra.mxu1 %vm97_vm1, %v93_v13 }
  0xa5   :  { %158 = vmatpush.msra.mxu2 %v139_v14 }
  0xa6   :  { %371 = vmatmul.msk.f32.vlgmr.msra.gmra.mxu2 %vm97_vm1, %v93_v13 }
  0xac   :  { %368 = vmatmul.msk.f32.gmra.mxu1 %vm97_vm1, %v94_v15 }
  0xae   :  { %372 = vmatmul.msk.f32.gmra.mxu2 %vm97_vm1, %v94_v15 }
  0xb4   :  { %369 = vmatmul.msk.f32.gmra.mxu1 %vm97_vm1, %v95_v16 }
  0xb6   :  { %373 = vmatmul.msk.f32.gmra.mxu2 %vm97_vm1, %v95_v16 }
  0xbc   :  { %370 = vmatmul.msk.f32.gmra.mxu1 %vm97_vm1, %v96_v17 }
  0xbe   :  { %374 = vmatmul.msk.f32.gmra.mxu2 %vm97_vm1, %v96_v17 }
 0x121   :  { %v127_v18 = vpop.f32.mrf.mxu1 }
 0x122   :  { %v172_v19 = vsel %vm97_vm1, %v127_v18, 0.0 }
 0x123   :  { %173 = vadd.xlane.f32.xlu0 %v172_v19 }
 0x129   :  { %v130_v20 = vpop.f32.mrf.mxu1  ;;  %v160_v21 = vpop.f32.mrf.mxu2 }
 0x12a   :  { %v188_v22 = vsel %vm97_vm1, %v160_v21, 0.0  ;;  %v175_v23 = vsel %vm97_vm1, %v130_v20, 0.0  ;;  %v264_v20 = vld [vmem:[%s552_s4] sm:$0xff]  ;;  %v213_v21 = vld [vmem:[%s551_s3 + $0x8] sm:$0xff] }
 0x12b   :  { %189 = vadd.xlane.f32.xlu2 %v188_v22  ;;  %176 = vadd.xlane.f32.xlu0 %v175_v23 }
 0x131   :  { %v133_v24 = vpop.f32.mrf.mxu1  ;;  %v163_v25 = vpop.f32.mrf.mxu2 }
 0x132   :  { %v191_v26 = vsel %vm97_vm1, %v163_v25, 0.0  ;;  %v178_v27 = vsel %vm97_vm1, %v133_v24, 0.0 }
 0x133   :  { %192 = vadd.xlane.f32.xlu2 %v191_v26  ;;  %179 = vadd.xlane.f32.xlu1 %v178_v27 }
 0x139   :  { %v136_v28 = vpop.f32.mrf.mxu1  ;;  %v166_v29 = vpop.f32.mrf.mxu2 }
 0x13a   :  { %v194_v30 = vsel %vm97_vm1, %v166_v29, 0.0  ;;  %v181_v31 = vsel %vm97_vm1, %v136_v28, 0.0  ;;  %v265_v28 = vld [vmem:[%s552_s4 + $0x8] sm:$0xff] }
 0x13b   :  { %195 = vadd.xlane.f32.xlu0 %v194_v30  ;;  %182 = vadd.xlane.f32.xlu1 %v181_v31 }
 0x141   :  { %v169_v32 = vpop.f32.mrf.mxu2 }
 0x142   :  { %v197_v33 = vsel %vm97_vm1, %v169_v32, 0.0 }
 0x143   :  { %198 = vadd.xlane.f32.xlu1 %v197_v33 }
 0x196   :  { %v174_v34 = vpop.xlane.xlu0 %173 }
 0x197   :  { %v184_v36 = vmul.f32 0.03125, %v174_v34 }
 0x199   :  { %v204_v38 = vmul.f32 %v184_v36, %v184_v36 }
 0x19e   :  { %v190_v37 = vpop.xlane.xlu2 %189  ;;  %v177_v40 = vpop.xlane.xlu0 %176 }
 0x19f   :  { %v200_v39 = vmul.f32 0.03125, %v190_v37  ;;  %v185_v43 = vmul.f32 0.03125, %v177_v40  ;;  %v214_v37 = vld [vmem:[%s551_s3 + $0x10] sm:$0xff] }
 0x1a1   :  { %v208_v41 = vsub.f32 %v200_v39, %v204_v38  ;;  %v205_v46 = vmul.f32 %v185_v43, %v185_v43 }
 0x1a3   :  { %v216_v42 = vadd.f32 1e-05, %v208_v41  ;;  %v215_v41 = vld [vmem:[%s551_s3 + $0x18] sm:$0xff] }
 0x1a5   :  { %389 = vrsqrt.f32 %v216_v42  ;;  %vm226_vm3 = vweird.f32 %v216_v42 }
 0x1a6   :  { %v193_v44 = vpop.xlane.xlu2 %192  ;;  %v180_v45 = vpop.xlane.xlu1 %179 }
 0x1a7   :  { %v201_v47 = vmul.f32 0.03125, %v193_v44  ;;  %v494_v51 = vmul.f32 0.03125, %v180_v45  ;;  %v267_v45 = vld [vmem:[%s552_s4 + $0x18] sm:$0xff] }
 0x1a9   :  { %v209_v48 = vsub.f32 %v201_v47, %v205_v46  ;;  %v206_v56 = vmul.f32 %v494_v51, %v494_v51 }
 0x1ab   :  { %v390_v49 = vpop.eup %389  ;;  %v217_v50 = vadd.f32 1e-05, %v209_v48 }
 0x1ac   :  { %v221_v52 = vmul.f32 %v390_v49, %v216_v42  ;;  %vm227_vm2 = vweird.f32 %v390_v49 }
 0x1ad   :  { %391 = vrsqrt.f32 %v217_v50  ;;  %vm228_vm4 = vmor %vm226_vm3, %vm227_vm2  ;;  %vm236_vm6 = vweird.f32 %v217_v50 }
 0x1ae   :  { %v222_v53 = vmul.f32 %v390_v49, %v221_v52  ;;  %v196_v54 = vpop.xlane.xlu0 %195  ;;  %v183_v55 = vpop.xlane.xlu1 %182 }
 0x1af   :  { %v202_v57 = vmul.f32 0.03125, %v196_v54  ;;  %v498_v63 = vmul.f32 0.03125, %v183_v55 }
 0x1b0   :  { %v223_v58 = vmul.f32 0.5, %v222_v53 }
 0x1b1   :  { %v210_v59 = vsub.f32 %v202_v57, %v206_v56  ;;  %v207_v9 = vmul.f32 %v498_v63, %v498_v63 }
 0x1b2   :  { %v224_v60 = vsub.f32 1.5, %v223_v58 }
 0x1b3   :  { %v392_v61 = vpop.eup %391  ;;  %v218_v62 = vadd.f32 1e-05, %v210_v59 }
 0x1b4   :  { %v231_v0 = vmul.f32 %v392_v61, %v217_v50  ;;  %v225_v2 = vmul.f32 %v390_v49, %v224_v60  ;;  %vm237_vm5 = vweird.f32 %v392_v61 }
 0x1b5   :  { %393 = vrsqrt.f32 %v218_v62  ;;  %vm238_vm7 = vmor %vm236_vm6, %vm237_vm5  ;;  %vm246_vm9 = vweird.f32 %v218_v62 }
 0x1b6   :  { %v232_v3 = vmul.f32 %v392_v61, %v231_v0  ;;  %v199_v4 = vpop.xlane.xlu1 %198  ;;  %v229_v5 = vsel %vm228_vm4, %v390_v49, %v225_v2  ;;  %v266_v49 = vld [vmem:[%s552_s4 + $0x10] sm:$0xff] }
 0x1b7   :  { %v203_v11 = vmul.f32 0.03125, %v199_v4  ;;  %v260_v12 = vmul.f32 %v229_v5, %v212_v1 }
 0x1b8   :  { %v233_v13 = vmul.f32 0.5, %v232_v3 }
 0x1b9   :  { %v211_v14 = vsub.f32 %v203_v11, %v207_v9  ;;  %278 = vperm.xlu2 %386, %v260_v12   ;;  %v268_v18 = vmul.f32 %v260_v12, %v184_v36 }
 0x1ba   :  { %v234_v15 = vsub.f32 1.5, %v233_v13 }
 0x1bb   :  { %v394_v16 = vpop.eup %393  ;;  %v219_v17 = vadd.f32 1e-05, %v211_v14  ;;  %v272_v25 = vsub.f32 %v264_v20, %v268_v18 }
 0x1bc   :  { %v241_v19 = vmul.f32 %v394_v16, %v218_v62  ;;  %v235_v22 = vmul.f32 %v392_v61, %v234_v15  ;;  %vm247_vm8 = vweird.f32 %v394_v16 }
 0x1bd   :  { %395 = vrsqrt.f32 %v219_v17  ;;  %vm248_vm10 = vmor %vm246_vm9, %vm247_vm8  ;;  %vm256_vm12 = vweird.f32 %v219_v17 }
 0x1be   :  { %v242_v23 = vmul.f32 %v394_v16, %v241_v19  ;;  %v239_v24 = vsel %vm238_vm7, %v392_v61, %v235_v22 }
 0x1bf   :  { %v261_v26 = vmul.f32 %v239_v24, %v213_v21 }
 0x1c0   :  { %v243_v27 = vmul.f32 0.5, %v242_v23 }
 0x1c1   :  { %302 = vperm.xlu2 %386, %v272_v25   ;;  %283 = vperm.xlu0 %387, %v261_v26   ;;  %v269_v29 = vmul.f32 %v261_v26, %v185_v43 }
 0x1c2   :  { %v244_v30 = vsub.f32 1.5, %v243_v27 }
 0x1c3   :  { %v396_v31 = vpop.eup %395  ;;  %v273_v32 = vsub.f32 %v265_v28, %v269_v29 }
 0x1c4   :  { %v251_v33 = vmul.f32 %v396_v31, %v219_v17  ;;  %v245_v34 = vmul.f32 %v394_v16, %v244_v30  ;;  %vm257_vm11 = vweird.f32 %v396_v31 }
 0x1c5   :  { %307 = vperm.xlu1 %388, %v273_v32   ;;  %vm258_vm13 = vmor %vm256_vm12, %vm257_vm11 }
 0x1c6   :  { %v252_v35 = vmul.f32 %v396_v31, %v251_v33  ;;  %v249_v38 = vsel %vm248_vm10, %v394_v16, %v245_v34 }
 0x1c7   :  { %v262_v40 = vmul.f32 %v249_v38, %v214_v37 }
 0x1c8   :  { %v253_v36 = vmul.f32 0.5, %v252_v35 }
 0x1c9   :  { %v270_v48 = vmul.f32 %v262_v40, %v494_v51 }
 0x1ca   :  { %v254_v39 = vsub.f32 1.5, %v253_v36 }
 0x1cb   :  { %v274_v50 = vsub.f32 %v266_v49, %v270_v48 }
 0x1cc   :  { %v255_v42 = vmul.f32 %v396_v31, %v254_v39 }
 0x1cd   :  { %288 = vperm.xlu1 %388, %v262_v40  }
 0x1ce   :  { %v259_v43 = vsel %vm258_vm13, %v396_v31, %v255_v42 }
 0x1cf   :  { %v263_v44 = vmul.f32 %v259_v43, %v215_v41 }
 0x1d1   :  { %293 = vperm.xlu2 %386, %v263_v44   ;;  %v271_v46 = vmul.f32 %v263_v44, %v498_v63 }
 0x1d3   :  { %v275_v47 = vsub.f32 %v267_v45, %v271_v46 }
 0x1d5   :  { %317 = vperm.xlu1 %388, %v275_v47  }
 0x1d9   :  { %312 = vperm.xlu2 %386, %v274_v50  }
 0x213   :  { %v279_v52 = vpop.permute.xlu2 %278 }
 0x214   :  { %v296_v53 = vmul.f32 %v279_v52, %v446_v6 }
 0x21b   :  { %v303_v54 = vpop.permute.xlu2 %302 }
 0x21c   :  { %v320_v55 = vadd.f32 %v303_v54, %v296_v53 }
 0x21e   :  { %v324_v56 = vmax.f32 %v320_v55, 0.0 }
 0x220   :  { %v328_v57 = vpack.c.bf16 %v324_v56, %v324_v56 }
 0x222   :  { %333 = vst.msk [vmem:[%s553_s5] sm:$0xf] %vm332_vm14, %v328_v57 }
 0x22b   :  { %v294_v59 = vpop.permute.xlu2 %293 }
 0x22c   :  { %v299_v4 = vmul.f32 %v294_v59, %v450_v8 }
 0x233   :  { %v284_v51 = vpop.permute.xlu0 %283  ;;  %v313_v1 = vpop.permute.xlu2 %312 }
 0x234   :  { %v297_v58 = vmul.f32 %v284_v51, %v455_v10 }
 0x237   :  { %v308_v60 = vpop.permute.xlu1 %307 }
 0x238   :  { %v321_v61 = vadd.f32 %v308_v60, %v297_v58 }
 0x23a   :  { %v325_v62 = vmax.f32 %v321_v61, 0.0 }
 0x23c   :  { %v329_v63 = vpack.c.bf16 %v325_v62, %v325_v62 }
 0x23e   :  { %334 = vst.msk [vmem:[%s553_s5 + $0x4] sm:$0xf] %vm332_vm14, %v329_v63 }
 0x23f   :  { %v289_v6 = vpop.permute.xlu1 %288 }
 0x240   :  { %v298_v0 = vmul.f32 %v289_v6, %v448_v7 }
 0x242   :  { %v322_v2 = vadd.f32 %v313_v1, %v298_v0 }
 0x244   :  { %v326_v3 = vmax.f32 %v322_v2, 0.0 }
 0x246   :  { %v330_v5 = vpack.c.bf16 %v326_v3, %v326_v3 }
 0x247   :  { %v318_v10 = vpop.permute.xlu1 %317 }
 0x248   :  { %335 = vst.msk [vmem:[%s553_s5 + $0x8] sm:$0xf] %vm332_vm14, %v330_v5  ;;  %v323_v9 = vadd.f32 %v318_v10, %v299_v4 }
 0x24a   :  { %v327_v11 = vmax.f32 %v323_v9, 0.0 }
 0x24c   :  { %v331_v12 = vpack.c.bf16 %v327_v11, %v327_v11 }
 0x24e   :  { %336 = vst.msk [vmem:[%s553_s5 + $0xc] sm:$0xf] %vm332_vm14, %v331_v12 }

// kernel: generator_forward.7
= control target key start
LH: loop header
LB: loop body
LE: loop exit
PB: predicated region body
PF: predicated region fallthrough
CT: control target
= control target key end

     0   :  { %vm123_vm0 = vcmask 261120   ;;  %v445_v39 = vmov 0   ;;  %vm358_vm13 = vcmask 257024   ;;  %s608_s1 = inlined_call_operand.vmem [shape: bf16[128,32], index: 1, kind: input, shape index: {}]   ;;  %s609_s0 = inlined_call_operand.vmem [shape: bf16[32,128], index: 0, kind: input, shape index: {}]   ;;  %s610_s2 = inlined_call_operand.vmem [shape: f32[32,32], index: 2, kind: input, shape index: {}]   ;;  %s611_s3 = inlined_call_operand.vmem [shape: f32[32,1], index: 3, kind: input, shape index: {}]   ;;  %s612_s4 = inlined_call_operand.vmem [shape: f32[32,1], index: 4, kind: input, shape index: {}]   ;;  %s613_s5 = inlined_call_operand.vmem [shape: bf16[32,32], index: 5, kind: output, shape index: {}]  }
   0x1   :  { %v424_v0 = vld [vmem:[%s608_s1 + $0x38] sm:$0xff]  ;;  %v423_v1 = vld [vmem:[%s608_s1 + $0x30] sm:$0xff]  ;;  %v422_v2 = vld [vmem:[%s608_s1 + $0x28] sm:$0xff]  ;;  %434 = vset.pattern.permute.xlu2 %v445_v39  ;;  %435 = vset.pattern.permute.xlu0 %v445_v39 }
   0x2   :  { %425 = vmatpush.bf16.msra.mxu3 %v424_v0  ;;  %100 = vmatpush.bf16.msra.mxu0 %v424_v0  ;;  %v421_v3 = vld [vmem:[%s608_s1 + $0x20] sm:$0xff]  ;;  %v420_v4 = vld [vmem:[%s608_s1 + $0x18] sm:$0xff]  ;;  %v419_v5 = vld [vmem:[%s608_s1 + $0x10] sm:$0xff] }
   0x3   :  { %v418_v6 = vld [vmem:[%s608_s1 + $0x8] sm:$0xff]  ;;  %v417_v7 = vld [vmem:[%s608_s1] sm:$0xff]  ;;  %v121_v20 = vld [vmem:[%s610_s2 + $0x10] sm:$0xff]  ;;  %436 = vset.pattern.permute.xlu1 %v445_v39 }
   0x4   :  { %v416_v8 = vld [vmem:[%s609_s0 + $0x8] sm:$0xff]  ;;  %v415_v9 = vld [vmem:[%s609_s0] sm:$0xff]  ;;  %v122_v21 = vld [vmem:[%s610_s2 + $0x18] sm:$0xff] }
   0x5   :  { %v119_v17 = vld [vmem:[%s610_s2] sm:$0xff]  ;;  %v120_v19 = vld [vmem:[%s610_s2 + $0x8] sm:$0xff] }
   0x6   :  { %426 = vmatpush.bf16.msra.mxu3 %v423_v1  ;;  %101 = vmatpush.bf16.msra.mxu0 %v423_v1 }
   0xa   :  { %427 = vmatpush.bf16.msra.mxu3 %v422_v2  ;;  %102 = vmatpush.bf16.msra.mxu0 %v422_v2 }
   0xe   :  { %428 = vmatpush.bf16.msra.mxu3 %v421_v3  ;;  %103 = vmatpush.bf16.msra.mxu0 %v421_v3 }
  0x12   :  { %429 = vmatpush.bf16.msra.mxu3 %v420_v4  ;;  %104 = vmatpush.bf16.msra.mxu0 %v420_v4 }
  0x16   :  { %430 = vmatpush.bf16.msra.mxu3 %v419_v5  ;;  %105 = vmatpush.bf16.msra.mxu0 %v419_v5  ;;  %v238_v5 = vld [vmem:[%s611_s3] sm:$0xff] }
  0x1a   :  { %431 = vmatpush.bf16.msra.mxu3 %v418_v6  ;;  %106 = vmatpush.bf16.msra.mxu0 %v418_v6 }
  0x1e   :  { %432 = vmatpush.bf16.msra.mxu3 %v417_v7  ;;  %107 = vmatpush.bf16.msra.mxu0 %v417_v7 }
  0x21   :  { %113 = vmatmul.bf16.vlgmr.msra.gmra.mxu3 %v416_v8  ;;  %108 = vmatmul.bf16.vlgmr.msra.gmra.mxu0 %v415_v9 }
  0x9e   :  { %v506_v10 = vpop.f32.mrf.mxu0 }
  0x9f   :  { %v165_v18 = vmul.f32 %v506_v10, %v506_v10 }
  0xa4   :  { %v508_v11 = vpop.f32.mrf.mxu3 }
  0xa5   :  { %v167_v15 = vmul.f32 %v508_v11, %v508_v11 }
  0xa6   :  { %v515_v14 = vpop.f32.mrf.mxu0 }
  0xa7   :  { %v166_v16 = vmul.f32 %v515_v14, %v515_v14 }
  0xac   :  { %v510_v12 = vpop.f32.mrf.mxu3 }
  0xad   :  { %148 = vmatpush.msra.mxu1 %v510_v12  ;;  %v168_v13 = vmul.f32 %v510_v12, %v510_v12 }
  0xaf   :  { %149 = vmatpush.msra.mxu1 %v508_v11  ;;  %181 = vmatpush.msra.mxu2 %v168_v13 }
  0xb1   :  { %150 = vmatpush.msra.mxu1 %v515_v14  ;;  %182 = vmatpush.msra.mxu2 %v167_v15 }
  0xb3   :  { %151 = vmatpush.msra.mxu1 %v506_v10  ;;  %183 = vmatpush.msra.mxu2 %v166_v16 }
  0xb4   :  { %407 = vmatmul.msk.f32.vlgmr.msra.gmra.mxu1 %vm123_vm0, %v119_v17 }
  0xb5   :  { %184 = vmatpush.msra.mxu2 %v165_v18 }
  0xb6   :  { %411 = vmatmul.msk.f32.vlgmr.msra.gmra.mxu2 %vm123_vm0, %v119_v17 }
  0xbc   :  { %408 = vmatmul.msk.f32.gmra.mxu1 %vm123_vm0, %v120_v19 }
  0xbe   :  { %412 = vmatmul.msk.f32.gmra.mxu2 %vm123_vm0, %v120_v19 }
  0xc4   :  { %409 = vmatmul.msk.f32.gmra.mxu1 %vm123_vm0, %v121_v20 }
  0xc6   :  { %413 = vmatmul.msk.f32.gmra.mxu2 %vm123_vm0, %v121_v20 }
  0xcc   :  { %410 = vmatmul.msk.f32.gmra.mxu1 %vm123_vm0, %v122_v21 }
  0xce   :  { %414 = vmatmul.msk.f32.gmra.mxu2 %vm123_vm0, %v122_v21 }
 0x131   :  { %v153_v22 = vpop.f32.mrf.mxu1 }
 0x132   :  { %v198_v23 = vsel %vm123_vm0, %v153_v22, 0.0 }
 0x133   :  { %199 = vadd.xlane.f32.xlu0 %v198_v23 }
 0x139   :  { %v156_v24 = vpop.f32.mrf.mxu1  ;;  %v186_v25 = vpop.f32.mrf.mxu2 }
 0x13a   :  { %v214_v26 = vsel %vm123_vm0, %v186_v25, 0.0  ;;  %v201_v27 = vsel %vm123_vm0, %v156_v24, 0.0  ;;  %v290_v24 = vld [vmem:[%s612_s4] sm:$0xff]  ;;  %v239_v25 = vld [vmem:[%s611_s3 + $0x8] sm:$0xff] }
 0x13b   :  { %215 = vadd.xlane.f32.xlu2 %v214_v26  ;;  %202 = vadd.xlane.f32.xlu0 %v201_v27 }
 0x141   :  { %v159_v28 = vpop.f32.mrf.mxu1  ;;  %v189_v29 = vpop.f32.mrf.mxu2 }
 0x142   :  { %v217_v30 = vsel %vm123_vm0, %v189_v29, 0.0  ;;  %v204_v31 = vsel %vm123_vm0, %v159_v28, 0.0 }
 0x143   :  { %218 = vadd.xlane.f32.xlu2 %v217_v30  ;;  %205 = vadd.xlane.f32.xlu1 %v204_v31 }
 0x149   :  { %v162_v32 = vpop.f32.mrf.mxu1  ;;  %v192_v33 = vpop.f32.mrf.mxu2 }
 0x14a   :  { %v220_v34 = vsel %vm123_vm0, %v192_v33, 0.0  ;;  %v207_v35 = vsel %vm123_vm0, %v162_v32, 0.0  ;;  %v291_v32 = vld [vmem:[%s612_s4 + $0x8] sm:$0xff] }
 0x14b   :  { %221 = vadd.xlane.f32.xlu0 %v220_v34  ;;  %208 = vadd.xlane.f32.xlu1 %v207_v35 }
 0x151   :  { %v195_v36 = vpop.f32.mrf.mxu2 }
 0x152   :  { %v223_v37 = vsel %vm123_vm0, %v195_v36, 0.0 }
 0x153   :  { %224 = vadd.xlane.f32.xlu1 %v223_v37 }
 0x1a6   :  { %v200_v38 = vpop.xlane.xlu0 %199 }
 0x1a7   :  { %v210_v40 = vmul.f32 0.03125, %v200_v38 }
 0x1a9   :  { %v230_v42 = vmul.f32 %v210_v40, %v210_v40 }
 0x1ae   :  { %v216_v41 = vpop.xlane.xlu2 %215  ;;  %v203_v44 = vpop.xlane.xlu0 %202 }
 0x1af   :  { %v226_v43 = vmul.f32 0.03125, %v216_v41  ;;  %v211_v47 = vmul.f32 0.03125, %v203_v44  ;;  %v240_v41 = vld [vmem:[%s611_s3 + $0x10] sm:$0xff] }
 0x1b1   :  { %v234_v45 = vsub.f32 %v226_v43, %v230_v42  ;;  %v231_v50 = vmul.f32 %v211_v47, %v211_v47 }
 0x1b3   :  { %v242_v46 = vadd.f32 1e-05, %v234_v45  ;;  %v241_v45 = vld [vmem:[%s611_s3 + $0x18] sm:$0xff] }
 0x1b5   :  { %437 = vrsqrt.f32 %v242_v46  ;;  %vm252_vm2 = vweird.f32 %v242_v46 }
 0x1b6   :  { %v219_v48 = vpop.xlane.xlu2 %218  ;;  %v206_v49 = vpop.xlane.xlu1 %205 }
 0x1b7   :  { %v227_v51 = vmul.f32 0.03125, %v219_v48  ;;  %v554_v55 = vmul.f32 0.03125, %v206_v49  ;;  %v293_v49 = vld [vmem:[%s612_s4 + $0x18] sm:$0xff] }
 0x1b9   :  { %v235_v52 = vsub.f32 %v227_v51, %v231_v50  ;;  %v232_v60 = vmul.f32 %v554_v55, %v554_v55 }
 0x1bb   :  { %v438_v53 = vpop.eup %437  ;;  %v243_v54 = vadd.f32 1e-05, %v235_v52 }
 0x1bc   :  { %v247_v56 = vmul.f32 %v438_v53, %v242_v46  ;;  %vm253_vm1 = vweird.f32 %v438_v53 }
 0x1bd   :  { %439 = vrsqrt.f32 %v243_v54  ;;  %vm254_vm3 = vmor %vm252_vm2, %vm253_vm1  ;;  %vm262_vm5 = vweird.f32 %v243_v54 }
 0x1be   :  { %v248_v57 = vmul.f32 %v438_v53, %v247_v56  ;;  %v222_v58 = vpop.xlane.xlu0 %221  ;;  %v209_v59 = vpop.xlane.xlu1 %208 }
 0x1bf   :  { %v228_v61 = vmul.f32 0.03125, %v222_v58  ;;  %v558_v3 = vmul.f32 0.03125, %v209_v59 }
 0x1c0   :  { %v249_v62 = vmul.f32 0.5, %v248_v57 }
 0x1c1   :  { %v236_v63 = vsub.f32 %v228_v61, %v232_v60  ;;  %v233_v13 = vmul.f32 %v558_v3, %v558_v3 }
 0x1c2   :  { %v250_v0 = vsub.f32 1.5, %v249_v62 }
 0x1c3   :  { %v440_v1 = vpop.eup %439  ;;  %v244_v2 = vadd.f32 1e-05, %v236_v63 }
 0x1c4   :  { %v257_v4 = vmul.f32 %v440_v1, %v243_v54  ;;  %v251_v6 = vmul.f32 %v438_v53, %v250_v0  ;;  %vm263_vm4 = vweird.f32 %v440_v1 }
 0x1c5   :  { %441 = vrsqrt.f32 %v244_v2  ;;  %vm264_vm6 = vmor %vm262_vm5, %vm263_vm4  ;;  %vm272_vm8 = vweird.f32 %v244_v2 }
 0x1c6   :  { %v258_v7 = vmul.f32 %v440_v1, %v257_v4  ;;  %v225_v8 = vpop.xlane.xlu1 %224  ;;  %v255_v9 = vsel %vm254_vm3, %v438_v53, %v251_v6  ;;  %v292_v53 = vld [vmem:[%s612_s4 + $0x10] sm:$0xff] }
 0x1c7   :  { %v229_v15 = vmul.f32 0.03125, %v225_v8  ;;  %v286_v16 = vmul.f32 %v255_v9, %v238_v5 }
 0x1c8   :  { %v259_v17 = vmul.f32 0.5, %v258_v7 }
 0x1c9   :  { %v237_v18 = vsub.f32 %v229_v15, %v233_v13  ;;  %304 = vperm.xlu2 %434, %v286_v16   ;;  %v294_v22 = vmul.f32 %v286_v16, %v210_v40 }
 0x1ca   :  { %v260_v19 = vsub.f32 1.5, %v259_v17 }
 0x1cb   :  { %v442_v20 = vpop.eup %441  ;;  %v245_v21 = vadd.f32 1e-05, %v237_v18  ;;  %v298_v29 = vsub.f32 %v290_v24, %v294_v22 }
 0x1cc   :  { %v267_v23 = vmul.f32 %v442_v20, %v244_v2  ;;  %v261_v26 = vmul.f32 %v440_v1, %v260_v19  ;;  %vm273_vm7 = vweird.f32 %v442_v20 }
 0x1cd   :  { %443 = vrsqrt.f32 %v245_v21  ;;  %vm274_vm9 = vmor %vm272_vm8, %vm273_vm7  ;;  %vm282_vm11 = vweird.f32 %v245_v21 }
 0x1ce   :  { %v268_v27 = vmul.f32 %v442_v20, %v267_v23  ;;  %v265_v28 = vsel %vm264_vm6, %v440_v1, %v261_v26 }
 0x1cf   :  { %v287_v30 = vmul.f32 %v265_v28, %v239_v25 }
 0x1d0   :  { %v269_v31 = vmul.f32 0.5, %v268_v27 }
 0x1d1   :  { %328 = vperm.xlu2 %434, %v298_v29   ;;  %309 = vperm.xlu0 %435, %v287_v30   ;;  %v295_v33 = vmul.f32 %v287_v30, %v211_v47 }
 0x1d2   :  { %v270_v34 = vsub.f32 1.5, %v269_v31 }
 0x1d3   :  { %v444_v35 = vpop.eup %443  ;;  %v299_v36 = vsub.f32 %v291_v32, %v295_v33 }
 0x1d4   :  { %v277_v37 = vmul.f32 %v444_v35, %v245_v21  ;;  %v271_v38 = vmul.f32 %v442_v20, %v270_v34  ;;  %vm283_vm10 = vweird.f32 %v444_v35 }
 0x1d5   :  { %333 = vperm.xlu1 %436, %v299_v36   ;;  %vm284_vm12 = vmor %vm282_vm11, %vm283_vm10 }
 0x1d6   :  { %v278_v39 = vmul.f32 %v444_v35, %v277_v37  ;;  %v275_v42 = vsel %vm274_vm9, %v442_v20, %v271_v38 }
 0x1d7   :  { %v288_v44 = vmul.f32 %v275_v42, %v240_v41 }
 0x1d8   :  { %v279_v40 = vmul.f32 0.5, %v278_v39 }
 0x1d9   :  { %v296_v52 = vmul.f32 %v288_v44, %v554_v55 }
 0x1da   :  { %v280_v43 = vsub.f32 1.5, %v279_v40 }
 0x1db   :  { %v300_v54 = vsub.f32 %v292_v53, %v296_v52 }
 0x1dc   :  { %v281_v46 = vmul.f32 %v444_v35, %v280_v43 }
 0x1dd   :  { %314 = vperm.xlu1 %436, %v288_v44  }
 0x1de   :  { %v285_v47 = vsel %vm284_vm12, %v444_v35, %v281_v46 }
 0x1df   :  { %v289_v48 = vmul.f32 %v285_v47, %v241_v45 }
 0x1e1   :  { %319 = vperm.xlu2 %434, %v289_v48   ;;  %v297_v50 = vmul.f32 %v289_v48, %v558_v3 }
 0x1e3   :  { %v301_v51 = vsub.f32 %v293_v49, %v297_v50 }
 0x1e5   :  { %343 = vperm.xlu1 %436, %v301_v51  }
 0x1e9   :  { %338 = vperm.xlu2 %434, %v300_v54  }
 0x223   :  { %v305_v56 = vpop.permute.xlu2 %304 }
 0x224   :  { %v322_v57 = vmul.f32 %v305_v56, %v506_v10 }
 0x22b   :  { %v329_v58 = vpop.permute.xlu2 %328 }
 0x22c   :  { %v346_v59 = vadd.f32 %v329_v58, %v322_v57 }
 0x22e   :  { %v350_v60 = vmax.f32 %v346_v59, 0.0 }
 0x230   :  { %v354_v61 = vpack.c.bf16 %v350_v60, %v350_v60 }
 0x232   :  { %359 = vst.msk [vmem:[%s613_s5] sm:$0xf] %vm358_vm13, %v354_v61 }
 0x23b   :  { %v320_v63 = vpop.permute.xlu2 %319 }
 0x23c   :  { %v325_v8 = vmul.f32 %v320_v63, %v510_v12 }
 0x243   :  { %v310_v55 = vpop.permute.xlu0 %309  ;;  %v339_v5 = vpop.permute.xlu2 %338 }
 0x244   :  { %v323_v62 = vmul.f32 %v310_v55, %v515_v14 }
 0x247   :  { %v334_v0 = vpop.permute.xlu1 %333 }
 0x248   :  { %v347_v1 = vadd.f32 %v334_v0, %v323_v62 }
 0x24a   :  { %v351_v2 = vmax.f32 %v347_v1, 0.0 }
 0x24c   :  { %v355_v3 = vpack.c.bf16 %v351_v2, %v351_v2 }
 0x24e   :  { %360 = vst.msk [vmem:[%s613_s5 + $0x4] sm:$0xf] %vm358_vm13, %v355_v3 }
 0x24f   :  { %v315_v10 = vpop.permute.xlu1 %314 }
 0x250   :  { %v324_v4 = vmul.f32 %v315_v10, %v508_v11 }
 0x252   :  { %v348_v6 = vadd.f32 %v339_v5, %v324_v4 }
 0x254   :  { %v352_v7 = vmax.f32 %v348_v6, 0.0 }
 0x256   :  { %v356_v9 = vpack.c.bf16 %v352_v7, %v352_v7 }
 0x257   :  { %v344_v14 = vpop.permute.xlu1 %343 }
 0x258   :  { %361 = vst.msk [vmem:[%s613_s5 + $0x8] sm:$0xf] %vm358_vm13, %v356_v9  ;;  %v349_v13 = vadd.f32 %v344_v14, %v325_v8 }
 0x25a   :  { %v353_v15 = vmax.f32 %v349_v13, 0.0 }
 0x25c   :  { %v357_v16 = vpack.c.bf16 %v353_v15, %v353_v15 }
 0x25e   :  { %362 = vst.msk [vmem:[%s613_s5 + $0xc] sm:$0xf] %vm358_vm13, %v357_v16 }

// kernel: generator_forward.9
= control target key start
LH: loop header
LB: loop body
LE: loop exit
PB: predicated region body
PF: predicated region fallthrough
CT: control target
= control target key end

     0   :  { %vm557_vm0 = vcmask 523264   ;;  %vm989_vm1 = vcmask 261120   ;;  %s3009_s1 = inlined_call_operand.vmem [shape: bf16[576,32], index: 1, kind: input, shape index: {}]   ;;  %s3010_s0 = inlined_call_operand.vmem [shape: bf16[128,576], index: 0, kind: input, shape index: {}]   ;;  %s3011_s2 = inlined_call_operand.vmem [shape: f32[128,128], index: 2, kind: input, shape index: {}]   ;;  %s3012_s3 = inlined_call_operand.vmem [shape: f32[128,1], index: 3, kind: input, shape index: {}]   ;;  %s3013_s4 = inlined_call_operand.vmem [shape: f32[128,1], index: 4, kind: input, shape index: {}]   ;;  %s3014_s5 = inlined_call_operand.vmem [shape: bf16[128,32], index: 5, kind: output, shape index: {}]  }
   0x1   :  { %v2010_v0 = vld [vmem:[%s3009_s1 + $0x38] sm:$0xff]  ;;  %v2009_v3 = vld [vmem:[%s3009_s1 + $0x30] sm:$0xff]  ;;  %v2008_v6 = vld [vmem:[%s3009_s1 + $0x28] sm:$0xff] }
   0x2   :  { %v2136_v1 = vld [vmem:[%s3009_s1 + $0x78] sm:$0xff]  ;;  %582 = vmatpush.bf16.msra.mxu0 %v2010_v0  ;;  %2039 = vmatpush.bf16.msra.mxu3 %v2010_v0  ;;  %v2151_v4 = vld [vmem:[%s3009_s1 + $0x70] sm:$0xff]  ;;  %v2016_v7 = vld [vmem:[%s3009_s1 + $0x68] sm:$0xff] }
   0x3   :  { %v2141_v2 = vld [vmem:[%s3009_s1 + $0xb8] sm:$0xff]  ;;  %631 = vmatpush.bf16.msra.mxu1 %v2136_v1  ;;  %v2156_v5 = vld [vmem:[%s3009_s1 + $0xb0] sm:$0xff]  ;;  %v2169_v8 = vld [vmem:[%s3009_s1 + $0xa8] sm:$0xff] }
   0x4   :  { %680 = vmatpush.bf16.msra.mxu2 %v2141_v2  ;;  %v2007_v9 = vld [vmem:[%s3009_s1 + $0x20] sm:$0xff]  ;;  %v2006_v12 = vld [vmem:[%s3009_s1 + $0x18] sm:$0xff]  ;;  %v2005_v15 = vld [vmem:[%s3009_s1 + $0x10] sm:$0xff] }
   0x5   :  { %v2015_v10 = vld [vmem:[%s3009_s1 + $0x60] sm:$0xff]  ;;  %v2014_v13 = vld [vmem:[%s3009_s1 + $0x58] sm:$0xff]  ;;  %v2013_v16 = vld [vmem:[%s3009_s1 + $0x50] sm:$0xff] }
   0x6   :  { %583 = vmatpush.bf16.msra.mxu0 %v2009_v3  ;;  %2040 = vmatpush.bf16.msra.mxu3 %v2009_v3  ;;  %v2181_v11 = vld [vmem:[%s3009_s1 + $0xa0] sm:$0xff]  ;;  %v2193_v14 = vld [vmem:[%s3009_s1 + $0x98] sm:$0xff]  ;;  %v2205_v17 = vld [vmem:[%s3009_s1 + $0x90] sm:$0xff] }
   0x7   :  { %632 = vmatpush.bf16.msra.mxu1 %v2151_v4  ;;  %v2004_v18 = vld [vmem:[%s3009_s1 + $0x8] sm:$0xff]  ;;  %v2003_v21 = vld [vmem:[%s3009_s1] sm:$0xff]  ;;  %v1965_v25 = vld [vmem:[%s3010_s0 + $0x10] sm:$0xf0] }
   0x8   :  { %681 = vmatpush.bf16.msra.mxu2 %v2156_v5  ;;  %v2012_v19 = vld [vmem:[%s3009_s1 + $0x48] sm:$0xff]  ;;  %v2011_v22 = vld [vmem:[%s3009_s1 + $0x40] sm:$0xff]  ;;  %v1773_v26 = vld [vmem:[%s3010_s0 + $0xf0] sm:$0xf] }
   0x9   :  { %v2217_v20 = vld [vmem:[%s3009_s1 + $0x88] sm:$0xff]  ;;  %v2228_v23 = vld [vmem:[%s3009_s1 + $0x80] sm:$0xff]  ;;  %v1655_v29 = vld [vmem:[%s3010_s0 + $0x14] sm:$0xf0] }
   0xa   :  { %584 = vmatpush.bf16.msra.mxu0 %v2008_v6  ;;  %2041 = vmatpush.bf16.msra.mxu3 %v2008_v6  ;;  %v1653_v24 = vld [vmem:[%s3010_s0] sm:$0xf]  ;;  %v1995_v27 = vld [vmem:[%s3010_s0 + $0x100] sm:$0xf0]  ;;  %v1661_v30 = vld [vmem:[%s3010_s0 + $0x8] sm:$0xf] }
   0xb   :  { %633 = vmatpush.bf16.msra.mxu1 %v2016_v7  ;;  %v1963_v28 = vld [vmem:[%s3010_s0 + $0x4] sm:$0xf]  ;;  %v1966_v31 = vld [vmem:[%s3010_s0 + $0x18] sm:$0xf0]  ;;  %v1654_v32 = vor.u32 %v1965_v25, %v1653_v24  ;;  %v1774_v33 = vor.u32 %v1995_v27, %v1773_v26  ;;  %v1673_v36 = vld [vmem:[%s3010_s0 + $0x28] sm:$0xf] }
   0xc   :  { %682 = vmatpush.bf16.msra.mxu2 %v2169_v8  ;;  %v1658_v34 = vor.u32 %v1963_v28, %v1655_v29  ;;  %v1662_v35 = vor.u32 %v1966_v31, %v1661_v30  ;;  %v1970_v37 = vld [vmem:[%s3010_s0 + $0x38] sm:$0xf0]  ;;  %v1793_v38 = vld [vmem:[%s3010_s0 + $0x118] sm:$0xf]  ;;  %v2000_v39 = vld [vmem:[%s3010_s0 + $0x128] sm:$0xf0] }
   0xd   :  { %v1968_v40 = vld [vmem:[%s3010_s0 + $0x2c] sm:$0xf]  ;;  %v1675_v41 = vld [vmem:[%s3010_s0 + $0x3c] sm:$0xf0]  ;;  %v1681_v42 = vld [vmem:[%s3010_s0 + $0x30] sm:$0xf]  ;;  %v1674_v44 = vor.u32 %v1970_v37, %v1673_v36  ;;  %v1794_v45 = vor.u32 %v2000_v39, %v1793_v38 }
   0xe   :  { %585 = vmatpush.bf16.msra.mxu0 %v2007_v9  ;;  %2042 = vmatpush.bf16.msra.mxu3 %v2007_v9  ;;  %v1971_v43 = vld [vmem:[%s3010_s0 + $0x40] sm:$0xf0]  ;;  %v1678_v46 = vor.u32 %v1968_v40, %v1675_v41  ;;  %v1693_v48 = vld [vmem:[%s3010_s0 + $0x50] sm:$0xf]  ;;  %v1973_v50 = vld [vmem:[%s3010_s0 + $0x54] sm:$0xf] }
   0xf   :  { %634 = vmatpush.bf16.msra.mxu1 %v2015_v10  ;;  %v1682_v47 = vor.u32 %v1971_v43, %v1681_v42  ;;  %v1975_v49 = vld [vmem:[%s3010_s0 + $0x60] sm:$0xf0]  ;;  %v1993_v51 = vld [vmem:[%s3010_s0 + $0xf4] sm:$0xf]  ;;  %v1775_v52 = vld [vmem:[%s3010_s0 + $0x104] sm:$0xf0] }
  0x10   :  { %683 = vmatpush.bf16.msra.mxu2 %v2181_v11  ;;  %v1695_v53 = vld [vmem:[%s3010_s0 + $0x64] sm:$0xf0]  ;;  %v1701_v54 = vld [vmem:[%s3010_s0 + $0x58] sm:$0xf]  ;;  %v1976_v55 = vld [vmem:[%s3010_s0 + $0x68] sm:$0xf0]  ;;  %v1694_v56 = vor.u32 %v1975_v49, %v1693_v48  ;;  %v1778_v57 = vor.u32 %v1993_v51, %v1775_v52 }
  0x11   :  { %v1698_v58 = vor.u32 %v1973_v50, %v1695_v53  ;;  %v1702_v59 = vor.u32 %v1976_v55, %v1701_v54  ;;  %v2038_v60 = vld [vmem:[%s3009_s1 + $0x118] sm:$0xff]  ;;  %v1980_v62 = vld [vmem:[%s3010_s0 + $0x88] sm:$0xf0]  ;;  %v1721_v3 = vld [vmem:[%s3010_s0 + $0x80] sm:$0xf] }
  0x12   :  { %586 = vmatpush.bf16.msra.mxu0 %v2006_v12  ;;  %2043 = vmatpush.bf16.msra.mxu3 %v2006_v12  ;;  %v1713_v61 = vld [vmem:[%s3010_s0 + $0x78] sm:$0xf]  ;;  %v1978_v63 = vld [vmem:[%s3010_s0 + $0x7c] sm:$0xf]  ;;  %v2037_v9 = vld [vmem:[%s3009_s1 + $0x110] sm:$0xff] }
  0x13   :  { %635 = vmatpush.bf16.msra.mxu1 %v2014_v13  ;;  %v1998_v0 = vld [vmem:[%s3010_s0 + $0x11c] sm:$0xf]  ;;  %v2035_v12 = vld [vmem:[%s3009_s1 + $0x100] sm:$0xff]  ;;  %v2032_v26 = vld [vmem:[%s3009_s1 + $0xe8] sm:$0xff] }
  0x14   :  { %684 = vmatpush.bf16.msra.mxu2 %v2193_v14  ;;  %v2031_v27 = vld [vmem:[%s3009_s1 + $0xe0] sm:$0xff]  ;;  %v2030_v28 = vld [vmem:[%s3009_s1 + $0xd8] sm:$0xff]  ;;  %v1753_v29 = vld [vmem:[%s3010_s0 + $0xc8] sm:$0xf] }
  0x15   :  { %v1990_v30 = vld [vmem:[%s3010_s0 + $0xd8] sm:$0xf0]  ;;  %v1988_v31 = vld [vmem:[%s3010_s0 + $0xcc] sm:$0xf]  ;;  %v1991_v36 = vld [vmem:[%s3010_s0 + $0xe0] sm:$0xf0] }
  0x16   :  { %587 = vmatpush.bf16.msra.mxu0 %v2005_v15  ;;  %2044 = vmatpush.bf16.msra.mxu3 %v2005_v15  ;;  %v1983_v15 = vld [vmem:[%s3010_s0 + $0xa4] sm:$0xf]  ;;  %v2029_v37 = vld [vmem:[%s3009_s1 + $0xd0] sm:$0xff]  ;;  %v1754_v38 = vor.u32 %v1990_v30, %v1753_v29  ;;  %v2028_v42 = vld [vmem:[%s3009_s1 + $0xc8] sm:$0xff] }
  0x17   :  { %636 = vmatpush.bf16.msra.mxu1 %v2013_v16  ;;  %v2027_v43 = vld [vmem:[%s3009_s1 + $0xc0] sm:$0xff]  ;;  %v1969_v50 = vld [vmem:[%s3010_s0 + $0x34] sm:$0xf]  ;;  %v1683_v51 = vld [vmem:[%s3010_s0 + $0x44] sm:$0xf0] }
  0x18   :  { %685 = vmatpush.bf16.msra.mxu2 %v2205_v17  ;;  %v1689_v52 = vld [vmem:[%s3010_s0 + $0x38] sm:$0xf]  ;;  %v1972_v53 = vld [vmem:[%s3010_s0 + $0x48] sm:$0xf0]  ;;  %v1686_v54 = vor.u32 %v1969_v50, %v1683_v51 }
  0x19   :  { %v1690_v55 = vor.u32 %v1972_v53, %v1689_v52 }
  0x1a   :  { %588 = vmatpush.bf16.msra.mxu0 %v2004_v18  ;;  %2045 = vmatpush.bf16.msra.mxu3 %v2004_v18  ;;  %v1735_v18 = vld [vmem:[%s3010_s0 + $0xb4] sm:$0xf0] }
  0x1b   :  { %637 = vmatpush.bf16.msra.mxu1 %v2012_v19  ;;  %v1738_v24 = vor.u32 %v1983_v15, %v1735_v18  ;;  %v1984_v18 = vld [vmem:[%s3010_s0 + $0xac] sm:$0xf] }
  0x1c   :  { %686 = vmatpush.bf16.msra.mxu2 %v2217_v20 }
  0x1e   :  { %589 = vmatpush.bf16.msra.mxu0 %v2003_v21  ;;  %2046 = vmatpush.bf16.msra.mxu3 %v2003_v21  ;;  %v2033_v21 = vld [vmem:[%s3009_s1 + $0xf0] sm:$0xff] }
  0x1f   :  { %638 = vmatpush.bf16.msra.mxu1 %v2011_v22 }
  0x20   :  { %687 = vmatpush.bf16.msra.mxu2 %v2228_v23 }
  0x21   :  { %590 = vmatmul.bf16.vlgmr.msra.gmra.mxu0 %v1654_v32  ;;  %620 = vmatmul.bf16.vlgmr.msra.gmra.mxu3 %v1774_v33  ;;  %v1801_v32 = vld [vmem:[%s3010_s0 + $0x120] sm:$0xf]  ;;  %v2001_v33 = vld [vmem:[%s3010_s0 + $0x130] sm:$0xf0] }
  0x22   :  { %2047 = vmatpush.bf16.msrb.mxu3 %v2136_v1  ;;  %639 = vmatmul.bf16.vlgmr.msra.gmra.mxu1 %v1658_v34  ;;  %v1795_v1 = vld [vmem:[%s3010_s0 + $0x12c] sm:$0xf0]  ;;  %v1755_v34 = vld [vmem:[%s3010_s0 + $0xdc] sm:$0xf0]  ;;  %v1802_v39 = vor.u32 %v2001_v33, %v1801_v32 }
  0x23   :  { %688 = vmatmul.bf16.vlgmr.msra.gmra.mxu2 %v1662_v35  ;;  %782 = vmatpush.bf16.msrb.mxu0 %v2038_v60  ;;  %v1798_v6 = vor.u32 %v1998_v0, %v1795_v1  ;;  %v1761_v35 = vld [vmem:[%s3010_s0 + $0xd0] sm:$0xf]  ;;  %v1758_v40 = vor.u32 %v1988_v31, %v1755_v34  ;;  %v1989_v34 = vld [vmem:[%s3010_s0 + $0xd4] sm:$0xf] }
  0x24   :  { %v1762_v41 = vor.u32 %v1991_v36, %v1761_v35  ;;  %v1763_v35 = vld [vmem:[%s3010_s0 + $0xe4] sm:$0xf0]  ;;  %v1769_v36 = vld [vmem:[%s3010_s0 + $0xd8] sm:$0xf] }
  0x26   :  { %2048 = vmatpush.bf16.msrb.mxu3 %v2151_v4  ;;  %v1981_v4 = vld [vmem:[%s3010_s0 + $0x90] sm:$0xf0] }
  0x27   :  { %783 = vmatpush.bf16.msrb.mxu0 %v2037_v9 }
  0x2a   :  { %2049 = vmatpush.bf16.msrb.mxu3 %v2016_v7 }
  0x2e   :  { %2050 = vmatpush.bf16.msrb.mxu3 %v2015_v10  ;;  %v2036_v10 = vld [vmem:[%s3009_s1 + $0x108] sm:$0xff] }
  0x2f   :  { %784 = vmatpush.bf16.msrb.mxu0 %v2036_v10 }
  0x31   :  { %595 = vmatmul.bf16.gmra.mxu0 %v1674_v44  ;;  %625 = vmatmul.bf16.gmra.mxu3 %v1794_v45  ;;  %v1964_v44 = vld [vmem:[%s3010_s0 + $0xc] sm:$0xf]  ;;  %v1663_v45 = vld [vmem:[%s3010_s0 + $0x1c] sm:$0xf0] }
  0x32   :  { %2051 = vmatpush.bf16.msrb.mxu3 %v2014_v13  ;;  %644 = vmatmul.bf16.gmra.mxu1 %v1678_v46  ;;  %v1733_v13 = vld [vmem:[%s3010_s0 + $0xa0] sm:$0xf]  ;;  %v1669_v46 = vld [vmem:[%s3010_s0 + $0x10] sm:$0xf]  ;;  %v1666_v48 = vor.u32 %v1964_v44, %v1663_v45 }
  0x33   :  { %693 = vmatmul.bf16.gmra.mxu2 %v1682_v47  ;;  %785 = vmatpush.bf16.msrb.mxu0 %v2035_v12  ;;  %v1967_v47 = vld [vmem:[%s3010_s0 + $0x20] sm:$0xf0] }
  0x34   :  { %v1670_v49 = vor.u32 %v1967_v47, %v1669_v46  ;;  %v1994_v46 = vld [vmem:[%s3010_s0 + $0xfc] sm:$0xf]  ;;  %v1783_v47 = vld [vmem:[%s3010_s0 + $0x10c] sm:$0xf0] }
  0x35   :  { %v1786_v52 = vor.u32 %v1994_v46, %v1783_v47 }
  0x36   :  { %2052 = vmatpush.bf16.msrb.mxu3 %v2013_v16  ;;  %v1781_v16 = vld [vmem:[%s3010_s0 + $0xf8] sm:$0xf] }
  0x3a   :  { %2053 = vmatpush.bf16.msrb.mxu3 %v2012_v19  ;;  %v1741_v19 = vld [vmem:[%s3010_s0 + $0xa8] sm:$0xf] }
  0x3e   :  { %2054 = vmatpush.bf16.msrb.mxu3 %v2011_v22 }
  0x41   :  { %600 = vmatmul.bf16.gmra.mxu0 %v1694_v56  ;;  %669 = vmatmul.bf16.vlgmr.msrb.gmra.mxu3 %v1778_v57  ;;  %v1974_v56 = vld [vmem:[%s3010_s0 + $0x5c] sm:$0xf]  ;;  %v1703_v57 = vld [vmem:[%s3010_s0 + $0x6c] sm:$0xf0] }
  0x42   :  { %2055 = vmatpush.bf16.msra.mxu3 %v2141_v2  ;;  %649 = vmatmul.bf16.gmra.mxu1 %v1698_v58  ;;  %v1715_v2 = vld [vmem:[%s3010_s0 + $0x8c] sm:$0xf0]  ;;  %v1709_v58 = vld [vmem:[%s3010_s0 + $0x60] sm:$0xf]  ;;  %v1706_v60 = vor.u32 %v1974_v56, %v1703_v57 }
  0x43   :  { %698 = vmatmul.bf16.gmra.mxu2 %v1702_v59  ;;  %v1718_v7 = vor.u32 %v1978_v63, %v1715_v2  ;;  %v1977_v59 = vld [vmem:[%s3010_s0 + $0x70] sm:$0xf0] }
  0x46   :  { %2056 = vmatpush.bf16.msra.mxu3 %v2156_v5  ;;  %v1714_v5 = vor.u32 %v1980_v62, %v1713_v61  ;;  %v1710_v61 = vor.u32 %v1977_v59, %v1709_v58  ;;  %v1999_v58 = vld [vmem:[%s3010_s0 + $0x124] sm:$0xf]  ;;  %v1803_v59 = vld [vmem:[%s3010_s0 + $0x134] sm:$0xf0] }
  0x4a   :  { %2057 = vmatpush.bf16.msra.mxu3 %v2169_v8  ;;  %v1722_v8 = vor.u32 %v1981_v4, %v1721_v3  ;;  %v1979_v4 = vld [vmem:[%s3010_s0 + $0x84] sm:$0xf] }
  0x4e   :  { %2058 = vmatpush.bf16.msra.mxu3 %v2181_v11  ;;  %v2034_v11 = vld [vmem:[%s3009_s1 + $0xf8] sm:$0xff] }
  0x51   :  { %605 = vmatmul.bf16.gmra.mxu0 %v1714_v5  ;;  %674 = vmatmul.bf16.gmra.mxu3 %v1798_v6  ;;  %v1723_v5 = vld [vmem:[%s3010_s0 + $0x94] sm:$0xf0]  ;;  %v1729_v6 = vld [vmem:[%s3010_s0 + $0x88] sm:$0xf] }
  0x52   :  { %2059 = vmatpush.bf16.msra.mxu3 %v2193_v14  ;;  %654 = vmatmul.bf16.gmra.mxu1 %v1718_v7  ;;  %v1985_v14 = vld [vmem:[%s3010_s0 + $0xb0] sm:$0xf0]  ;;  %v1982_v7 = vld [vmem:[%s3010_s0 + $0x98] sm:$0xf0]  ;;  %v1726_v10 = vor.u32 %v1979_v4, %v1723_v5  ;;  %v1806_v5 = vor.u32 %v1999_v58, %v1803_v59 }
  0x53   :  { %703 = vmatmul.bf16.gmra.mxu2 %v1722_v8  ;;  %v1734_v22 = vor.u32 %v1985_v14, %v1733_v13 }
  0x56   :  { %2060 = vmatpush.bf16.msra.mxu3 %v2205_v17  ;;  %v1996_v17 = vld [vmem:[%s3010_s0 + $0x108] sm:$0xf0] }
  0x5a   :  { %2061 = vmatpush.bf16.msra.mxu3 %v2217_v20  ;;  %v1986_v20 = vld [vmem:[%s3010_s0 + $0xb8] sm:$0xf0] }
  0x5b   :  { %v1742_v25 = vor.u32 %v1986_v20, %v1741_v19  ;;  %v1743_v19 = vld [vmem:[%s3010_s0 + $0xbc] sm:$0xf0]  ;;  %v1749_v20 = vld [vmem:[%s3010_s0 + $0xb0] sm:$0xf] }
  0x5e   :  { %2062 = vmatpush.bf16.msra.mxu3 %v2228_v23  ;;  %v1782_v23 = vor.u32 %v1996_v17, %v1781_v16 }
  0x61   :  { %610 = vmatmul.bf16.gmra.mxu0 %v1734_v22  ;;  %718 = vmatmul.bf16.vlgmr.msra.gmra.mxu3 %v1782_v23 }
  0x62   :  { %729 = vmatpush.bf16.msrb.mxu3 %v2034_v11  ;;  %659 = vmatmul.bf16.gmra.mxu1 %v1738_v24  ;;  %v1730_v11 = vor.u32 %v1982_v7, %v1729_v6  ;;  %v1746_v24 = vor.u32 %v1984_v18, %v1743_v19 }
  0x63   :  { %708 = vmatmul.bf16.gmra.mxu2 %v1742_v25 }
  0x66   :  { %730 = vmatpush.bf16.msrb.mxu3 %v2033_v21  ;;  %v1987_v21 = vld [vmem:[%s3010_s0 + $0xc0] sm:$0xf0] }
  0x67   :  { %v1750_v25 = vor.u32 %v1987_v21, %v1749_v20 }
  0x6a   :  { %731 = vmatpush.bf16.msrb.mxu3 %v2032_v26 }
  0x6e   :  { %732 = vmatpush.bf16.msrb.mxu3 %v2031_v27 }
  0x71   :  { %615 = vmatmul.bf16.gmra.mxu0 %v1754_v38  ;;  %723 = vmatmul.bf16.gmra.mxu3 %v1802_v39 }
  0x72   :  { %733 = vmatpush.bf16.msrb.mxu3 %v2030_v28  ;;  %664 = vmatmul.bf16.gmra.mxu1 %v1758_v40  ;;  %v1766_v40 = vor.u32 %v1989_v34, %v1763_v35 }
  0x73   :  { %713 = vmatmul.bf16.gmra.mxu2 %v1762_v41 }
  0x76   :  { %734 = vmatpush.bf16.msrb.mxu3 %v2029_v37  ;;  %v1992_v37 = vld [vmem:[%s3010_s0 + $0xe8] sm:$0xf0] }
  0x77   :  { %v1770_v41 = vor.u32 %v1992_v37, %v1769_v36 }
  0x7a   :  { %735 = vmatpush.bf16.msrb.mxu3 %v2028_v42 }
  0x7e   :  { %736 = vmatpush.bf16.msrb.mxu3 %v2027_v43 }
  0x81   :  { %737 = vmatmul.bf16.vlgmr.msrb.gmra.mxu3 %v1666_v48  ;;  %1955 = vmatmul.msk.bf16.vlgmr.msrb.gmra.mxu0 %vm557_vm0, %v1670_v49  ;;  %v1789_v48 = vld [vmem:[%s3010_s0 + $0x100] sm:$0xf]  ;;  %v1997_v49 = vld [vmem:[%s3010_s0 + $0x110] sm:$0xf0] }
  0x82   :  { %v1790_v53 = vor.u32 %v1997_v49, %v1789_v48 }
  0x91   :  { %742 = vmatmul.bf16.gmra.mxu3 %v1686_v54  ;;  %1956 = vmatmul.msk.bf16.gmra.mxu0 %vm557_vm0, %v1690_v55 }
  0x9e   :  { %v2460_v62 = vpop.f32.mrf.mxu0 }
  0x9f   :  { %v2462_v63 = vpop.f32.mrf.mxu1 }
  0xa0   :  { %v641_v20 = vadd.f32 %v2462_v63, %v2460_v62 }
  0xa1   :  { %747 = vmatmul.bf16.gmra.mxu3 %v1706_v60  ;;  %1957 = vmatmul.msk.bf16.gmra.mxu0 %vm557_vm0, %v1710_v61  ;;  %v1809_v60 = vld [vmem:[%s3010_s0 + $0x128] sm:$0xf]  ;;  %v2002_v61 = vld [vmem:[%s3010_s0 + $0x138] sm:$0xf0] }
  0xa2   :  { %v1810_v6 = vor.u32 %v2002_v61, %v1809_v60 }
  0xa4   :  { %v621_v0 = vpop.f32.mrf.mxu3 }
  0xa6   :  { %v2465_v1 = vpop.f32.mrf.mxu2  ;;  %v2467_v2 = vpop.f32.mrf.mxu0 }
  0xa7   :  { %v2469_v3 = vpop.f32.mrf.mxu1  ;;  %v690_v21 = vadd.f32 %v2465_v1, %v641_v20 }
  0xac   :  { %v623_v8 = vpop.f32.mrf.mxu3 }
  0xae   :  { %v2483_v9 = vpop.f32.mrf.mxu2  ;;  %v2485_v12 = vpop.f32.mrf.mxu0 }
  0xaf   :  { %v2487_v13 = vpop.f32.mrf.mxu1 }
  0xb0   :  { %v646_v34 = vadd.f32 %v2487_v13, %v2485_v12 }
  0xb1   :  { %752 = vmatmul.bf16.gmra.mxu3 %v1726_v10  ;;  %1958 = vmatmul.msk.bf16.gmra.mxu0 %vm557_vm0, %v1730_v11 }
  0xb4   :  { %v626_v14 = vpop.f32.mrf.mxu3 }
  0xb6   :  { %v2490_v15 = vpop.f32.mrf.mxu2  ;;  %v2492_v16 = vpop.f32.mrf.mxu0 }
  0xb7   :  { %v2494_v17 = vpop.f32.mrf.mxu1  ;;  %v695_v62 = vadd.f32 %v2490_v15, %v646_v34 }
  0xbc   :  { %v628_v22 = vpop.f32.mrf.mxu3 }
  0xbe   :  { %v2508_v23 = vpop.f32.mrf.mxu2  ;;  %v601_v26 = vpop.f32.mrf.mxu0 }
  0xbf   :  { %v650_v27 = vpop.f32.mrf.mxu1 }
  0xc0   :  { %v651_v28 = vadd.f32 %v650_v27, %v601_v26  ;;  %v643_v27 = vadd.f32 %v2469_v3, %v2467_v2  ;;  %v648_v2 = vadd.f32 %v2494_v17, %v2492_v16 }
  0xc1   :  { %757 = vmatmul.bf16.gmra.mxu3 %v1746_v24  ;;  %1959 = vmatmul.msk.bf16.gmra.mxu0 %vm557_vm0, %v1750_v25 }
  0xc2   :  { %v697_v3 = vadd.f32 %v2508_v23, %v648_v2 }
  0xc4   :  { %v670_v29 = vpop.f32.mrf.mxu3 }
  0xc5   :  { %v671_v30 = vadd.f32 %v670_v29, %v621_v0 }
  0xc6   :  { %v699_v31 = vpop.f32.mrf.mxu2  ;;  %v2513_v33 = vpop.f32.mrf.mxu0 }
  0xc7   :  { %v2511_v32 = vadd.f32 %v699_v31, %v651_v28  ;;  %v692_v28 = vadd.f32 %v2483_v9, %v643_v27  ;;  %v652_v12 = vpop.f32.mrf.mxu1 }
  0xc8   :  { %v653_v46 = vadd.f32 %v652_v12, %v2513_v33 }
  0xcc   :  { %v672_v38 = vpop.f32.mrf.mxu3 }
  0xcd   :  { %v673_v39 = vadd.f32 %v672_v38, %v623_v8 }
  0xce   :  { %v2527_v42 = vpop.f32.mrf.mxu0  ;;  %v701_v13 = vpop.f32.mrf.mxu2 }
  0xcf   :  { %v655_v47 = vpop.f32.mrf.mxu1  ;;  %v702_v48 = vadd.f32 %v701_v13, %v653_v46 }
  0xd1   :  { %762 = vmatmul.bf16.gmra.mxu3 %v1766_v40  ;;  %1960 = vmatmul.msk.bf16.gmra.mxu0 %vm557_vm0, %v1770_v41 }
  0xd4   :  { %v675_v43 = vpop.f32.mrf.mxu3 }
  0xd5   :  { %v676_v44 = vadd.f32 %v675_v43, %v626_v14 }
  0xd6   :  { %v2530_v45 = vpop.f32.mrf.mxu0  ;;  %v704_v23 = vpop.f32.mrf.mxu2 }
  0xdc   :  { %v677_v50 = vpop.f32.mrf.mxu3 }
  0xdd   :  { %v678_v51 = vadd.f32 %v677_v50, %v628_v22  ;;  %v656_v50 = vadd.f32 %v655_v47, %v2527_v42 }
  0xde   :  { %v2544_v54 = vpop.f32.mrf.mxu0  ;;  %v706_v60 = vpop.f32.mrf.mxu2 }
  0xe1   :  { %767 = vmatmul.bf16.gmra.mxu3 %v1786_v52  ;;  %1961 = vmatmul.msk.bf16.gmra.mxu0 %vm557_vm0, %v1790_v53  ;;  %v705_v52 = vadd.f32 %v704_v23, %v656_v50  ;;  %v657_v53 = vpop.f32.mrf.mxu1 }
  0xe2   :  { %v658_v33 = vadd.f32 %v657_v53, %v2530_v45 }
  0xe4   :  { %v719_v55 = vpop.f32.mrf.mxu3  ;;  %v707_v61 = vadd.f32 %v706_v60, %v658_v33 }
  0xe5   :  { %v2547_v56 = vadd.f32 %v719_v55, %v671_v30 }
  0xe6   :  { %v2549_v57 = vpop.f32.mrf.mxu0 }
  0xec   :  { %v721_v0 = vpop.f32.mrf.mxu3 }
  0xed   :  { %v2563_v4 = vadd.f32 %v721_v0, %v673_v39 }
  0xee   :  { %v2565_v7 = vpop.f32.mrf.mxu0 }
  0xf1   :  { %772 = vmatmul.bf16.gmra.mxu3 %v1806_v5  ;;  %1962 = vmatmul.msk.bf16.gmra.mxu0 %vm557_vm0, %v1810_v6  ;;  %v660_v6 = vpop.f32.mrf.mxu1 }
  0xf4   :  { %v724_v8 = vpop.f32.mrf.mxu3 }
  0xf5   :  { %v2568_v10 = vadd.f32 %v724_v8, %v676_v44 }
  0xf6   :  { %v2570_v11 = vpop.f32.mrf.mxu0 }
  0xfc   :  { %v726_v14 = vpop.f32.mrf.mxu3 }
  0xfd   :  { %v2572_v18 = vadd.f32 %v726_v14, %v678_v51  ;;  %v661_v14 = vadd.f32 %v660_v6, %v2544_v54 }
  0xfe   :  { %v787_v19 = vpop.f32.mrf.mxu0 }
 0x104   :  { %v738_v22 = vpop.f32.mrf.mxu3 }
 0x105   :  { %v739_v24 = vadd.f32 %v738_v22, %v690_v21 }
 0x106   :  { %v789_v25 = vpop.f32.mrf.mxu0 }
 0x107   :  { %v2577_v26 = vadd.f32 %v787_v19, %v739_v24  ;;  %v709_v19 = vpop.f32.mrf.mxu2 }
 0x108   :  { %v710_v20 = vadd.f32 %v709_v19, %v661_v14 }
 0x10c   :  { %v740_v29 = vpop.f32.mrf.mxu3 }
 0x10d   :  { %v741_v30 = vadd.f32 %v740_v29, %v692_v28 }
 0x10e   :  { %v792_v31 = vpop.f32.mrf.mxu0 }
 0x10f   :  { %v2584_v35 = vadd.f32 %v789_v25, %v741_v30 }
 0x114   :  { %v743_v63 = vpop.f32.mrf.mxu3 }
 0x115   :  { %v744_v1 = vadd.f32 %v743_v63, %v695_v62  ;;  %v662_v62 = vpop.f32.mrf.mxu1  ;;  %v711_v63 = vpop.f32.mrf.mxu2 }
 0x116   :  { %v794_v36 = vpop.f32.mrf.mxu0 }
 0x117   :  { %v2587_v37 = vadd.f32 %v792_v31, %v744_v1 }
 0x11c   :  { %v745_v9 = vpop.f32.mrf.mxu3 }
 0x11d   :  { %v746_v38 = vadd.f32 %v745_v9, %v697_v3  ;;  %v714_v2 = vpop.f32.mrf.mxu2 }
 0x11e   :  { %v797_v39 = vpop.f32.mrf.mxu0 }
 0x11f   :  { %v2592_v40 = vadd.f32 %v794_v36, %v746_v38  ;;  %v665_v36 = vpop.f32.mrf.mxu1 }
 0x124   :  { %v748_v41 = vpop.f32.mrf.mxu3 }
 0x125   :  { %v749_v15 = vadd.f32 %v748_v41, %v2511_v32  ;;  %v716_v12 = vpop.f32.mrf.mxu2  ;;  %v666_v41 = vadd.f32 %v665_v36, %v2565_v7  ;;  %v838_v36 = vld [vmem:[%s3011_s2 + $0x58] sm:$0xff] }
 0x126   :  { %v799_v43 = vpop.f32.mrf.mxu0 }
 0x127   :  { %v2595_v44 = vadd.f32 %v797_v39, %v749_v15  ;;  %v667_v38 = vpop.f32.mrf.mxu1 }
 0x128   :  { %v668_v15 = vadd.f32 %v667_v38, %v2570_v11  ;;  %v842_v38 = vld [vmem:[%s3011_s2 + $0x78] sm:$0xff] }
 0x129   :  { %v912_v19 = vmul.f32 %v2595_v44, %v2595_v44 }
 0x12c   :  { %v750_v16 = vpop.f32.mrf.mxu3 }
 0x12d   :  { %v751_v17 = vadd.f32 %v750_v16, %v702_v48  ;;  %v717_v48 = vadd.f32 %v716_v12, %v668_v15 }
 0x12e   :  { %v802_v49 = vpop.f32.mrf.mxu0 }
 0x12f   :  { %v2599_v51 = vadd.f32 %v799_v43, %v751_v17 }
 0x131   :  { %v913_v14 = vmul.f32 %v2599_v51, %v2599_v51 }
 0x134   :  { %v753_v55 = vpop.f32.mrf.mxu3 }
 0x135   :  { %v754_v58 = vadd.f32 %v753_v55, %v705_v52 }
 0x136   :  { %v804_v32 = vpop.f32.mrf.mxu0 }
 0x137   :  { %v2601_v59 = vadd.f32 %v802_v49, %v754_v58  ;;  %v715_v49 = vadd.f32 %v714_v2, %v666_v41  ;;  %v839_v2 = vld [vmem:[%s3011_s2 + $0x60] sm:$0xff] }
 0x13c   :  { %v755_v0 = vpop.f32.mrf.mxu3 }
 0x13d   :  { %v756_v5 = vadd.f32 %v755_v0, %v707_v61 }
 0x13e   :  { %v807_v8 = vpop.f32.mrf.mxu0 }
 0x13f   :  { %v2605_v42 = vadd.f32 %v804_v32, %v756_v5 }
 0x141   :  { %v915_v6 = vmul.f32 %v2605_v42, %v2605_v42 }
 0x144   :  { %v758_v21 = vpop.f32.mrf.mxu3 }
 0x145   :  { %v759_v22 = vadd.f32 %v758_v21, %v710_v20  ;;  %v911_v20 = vmul.f32 %v2592_v40, %v2592_v40  ;;  %v910_v21 = vmul.f32 %v2587_v37, %v2587_v37 }
 0x146   :  { %v809_v24 = vpop.f32.mrf.mxu0 }
 0x147   :  { %v2607_v25 = vadd.f32 %v807_v8, %v759_v22  ;;  %v914_v8 = vmul.f32 %v2601_v59, %v2601_v59  ;;  %v909_v22 = vmul.f32 %v2584_v35, %v2584_v35 }
 0x149   :  { %v916_v5 = vmul.f32 %v2607_v25, %v2607_v25 }
 0x14c   :  { %v760_v27 = vpop.f32.mrf.mxu3 }
 0x14e   :  { %v812_v28 = vpop.f32.mrf.mxu0 }
 0x154   :  { %v763_v29 = vpop.f32.mrf.mxu3 }
 0x155   :  { %v764_v11 = vadd.f32 %v763_v29, %v715_v49  ;;  %v829_v29 = vld [vmem:[%s3011_s2 + $0x10] sm:$0xff] }
 0x156   :  { %v814_v45 = vpop.f32.mrf.mxu0 }
 0x157   :  { %v2635_v58 = vadd.f32 %v812_v28, %v764_v11  ;;  %v828_v28 = vld [vmem:[%s3011_s2 + $0x8] sm:$0xff] }
 0x159   :  { %v918_v61 = vmul.f32 %v2635_v58, %v2635_v58 }
 0x15c   :  { %v765_v30 = vpop.f32.mrf.mxu3 }
 0x15d   :  { %v766_v50 = vadd.f32 %v765_v30, %v717_v48  ;;  %v831_v30 = vld [vmem:[%s3011_s2 + $0x20] sm:$0xff] }
 0x15e   :  { %v817_v31 = vpop.f32.mrf.mxu0 }
 0x15f   :  { %v2630_v53 = vadd.f32 %v814_v45, %v766_v50  ;;  %v830_v45 = vld [vmem:[%s3011_s2 + $0x18] sm:$0xff] }
 0x161   :  { %v919_v33 = vmul.f32 %v2630_v53, %v2630_v53 }
 0x164   :  { %v768_v34 = vpop.f32.mrf.mxu3 }
 0x165   :  { %v769_v16 = vadd.f32 %v768_v34, %v2547_v56  ;;  %v833_v34 = vld [vmem:[%s3011_s2 + $0x30] sm:$0xff] }
 0x166   :  { %v819_v1 = vpop.f32.mrf.mxu0 }
 0x16c   :  { %v770_v54 = vpop.f32.mrf.mxu3 }
 0x16d   :  { %v771_v43 = vadd.f32 %v770_v54, %v2563_v4  ;;  %v837_v54 = vld [vmem:[%s3011_s2 + $0x50] sm:$0xff] }
 0x16e   :  { %v822_v3 = vpop.f32.mrf.mxu0 }
 0x16f   :  { %v2620_v52 = vadd.f32 %v819_v1, %v771_v43  ;;  %v836_v1 = vld [vmem:[%s3011_s2 + $0x48] sm:$0xff] }
 0x171   :  { %v921_v55 = vmul.f32 %v2620_v52, %v2620_v52 }
 0x174   :  { %v773_v9 = vpop.f32.mrf.mxu3 }
 0x175   :  { %v774_v39 = vadd.f32 %v773_v9, %v2568_v10  ;;  %v663_v10 = vadd.f32 %v662_v62, %v2549_v57  ;;  %v834_v62 = vld [vmem:[%s3011_s2 + $0x38] sm:$0xff]  ;;  %v841_v9 = vld [vmem:[%s3011_s2 + $0x70] sm:$0xff] }
 0x176   :  { %v824_v47 = vpop.f32.mrf.mxu0 }
 0x177   :  { %v2615_v17 = vadd.f32 %v822_v3, %v774_v39  ;;  %v712_v7 = vadd.f32 %v711_v63, %v663_v10  ;;  %v835_v63 = vld [vmem:[%s3011_s2 + $0x40] sm:$0xff]  ;;  %v840_v3 = vld [vmem:[%s3011_s2 + $0x68] sm:$0xff] }
 0x179   :  { %v922_v56 = vmul.f32 %v2615_v17, %v2615_v17  ;;  %v761_v57 = vadd.f32 %v760_v27, %v712_v7  ;;  %v908_v27 = vmul.f32 %v2577_v26, %v2577_v26 }
 0x17b   :  { %v2640_v60 = vadd.f32 %v809_v24, %v761_v57  ;;  %v827_v24 = vld [vmem:[%s3011_s2] sm:$0xff] }
 0x17c   :  { %v775_v13 = vpop.f32.mrf.mxu3 }
 0x17d   :  { %v776_v46 = vadd.f32 %v775_v13, %v2572_v18  ;;  %v2625_v18 = vadd.f32 %v817_v31, %v769_v16  ;;  %v917_v0 = vmul.f32 %v2640_v60, %v2640_v60  ;;  %v832_v31 = vld [vmem:[%s3011_s2 + $0x28] sm:$0xff] }
 0x17f   :  { %v2617_v23 = vadd.f32 %v824_v47, %v776_v46  ;;  %v920_v32 = vmul.f32 %v2625_v18, %v2625_v18 }
 0x181   :  { %843 = vmatpush.msrb.mxu1 %v2617_v23  ;;  %v923_v4 = vmul.f32 %v2617_v23, %v2617_v23 }
 0x183   :  { %844 = vmatpush.msrb.mxu1 %v2615_v17  ;;  %924 = vmatpush.msrb.mxu2 %v923_v4 }
 0x185   :  { %845 = vmatpush.msrb.mxu1 %v2620_v52  ;;  %925 = vmatpush.msrb.mxu2 %v922_v56 }
 0x187   :  { %846 = vmatpush.msrb.mxu1 %v2625_v18  ;;  %926 = vmatpush.msrb.mxu2 %v921_v55 }
 0x189   :  { %847 = vmatpush.msrb.mxu1 %v2630_v53  ;;  %927 = vmatpush.msrb.mxu2 %v920_v32 }
 0x18b   :  { %848 = vmatpush.msrb.mxu1 %v2635_v58  ;;  %928 = vmatpush.msrb.mxu2 %v919_v33 }
 0x18d   :  { %849 = vmatpush.msrb.mxu1 %v2640_v60  ;;  %929 = vmatpush.msrb.mxu2 %v918_v61 }
 0x18f   :  { %850 = vmatpush.msrb.mxu1 %v2607_v25  ;;  %930 = vmatpush.msrb.mxu2 %v917_v0 }
 0x191   :  { %851 = vmatpush.msrb.mxu1 %v2605_v42  ;;  %931 = vmatpush.msrb.mxu2 %v916_v5 }
 0x193   :  { %852 = vmatpush.msrb.mxu1 %v2601_v59  ;;  %932 = vmatpush.msrb.mxu2 %v915_v6 }
 0x195   :  { %853 = vmatpush.msrb.mxu1 %v2599_v51  ;;  %933 = vmatpush.msrb.mxu2 %v914_v8 }
 0x197   :  { %854 = vmatpush.msrb.mxu1 %v2595_v44  ;;  %934 = vmatpush.msrb.mxu2 %v913_v14 }
 0x199   :  { %855 = vmatpush.msrb.mxu1 %v2592_v40  ;;  %935 = vmatpush.msrb.mxu2 %v912_v19 }
 0x19b   :  { %856 = vmatpush.msrb.mxu1 %v2587_v37  ;;  %936 = vmatpush.msrb.mxu2 %v911_v20 }
 0x19d   :  { %857 = vmatpush.msrb.mxu1 %v2584_v35  ;;  %937 = vmatpush.msrb.mxu2 %v910_v21 }
 0x19f   :  { %858 = vmatpush.msrb.mxu1 %v2577_v26  ;;  %938 = vmatpush.msrb.mxu2 %v909_v22 }
 0x1a0   :  { %859 = vmatmul.f32.vlgmr.msrb.gmra.mxu1 %v827_v24 }
 0x1a1   :  { %939 = vmatpush.msrb.mxu2 %v908_v27 }
 0x1a2   :  { %940 = vmatmul.f32.vlgmr.msrb.gmra.mxu2 %v827_v24 }
 0x1a8   :  { %862 = vmatmul.f32.gmra.mxu1 %v828_v28 }
 0x1aa   :  { %943 = vmatmul.f32.gmra.mxu2 %v828_v28 }
 0x1b0   :  { %865 = vmatmul.f32.gmra.mxu1 %v829_v29 }
 0x1b2   :  { %946 = vmatmul.f32.gmra.mxu2 %v829_v29 }
 0x1b8   :  { %868 = vmatmul.f32.gmra.mxu1 %v830_v45 }
 0x1ba   :  { %949 = vmatmul.f32.gmra.mxu2 %v830_v45 }
 0x1c0   :  { %871 = vmatmul.f32.gmra.mxu1 %v831_v30 }
 0x1c2   :  { %952 = vmatmul.f32.gmra.mxu2 %v831_v30 }
 0x1c8   :  { %874 = vmatmul.f32.gmra.mxu1 %v832_v31 }
 0x1ca   :  { %955 = vmatmul.f32.gmra.mxu2 %v832_v31 }
 0x1d0   :  { %877 = vmatmul.f32.gmra.mxu1 %v833_v34 }
 0x1d2   :  { %958 = vmatmul.f32.gmra.mxu2 %v833_v34 }
 0x1d8   :  { %880 = vmatmul.f32.gmra.mxu1 %v834_v62 }
 0x1da   :  { %961 = vmatmul.f32.gmra.mxu2 %v834_v62 }
 0x1e0   :  { %883 = vmatmul.f32.gmra.mxu1 %v835_v63 }
 0x1e2   :  { %964 = vmatmul.f32.gmra.mxu2 %v835_v63 }
 0x1e8   :  { %886 = vmatmul.f32.gmra.mxu1 %v836_v1 }
 0x1ea   :  { %967 = vmatmul.f32.gmra.mxu2 %v836_v1 }
 0x1f0   :  { %889 = vmatmul.f32.gmra.mxu1 %v837_v54 }
 0x1f2   :  { %970 = vmatmul.f32.gmra.mxu2 %v837_v54 }
 0x1f8   :  { %892 = vmatmul.f32.gmra.mxu1 %v838_v36 }
 0x1fa   :  { %973 = vmatmul.f32.gmra.mxu2 %v838_v36 }
 0x200   :  { %895 = vmatmul.f32.gmra.mxu1 %v839_v2 }
 0x202   :  { %976 = vmatmul.f32.gmra.mxu2 %v839_v2 }
 0x208   :  { %898 = vmatmul.f32.gmra.mxu1 %v840_v3 }
 0x20a   :  { %979 = vmatmul.f32.gmra.mxu2 %v840_v3 }
 0x210   :  { %901 = vmatmul.f32.gmra.mxu1 %v841_v9 }
 0x212   :  { %982 = vmatmul.f32.gmra.mxu2 %v841_v9 }
 0x218   :  { %904 = vmatmul.f32.gmra.mxu1 %v842_v38 }
 0x21a   :  { %985 = vmatmul.f32.gmra.mxu2 %v842_v38 }
 0x21d   :  { %v860_v39 = vpop.f32.mrf.mxu1 }
 0x21e   :  { %v990_v12 = vsel %vm989_vm1, %v860_v39, 0.0 }
 0x21f   :  { %991 = vadd.xlane.f32.xlu0 %v990_v12 }
 0x225   :  { %v941_v13 = vpop.f32.mrf.mxu2  ;;  %v863_v41 = vpop.f32.mrf.mxu1 }
 0x226   :  { %v1054_v15 = vsel %vm989_vm1, %v941_v13, 0.0  ;;  %v993_v43 = vsel %vm989_vm1, %v863_v41, 0.0 }
 0x227   :  { %1055 = vadd.xlane.f32.xlu1 %v1054_v15  ;;  %994 = vadd.xlane.f32.xlu0 %v993_v43 }
 0x22d   :  { %v944_v46 = vpop.f32.mrf.mxu2  ;;  %v866_v47 = vpop.f32.mrf.mxu1 }
 0x22e   :  { %v1057_v48 = vsel %vm989_vm1, %v944_v46, 0.0  ;;  %v996_v16 = vsel %vm989_vm1, %v866_v47, 0.0 }
 0x22f   :  { %1058 = vadd.xlane.f32.xlu2 %v1057_v48  ;;  %997 = vadd.xlane.f32.xlu1 %v996_v16 }
 0x235   :  { %v869_v10 = vpop.f32.mrf.mxu1  ;;  %v947_v49 = vpop.f32.mrf.mxu2 }
 0x236   :  { %v1060_v50 = vsel %vm989_vm1, %v947_v49, 0.0  ;;  %v999_v4 = vsel %vm989_vm1, %v869_v10, 0.0 }
 0x237   :  { %1061 = vadd.xlane.f32.xlu0 %v1060_v50  ;;  %1000 = vadd.xlane.f32.xlu1 %v999_v4  ;;  %v2099_v50 = vmov 0  }
 0x238   :  { %2064 = vset.pattern.permute.xlu2 %v2099_v50  ;;  %2065 = vset.pattern.permute.xlu1 %v2099_v50 }
 0x239   :  { %2066 = vset.pattern.permute.xlu0 %v2099_v50 }
 0x23d   :  { %v872_v7 = vpop.f32.mrf.mxu1  ;;  %v950_v11 = vpop.f32.mrf.mxu2 }
 0x23e   :  { %v1063_v56 = vsel %vm989_vm1, %v950_v11, 0.0  ;;  %v1002_v57 = vsel %vm989_vm1, %v872_v7, 0.0 }
 0x23f   :  { %1064 = vadd.xlane.f32.xlu1 %v1063_v56  ;;  %1003 = vadd.xlane.f32.xlu2 %v1002_v57 }
 0x245   :  { %v875_v55 = vpop.f32.mrf.mxu1  ;;  %v953_v32 = vpop.f32.mrf.mxu2 }
 0x246   :  { %v1005_v33 = vsel %vm989_vm1, %v875_v55, 0.0  ;;  %v1066_v5 = vsel %vm989_vm1, %v953_v32, 0.0 }
 0x247   :  { %1006 = vadd.xlane.f32.xlu2 %v1005_v33 }
 0x24d   :  { %v878_v61 = vpop.f32.mrf.mxu1  ;;  %v956_v0 = vpop.f32.mrf.mxu2 }
 0x24e   :  { %v1008_v6 = vsel %vm989_vm1, %v878_v61, 0.0  ;;  %v1069_v19 = vsel %vm989_vm1, %v956_v0, 0.0 }
 0x24f   :  { %1067 = vadd.xlane.f32.xlu2 %v1066_v5  ;;  %1009 = vadd.xlane.f32.xlu0 %v1008_v6 }
 0x255   :  { %v881_v8 = vpop.f32.mrf.mxu1  ;;  %v959_v14 = vpop.f32.mrf.mxu2 }
 0x256   :  { %v1011_v20 = vsel %vm989_vm1, %v881_v8, 0.0  ;;  %v1072_v24 = vsel %vm989_vm1, %v959_v14, 0.0 }
 0x257   :  { %1070 = vadd.xlane.f32.xlu0 %v1069_v19  ;;  %1012 = vadd.xlane.f32.xlu1 %v1011_v20 }
 0x25d   :  { %v884_v21 = vpop.f32.mrf.mxu1  ;;  %v962_v22 = vpop.f32.mrf.mxu2 }
 0x25e   :  { %v1014_v27 = vsel %vm989_vm1, %v884_v21, 0.0  ;;  %v1075_v45 = vsel %vm989_vm1, %v962_v22, 0.0 }
 0x25f   :  { %1073 = vadd.xlane.f32.xlu1 %v1072_v24  ;;  %1015 = vadd.xlane.f32.xlu2 %v1014_v27 }
 0x265   :  { %v887_v28 = vpop.f32.mrf.mxu1  ;;  %v965_v29 = vpop.f32.mrf.mxu2 }
 0x266   :  { %v1017_v30 = vsel %vm989_vm1, %v887_v28, 0.0  ;;  %v1078_v62 = vsel %vm989_vm1, %v965_v29, 0.0 }
 0x267   :  { %1076 = vadd.xlane.f32.xlu2 %v1075_v45  ;;  %1018 = vadd.xlane.f32.xlu0 %v1017_v30 }
 0x26d   :  { %v890_v31 = vpop.f32.mrf.mxu1  ;;  %v968_v34 = vpop.f32.mrf.mxu2 }
 0x26e   :  { %v1020_v63 = vsel %vm989_vm1, %v890_v31, 0.0  ;;  %v1081_v36 = vsel %vm989_vm1, %v968_v34, 0.0 }
 0x26f   :  { %1079 = vadd.xlane.f32.xlu0 %v1078_v62  ;;  %1021 = vadd.xlane.f32.xlu1 %v1020_v63 }
 0x275   :  { %v893_v1 = vpop.f32.mrf.mxu1  ;;  %v971_v54 = vpop.f32.mrf.mxu2 }
 0x276   :  { %v1023_v2 = vsel %vm989_vm1, %v893_v1, 0.0  ;;  %v1084_v38 = vsel %vm989_vm1, %v971_v54, 0.0 }
 0x277   :  { %1082 = vadd.xlane.f32.xlu1 %v1081_v36  ;;  %1024 = vadd.xlane.f32.xlu2 %v1023_v2 }
 0x27d   :  { %v896_v3 = vpop.f32.mrf.mxu1  ;;  %v974_v9 = vpop.f32.mrf.mxu2 }
 0x27e   :  { %v1026_v39 = vsel %vm989_vm1, %v896_v3, 0.0  ;;  %v1087_v41 = vsel %vm989_vm1, %v974_v9, 0.0 }
 0x27f   :  { %1085 = vadd.xlane.f32.xlu2 %v1084_v38  ;;  %1027 = vadd.xlane.f32.xlu0 %v1026_v39  ;;  %v1150_v38 = vld [vmem:[%s3012_s3] sm:$0xff] }
 0x285   :  { %v899_v12 = vpop.f32.mrf.mxu1  ;;  %v977_v13 = vpop.f32.mrf.mxu2 }
 0x286   :  { %v1029_v15 = vsel %vm989_vm1, %v899_v12, 0.0  ;;  %v1090_v47 = vsel %vm989_vm1, %v977_v13, 0.0 }
 0x287   :  { %1088 = vadd.xlane.f32.xlu0 %v1087_v41  ;;  %1030 = vadd.xlane.f32.xlu1 %v1029_v15 }
 0x28d   :  { %v902_v43 = vpop.f32.mrf.mxu1  ;;  %v980_v46 = vpop.f32.mrf.mxu2 }
 0x28e   :  { %v1032_v48 = vsel %vm989_vm1, %v902_v43, 0.0  ;;  %v1093_v4 = vsel %vm989_vm1, %v980_v46, 0.0 }
 0x28f   :  { %1091 = vadd.xlane.f32.xlu1 %v1090_v47  ;;  %1033 = vadd.xlane.f32.xlu2 %v1032_v48 }
 0x292   :  { %v992_v16 = vpop.xlane.xlu0 %991 }
 0x293   :  { %v1038_v11 = vmul.f32 0.0078125, %v992_v16  ;;  %v1358_v16 = vld [vmem:[%s3013_s4] sm:$0xff] }
 0x295   :  { %v905_v10 = vpop.f32.mrf.mxu1  ;;  %v983_v49 = vpop.f32.mrf.mxu2  ;;  %v1118_v57 = vmul.f32 %v1038_v11, %v1038_v11 }
 0x296   :  { %v1035_v7 = vsel %vm989_vm1, %v905_v10, 0.0  ;;  %v1096_v5 = vsel %vm989_vm1, %v983_v49, 0.0 }
 0x297   :  { %1094 = vadd.xlane.f32.xlu2 %v1093_v4  ;;  %1036 = vadd.xlane.f32.xlu0 %v1035_v7 }
 0x29a   :  { %v1056_v56 = vpop.xlane.xlu1 %1055  ;;  %v995_v32 = vpop.xlane.xlu0 %994 }
 0x29b   :  { %v1102_v55 = vmul.f32 0.0078125, %v1056_v56  ;;  %v2758_v8 = vmul.f32 0.0078125, %v995_v32 }
 0x29d   :  { %v1134_v33 = vsub.f32 %v1102_v55, %v1118_v57  ;;  %v986_v61 = vpop.f32.mrf.mxu2  ;;  %v1119_v20 = vmul.f32 %v2758_v8, %v2758_v8  ;;  %v1151_v55 = vld [vmem:[%s3012_s3 + $0x8] sm:$0xff] }
 0x29e   :  { %v1099_v0 = vsel %vm989_vm1, %v986_v61, 0.0 }
 0x29f   :  { %v1166_v6 = vadd.f32 1e-05, %v1134_v33  ;;  %1100 = vadd.xlane.f32.xlu1 %v1099_v0  ;;  %1097 = vadd.xlane.f32.xlu0 %v1096_v5 }
 0x2a1   :  { %2067 = vrsqrt.f32 %v1166_v6  ;;  %vm1188_vm3 = vweird.f32 %v1166_v6 }
 0x2a2   :  { %v1059_v14 = vpop.xlane.xlu2 %1058  ;;  %v998_v19 = vpop.xlane.xlu1 %997 }
 0x2a3   :  { %v1103_v21 = vmul.f32 0.0078125, %v1059_v14  ;;  %v2762_v28 = vmul.f32 0.0078125, %v998_v19 }
 0x2a5   :  { %v1135_v22 = vsub.f32 %v1103_v21, %v1119_v20  ;;  %v1120_v34 = vmul.f32 %v2762_v28, %v2762_v28 }
 0x2a7   :  { %v2068_v24 = vpop.eup %2067  ;;  %v1167_v27 = vadd.f32 1e-05, %v1135_v22  ;;  %v1152_v22 = vld [vmem:[%s3012_s3 + $0x10] sm:$0xff] }
 0x2a8   :  { %v1183_v29 = vmul.f32 %v2068_v24, %v1166_v6  ;;  %vm1189_vm2 = vweird.f32 %v2068_v24 }
 0x2a9   :  { %2069 = vrsqrt.f32 %v1167_v27  ;;  %vm1190_vm4 = vmor %vm1188_vm3, %vm1189_vm2  ;;  %vm1198_vm6 = vweird.f32 %v1167_v27 }
 0x2aa   :  { %v1184_v45 = vmul.f32 %v2068_v24, %v1183_v29  ;;  %v1062_v30 = vpop.xlane.xlu0 %1061  ;;  %v1001_v31 = vpop.xlane.xlu1 %1000 }
 0x2ab   :  { %v1104_v62 = vmul.f32 0.0078125, %v1062_v30  ;;  %v2766_v3 = vmul.f32 0.0078125, %v1001_v31 }
 0x2ac   :  { %v1185_v63 = vmul.f32 0.5, %v1184_v45 }
 0x2ad   :  { %v1136_v1 = vsub.f32 %v1104_v62, %v1120_v34  ;;  %v1121_v43 = vmul.f32 %v2766_v3, %v2766_v3 }
 0x2ae   :  { %v1186_v54 = vsub.f32 1.5, %v1185_v63 }
 0x2af   :  { %v2070_v36 = vpop.eup %2069  ;;  %v1168_v2 = vadd.f32 1e-05, %v1136_v1 }
 0x2b0   :  { %v1193_v9 = vmul.f32 %v2070_v36, %v1167_v27  ;;  %v1187_v39 = vmul.f32 %v2068_v24, %v1186_v54  ;;  %vm1199_vm5 = vweird.f32 %v2070_v36  ;;  %v1359_v27 = vld [vmem:[%s3013_s4 + $0x8] sm:$0xff]  ;;  %v1360_v54 = vld [vmem:[%s3013_s4 + $0x10] sm:$0xff] }
 0x2b1   :  { %2071 = vrsqrt.f32 %v1168_v2  ;;  %vm1200_vm7 = vmor %vm1198_vm6, %vm1199_vm5  ;;  %vm1208_vm9 = vweird.f32 %v1168_v2 }
 0x2b2   :  { %v1194_v12 = vmul.f32 %v2070_v36, %v1193_v9  ;;  %v1065_v13 = vpop.xlane.xlu1 %1064  ;;  %v1004_v41 = vpop.xlane.xlu2 %1003  ;;  %v1191_v15 = vsel %vm1190_vm4, %v2068_v24, %v1187_v39 }
 0x2b3   :  { %v1105_v46 = vmul.f32 0.0078125, %v1065_v13  ;;  %v1342_v47 = vmul.f32 %v1191_v15, %v1150_v38  ;;  %v2779_v19 = vmul.f32 0.0078125, %v1004_v41  ;;  %v1153_v41 = vld [vmem:[%s3012_s3 + $0x18] sm:$0xff] }
 0x2b4   :  { %v1195_v48 = vmul.f32 0.5, %v1194_v12 }
 0x2b5   :  { %v1137_v10 = vsub.f32 %v1105_v46, %v1121_v43  ;;  %1408 = vperm.xlu2 %2064, %v1342_v47   ;;  %v1374_v49 = vmul.f32 %v1342_v47, %v1038_v11  ;;  %v1122_v34 = vmul.f32 %v2779_v19, %v2779_v19 }
 0x2b6   :  { %v1196_v50 = vsub.f32 1.5, %v1195_v48 }
 0x2b7   :  { %v2072_v4 = vpop.eup %2071  ;;  %v1169_v7 = vadd.f32 1e-05, %v1137_v10  ;;  %v1390_v56 = vsub.f32 %v1358_v16, %v1374_v49  ;;  %v1361_v16 = vld [vmem:[%s3013_s4 + $0x18] sm:$0xff] }
 0x2b8   :  { %v1203_v57 = vmul.f32 %v2072_v4, %v1168_v2  ;;  %v1197_v32 = vmul.f32 %v2070_v36, %v1196_v50  ;;  %vm1209_vm8 = vweird.f32 %v2072_v4 }
 0x2b9   :  { %2073 = vrsqrt.f32 %v1169_v7  ;;  %1504 = vperm.xlu1 %2065, %v1390_v56   ;;  %vm1210_vm10 = vmor %vm1208_vm9, %vm1209_vm8  ;;  %vm1218_vm12 = vweird.f32 %v1169_v7 }
 0x2ba   :  { %v1204_v33 = vmul.f32 %v2072_v4, %v1203_v57  ;;  %v1007_v61 = vpop.xlane.xlu2 %1006  ;;  %v1201_v0 = vsel %vm1200_vm7, %v2070_v36, %v1197_v32 }
 0x2bb   :  { %v1343_v5 = vmul.f32 %v1201_v0, %v1151_v55  ;;  %v2794_v38 = vmul.f32 0.0078125, %v1007_v61 }
 0x2bc   :  { %v1205_v11 = vmul.f32 0.5, %v1204_v33 }
 0x2bd   :  { %1413 = vperm.xlu0 %2066, %v1343_v5   ;;  %v1375_v20 = vmul.f32 %v1343_v5, %v2758_v8 }
 0x2be   :  { %v1206_v6 = vsub.f32 1.5, %v1205_v11 }
 0x2bf   :  { %v2074_v14 = vpop.eup %2073  ;;  %v1391_v63 = vsub.f32 %v1359_v27, %v1375_v20 }
 0x2c0   :  { %v1213_v21 = vmul.f32 %v2074_v14, %v1169_v7  ;;  %v1207_v24 = vmul.f32 %v2072_v4, %v1206_v6  ;;  %vm1219_vm11 = vweird.f32 %v2074_v14 }
 0x2c1   :  { %vm1220_vm13 = vmor %vm1218_vm12, %vm1219_vm11 }
 0x2c2   :  { %v1214_v29 = vmul.f32 %v2074_v14, %v1213_v21  ;;  %v1068_v45 = vpop.xlane.xlu2 %1067  ;;  %v1010_v30 = vpop.xlane.xlu0 %1009  ;;  %v1211_v31 = vsel %vm1210_vm10, %v2072_v4, %v1207_v24 }
 0x2c3   :  { %v1106_v8 = vmul.f32 0.0078125, %v1068_v45  ;;  %v1344_v62 = vmul.f32 %v1211_v31, %v1152_v22  ;;  %v2805_v4 = vmul.f32 0.0078125, %v1010_v30  ;;  %v1154_v22 = vld [vmem:[%s3012_s3 + $0x20] sm:$0xff] }
 0x2c4   :  { %v1215_v1 = vmul.f32 0.5, %v1214_v29 }
 0x2c5   :  { %v1138_v36 = vsub.f32 %v1106_v8, %v1122_v34  ;;  %1418 = vperm.xlu1 %2065, %v1344_v62   ;;  %1509 = vperm.xlu0 %2066, %v1391_v63   ;;  %v1376_v2 = vmul.f32 %v1344_v62, %v2762_v28  ;;  %v1123_v28 = vmul.f32 %v2794_v38, %v2794_v38  ;;  %v1362_v63 = vld [vmem:[%s3013_s4 + $0x20] sm:$0xff] }
 0x2c6   :  { %v1216_v9 = vsub.f32 1.5, %v1215_v1  ;;  %v1124_v61 = vmul.f32 %v2805_v4, %v2805_v4 }
 0x2c7   :  { %v1170_v39 = vadd.f32 1e-05, %v1138_v36  ;;  %v1392_v12 = vsub.f32 %v1360_v54, %v1376_v2 }
 0x2c8   :  { %v1217_v13 = vmul.f32 %v2074_v14, %v1216_v9 }
 0x2c9   :  { %2075 = vrsqrt.f32 %v1170_v39  ;;  %1514 = vperm.xlu2 %2064, %v1392_v12   ;;  %vm1228_vm15 = vweird.f32 %v1170_v39 }
 0x2ca   :  { %v1071_v15 = vpop.xlane.xlu0 %1070  ;;  %v1013_v43 = vpop.xlane.xlu1 %1012  ;;  %v1221_v46 = vsel %vm1220_vm13, %v2074_v14, %v1217_v13 }
 0x2cb   :  { %v1107_v47 = vmul.f32 0.0078125, %v1071_v15  ;;  %v1345_v48 = vmul.f32 %v1221_v46, %v1153_v41  ;;  %v2809_v14 = vmul.f32 0.0078125, %v1013_v43  ;;  %v1155_v41 = vld [vmem:[%s3012_s3 + $0x28] sm:$0xff] }
 0x2cd   :  { %v1139_v10 = vsub.f32 %v1107_v47, %v1123_v28  ;;  %v1377_v49 = vmul.f32 %v1345_v48, %v2766_v3  ;;  %v1125_v31 = vmul.f32 %v2809_v14, %v2809_v14 }
 0x2cf   :  { %v2076_v50 = vpop.eup %2075  ;;  %v1171_v7 = vadd.f32 1e-05, %v1139_v10  ;;  %v1393_v56 = vsub.f32 %v1361_v16, %v1377_v49  ;;  %v1363_v49 = vld [vmem:[%s3013_s4 + $0x28] sm:$0xff] }
 0x2d0   :  { %v1223_v57 = vmul.f32 %v2076_v50, %v1170_v39  ;;  %vm1229_vm14 = vweird.f32 %v2076_v50 }
 0x2d1   :  { %2077 = vrsqrt.f32 %v1171_v7  ;;  %1519 = vperm.xlu1 %2065, %v1393_v56   ;;  %1423 = vperm.xlu2 %2064, %v1345_v48   ;;  %vm1230_vm0 = vmor %vm1228_vm15, %vm1229_vm14  ;;  %vm1238_vm2 = vweird.f32 %v1171_v7 }
 0x2d2   :  { %v1224_v55 = vmul.f32 %v2076_v50, %v1223_v57  ;;  %v1074_v32 = vpop.xlane.xlu1 %1073  ;;  %v1016_v33 = vpop.xlane.xlu2 %1015 }
 0x2d3   :  { %v1108_v0 = vmul.f32 0.0078125, %v1074_v32  ;;  %v2820_v9 = vmul.f32 0.0078125, %v1016_v33 }
 0x2d4   :  { %v1225_v5 = vmul.f32 0.5, %v1224_v55 }
 0x2d5   :  { %v1140_v11 = vsub.f32 %v1108_v0, %v1124_v61  ;;  %v1126_v47 = vmul.f32 %v2820_v9, %v2820_v9 }
 0x2d6   :  { %v1226_v6 = vsub.f32 1.5, %v1225_v5  ;;  %v1156_v5 = vld [vmem:[%s3012_s3 + $0x30] sm:$0xff] }
 0x2d7   :  { %v2078_v3 = vpop.eup %2077  ;;  %v1172_v20 = vadd.f32 1e-05, %v1140_v11 }
 0x2d8   :  { %v1233_v21 = vmul.f32 %v2078_v3, %v1171_v7  ;;  %v1227_v24 = vmul.f32 %v2076_v50, %v1226_v6  ;;  %vm1239_vm1 = vweird.f32 %v2078_v3 }
 0x2d9   :  { %2079 = vrsqrt.f32 %v1172_v20  ;;  %vm1240_vm3 = vmor %vm1238_vm2, %vm1239_vm1  ;;  %vm1248_vm5 = vweird.f32 %v1172_v20 }
 0x2da   :  { %v1234_v27 = vmul.f32 %v2078_v3, %v1233_v21  ;;  %v1077_v29 = vpop.xlane.xlu2 %1076  ;;  %v1019_v45 = vpop.xlane.xlu0 %1018  ;;  %v1231_v30 = vsel %vm1230_vm0, %v2076_v50, %v1227_v24 }
 0x2db   :  { %v1109_v34 = vmul.f32 0.0078125, %v1077_v29  ;;  %v1346_v8 = vmul.f32 %v1231_v30, %v1154_v22  ;;  %v2831_v55 = vmul.f32 0.0078125, %v1019_v45 }
 0x2dc   :  { %v1235_v62 = vmul.f32 0.5, %v1234_v27 }
 0x2dd   :  { %v1141_v1 = vsub.f32 %v1109_v34, %v1125_v31  ;;  %1428 = vperm.xlu2 %2064, %v1346_v8   ;;  %v1378_v54 = vmul.f32 %v1346_v8, %v2779_v19  ;;  %v1127_v21 = vmul.f32 %v2831_v55, %v2831_v55 }
 0x2de   :  { %v1236_v36 = vsub.f32 1.5, %v1235_v62 }
 0x2df   :  { %v2080_v2 = vpop.eup %2079  ;;  %v1173_v39 = vadd.f32 1e-05, %v1141_v1  ;;  %v1394_v12 = vsub.f32 %v1362_v63, %v1378_v54  ;;  %v1157_v1 = vld [vmem:[%s3012_s3 + $0x38] sm:$0xff] }
 0x2e0   :  { %v1243_v13 = vmul.f32 %v2080_v2, %v1172_v20  ;;  %v1237_v15 = vmul.f32 %v2078_v3, %v1236_v36  ;;  %vm1249_vm4 = vweird.f32 %v2080_v2  ;;  %v1364_v20 = vld [vmem:[%s3013_s4 + $0x30] sm:$0xff] }
 0x2e1   :  { %2081 = vrsqrt.f32 %v1173_v39  ;;  %1524 = vperm.xlu0 %2066, %v1394_v12   ;;  %vm1250_vm6 = vmor %vm1248_vm5, %vm1249_vm4  ;;  %vm1258_vm8 = vweird.f32 %v1173_v39 }
 0x2e2   :  { %v1244_v43 = vmul.f32 %v2080_v2, %v1243_v13  ;;  %v1080_v46 = vpop.xlane.xlu0 %1079  ;;  %v1022_v19 = vpop.xlane.xlu1 %1021  ;;  %v1241_v28 = vsel %vm1240_vm3, %v2078_v3, %v1237_v15 }
 0x2e3   :  { %v1110_v48 = vmul.f32 0.0078125, %v1080_v46  ;;  %v1347_v16 = vmul.f32 %v1241_v28, %v1155_v41  ;;  %v2842_v34 = vmul.f32 0.0078125, %v1022_v19 }
 0x2e4   :  { %v1245_v10 = vmul.f32 0.5, %v1244_v43  ;;  %v1365_v43 = vld [vmem:[%s3013_s4 + $0x38] sm:$0xff] }
 0x2e5   :  { %v1142_v50 = vsub.f32 %v1110_v48, %v1126_v47  ;;  %1433 = vperm.xlu1 %2065, %v1347_v16   ;;  %v1379_v7 = vmul.f32 %v1347_v16, %v2794_v38  ;;  %v1128_v13 = vmul.f32 %v2842_v34, %v2842_v34 }
 0x2e6   :  { %v1246_v56 = vsub.f32 1.5, %v1245_v10 }
 0x2e7   :  { %v2082_v57 = vpop.eup %2081  ;;  %v1174_v32 = vadd.f32 1e-05, %v1142_v50  ;;  %v1395_v33 = vsub.f32 %v1363_v49, %v1379_v7  ;;  %v1158_v7 = vld [vmem:[%s3012_s3 + $0x40] sm:$0xff] }
 0x2e8   :  { %v1247_v61 = vmul.f32 %v2080_v2, %v1246_v56  ;;  %v1253_v0 = vmul.f32 %v2082_v57, %v1173_v39  ;;  %vm1259_vm7 = vweird.f32 %v2082_v57 }
 0x2e9   :  { %2083 = vrsqrt.f32 %v1174_v32  ;;  %1529 = vperm.xlu2 %2064, %v1395_v33   ;;  %vm1260_vm9 = vmor %vm1258_vm8, %vm1259_vm7  ;;  %vm1268_vm11 = vweird.f32 %v1174_v32 }
 0x2ea   :  { %v1254_v11 = vmul.f32 %v2082_v57, %v1253_v0  ;;  %v1083_v6 = vpop.xlane.xlu1 %1082  ;;  %v1025_v38 = vpop.xlane.xlu2 %1024  ;;  %v1251_v3 = vsel %vm1250_vm6, %v2080_v2, %v1247_v61 }
 0x2eb   :  { %v1111_v22 = vmul.f32 0.0078125, %v1083_v6  ;;  %v1348_v24 = vmul.f32 %v1251_v3, %v1156_v5  ;;  %v2853_v48 = vmul.f32 0.0078125, %v1025_v38 }
 0x2ec   :  { %v1255_v27 = vmul.f32 0.5, %v1254_v11 }
 0x2ed   :  { %v1143_v29 = vsub.f32 %v1111_v22, %v1127_v21  ;;  %v1380_v45 = vmul.f32 %v1348_v24, %v2805_v4  ;;  %v1129_v61 = vmul.f32 %v2853_v48, %v2853_v48 }
 0x2ee   :  { %v1256_v30 = vsub.f32 1.5, %v1255_v27 }
 0x2ef   :  { %v2084_v31 = vpop.eup %2083  ;;  %v1175_v8 = vadd.f32 1e-05, %v1143_v29  ;;  %v1396_v62 = vsub.f32 %v1364_v20, %v1380_v45  ;;  %v1159_v45 = vld [vmem:[%s3012_s3 + $0x48] sm:$0xff] }
 0x2f0   :  { %v1263_v63 = vmul.f32 %v2084_v31, %v1174_v32  ;;  %v1257_v54 = vmul.f32 %v2082_v57, %v1256_v30  ;;  %vm1269_vm10 = vweird.f32 %v2084_v31  ;;  %v1366_v32 = vld [vmem:[%s3013_s4 + $0x40] sm:$0xff] }
 0x2f1   :  { %2085 = vrsqrt.f32 %v1175_v8  ;;  %1534 = vperm.xlu1 %2065, %v1396_v62   ;;  %1438 = vperm.xlu2 %2064, %v1348_v24   ;;  %vm1270_vm12 = vmor %vm1268_vm11, %vm1269_vm10  ;;  %vm1278_vm14 = vweird.f32 %v1175_v8 }
 0x2f2   :  { %v1264_v36 = vmul.f32 %v2084_v31, %v1263_v63  ;;  %v1086_v4 = vpop.xlane.xlu2 %1085  ;;  %v1028_v2 = vpop.xlane.xlu0 %1027  ;;  %v1261_v12 = vsel %vm1260_vm9, %v2082_v57, %v1257_v54 }
 0x2f3   :  { %v1112_v41 = vmul.f32 0.0078125, %v1086_v4  ;;  %v1349_v15 = vmul.f32 %v1261_v12, %v1157_v1  ;;  %v2864_v22 = vmul.f32 0.0078125, %v1028_v2 }
 0x2f4   :  { %v1265_v39 = vmul.f32 0.5, %v1264_v36 }
 0x2f5   :  { %v1144_v46 = vsub.f32 %v1112_v41, %v1128_v13  ;;  %v1381_v19 = vmul.f32 %v1349_v15, %v2809_v14  ;;  %v1130_v63 = vmul.f32 %v2864_v22, %v2864_v22 }
 0x2f6   :  { %v1266_v28 = vsub.f32 1.5, %v1265_v39 }
 0x2f7   :  { %v2086_v47 = vpop.eup %2085  ;;  %v1176_v16 = vadd.f32 1e-05, %v1144_v46  ;;  %v1397_v10 = vsub.f32 %v1365_v43, %v1381_v19  ;;  %v1160_v46 = vld [vmem:[%s3012_s3 + $0x50] sm:$0xff] }
 0x2f8   :  { %v1267_v49 = vmul.f32 %v2084_v31, %v1266_v28  ;;  %v1273_v50 = vmul.f32 %v2086_v47, %v1175_v8  ;;  %vm1279_vm13 = vweird.f32 %v2086_v47  ;;  %v1367_v8 = vld [vmem:[%s3013_s4 + $0x48] sm:$0xff] }
 0x2f9   :  { %2087 = vrsqrt.f32 %v1176_v16  ;;  %1443 = vperm.xlu1 %2065, %v1349_v15   ;;  %1539 = vperm.xlu0 %2066, %v1397_v10   ;;  %vm1280_vm15 = vmor %vm1278_vm14, %vm1279_vm13  ;;  %vm1288_vm1 = vweird.f32 %v1176_v16 }
 0x2fa   :  { %v1274_v56 = vmul.f32 %v2086_v47, %v1273_v50  ;;  %v1089_v14 = vpop.xlane.xlu0 %1088  ;;  %v1031_v57 = vpop.xlane.xlu1 %1030  ;;  %v1271_v33 = vsel %vm1270_vm12, %v2084_v31, %v1267_v49 }
 0x2fb   :  { %v1113_v0 = vmul.f32 0.0078125, %v1089_v14  ;;  %v1350_v5 = vmul.f32 %v1271_v33, %v1158_v7  ;;  %v2875_v41 = vmul.f32 0.0078125, %v1031_v57 }
 0x2fc   :  { %v1275_v11 = vmul.f32 0.5, %v1274_v56  ;;  %v1368_v56 = vld [vmem:[%s3013_s4 + $0x50] sm:$0xff] }
 0x2fd   :  { %v1145_v6 = vsub.f32 %v1113_v0, %v1129_v61  ;;  %v1382_v38 = vmul.f32 %v1350_v5, %v2820_v9  ;;  %v1131_v49 = vmul.f32 %v2875_v41, %v2875_v41 }
 0x2fe   :  { %v1276_v3 = vsub.f32 1.5, %v1275_v11 }
 0x2ff   :  { %v2088_v21 = vpop.eup %2087  ;;  %v1177_v24 = vadd.f32 1e-05, %v1145_v6  ;;  %v1398_v27 = vsub.f32 %v1366_v32, %v1382_v38 }
 0x300   :  { %v1277_v20 = vmul.f32 %v2086_v47, %v1276_v3  ;;  %v1283_v29 = vmul.f32 %v2088_v21, %v1176_v16  ;;  %vm1289_vm0 = vweird.f32 %v2088_v21  ;;  %v1161_v3 = vld [vmem:[%s3012_s3 + $0x58] sm:$0xff] }
 0x301   :  { %2089 = vrsqrt.f32 %v1177_v24  ;;  %1544 = vperm.xlu2 %2064, %v1398_v27   ;;  %1448 = vperm.xlu0 %2066, %v1350_v5   ;;  %vm1290_vm2 = vmor %vm1288_vm1, %vm1289_vm0  ;;  %vm1298_vm4 = vweird.f32 %v1177_v24 }
 0x302   :  { %v1284_v30 = vmul.f32 %v2088_v21, %v1283_v29  ;;  %v1092_v9 = vpop.xlane.xlu1 %1091  ;;  %v1034_v31 = vpop.xlane.xlu2 %1033  ;;  %v1281_v62 = vsel %vm1280_vm15, %v2086_v47, %v1277_v20 }
 0x303   :  { %v1114_v1 = vmul.f32 0.0078125, %v1092_v9  ;;  %v1351_v54 = vmul.f32 %v1281_v62, %v1159_v45  ;;  %v2888_v38 = vmul.f32 0.0078125, %v1034_v31  ;;  %v1369_v62 = vld [vmem:[%s3013_s4 + $0x58] sm:$0xff] }
 0x304   :  { %v1285_v36 = vmul.f32 0.5, %v1284_v30 }
 0x305   :  { %v1146_v4 = vsub.f32 %v1114_v1, %v1130_v63  ;;  %v1383_v2 = vmul.f32 %v1351_v54, %v2831_v55  ;;  %v1132_v9 = vmul.f32 %v2888_v38, %v2888_v38 }
 0x306   :  { %v1286_v12 = vsub.f32 1.5, %v1285_v36 }
 0x307   :  { %v2090_v13 = vpop.eup %2089  ;;  %v1178_v15 = vadd.f32 1e-05, %v1146_v4  ;;  %v1399_v39 = vsub.f32 %v1367_v8, %v1383_v2 }
 0x308   :  { %v1293_v43 = vmul.f32 %v2090_v13, %v1177_v24  ;;  %v1287_v19 = vmul.f32 %v2088_v21, %v1286_v12  ;;  %vm1299_vm3 = vweird.f32 %v2090_v13 }
 0x309   :  { %2091 = vrsqrt.f32 %v1178_v15  ;;  %1549 = vperm.xlu1 %2065, %v1399_v39   ;;  %1453 = vperm.xlu2 %2064, %v1351_v54   ;;  %vm1300_vm5 = vmor %vm1298_vm4, %vm1299_vm3  ;;  %vm1308_vm7 = vweird.f32 %v1178_v15 }
 0x30a   :  { %v1294_v28 = vmul.f32 %v2090_v13, %v1293_v43  ;;  %v1095_v55 = vpop.xlane.xlu2 %1094  ;;  %v1037_v47 = vpop.xlane.xlu0 %1036  ;;  %v1291_v10 = vsel %vm1290_vm2, %v2088_v21, %v1287_v19  ;;  %v1162_v43 = vld [vmem:[%s3012_s3 + $0x60] sm:$0xff]  ;;  %vm1630_vm2 = vcmask 257024  }
 0x30b   :  { %v1115_v50 = vmul.f32 0.0078125, %v1095_v55  ;;  %v1352_v7 = vmul.f32 %v1291_v10, %v1160_v46  ;;  %v2886_v5 = vmul.f32 0.0078125, %v1037_v47  ;;  %v1370_v55 = vld [vmem:[%s3013_s4 + $0x60] sm:$0xff] }
 0x30c   :  { %v1295_v16 = vmul.f32 0.5, %v1294_v28 }
 0x30d   :  { %v1147_v14 = vsub.f32 %v1115_v50, %v1131_v49  ;;  %v1384_v57 = vmul.f32 %v1352_v7, %v2842_v34  ;;  %v1133_v20 = vmul.f32 %v2886_v5, %v2886_v5 }
 0x30e   :  { %v1296_v33 = vsub.f32 1.5, %v1295_v16 }
 0x30f   :  { %v2092_v61 = vpop.eup %2091  ;;  %v1179_v0 = vadd.f32 1e-05, %v1147_v14  ;;  %v1400_v11 = vsub.f32 %v1368_v56, %v1384_v57 }
 0x310   :  { %v1297_v32 = vmul.f32 %v2090_v13, %v1296_v33  ;;  %v1303_v6 = vmul.f32 %v2092_v61, %v1178_v15  ;;  %vm1309_vm6 = vweird.f32 %v2092_v61 }
 0x311   :  { %2093 = vrsqrt.f32 %v1179_v0  ;;  %1458 = vperm.xlu1 %2065, %v1352_v7   ;;  %1554 = vperm.xlu0 %2066, %v1400_v11   ;;  %vm1310_vm8 = vmor %vm1308_vm7, %vm1309_vm6  ;;  %vm1318_vm10 = vweird.f32 %v1179_v0 }
 0x312   :  { %v1304_v34 = vmul.f32 %v2092_v61, %v1303_v6  ;;  %v1101_v21 = vpop.xlane.xlu1 %1100  ;;  %v1301_v27 = vsel %vm1300_vm5, %v2090_v13, %v1297_v32  ;;  %v1098_v45 = vpop.xlane.xlu0 %1097 }
 0x313   :  { %v1117_v29 = vmul.f32 0.0078125, %v1101_v21  ;;  %v1353_v24 = vmul.f32 %v1301_v27, %v1161_v3  ;;  %v1116_v31 = vmul.f32 0.0078125, %v1098_v45  ;;  %v1409_v6 = vpop.permute.xlu2 %1408  ;;  %v1164_v27 = vld [vmem:[%s3012_s3 + $0x70] sm:$0xff] }
 0x314   :  { %v1305_v30 = vmul.f32 0.5, %v1304_v34 }
 0x315   :  { %v1149_v63 = vsub.f32 %v1117_v29, %v1133_v20  ;;  %v1385_v1 = vmul.f32 %v1353_v24, %v2853_v48  ;;  %v1148_v36 = vsub.f32 %v1116_v31, %v1132_v9  ;;  %v1486_v29 = vmul.f32 %v1409_v6, %v2577_v26 }
 0x316   :  { %v1306_v54 = vsub.f32 1.5, %v1305_v30 }
 0x317   :  { %v2094_v8 = vpop.eup %2093  ;;  %v1181_v4 = vadd.f32 1e-05, %v1149_v63  ;;  %v1401_v2 = vsub.f32 %v1369_v62, %v1385_v1  ;;  %v1180_v39 = vadd.f32 1e-05, %v1148_v36  ;;  %v1373_v63 = vld [vmem:[%s3013_s4 + $0x78] sm:$0xff] }
 0x318   :  { %v1307_v12 = vmul.f32 %v2092_v61, %v1306_v54  ;;  %v1313_v13 = vmul.f32 %v2094_v8, %v1179_v0  ;;  %vm1319_vm9 = vweird.f32 %v2094_v8  ;;  %v1165_v0 = vld [vmem:[%s3012_s3 + $0x78] sm:$0xff] }
 0x319   :  { %2095 = vrsqrt.f32 %v1181_v4  ;;  %1559 = vperm.xlu2 %2064, %v1401_v2   ;;  %1463 = vperm.xlu0 %2066, %v1353_v24   ;;  %vm1320_vm11 = vmor %vm1318_vm10, %vm1319_vm9  ;;  %vm1338_vm14 = vweird.f32 %v1181_v4  ;;  %vm1328_vm15 = vweird.f32 %v1180_v39 }
 0x31a   :  { %v1314_v46 = vmul.f32 %v2094_v8, %v1313_v13  ;;  %2097 = vrsqrt.f32 %v1180_v39  ;;  %v1311_v48 = vsel %vm1310_vm8, %v2092_v61, %v1307_v12  ;;  %v1163_v61 = vld [vmem:[%s3012_s3 + $0x68] sm:$0xff]  ;;  %v1372_v12 = vld [vmem:[%s3013_s4 + $0x70] sm:$0xff] }
 0x31b   :  { %v1354_v19 = vmul.f32 %v1311_v48, %v1162_v43  ;;  %v1371_v13 = vld [vmem:[%s3013_s4 + $0x68] sm:$0xff] }
 0x31c   :  { %v1315_v28 = vmul.f32 0.5, %v1314_v46 }
 0x31d   :  { %v1386_v15 = vmul.f32 %v1354_v19, %v2864_v22 }
 0x31e   :  { %v1316_v47 = vsub.f32 1.5, %v1315_v28 }
 0x31f   :  { %v2096_v10 = vpop.eup %2095  ;;  %v1402_v49 = vsub.f32 %v1370_v55, %v1386_v15 }
 0x320   :  { %v2098_v50 = vpop.eup %2097  ;;  %v1333_v7 = vmul.f32 %v2096_v10, %v1181_v4  ;;  %v1317_v16 = vmul.f32 %v2094_v8, %v1316_v47  ;;  %vm1339_vm12 = vweird.f32 %v2096_v10 }
 0x321   :  { %v1323_v56 = vmul.f32 %v2098_v50, %v1180_v39  ;;  %1564 = vperm.xlu1 %2065, %v1402_v49   ;;  %1468 = vperm.xlu2 %2064, %v1354_v19   ;;  %vm1329_vm13 = vweird.f32 %v2098_v50  ;;  %vm1340_vm0 = vmor %vm1338_vm14, %vm1339_vm12 }
 0x322   :  { %v1334_v14 = vmul.f32 %v2096_v10, %v1333_v7  ;;  %v1321_v22 = vsel %vm1320_vm11, %v2094_v8, %v1317_v16  ;;  %vm1330_vm1 = vmor %vm1328_vm15, %vm1329_vm13 }
 0x323   :  { %v1324_v57 = vmul.f32 %v2098_v50, %v1323_v56  ;;  %v1355_v34 = vmul.f32 %v1321_v22, %v1163_v61 }
 0x324   :  { %v1335_v33 = vmul.f32 0.5, %v1334_v14 }
 0x325   :  { %v1325_v11 = vmul.f32 0.5, %v1324_v57  ;;  %v1387_v2 = vmul.f32 %v1355_v34, %v2875_v41 }
 0x326   :  { %v1336_v32 = vsub.f32 1.5, %v1335_v33 }
 0x327   :  { %v1326_v3 = vsub.f32 1.5, %v1325_v11  ;;  %v1403_v39 = vsub.f32 %v1371_v13, %v1387_v2 }
 0x328   :  { %v1337_v21 = vmul.f32 %v2096_v10, %v1336_v32 }
 0x329   :  { %1473 = vperm.xlu1 %2065, %v1355_v34   ;;  %v1327_v20 = vmul.f32 %v2098_v50, %v1326_v3 }
 0x32a   :  { %v1341_v45 = vsel %vm1340_vm0, %v2096_v10, %v1337_v21 }
 0x32b   :  { %v1505_v24 = vpop.permute.xlu1 %1504  ;;  %v1357_v30 = vmul.f32 %v1341_v45, %v1165_v0  ;;  %v1331_v9 = vsel %vm1330_vm1, %v2098_v50, %v1327_v20 }
 0x32c   :  { %v1582_v31 = vadd.f32 %v1505_v24, %v1486_v29  ;;  %v1356_v62 = vmul.f32 %v1331_v9, %v1164_v27 }
 0x32d   :  { %1483 = vperm.xlu2 %2064, %v1357_v30   ;;  %v1389_v1 = vmul.f32 %v1357_v30, %v2886_v5 }
 0x32e   :  { %v1598_v54 = vmax.f32 %v1582_v31, 0.0  ;;  %1478 = vperm.xlu0 %2066, %v1356_v62   ;;  %v1388_v26 = vmul.f32 %v1356_v62, %v2888_v38  ;;  %v1515_v38 = vpop.permute.xlu2 %1514 }
 0x32f   :  { %v1414_v36 = vpop.permute.xlu0 %1413  ;;  %v1405_v8 = vsub.f32 %v1373_v63, %v1389_v1 }
 0x330   :  { %v1614_v4 = vpack.c.bf16 %v1598_v54, %v1598_v54  ;;  %v1404_v5 = vsub.f32 %v1372_v12, %v1388_v26  ;;  %v1487_v41 = vmul.f32 %v1414_v36, %v2584_v35 }
 0x331   :  { %1579 = vperm.xlu1 %2065, %v1405_v8  }
 0x332   :  { %1631 = vst.msk [vmem:[%s3014_s5] sm:$0xf] %vm1630_vm2, %v1614_v4 }
 0x335   :  { %1574 = vperm.xlu2 %2064, %v1404_v5  }
 0x336   :  { %1569 = vperm.xlu0 %2066, %v1403_v39   ;;  %v1424_v49 = vpop.permute.xlu2 %1423 }
 0x337   :  { %v1419_v43 = vpop.permute.xlu1 %1418  ;;  %v1510_v48 = vpop.permute.xlu0 %1509  ;;  %v1489_v35 = vmul.f32 %v1424_v49, %v2592_v40 }
 0x338   :  { %v1488_v46 = vmul.f32 %v1419_v43, %v2587_v37  ;;  %v1583_v19 = vadd.f32 %v1510_v48, %v1487_v41 }
 0x33a   :  { %v1584_v28 = vadd.f32 %v1515_v38, %v1488_v46  ;;  %v1599_v55 = vmax.f32 %v1583_v19, 0.0 }
 0x33c   :  { %v1600_v15 = vmax.f32 %v1584_v28, 0.0  ;;  %v1615_v47 = vpack.c.bf16 %v1599_v55, %v1599_v55 }
 0x33e   :  { %v1616_v10 = vpack.c.bf16 %v1600_v15, %v1600_v15  ;;  %1632 = vst.msk [vmem:[%s3014_s5 + $0x4] sm:$0xf] %vm1630_vm2, %v1615_v47  ;;  %v1429_v56 = vpop.permute.xlu2 %1428 }
 0x33f   :  { %v1490_v14 = vmul.f32 %v1429_v56, %v2595_v44 }
 0x340   :  { %1633 = vst.msk [vmem:[%s3014_s5 + $0x8] sm:$0xf] %vm1630_vm2, %v1616_v10 }
 0x343   :  { %v1520_v37 = vpop.permute.xlu1 %1519 }
 0x344   :  { %v1585_v50 = vadd.f32 %v1520_v37, %v1489_v35 }
 0x346   :  { %v1601_v7 = vmax.f32 %v1585_v50, 0.0  ;;  %v1530_v61 = vpop.permute.xlu2 %1529 }
 0x348   :  { %v1617_v16 = vpack.c.bf16 %v1601_v7, %v1601_v7 }
 0x34a   :  { %1634 = vst.msk [vmem:[%s3014_s5 + $0xc] sm:$0xf] %vm1630_vm2, %v1617_v16 }
 0x34e   :  { %v1439_v0 = vpop.permute.xlu2 %1438 }
 0x34f   :  { %v1492_v44 = vmul.f32 %v1439_v0, %v2601_v59 }
 0x353   :  { %v1525_v57 = vpop.permute.xlu0 %1524 }
 0x354   :  { %v1586_v33 = vadd.f32 %v1525_v57, %v1490_v14 }
 0x356   :  { %v1602_v22 = vmax.f32 %v1586_v33, 0.0 }
 0x357   :  { %v1434_v11 = vpop.permute.xlu1 %1433 }
 0x358   :  { %v1618_v32 = vpack.c.bf16 %v1602_v22, %v1602_v22  ;;  %v1491_v40 = vmul.f32 %v1434_v11, %v2599_v51 }
 0x35a   :  { %1635 = vst.msk [vmem:[%s3014_s5 + $0x10] sm:$0xf] %vm1630_vm2, %v1618_v32  ;;  %v1587_v6 = vadd.f32 %v1530_v61, %v1491_v40 }
 0x35b   :  { %v1545_v30 = vpop.permute.xlu2 %1544 }
 0x35c   :  { %v1603_v3 = vmax.f32 %v1587_v6, 0.0 }
 0x35e   :  { %v1619_v34 = vpack.c.bf16 %v1603_v3, %v1603_v3 }
 0x360   :  { %1636 = vst.msk [vmem:[%s3014_s5 + $0x14] sm:$0xf] %vm1630_vm2, %v1619_v34 }
 0x363   :  { %v1535_v21 = vpop.permute.xlu1 %1534  ;;  %v1454_v54 = vpop.permute.xlu2 %1453 }
 0x364   :  { %v1588_v27 = vadd.f32 %v1535_v21, %v1492_v44  ;;  %v1495_v8 = vmul.f32 %v1454_v54, %v2640_v60 }
 0x366   :  { %v1604_v20 = vmax.f32 %v1588_v27, 0.0 }
 0x368   :  { %v1620_v51 = vpack.c.bf16 %v1604_v20, %v1604_v20 }
 0x36a   :  { %1637 = vst.msk [vmem:[%s3014_s5 + $0x18] sm:$0xf] %vm1630_vm2, %v1620_v51 }
 0x36b   :  { %v1444_v29 = vpop.permute.xlu1 %1443  ;;  %v1540_v45 = vpop.permute.xlu0 %1539 }
 0x36c   :  { %v1493_v24 = vmul.f32 %v1444_v29, %v2605_v42 }
 0x36e   :  { %v1589_v9 = vadd.f32 %v1540_v45, %v1493_v24 }
 0x370   :  { %v1605_v31 = vmax.f32 %v1589_v9, 0.0 }
 0x372   :  { %v1621_v62 = vpack.c.bf16 %v1605_v31, %v1605_v31 }
 0x373   :  { %v1449_v63 = vpop.permute.xlu0 %1448  ;;  %v1560_v60 = vpop.permute.xlu2 %1559 }
 0x374   :  { %1638 = vst.msk [vmem:[%s3014_s5 + $0x1c] sm:$0xf] %vm1630_vm2, %v1621_v62  ;;  %v1494_v59 = vmul.f32 %v1449_v63, %v2607_v25 }
 0x376   :  { %v1590_v1 = vadd.f32 %v1545_v30, %v1494_v59 }
 0x378   :  { %v1606_v36 = vmax.f32 %v1590_v1, 0.0 }
 0x37a   :  { %v1622_v26 = vpack.c.bf16 %v1606_v36, %v1606_v36 }
 0x37b   :  { %v1550_v4 = vpop.permute.xlu1 %1549  ;;  %v1469_v19 = vpop.permute.xlu2 %1468 }
 0x37c   :  { %1639 = vst.msk [vmem:[%s3014_s5 + $0x20] sm:$0xf] %vm1630_vm2, %v1622_v26  ;;  %v1591_v42 = vadd.f32 %v1550_v4, %v1495_v8  ;;  %v1498_v55 = vmul.f32 %v1469_v19, %v2625_v18 }
 0x37e   :  { %v1607_v2 = vmax.f32 %v1591_v42, 0.0 }
 0x380   :  { %v1623_v12 = vpack.c.bf16 %v1607_v2, %v1607_v2 }
 0x382   :  { %1640 = vst.msk [vmem:[%s3014_s5 + $0x24] sm:$0xf] %vm1630_vm2, %v1623_v12 }
 0x383   :  { %v1459_v25 = vpop.permute.xlu1 %1458  ;;  %v1555_v13 = vpop.permute.xlu0 %1554 }
 0x384   :  { %v1496_v5 = vmul.f32 %v1459_v25, %v2635_v58 }
 0x386   :  { %v1592_v39 = vadd.f32 %v1555_v13, %v1496_v5 }
 0x387   :  { %v1484_v49 = vpop.permute.xlu2 %1483 }
 0x388   :  { %v1608_v38 = vmax.f32 %v1592_v39, 0.0  ;;  %v1501_v50 = vmul.f32 %v1484_v49, %v2617_v23 }
 0x38a   :  { %v1624_v41 = vpack.c.bf16 %v1608_v38, %v1608_v38 }
 0x38b   :  { %v1464_v43 = vpop.permute.xlu0 %1463 }
 0x38c   :  { %1641 = vst.msk [vmem:[%s3014_s5 + $0x28] sm:$0xf] %vm1630_vm2, %v1624_v41  ;;  %v1497_v46 = vmul.f32 %v1464_v43, %v2630_v53 }
 0x38e   :  { %v1593_v48 = vadd.f32 %v1560_v60, %v1497_v46 }
 0x38f   :  { %v1575_v7 = vpop.permute.xlu2 %1574 }
 0x390   :  { %v1609_v28 = vmax.f32 %v1593_v48, 0.0 }
 0x392   :  { %v1625_v15 = vpack.c.bf16 %v1609_v28, %v1609_v28 }
 0x393   :  { %v1565_v47 = vpop.permute.xlu1 %1564 }
 0x394   :  { %1642 = vst.msk [vmem:[%s3014_s5 + $0x2c] sm:$0xf] %vm1630_vm2, %v1625_v15  ;;  %v1594_v58 = vadd.f32 %v1565_v47, %v1498_v55 }
 0x396   :  { %v1610_v10 = vmax.f32 %v1594_v58, 0.0 }
 0x398   :  { %v1626_v35 = vpack.c.bf16 %v1610_v10, %v1610_v10 }
 0x39a   :  { %1643 = vst.msk [vmem:[%s3014_s5 + $0x30] sm:$0xf] %vm1630_vm2, %v1626_v35 }
 0x39b   :  { %v1474_v53 = vpop.permute.xlu1 %1473 }
 0x39c   :  { %v1499_v61 = vmul.f32 %v1474_v53, %v2620_v52 }
 0x3a0   :  { %v1479_v37 = vpop.permute.xlu0 %1478 }
 0x3a1   :  { %v1500_v18 = vmul.f32 %v1479_v37, %v2615_v17 }
 0x3a3   :  { %v1596_v16 = vadd.f32 %v1575_v7, %v1500_v18  ;;  %v1580_v56 = vpop.permute.xlu1 %1579 }
 0x3a4   :  { %v1597_v14 = vadd.f32 %v1580_v56, %v1501_v50 }
 0x3a5   :  { %v1612_v57 = vmax.f32 %v1596_v16, 0.0 }
 0x3a6   :  { %v1613_v33 = vmax.f32 %v1597_v14, 0.0 }
 0x3a7   :  { %v1628_v22 = vpack.c.bf16 %v1612_v57, %v1612_v57 }
 0x3a8   :  { %v1629_v11 = vpack.c.bf16 %v1613_v33, %v1613_v33  ;;  %v1570_v32 = vpop.permute.xlu0 %1569 }
 0x3a9   :  { %1645 = vst.msk [vmem:[%s3014_s5 + $0x38] sm:$0xf] %vm1630_vm2, %v1628_v22  ;;  %v1595_v40 = vadd.f32 %v1570_v32, %v1499_v61 }
 0x3aa   :  { %1646 = vst.msk [vmem:[%s3014_s5 + $0x3c] sm:$0xf] %vm1630_vm2, %v1629_v11 }
 0x3ab   :  { %v1611_v17 = vmax.f32 %v1595_v40, 0.0 }
 0x3ad   :  { %v1627_v23 = vpack.c.bf16 %v1611_v17, %v1611_v17 }
 0x3af   :  { %1644 = vst.msk [vmem:[%s3014_s5 + $0x34] sm:$0xf] %vm1630_vm2, %v1627_v23 }

// kernel: generator_forward.10
= control target key start
LH: loop header
LB: loop body
LE: loop exit
PB: predicated region body
PF: predicated region fallthrough
CT: control target
= control target key end

     0   :  { %vm241_vm0 = vcmask 261120   ;;  %vm349_vm1 = vcmask 523264   ;;  %s1350_s1 = inlined_call_operand.vmem [shape: bf16[288,128], index: 1, kind: input, shape index: {}]   ;;  %s1351_s0 = inlined_call_operand.vmem [shape: bf16[64,288], index: 0, kind: input, shape index: {}]   ;;  %s1352_s2 = inlined_call_operand.vmem [shape: f32[64,64], index: 2, kind: input, shape index: {}]   ;;  %s1353_s3 = inlined_call_operand.vmem [shape: f32[64,1], index: 3, kind: input, shape index: {}]   ;;  %s1354_s4 = inlined_call_operand.vmem [shape: f32[64,1], index: 4, kind: input, shape index: {}]   ;;  %s1355_s5 = inlined_call_operand.vmem [shape: bf16[64,128], index: 5, kind: output, shape index: {}]  }
   0x1   :  { %v939_v0 = vld [vmem:[%s1350_s1 + $0x38] sm:$0xff]  ;;  %v938_v2 = vld [vmem:[%s1350_s1 + $0x30] sm:$0xff]  ;;  %v949_v4 = vld [vmem:[%s1350_s1 + $0x88] sm:$0xff] }
   0x2   :  { %v947_v1 = vld [vmem:[%s1350_s1 + $0x78] sm:$0xff]  ;;  %254 = vmatpush.bf16.msra.mxu0 %v939_v0  ;;  %v946_v3 = vld [vmem:[%s1350_s1 + $0x70] sm:$0xff]  ;;  %v937_v5 = vld [vmem:[%s1350_s1 + $0x28] sm:$0xff]  ;;  %318 = vmatpush.bf16.msra.mxu2 %v949_v4 }
   0x3   :  { %283 = vmatpush.bf16.msra.mxu1 %v947_v1  ;;  %v945_v6 = vld [vmem:[%s1350_s1 + $0x68] sm:$0xff]  ;;  %v948_v7 = vld [vmem:[%s1350_s1 + $0x80] sm:$0xff]  ;;  %973 = vmatpush.bf16.msra.mxu3 %v949_v4  ;;  %v922_v9 = vld [vmem:[%s1351_s0 + $0x10] sm:$0xf0] }
   0x4   :  { %v790_v8 = vld [vmem:[%s1351_s0 + $0x8] sm:$0xf]  ;;  %v936_v10 = vld [vmem:[%s1350_s1 + $0x20] sm:$0xff]  ;;  %v935_v13 = vld [vmem:[%s1350_s1 + $0x18] sm:$0xff] }
   0x5   :  { %v944_v11 = vld [vmem:[%s1350_s1 + $0x60] sm:$0xff]  ;;  %v791_v12 = vor.u32 %v922_v9, %v790_v8  ;;  %v943_v14 = vld [vmem:[%s1350_s1 + $0x58] sm:$0xff]  ;;  %v934_v17 = vld [vmem:[%s1350_s1 + $0x10] sm:$0xff] }
   0x6   :  { %255 = vmatpush.bf16.msra.mxu0 %v938_v2  ;;  %319 = vmatpush.bf16.msra.mxu2 %v948_v7  ;;  %v814_v15 = vld [vmem:[%s1351_s0 + $0x38] sm:$0xf]  ;;  %v928_v16 = vld [vmem:[%s1351_s0 + $0x40] sm:$0xf0]  ;;  %v942_v18 = vld [vmem:[%s1350_s1 + $0x50] sm:$0xff] }
   0x7   :  { %284 = vmatpush.bf16.msra.mxu1 %v946_v3  ;;  %974 = vmatpush.bf16.msra.mxu3 %v948_v7  ;;  %v815_v19 = vor.u32 %v928_v16, %v814_v15  ;;  %v933_v20 = vld [vmem:[%s1350_s1 + $0x8] sm:$0xff]  ;;  %v802_v22 = vld [vmem:[%s1351_s0 + $0x20] sm:$0xf]  ;;  %v920_v28 = vld [vmem:[%s1351_s0 + $0x4] sm:$0xf] }
   0x8   :  { %v941_v21 = vld [vmem:[%s1350_s1 + $0x48] sm:$0xff]  ;;  %v932_v24 = vld [vmem:[%s1350_s1] sm:$0xff]  ;;  %v784_v29 = vld [vmem:[%s1351_s0 + $0xc] sm:$0xf0] }
   0x9   :  { %900 = vmatmul.msk.bf16.vlgmr.msra.gmra.mxu2 %vm241_vm0, %v791_v12  ;;  %v925_v23 = vld [vmem:[%s1351_s0 + $0x28] sm:$0xf0]  ;;  %v940_v25 = vld [vmem:[%s1350_s1 + $0x40] sm:$0xff]  ;;  %v787_v32 = vor.u32 %v920_v28, %v784_v29  ;;  %v826_v33 = vld [vmem:[%s1351_s0 + $0x50] sm:$0xf] }
   0xa   :  { %256 = vmatpush.bf16.msra.mxu0 %v937_v5  ;;  %902 = vmatmul.msk.bf16.vlgmr.msra.gmra.mxu3 %vm241_vm0, %v815_v19  ;;  %v782_v26 = vld [vmem:[%s1351_s0] sm:$0xf]  ;;  %v921_v27 = vld [vmem:[%s1351_s0 + $0x8] sm:$0xf0]  ;;  %v803_v30 = vor.u32 %v925_v23, %v802_v22  ;;  %v931_v34 = vld [vmem:[%s1351_s0 + $0x58] sm:$0xf0] }
   0xb   :  { %285 = vmatpush.bf16.msra.mxu1 %v945_v6  ;;  %v783_v31 = vor.u32 %v921_v27, %v782_v26  ;;  %v827_v35 = vor.u32 %v931_v34, %v826_v33  ;;  %v794_v36 = vld [vmem:[%s1351_s0 + $0x18] sm:$0xf]  ;;  %v924_v37 = vld [vmem:[%s1351_s0 + $0x20] sm:$0xf0]  ;;  %v923_v38 = vld [vmem:[%s1351_s0 + $0x1c] sm:$0xf] }
   0xc   :  { %v796_v39 = vld [vmem:[%s1351_s0 + $0x24] sm:$0xf0]  ;;  %v795_v40 = vor.u32 %v924_v37, %v794_v36  ;;  %v806_v42 = vld [vmem:[%s1351_s0 + $0x30] sm:$0xf]  ;;  %v927_v43 = vld [vmem:[%s1351_s0 + $0x38] sm:$0xf0] }
   0xd   :  { %v799_v41 = vor.u32 %v923_v38, %v796_v39  ;;  %v926_v44 = vld [vmem:[%s1351_s0 + $0x34] sm:$0xf]  ;;  %v808_v45 = vld [vmem:[%s1351_s0 + $0x3c] sm:$0xf0]  ;;  %v807_v46 = vor.u32 %v927_v43, %v806_v42  ;;  %v818_v48 = vld [vmem:[%s1351_s0 + $0x48] sm:$0xf] }
   0xe   :  { %257 = vmatpush.bf16.msra.mxu0 %v936_v10  ;;  %v811_v47 = vor.u32 %v926_v44, %v808_v45  ;;  %v930_v49 = vld [vmem:[%s1351_s0 + $0x50] sm:$0xf0]  ;;  %v929_v50 = vld [vmem:[%s1351_s0 + $0x4c] sm:$0xf]  ;;  %v820_v51 = vld [vmem:[%s1351_s0 + $0x54] sm:$0xf0] }
   0xf   :  { %286 = vmatpush.bf16.msra.mxu1 %v944_v11  ;;  %v819_v52 = vor.u32 %v930_v49, %v818_v48  ;;  %v823_v53 = vor.u32 %v929_v50, %v820_v51  ;;  %v341_v37 = vld [vmem:[%s1352_s2] sm:$0xff]  ;;  %v342_v39 = vld [vmem:[%s1352_s2 + $0x8] sm:$0xff]  ;;  %v347_v44 = vld [vmem:[%s1352_s2 + $0x30] sm:$0xff] }
  0x10   :  { %v345_v42 = vld [vmem:[%s1352_s2 + $0x20] sm:$0xff]  ;;  %v346_v43 = vld [vmem:[%s1352_s2 + $0x28] sm:$0xff]  ;;  %v348_v45 = vld [vmem:[%s1352_s2 + $0x38] sm:$0xff] }
  0x12   :  { %258 = vmatpush.bf16.msra.mxu0 %v935_v13 }
  0x13   :  { %287 = vmatpush.bf16.msra.mxu1 %v943_v14 }
  0x16   :  { %259 = vmatpush.bf16.msra.mxu0 %v934_v17 }
  0x17   :  { %288 = vmatpush.bf16.msra.mxu1 %v942_v18 }
  0x19   :  { %901 = vmatmul.msk.bf16.gmra.mxu2 %vm241_vm0, %v803_v30 }
  0x1a   :  { %260 = vmatpush.bf16.msra.mxu0 %v933_v20  ;;  %903 = vmatmul.msk.bf16.gmra.mxu3 %vm241_vm0, %v827_v35 }
  0x1b   :  { %289 = vmatpush.bf16.msra.mxu1 %v941_v21 }
  0x1e   :  { %261 = vmatpush.bf16.msra.mxu0 %v932_v24 }
  0x1f   :  { %290 = vmatpush.bf16.msra.mxu1 %v940_v25 }
  0x21   :  { %262 = vmatmul.bf16.vlgmr.msra.gmra.mxu0 %v783_v31 }
  0x22   :  { %291 = vmatmul.bf16.vlgmr.msra.gmra.mxu1 %v787_v32 }
  0x31   :  { %267 = vmatmul.bf16.gmra.mxu0 %v795_v40  ;;  %v343_v40 = vld [vmem:[%s1352_s2 + $0x10] sm:$0xff] }
  0x32   :  { %296 = vmatmul.bf16.gmra.mxu1 %v799_v41  ;;  %v344_v41 = vld [vmem:[%s1352_s2 + $0x18] sm:$0xff] }
  0x41   :  { %272 = vmatmul.bf16.gmra.mxu0 %v807_v46 }
  0x42   :  { %301 = vmatmul.bf16.gmra.mxu1 %v811_v47 }
  0x51   :  { %277 = vmatmul.bf16.gmra.mxu0 %v819_v52 }
  0x52   :  { %306 = vmatmul.bf16.gmra.mxu1 %v823_v53 }
  0x8c   :  { %v321_v0 = vpop.f32.mrf.mxu2 }
  0x8d   :  { %v331_v63 = vpop.f32.mrf.mxu3 }
  0x94   :  { %v323_v6 = vpop.f32.mrf.mxu2 }
  0x95   :  { %v333_v3 = vpop.f32.mrf.mxu3 }
  0x9c   :  { %v326_v10 = vpop.f32.mrf.mxu2 }
  0x9d   :  { %v336_v7 = vpop.f32.mrf.mxu3 }
  0x9e   :  { %v263_v54 = vpop.f32.mrf.mxu0 }
  0x9f   :  { %v292_v55 = vpop.f32.mrf.mxu1 }
  0xa0   :  { %v293_v56 = vadd.f32 %v292_v55, %v263_v54 }
  0xa2   :  { %v1185_v34 = vadd.f32 %v321_v0, %v293_v56 }
  0xa4   :  { %v328_v23 = vpop.f32.mrf.mxu2  ;;  %v415_v38 = vmul.f32 %v1185_v34, %v1185_v34 }
  0xa5   :  { %v338_v16 = vpop.f32.mrf.mxu3 }
  0xa6   :  { %v265_v57 = vpop.f32.mrf.mxu0 }
  0xa7   :  { %v294_v58 = vpop.f32.mrf.mxu1 }
  0xa8   :  { %v295_v27 = vadd.f32 %v294_v58, %v265_v57 }
  0xaa   :  { %v1180_v32 = vadd.f32 %v323_v6, %v295_v27 }
  0xac   :  { %v416_v36 = vmul.f32 %v1180_v32, %v1180_v32 }
  0xae   :  { %v268_v59 = vpop.f32.mrf.mxu0 }
  0xaf   :  { %v297_v60 = vpop.f32.mrf.mxu1 }
  0xb0   :  { %v298_v24 = vadd.f32 %v297_v60, %v268_v59 }
  0xb2   :  { %v1175_v30 = vadd.f32 %v326_v10, %v298_v24  ;;  %v528_v24 = vld [vmem:[%s1353_s3] sm:$0xff] }
  0xb4   :  { %v417_v35 = vmul.f32 %v1175_v30, %v1175_v30 }
  0xb6   :  { %v270_v61 = vpop.f32.mrf.mxu0 }
  0xb7   :  { %v299_v62 = vpop.f32.mrf.mxu1 }
  0xb8   :  { %v300_v20 = vadd.f32 %v299_v62, %v270_v61  ;;  %v995_v62 = vmov 0  }
  0xb9   :  { %976 = vset.pattern.permute.xlu1 %v995_v62  ;;  %977 = vset.pattern.permute.xlu2 %v995_v62 }
  0xba   :  { %v1170_v28 = vadd.f32 %v328_v23, %v300_v20  ;;  %978 = vset.pattern.permute.xlu0 %v995_v62 }
  0xbc   :  { %v418_v33 = vmul.f32 %v1170_v28, %v1170_v28 }
  0xbe   :  { %v273_v1 = vpop.f32.mrf.mxu0 }
  0xbf   :  { %v302_v2 = vpop.f32.mrf.mxu1 }
  0xc0   :  { %v303_v17 = vadd.f32 %v302_v2, %v273_v1 }
  0xc2   :  { %v1165_v25 = vadd.f32 %v331_v63, %v303_v17 }
  0xc4   :  { %v419_v31 = vmul.f32 %v1165_v25, %v1165_v25 }
  0xc6   :  { %v275_v4 = vpop.f32.mrf.mxu0 }
  0xc7   :  { %v304_v5 = vpop.f32.mrf.mxu1 }
  0xc8   :  { %v305_v14 = vadd.f32 %v304_v5, %v275_v4 }
  0xca   :  { %v1160_v21 = vadd.f32 %v333_v3, %v305_v14 }
  0xcc   :  { %v420_v29 = vmul.f32 %v1160_v21, %v1160_v21 }
  0xce   :  { %v278_v8 = vpop.f32.mrf.mxu0 }
  0xcf   :  { %v307_v9 = vpop.f32.mrf.mxu1 }
  0xd0   :  { %v308_v11 = vadd.f32 %v307_v9, %v278_v8 }
  0xd2   :  { %v1156_v18 = vadd.f32 %v336_v7, %v308_v11 }
  0xd4   :  { %v421_v26 = vmul.f32 %v1156_v18, %v1156_v18 }
  0xd6   :  { %v280_v12 = vpop.f32.mrf.mxu0 }
  0xd7   :  { %v309_v13 = vpop.f32.mrf.mxu1 }
  0xd8   :  { %v310_v15 = vadd.f32 %v309_v13, %v280_v12 }
  0xda   :  { %v1158_v19 = vadd.f32 %v338_v16, %v310_v15 }
  0xdc   :  { %382 = vmatpush.msrb.mxu3 %v1158_v19  ;;  %v422_v22 = vmul.f32 %v1158_v19, %v1158_v19 }
  0xde   :  { %383 = vmatpush.msrb.mxu3 %v1156_v18  ;;  %431 = vmatpush.msrb.mxu2 %v422_v22 }
  0xe0   :  { %384 = vmatpush.msrb.mxu3 %v1160_v21  ;;  %432 = vmatpush.msrb.mxu2 %v421_v26 }
  0xe2   :  { %385 = vmatpush.msrb.mxu3 %v1165_v25  ;;  %433 = vmatpush.msrb.mxu2 %v420_v29 }
  0xe4   :  { %386 = vmatpush.msrb.mxu3 %v1170_v28  ;;  %434 = vmatpush.msrb.mxu2 %v419_v31 }
  0xe6   :  { %387 = vmatpush.msrb.mxu3 %v1175_v30  ;;  %435 = vmatpush.msrb.mxu2 %v418_v33 }
  0xe8   :  { %388 = vmatpush.msrb.mxu3 %v1180_v32  ;;  %436 = vmatpush.msrb.mxu2 %v417_v35 }
  0xea   :  { %389 = vmatpush.msrb.mxu3 %v1185_v34  ;;  %437 = vmatpush.msrb.mxu2 %v416_v36 }
  0xeb   :  { %904 = vmatmul.msk.f32.vlgmr.msrb.gmra.mxu3 %vm349_vm1, %v341_v37 }
  0xec   :  { %438 = vmatpush.msrb.mxu2 %v415_v38 }
  0xed   :  { %912 = vmatmul.msk.f32.vlgmr.msrb.gmra.mxu2 %vm349_vm1, %v341_v37 }
  0xf3   :  { %905 = vmatmul.msk.f32.gmra.mxu3 %vm349_vm1, %v342_v39 }
  0xf5   :  { %913 = vmatmul.msk.f32.gmra.mxu2 %vm349_vm1, %v342_v39 }
  0xfb   :  { %906 = vmatmul.msk.f32.gmra.mxu3 %vm349_vm1, %v343_v40 }
  0xfd   :  { %914 = vmatmul.msk.f32.gmra.mxu2 %vm349_vm1, %v343_v40 }
 0x103   :  { %907 = vmatmul.msk.f32.gmra.mxu3 %vm349_vm1, %v344_v41 }
 0x105   :  { %915 = vmatmul.msk.f32.gmra.mxu2 %vm349_vm1, %v344_v41 }
 0x10b   :  { %908 = vmatmul.msk.f32.gmra.mxu3 %vm349_vm1, %v345_v42 }
 0x10d   :  { %916 = vmatmul.msk.f32.gmra.mxu2 %vm349_vm1, %v345_v42 }
 0x113   :  { %909 = vmatmul.msk.f32.gmra.mxu3 %vm349_vm1, %v346_v43 }
 0x115   :  { %917 = vmatmul.msk.f32.gmra.mxu2 %vm349_vm1, %v346_v43  ;;  %v632_v43 = vld [vmem:[%s1354_s4] sm:$0xff] }
 0x11b   :  { %910 = vmatmul.msk.f32.gmra.mxu3 %vm349_vm1, %v347_v44 }
 0x11d   :  { %918 = vmatmul.msk.f32.gmra.mxu2 %vm349_vm1, %v347_v44 }
 0x123   :  { %911 = vmatmul.msk.f32.gmra.mxu3 %vm349_vm1, %v348_v45 }
 0x125   :  { %919 = vmatmul.msk.f32.gmra.mxu2 %vm349_vm1, %v348_v45 }
 0x16e   :  { %v391_v46 = vpop.f32.mrf.mxu3 }
 0x16f   :  { %464 = vadd.xlane.f32.xlu0 %v391_v46 }
 0x170   :  { %v440_v47 = vpop.f32.mrf.mxu2 }
 0x171   :  { %488 = vadd.xlane.f32.xlu2 %v440_v47 }
 0x176   :  { %v394_v48 = vpop.f32.mrf.mxu3 }
 0x177   :  { %466 = vadd.xlane.f32.xlu0 %v394_v48 }
 0x178   :  { %v443_v49 = vpop.f32.mrf.mxu2 }
 0x17e   :  { %v397_v50 = vpop.f32.mrf.mxu3 }
 0x17f   :  { %490 = vadd.xlane.f32.xlu0 %v443_v49  ;;  %468 = vadd.xlane.f32.xlu1 %v397_v50 }
 0x180   :  { %v446_v51 = vpop.f32.mrf.mxu2 }
 0x186   :  { %v400_v52 = vpop.f32.mrf.mxu3 }
 0x187   :  { %492 = vadd.xlane.f32.xlu1 %v446_v51 }
 0x188   :  { %v449_v53 = vpop.f32.mrf.mxu2 }
 0x189   :  { %494 = vadd.xlane.f32.xlu2 %v449_v53 }
 0x18e   :  { %v403_v54 = vpop.f32.mrf.mxu3 }
 0x18f   :  { %470 = vadd.xlane.f32.xlu1 %v400_v52 }
 0x190   :  { %v452_v55 = vpop.f32.mrf.mxu2 }
 0x191   :  { %472 = vadd.xlane.f32.xlu2 %v403_v54  ;;  %496 = vadd.xlane.f32.xlu0 %v452_v55 }
 0x196   :  { %v406_v56 = vpop.f32.mrf.mxu3 }
 0x198   :  { %v455_v57 = vpop.f32.mrf.mxu2 }
 0x199   :  { %474 = vadd.xlane.f32.xlu2 %v406_v56  ;;  %498 = vadd.xlane.f32.xlu1 %v455_v57 }
 0x19e   :  { %v409_v58 = vpop.f32.mrf.mxu3 }
 0x19f   :  { %476 = vadd.xlane.f32.xlu0 %v409_v58  ;;  %v529_v58 = vld [vmem:[%s1353_s3 + $0x8] sm:$0xff] }
 0x1a0   :  { %v458_v59 = vpop.f32.mrf.mxu2 }
 0x1a1   :  { %500 = vadd.xlane.f32.xlu2 %v458_v59 }
 0x1a6   :  { %v412_v60 = vpop.f32.mrf.mxu3 }
 0x1a7   :  { %478 = vadd.xlane.f32.xlu1 %v412_v60 }
 0x1a8   :  { %v461_v61 = vpop.f32.mrf.mxu2 }
 0x1a9   :  { %502 = vadd.xlane.f32.xlu0 %v461_v61 }
 0x1e2   :  { %v465_v63 = vpop.xlane.xlu0 %464 }
 0x1e3   :  { %v480_v0 = vmul.f32 0.001953125, %v465_v63 }
 0x1e4   :  { %v489_v1 = vpop.xlane.xlu2 %488 }
 0x1e5   :  { %v512_v2 = vmul.f32 %v480_v0, %v480_v0  ;;  %v504_v3 = vmul.f32 0.001953125, %v489_v1 }
 0x1e7   :  { %v520_v4 = vsub.f32 %v504_v3, %v512_v2 }
 0x1e9   :  { %v536_v5 = vadd.f32 1e-05, %v520_v4 }
 0x1ea   :  { %v467_v6 = vpop.xlane.xlu0 %466 }
 0x1eb   :  { %979 = vrsqrt.f32 %v536_v5  ;;  %v1236_v7 = vmul.f32 0.001953125, %v467_v6  ;;  %vm550_vm3 = vweird.f32 %v536_v5  ;;  %v633_v6 = vld [vmem:[%s1354_s4 + $0x8] sm:$0xff] }
 0x1ed   :  { %v513_v12 = vmul.f32 %v1236_v7, %v1236_v7 }
 0x1f1   :  { %v980_v8 = vpop.eup %979 }
 0x1f2   :  { %v545_v9 = vmul.f32 %v980_v8, %v536_v5  ;;  %v491_v10 = vpop.xlane.xlu0 %490  ;;  %v469_v11 = vpop.xlane.xlu1 %468  ;;  %vm551_vm2 = vweird.f32 %v980_v8 }
 0x1f3   :  { %v505_v13 = vmul.f32 0.001953125, %v491_v10  ;;  %v1240_v20 = vmul.f32 0.001953125, %v469_v11  ;;  %vm552_vm4 = vmor %vm550_vm3, %vm551_vm2 }
 0x1f4   :  { %v546_v14 = vmul.f32 %v980_v8, %v545_v9 }
 0x1f5   :  { %v521_v15 = vsub.f32 %v505_v13, %v513_v12  ;;  %v514_v27 = vmul.f32 %v1240_v20, %v1240_v20 }
 0x1f6   :  { %v547_v16 = vmul.f32 0.5, %v546_v14  ;;  %v530_v14 = vld [vmem:[%s1353_s3 + $0x10] sm:$0xff] }
 0x1f7   :  { %v537_v17 = vadd.f32 1e-05, %v521_v15 }
 0x1f8   :  { %v548_v22 = vsub.f32 1.5, %v547_v16 }
 0x1f9   :  { %981 = vrsqrt.f32 %v537_v17  ;;  %vm560_vm6 = vweird.f32 %v537_v17 }
 0x1fa   :  { %v493_v23 = vpop.xlane.xlu1 %492  ;;  %v549_v26 = vmul.f32 %v980_v8, %v548_v22 }
 0x1fb   :  { %v506_v29 = vmul.f32 0.001953125, %v493_v23 }
 0x1fc   :  { %v495_v31 = vpop.xlane.xlu2 %494  ;;  %v553_v33 = vsel %vm552_vm4, %v980_v8, %v549_v26 }
 0x1fd   :  { %v522_v35 = vsub.f32 %v506_v29, %v514_v27  ;;  %v624_v36 = vmul.f32 %v553_v33, %v528_v24  ;;  %v507_v48 = vmul.f32 0.001953125, %v495_v31 }
 0x1ff   :  { %v982_v37 = vpop.eup %981  ;;  %v538_v38 = vadd.f32 1e-05, %v522_v35  ;;  %658 = vperm.xlu1 %976, %v624_v36   ;;  %v640_v40 = vmul.f32 %v624_v36, %v480_v0 }
 0x200   :  { %v555_v39 = vmul.f32 %v982_v37, %v537_v17  ;;  %vm561_vm5 = vweird.f32 %v982_v37 }
 0x201   :  { %983 = vrsqrt.f32 %v538_v38  ;;  %v648_v51 = vsub.f32 %v632_v43, %v640_v40  ;;  %vm562_vm7 = vmor %vm560_vm6, %vm561_vm5  ;;  %vm570_vm9 = vweird.f32 %v538_v38 }
 0x202   :  { %v556_v41 = vmul.f32 %v982_v37, %v555_v39  ;;  %v471_v42 = vpop.xlane.xlu1 %470 }
 0x203   :  { %v1250_v44 = vmul.f32 0.001953125, %v471_v42 }
 0x204   :  { %v557_v45 = vmul.f32 0.5, %v556_v41  ;;  %v473_v46 = vpop.xlane.xlu2 %472  ;;  %v497_v47 = vpop.xlane.xlu0 %496 }
 0x205   :  { %v515_v49 = vmul.f32 %v1250_v44, %v1250_v44  ;;  %v1254_v50 = vmul.f32 0.001953125, %v473_v46  ;;  %v508_v56 = vmul.f32 0.001953125, %v497_v47  ;;  %v531_v47 = vld [vmem:[%s1353_s3 + $0x18] sm:$0xff] }
 0x206   :  { %v558_v52 = vsub.f32 1.5, %v557_v45 }
 0x207   :  { %v984_v53 = vpop.eup %983  ;;  %v523_v54 = vsub.f32 %v507_v48, %v515_v49  ;;  %v516_v55 = vmul.f32 %v1254_v50, %v1254_v50  ;;  %706 = vperm.xlu1 %976, %v648_v51  }
 0x208   :  { %v565_v57 = vmul.f32 %v984_v53, %v538_v38  ;;  %v559_v59 = vmul.f32 %v982_v37, %v558_v52  ;;  %vm571_vm8 = vweird.f32 %v984_v53 }
 0x209   :  { %v539_v60 = vadd.f32 1e-05, %v523_v54  ;;  %v524_v61 = vsub.f32 %v508_v56, %v516_v55  ;;  %vm572_vm10 = vmor %vm570_vm9, %vm571_vm8 }
 0x20a   :  { %v566_v62 = vmul.f32 %v984_v53, %v565_v57  ;;  %v563_v63 = vsel %vm562_vm7, %v982_v37, %v559_v59  ;;  %v634_v37 = vld [vmem:[%s1354_s4 + $0x10] sm:$0xff]  ;;  %v532_v57 = vld [vmem:[%s1353_s3 + $0x20] sm:$0xff] }
 0x20b   :  { %985 = vrsqrt.f32 %v539_v60  ;;  %v1261_v0 = vadd.f32 1e-05, %v524_v61  ;;  %v625_v1 = vmul.f32 %v563_v63, %v529_v58  ;;  %vm580_vm12 = vweird.f32 %v539_v60 }
 0x20c   :  { %v567_v2 = vmul.f32 0.5, %v566_v62  ;;  %v475_v3 = vpop.xlane.xlu2 %474  ;;  %v499_v4 = vpop.xlane.xlu1 %498  ;;  %v635_v62 = vld [vmem:[%s1354_s4 + $0x18] sm:$0xff] }
 0x20d   :  { %987 = vrsqrt.f32 %v1261_v0  ;;  %v1264_v5 = vmul.f32 0.001953125, %v475_v3  ;;  %663 = vperm.xlu2 %977, %v625_v1   ;;  %v641_v9 = vmul.f32 %v625_v1, %v1236_v7  ;;  %v509_v11 = vmul.f32 0.001953125, %v499_v4  ;;  %v636_v4 = vld [vmem:[%s1354_s4 + $0x20] sm:$0xff] }
 0x20e   :  { %v568_v8 = vsub.f32 1.5, %v567_v2  ;;  %vm590_vm15 = vweird.f32 %v1261_v0 }
 0x20f   :  { %v517_v10 = vmul.f32 %v1264_v5, %v1264_v5  ;;  %v649_v13 = vsub.f32 %v633_v6, %v641_v9 }
 0x210   :  { %v569_v12 = vmul.f32 %v984_v53, %v568_v8 }
 0x211   :  { %v986_v15 = vpop.eup %985  ;;  %v525_v16 = vsub.f32 %v509_v11, %v517_v10  ;;  %711 = vperm.xlu0 %978, %v649_v13  }
 0x212   :  { %v575_v17 = vmul.f32 %v986_v15, %v539_v60  ;;  %v477_v22 = vpop.xlane.xlu0 %476  ;;  %v573_v23 = vsel %vm572_vm10, %v984_v53, %v569_v12  ;;  %vm581_vm11 = vweird.f32 %v986_v15 }
 0x213   :  { %v988_v24 = vpop.eup %987  ;;  %v1275_v7 = vadd.f32 1e-05, %v525_v16  ;;  %v1277_v26 = vmul.f32 0.001953125, %v477_v22  ;;  %v626_v27 = vmul.f32 %v573_v23, %v530_v14  ;;  %vm582_vm14 = vmor %vm580_vm12, %vm581_vm11  ;;  %v533_v14 = vld [vmem:[%s1353_s3 + $0x28] sm:$0xff] }
 0x214   :  { %v576_v29 = vmul.f32 %v986_v15, %v575_v17  ;;  %v585_v31 = vmul.f32 %v988_v24, %v1261_v0  ;;  %v501_v33 = vpop.xlane.xlu2 %500  ;;  %vm591_vm13 = vweird.f32 %v988_v24 }
 0x215   :  { %989 = vrsqrt.f32 %v1275_v7  ;;  %v518_v35 = vmul.f32 %v1277_v26, %v1277_v26  ;;  %v510_v36 = vmul.f32 0.001953125, %v501_v33  ;;  %v642_v40 = vmul.f32 %v626_v27, %v1240_v20  ;;  %vm592_vm0 = vmor %vm590_vm15, %vm591_vm13 }
 0x216   :  { %v577_v38 = vmul.f32 0.5, %v576_v29  ;;  %v586_v39 = vmul.f32 %v988_v24, %v585_v31  ;;  %vm600_vm2 = vweird.f32 %v1275_v7  ;;  %v534_v31 = vld [vmem:[%s1353_s3 + $0x30] sm:$0xff] }
 0x217   :  { %v526_v41 = vsub.f32 %v510_v36, %v518_v35  ;;  %v650_v45 = vsub.f32 %v634_v37, %v642_v40  ;;  %v535_v37 = vld [vmem:[%s1353_s3 + $0x38] sm:$0xff] }
 0x218   :  { %v578_v42 = vsub.f32 1.5, %v577_v38  ;;  %v587_v43 = vmul.f32 0.5, %v586_v39 }
 0x219   :  { %v542_v46 = vadd.f32 1e-05, %v526_v41  ;;  %716 = vperm.xlu2 %977, %v650_v45   ;;  %668 = vperm.xlu0 %978, %v626_v27  }
 0x21a   :  { %v579_v48 = vmul.f32 %v986_v15, %v578_v42  ;;  %v588_v49 = vsub.f32 1.5, %v587_v43  ;;  %v479_v51 = vpop.xlane.xlu1 %478  ;;  %v638_v42 = vld [vmem:[%s1354_s4 + $0x30] sm:$0xff]  ;;  %v639_v43 = vld [vmem:[%s1354_s4 + $0x38] sm:$0xff] }
 0x21b   :  { %v990_v52 = vpop.eup %989  ;;  %991 = vrsqrt.f32 %v542_v46  ;;  %v1290_v20 = vmul.f32 0.001953125, %v479_v51  ;;  %vm610_vm5 = vweird.f32 %v542_v46 }
 0x21c   :  { %v583_v53 = vsel %vm582_vm14, %v986_v15, %v579_v48  ;;  %v589_v54 = vmul.f32 %v988_v24, %v588_v49  ;;  %v595_v55 = vmul.f32 %v990_v52, %v1275_v7  ;;  %v503_v56 = vpop.xlane.xlu0 %502  ;;  %vm601_vm1 = vweird.f32 %v990_v52  ;;  %v637_v49 = vld [vmem:[%s1354_s4 + $0x28] sm:$0xff] }
 0x21d   :  { %v627_v58 = vmul.f32 %v583_v53, %v531_v47  ;;  %v519_v59 = vmul.f32 %v1290_v20, %v1290_v20  ;;  %v511_v60 = vmul.f32 0.001953125, %v503_v56  ;;  %vm602_vm3 = vmor %vm600_vm2, %vm601_vm1 }
 0x21e   :  { %v596_v61 = vmul.f32 %v990_v52, %v595_v55  ;;  %v593_v63 = vsel %vm592_vm0, %v988_v24, %v589_v54 }
 0x21f   :  { %v643_v0 = vmul.f32 %v627_v58, %v1250_v44  ;;  %v527_v1 = vsub.f32 %v511_v60, %v519_v59  ;;  %v628_v2 = vmul.f32 %v593_v63, %v532_v57 }
 0x220   :  { %v597_v3 = vmul.f32 0.5, %v596_v61 }
 0x221   :  { %v992_v6 = vpop.eup %991  ;;  %v543_v8 = vadd.f32 1e-05, %v527_v1  ;;  %v651_v9 = vsub.f32 %v635_v62, %v643_v0  ;;  %v644_v10 = vmul.f32 %v628_v2, %v1254_v50  ;;  %673 = vperm.xlu2 %977, %v627_v58  }
 0x222   :  { %v598_v11 = vsub.f32 1.5, %v597_v3  ;;  %v605_v12 = vmul.f32 %v992_v6, %v542_v46  ;;  %vm611_vm4 = vweird.f32 %v992_v6 }
 0x223   :  { %993 = vrsqrt.f32 %v543_v8  ;;  %721 = vperm.xlu1 %976, %v651_v9   ;;  %v652_v13 = vsub.f32 %v636_v4, %v644_v10  ;;  %vm612_vm6 = vmor %vm610_vm5, %vm611_vm4  ;;  %vm620_vm8 = vweird.f32 %v543_v8 }
 0x224   :  { %v606_v44 = vmul.f32 %v992_v6, %v605_v12  ;;  %v599_v15 = vmul.f32 %v990_v52, %v598_v11 }
 0x225   :  { %726 = vperm.xlu0 %978, %v652_v13  }
 0x226   :  { %v607_v16 = vmul.f32 0.5, %v606_v44  ;;  %v603_v17 = vsel %vm602_vm3, %v990_v52, %v599_v15 }
 0x227   :  { %v629_v50 = vmul.f32 %v603_v17, %v533_v14 }
 0x228   :  { %v608_v22 = vsub.f32 1.5, %v607_v16 }
 0x229   :  { %v994_v23 = vpop.eup %993  ;;  %683 = vperm.xlu2 %977, %v629_v50   ;;  %v645_v48 = vmul.f32 %v629_v50, %v1264_v5 }
 0x22a   :  { %v615_v24 = vmul.f32 %v994_v23, %v543_v8  ;;  %v609_v27 = vmul.f32 %v992_v6, %v608_v22  ;;  %vm621_vm7 = vweird.f32 %v994_v23 }
 0x22b   :  { %678 = vperm.xlu1 %976, %v628_v2   ;;  %vm622_vm9 = vmor %vm620_vm8, %vm621_vm7 }
 0x22c   :  { %v616_v7 = vmul.f32 %v994_v23, %v615_v24  ;;  %v613_v33 = vsel %vm612_vm6, %v992_v6, %v609_v27 }
 0x22d   :  { %v630_v36 = vmul.f32 %v613_v33, %v534_v31 }
 0x22e   :  { %v617_v29 = vmul.f32 0.5, %v616_v7 }
 0x22f   :  { %v646_v41 = vmul.f32 %v630_v36, %v1277_v26  ;;  %v653_v26 = vsub.f32 %v637_v49, %v645_v48 }
 0x230   :  { %v618_v35 = vsub.f32 1.5, %v617_v29 }
 0x231   :  { %v654_v46 = vsub.f32 %v638_v42, %v646_v41 }
 0x232   :  { %v619_v38 = vmul.f32 %v994_v23, %v618_v35 }
 0x233   :  { %688 = vperm.xlu1 %976, %v630_v36  }
 0x234   :  { %v623_v39 = vsel %vm622_vm9, %v994_v23, %v619_v38 }
 0x235   :  { %v631_v40 = vmul.f32 %v623_v39, %v535_v37 }
 0x237   :  { %693 = vperm.xlu2 %977, %v631_v40   ;;  %v647_v45 = vmul.f32 %v631_v40, %v1290_v20 }
 0x239   :  { %v655_v47 = vsub.f32 %v639_v43, %v647_v45 }
 0x23b   :  { %736 = vperm.xlu1 %976, %v654_v46   ;;  %741 = vperm.xlu0 %978, %v655_v47  }
 0x23f   :  { %731 = vperm.xlu2 %977, %v653_v26  }
 0x267   :  { %v664_v51 = vpop.permute.xlu2 %663 }
 0x268   :  { %v697_v20 = vmul.f32 %v664_v51, %v1180_v32 }
 0x271   :  { %v659_v53 = vpop.permute.xlu1 %658 }
 0x272   :  { %v696_v56 = vmul.f32 %v659_v53, %v1185_v34 }
 0x273   :  { %v717_v52 = vpop.permute.xlu2 %716 }
 0x279   :  { %v707_v55 = vpop.permute.xlu1 %706 }
 0x27a   :  { %v744_v57 = vadd.f32 %v707_v55, %v696_v56 }
 0x27b   :  { %v674_v54 = vpop.permute.xlu2 %673 }
 0x27c   :  { %v752_v59 = vmax.f32 %v744_v57, 0.0  ;;  %v699_v2 = vmul.f32 %v674_v54, %v1170_v28 }
 0x283   :  { %v712_v58 = vpop.permute.xlu0 %711  ;;  %v684_v61 = vpop.permute.xlu2 %683 }
 0x284   :  { %v745_v5 = vadd.f32 %v712_v58, %v697_v20  ;;  %v701_v10 = vmul.f32 %v684_v61, %v1160_v21 }
 0x286   :  { %v753_v60 = vmax.f32 %v745_v5, 0.0 }
 0x288   :  { %v953_v62 = vpack.c.bf16 %v753_v60, %v752_v59 }
 0x28a   :  { %954 = vst [vmem:[%s1355_s5] sm:$0xff] %v953_v62  }
 0x28b   :  { %v669_v63 = vpop.permute.xlu0 %668 }
 0x28c   :  { %v698_v0 = vmul.f32 %v669_v63, %v1175_v30 }
 0x28e   :  { %v746_v34 = vadd.f32 %v717_v52, %v698_v0 }
 0x290   :  { %v754_v4 = vmax.f32 %v746_v34, 0.0 }
 0x291   :  { %v694_v1 = vpop.permute.xlu2 %693 }
 0x292   :  { %v703_v21 = vmul.f32 %v694_v1, %v1158_v19 }
 0x295   :  { %v722_v3 = vpop.permute.xlu1 %721 }
 0x296   :  { %v747_v32 = vadd.f32 %v722_v3, %v699_v2 }
 0x297   :  { %v727_v13 = vpop.permute.xlu0 %726 }
 0x298   :  { %v755_v6 = vmax.f32 %v747_v32, 0.0 }
 0x299   :  { %v732_v9 = vpop.permute.xlu2 %731 }
 0x29a   :  { %v958_v8 = vpack.c.bf16 %v755_v6, %v754_v4  ;;  %v749_v12 = vadd.f32 %v732_v9, %v701_v10 }
 0x29c   :  { %970 = vst [vmem:[%s1355_s5 + $0x8] sm:$0xff] %v958_v8   ;;  %v757_v28 = vmax.f32 %v749_v12, 0.0 }
 0x29d   :  { %v679_v11 = vpop.permute.xlu1 %678 }
 0x29e   :  { %v700_v30 = vmul.f32 %v679_v11, %v1165_v25 }
 0x2a0   :  { %v748_v44 = vadd.f32 %v727_v13, %v700_v30 }
 0x2a2   :  { %v756_v14 = vmax.f32 %v748_v44, 0.0 }
 0x2a4   :  { %v963_v15 = vpack.c.bf16 %v757_v28, %v756_v14 }
 0x2a5   :  { %v689_v16 = vpop.permute.xlu1 %688 }
 0x2a6   :  { %971 = vst [vmem:[%s1355_s5 + $0x10] sm:$0xff] %v963_v15   ;;  %v702_v17 = vmul.f32 %v689_v16, %v1156_v18 }
 0x2ad   :  { %v742_v50 = vpop.permute.xlu0 %741  ;;  %v737_v22 = vpop.permute.xlu1 %736 }
 0x2ae   :  { %v751_v23 = vadd.f32 %v742_v50, %v703_v21  ;;  %v750_v24 = vadd.f32 %v737_v22, %v702_v17 }
 0x2b0   :  { %v759_v27 = vmax.f32 %v751_v23, 0.0  ;;  %v758_v25 = vmax.f32 %v750_v24, 0.0 }
 0x2b2   :  { %v968_v7 = vpack.c.bf16 %v759_v27, %v758_v25 }
 0x2b4   :  { %972 = vst [vmem:[%s1355_s5 + $0x18] sm:$0xff] %v968_v7  }

// kernel: generator_forward.11
= control target key start
LH: loop header
LB: loop body
LE: loop exit
PB: predicated region body
PF: predicated region fallthrough
CT: control target
= control target key end

     0   :  { %vm259_vm0 = vcmask 130048   ;;  %vm422_vm1 = vcmask 261120   ;;  %s1681_s1 = inlined_call_operand.vmem [shape: bf16[144,512], index: 1, kind: input, shape index: {}]   ;;  %s1682_s0 = inlined_call_operand.vmem [shape: bf16[32,144], index: 0, kind: input, shape index: {}]   ;;  %s1683_s2 = inlined_call_operand.vmem [shape: f32[32,32], index: 2, kind: input, shape index: {}]   ;;  %s1684_s3 = inlined_call_operand.vmem [shape: f32[32,1], index: 3, kind: input, shape index: {}]   ;;  %s1685_s4 = inlined_call_operand.vmem [shape: f32[32,1], index: 4, kind: input, shape index: {}]   ;;  %s1686_s5 = inlined_call_operand.vmem [shape: bf16[32,512], index: 5, kind: output, shape index: {}]  }
   0x1   :  { %v1041_v0 = vld [vmem:[%s1681_s1 + $0xe0] sm:$0xf]  ;;  %v1145_v1 = vld [vmem:[%s1681_s1 + $0xec] sm:$0xf0]  ;;  %v1143_v5 = vld [vmem:[%s1681_s1 + $0xe4] sm:$0xf] }
   0x2   :  { %v1057_v2 = vld [vmem:[%s1681_s1 + $0x100] sm:$0xf]  ;;  %v1042_v3 = vor.u32 %v1145_v1, %v1041_v0  ;;  %v1149_v4 = vld [vmem:[%s1681_s1 + $0x10c] sm:$0xf0]  ;;  %v1043_v6 = vld [vmem:[%s1681_s1 + $0xf0] sm:$0xf0] }
   0x3   :  { %v1058_v7 = vor.u32 %v1149_v4, %v1057_v2  ;;  %v1046_v8 = vor.u32 %v1143_v5, %v1043_v6  ;;  %v1147_v9 = vld [vmem:[%s1681_s1 + $0x104] sm:$0xf]  ;;  %v1059_v10 = vld [vmem:[%s1681_s1 + $0x110] sm:$0xf0]  ;;  %v915_v13 = vld [vmem:[%s1682_s0 + $0x8] sm:$0xf0] }
   0x4   :  { %v1111_v11 = vld [vmem:[%s1682_s0 + $0x4] sm:$0xf]  ;;  %266 = vmatpush.bf16.msra.mxu0 %v1042_v3  ;;  %v1062_v12 = vor.u32 %v1147_v9, %v1059_v10  ;;  %v1025_v14 = vld [vmem:[%s1681_s1 + $0xc0] sm:$0xf]  ;;  %v1141_v15 = vld [vmem:[%s1681_s1 + $0xcc] sm:$0xf0] }
   0x5   :  { %292 = vmatpush.bf16.msra.mxu1 %v1058_v7  ;;  %304 = vmatpush.bf16.msra.mxu2 %v1046_v8  ;;  %v1239_v16 = vor.u32 %v1111_v11, %v915_v13  ;;  %v1026_v17 = vor.u32 %v1141_v15, %v1025_v14  ;;  %v1139_v18 = vld [vmem:[%s1681_s1 + $0xc4] sm:$0xf]  ;;  %v1027_v19 = vld [vmem:[%s1681_s1 + $0xd0] sm:$0xf0]  ;;  %v1049_v20 = vld [vmem:[%s1681_s1 + $0xe8] sm:$0xf] }
   0x6   :  { %330 = vmatpush.bf16.msra.mxu3 %v1062_v12  ;;  %v1030_v21 = vor.u32 %v1139_v18, %v1027_v19  ;;  %v1146_v22 = vld [vmem:[%s1681_s1 + $0xf4] sm:$0xf0]  ;;  %v1009_v23 = vld [vmem:[%s1681_s1 + $0xa0] sm:$0xf]  ;;  %v1137_v24 = vld [vmem:[%s1681_s1 + $0xac] sm:$0xf0] }
   0x7   :  { %v1050_v25 = vor.u32 %v1146_v22, %v1049_v20  ;;  %v1135_v26 = vld [vmem:[%s1681_s1 + $0xa4] sm:$0xf]  ;;  %v1011_v27 = vld [vmem:[%s1681_s1 + $0xb0] sm:$0xf0]  ;;  %v1033_v28 = vld [vmem:[%s1681_s1 + $0xc8] sm:$0xf]  ;;  %v1010_v29 = vor.u32 %v1137_v24, %v1009_v23 }
   0x8   :  { %1071 = vmatmul.msk.bf16.vlgmr.msra.gmra.mxu1 %vm259_vm0, %v1239_v16  ;;  %267 = vmatpush.bf16.msra.mxu0 %v1026_v17  ;;  %v1142_v30 = vld [vmem:[%s1681_s1 + $0xd4] sm:$0xf0]  ;;  %v1014_v31 = vor.u32 %v1135_v26, %v1011_v27  ;;  %v993_v32 = vld [vmem:[%s1681_s1 + $0x80] sm:$0xf]  ;;  %v1133_v33 = vld [vmem:[%s1681_s1 + $0x8c] sm:$0xf0] }
   0x9   :  { %1073 = vmatmul.msk.bf16.vlgmr.msra.gmra.mxu3 %vm259_vm0, %v1239_v16  ;;  %305 = vmatpush.bf16.msra.mxu2 %v1030_v21  ;;  %v1131_v34 = vld [vmem:[%s1681_s1 + $0x84] sm:$0xf]  ;;  %v1034_v35 = vor.u32 %v1142_v30, %v1033_v28  ;;  %v995_v36 = vld [vmem:[%s1681_s1 + $0x90] sm:$0xf0]  ;;  %v1065_v37 = vld [vmem:[%s1681_s1 + $0x108] sm:$0xf]  ;;  %v994_v42 = vor.u32 %v1133_v33, %v993_v32 }
   0xa   :  { %342 = vmatpush.bf16.msrb.mxu1 %v1050_v25  ;;  %v1150_v38 = vld [vmem:[%s1681_s1 + $0x114] sm:$0xf0]  ;;  %v1017_v39 = vld [vmem:[%s1681_s1 + $0xa8] sm:$0xf]  ;;  %v998_v43 = vor.u32 %v1131_v34, %v995_v36  ;;  %v977_v44 = vld [vmem:[%s1681_s1 + $0x60] sm:$0xf] }
   0xb   :  { %v1138_v40 = vld [vmem:[%s1681_s1 + $0xb4] sm:$0xf0]  ;;  %v1066_v41 = vor.u32 %v1150_v38, %v1065_v37  ;;  %v1129_v45 = vld [vmem:[%s1681_s1 + $0x6c] sm:$0xf0]  ;;  %v1127_v47 = vld [vmem:[%s1681_s1 + $0x64] sm:$0xf] }
   0xc   :  { %268 = vmatpush.bf16.msra.mxu0 %v1010_v29  ;;  %v1018_v46 = vor.u32 %v1138_v40, %v1017_v39  ;;  %v979_v48 = vld [vmem:[%s1681_s1 + $0x70] sm:$0xf0]  ;;  %v1001_v49 = vld [vmem:[%s1681_s1 + $0x88] sm:$0xf]  ;;  %v1134_v50 = vld [vmem:[%s1681_s1 + $0x94] sm:$0xf0]  ;;  %v978_v51 = vor.u32 %v1129_v45, %v977_v44 }
   0xd   :  { %306 = vmatpush.bf16.msra.mxu2 %v1014_v31  ;;  %368 = vmatpush.bf16.msrb.mxu3 %v1066_v41  ;;  %v1113_v52 = vld [vmem:[%s1682_s0 + $0x14] sm:$0xf]  ;;  %v982_v53 = vor.u32 %v1127_v47, %v979_v48  ;;  %v923_v54 = vld [vmem:[%s1682_s0 + $0x18] sm:$0xf0]  ;;  %v961_v55 = vld [vmem:[%s1681_s1 + $0x40] sm:$0xf]  ;;  %v1002_v57 = vor.u32 %v1134_v50, %v1001_v49 }
   0xe   :  { %343 = vmatpush.bf16.msrb.mxu1 %v1034_v35  ;;  %v1125_v56 = vld [vmem:[%s1681_s1 + $0x4c] sm:$0xf0]  ;;  %v1123_v58 = vld [vmem:[%s1681_s1 + $0x44] sm:$0xf]  ;;  %v963_v59 = vld [vmem:[%s1681_s1 + $0x50] sm:$0xf0]  ;;  %v1341_v62 = vor.u32 %v1113_v52, %v923_v54 }
   0xf   :  { %v985_v60 = vld [vmem:[%s1681_s1 + $0x68] sm:$0xf]  ;;  %v1130_v61 = vld [vmem:[%s1681_s1 + $0x74] sm:$0xf0]  ;;  %v962_v63 = vor.u32 %v1125_v56, %v961_v55  ;;  %v966_v0 = vor.u32 %v1123_v58, %v963_v59  ;;  %v945_v1 = vld [vmem:[%s1681_s1 + $0x20] sm:$0xf] }
  0x10   :  { %269 = vmatpush.bf16.msra.mxu0 %v994_v42  ;;  %v1121_v2 = vld [vmem:[%s1681_s1 + $0x2c] sm:$0xf0]  ;;  %v986_v3 = vor.u32 %v1130_v61, %v985_v60  ;;  %v1119_v4 = vld [vmem:[%s1681_s1 + $0x24] sm:$0xf]  ;;  %v947_v5 = vld [vmem:[%s1681_s1 + $0x30] sm:$0xf0] }
  0x11   :  { %307 = vmatpush.bf16.msra.mxu2 %v998_v43  ;;  %v969_v6 = vld [vmem:[%s1681_s1 + $0x48] sm:$0xf]  ;;  %v1126_v7 = vld [vmem:[%s1681_s1 + $0x54] sm:$0xf0]  ;;  %v1148_v8 = vld [vmem:[%s1681_s1 + $0x10c] sm:$0xf]  ;;  %v946_v10 = vor.u32 %v1121_v2, %v945_v1  ;;  %v950_v12 = vor.u32 %v1119_v4, %v947_v5 }
  0x12   :  { %344 = vmatpush.bf16.msrb.mxu1 %v1018_v46  ;;  %v1067_v9 = vld [vmem:[%s1681_s1 + $0x118] sm:$0xf0]  ;;  %v929_v13 = vld [vmem:[%s1681_s1] sm:$0xf]  ;;  %v1117_v14 = vld [vmem:[%s1681_s1 + $0xc] sm:$0xf0]  ;;  %v970_v15 = vor.u32 %v1126_v7, %v969_v6 }
  0x13   :  { %v1070_v11 = vor.u32 %v1148_v8, %v1067_v9  ;;  %v1115_v17 = vld [vmem:[%s1681_s1 + $0x4] sm:$0xf]  ;;  %v931_v18 = vld [vmem:[%s1681_s1 + $0x10] sm:$0xf0]  ;;  %v953_v19 = vld [vmem:[%s1681_s1 + $0x28] sm:$0xf]  ;;  %v930_v22 = vor.u32 %v1117_v14, %v929_v13 }
  0x14   :  { %270 = vmatpush.bf16.msra.mxu0 %v978_v51  ;;  %v1122_v20 = vld [vmem:[%s1681_s1 + $0x34] sm:$0xf0]  ;;  %v913_v21 = vld [vmem:[%s1682_s0] sm:$0xf]  ;;  %v1112_v23 = vld [vmem:[%s1682_s0 + $0x4] sm:$0xf0]  ;;  %v934_v26 = vor.u32 %v1115_v17, %v931_v18 }
  0x15   :  { %308 = vmatpush.bf16.msra.mxu2 %v982_v53  ;;  %1159 = vmatpush.bf16.msra.mxu3 %v1070_v11  ;;  %v1144_v24 = vld [vmem:[%s1681_s1 + $0xec] sm:$0xf]  ;;  %v1051_v25 = vld [vmem:[%s1681_s1 + $0xf8] sm:$0xf0]  ;;  %v954_v27 = vor.u32 %v1122_v20, %v953_v19  ;;  %v914_v28 = vor.u32 %v1112_v23, %v913_v21  ;;  %v937_v29 = vld [vmem:[%s1681_s1 + $0x8] sm:$0xf] }
  0x16   :  { %345 = vmatpush.bf16.msrb.mxu1 %v1002_v57  ;;  %v1118_v30 = vld [vmem:[%s1681_s1 + $0x14] sm:$0xf0]  ;;  %v1054_v31 = vor.u32 %v1144_v24, %v1051_v25  ;;  %v1140_v32 = vld [vmem:[%s1681_s1 + $0xcc] sm:$0xf]  ;;  %v1035_v33 = vld [vmem:[%s1681_s1 + $0xd8] sm:$0xf0] }
  0x17   :  { %v938_v34 = vor.u32 %v1118_v30, %v937_v29  ;;  %v1038_v35 = vor.u32 %v1140_v32, %v1035_v33  ;;  %v1136_v36 = vld [vmem:[%s1681_s1 + $0xac] sm:$0xf]  ;;  %v1019_v37 = vld [vmem:[%s1681_s1 + $0xb8] sm:$0xf0]  ;;  %v921_v41 = vld [vmem:[%s1682_s0 + $0x10] sm:$0xf] }
  0x18   :  { %1072 = vmatmul.msk.bf16.gmra.mxu1 %vm259_vm0, %v1341_v62  ;;  %271 = vmatpush.bf16.msra.mxu0 %v962_v63  ;;  %v1022_v38 = vor.u32 %v1136_v36, %v1019_v37  ;;  %v1132_v39 = vld [vmem:[%s1681_s1 + $0x8c] sm:$0xf]  ;;  %v1003_v40 = vld [vmem:[%s1681_s1 + $0x98] sm:$0xf0]  ;;  %v1114_v42 = vld [vmem:[%s1682_s0 + $0x14] sm:$0xf0] }
  0x19   :  { %1074 = vmatmul.msk.bf16.gmra.mxu3 %vm259_vm0, %v1341_v62  ;;  %309 = vmatpush.bf16.msra.mxu2 %v966_v0  ;;  %v1006_v43 = vor.u32 %v1132_v39, %v1003_v40  ;;  %v1128_v44 = vld [vmem:[%s1681_s1 + $0x6c] sm:$0xf]  ;;  %v987_v45 = vld [vmem:[%s1681_s1 + $0x78] sm:$0xf0]  ;;  %v922_v46 = vor.u32 %v1114_v42, %v921_v41  ;;  %v1487_v24 = vld [vmem:[%s1683_s2] sm:$0xff] }
  0x1a   :  { %346 = vmatpush.bf16.msrb.mxu1 %v986_v3  ;;  %v990_v47 = vor.u32 %v1128_v44, %v987_v45  ;;  %v1124_v48 = vld [vmem:[%s1681_s1 + $0x4c] sm:$0xf]  ;;  %v971_v49 = vld [vmem:[%s1681_s1 + $0x58] sm:$0xf0] }
  0x1b   :  { %v974_v50 = vor.u32 %v1124_v48, %v971_v49  ;;  %v1120_v51 = vld [vmem:[%s1681_s1 + $0x2c] sm:$0xf]  ;;  %v955_v52 = vld [vmem:[%s1681_s1 + $0x38] sm:$0xf0] }
  0x1c   :  { %272 = vmatpush.bf16.msra.mxu0 %v946_v10  ;;  %v958_v53 = vor.u32 %v1120_v51, %v955_v52  ;;  %v1116_v54 = vld [vmem:[%s1681_s1 + $0xc] sm:$0xf]  ;;  %v939_v55 = vld [vmem:[%s1681_s1 + $0x18] sm:$0xf0] }
  0x1d   :  { %310 = vmatpush.bf16.msra.mxu2 %v950_v12  ;;  %v942_v56 = vor.u32 %v1116_v54, %v939_v55  ;;  %v1524_v39 = vld [vmem:[%s1683_s2 + $0x8] sm:$0xff] }
  0x1e   :  { %347 = vmatpush.bf16.msrb.mxu1 %v970_v15 }
  0x20   :  { %273 = vmatpush.bf16.msra.mxu0 %v930_v22 }
  0x21   :  { %311 = vmatpush.bf16.msra.mxu2 %v934_v26 }
  0x22   :  { %348 = vmatpush.bf16.msrb.mxu1 %v954_v27 }
  0x23   :  { %274 = vmatmul.bf16.vlgmr.msra.gmra.mxu0 %v914_v28 }
  0x24   :  { %380 = vmatpush.bf16.msrb.mxu0 %v1054_v31  ;;  %312 = vmatmul.bf16.vlgmr.msra.gmra.mxu2 %v914_v28 }
  0x25   :  { %406 = vmatpush.bf16.msrb.mxu2 %v1070_v11 }
  0x26   :  { %349 = vmatpush.bf16.msrb.mxu1 %v938_v34 }
  0x28   :  { %381 = vmatpush.bf16.msrb.mxu0 %v1038_v35 }
  0x29   :  { %350 = vmatmul.bf16.vlgmr.msrb.gmra.mxu1 %v914_v28  ;;  %1075 = vmatmul.msk.bf16.vlgmr.msrb.gmra.mxu3 %vm259_vm0, %v1239_v16 }
  0x2a   :  { %1151 = vmatpush.bf16.msra.mxu1 %v1054_v31 }
  0x2c   :  { %382 = vmatpush.bf16.msrb.mxu0 %v1022_v38 }
  0x2e   :  { %1152 = vmatpush.bf16.msra.mxu1 %v1038_v35 }
  0x30   :  { %383 = vmatpush.bf16.msrb.mxu0 %v1006_v43 }
  0x32   :  { %1153 = vmatpush.bf16.msra.mxu1 %v1022_v38 }
  0x33   :  { %279 = vmatmul.bf16.gmra.mxu0 %v922_v46 }
  0x34   :  { %384 = vmatpush.bf16.msrb.mxu0 %v990_v47  ;;  %317 = vmatmul.bf16.gmra.mxu2 %v922_v46 }
  0x36   :  { %1154 = vmatpush.bf16.msra.mxu1 %v1006_v43 }
  0x38   :  { %385 = vmatpush.bf16.msrb.mxu0 %v974_v50 }
  0x39   :  { %355 = vmatmul.bf16.gmra.mxu1 %v922_v46  ;;  %1076 = vmatmul.msk.bf16.gmra.mxu3 %vm259_vm0, %v1341_v62 }
  0x3a   :  { %1155 = vmatpush.bf16.msra.mxu1 %v990_v47  ;;  %v420_v47 = vld [vmem:[%s1683_s2 + $0x10] sm:$0xff] }
  0x3c   :  { %386 = vmatpush.bf16.msrb.mxu0 %v958_v53 }
  0x3e   :  { %1156 = vmatpush.bf16.msra.mxu1 %v974_v50 }
  0x40   :  { %387 = vmatpush.bf16.msrb.mxu0 %v942_v56 }
  0x42   :  { %1157 = vmatpush.bf16.msra.mxu1 %v958_v53 }
  0x43   :  { %388 = vmatmul.bf16.vlgmr.msrb.gmra.mxu0 %v914_v28 }
  0x44   :  { %1077 = vmatmul.msk.bf16.vlgmr.msrb.gmra.mxu2 %vm259_vm0, %v1239_v16 }
  0x46   :  { %1158 = vmatpush.bf16.msra.mxu1 %v942_v56  ;;  %v421_v56 = vld [vmem:[%s1683_s2 + $0x18] sm:$0xff] }
  0x49   :  { %393 = vmatmul.bf16.vlgmr.msra.gmra.mxu1 %v922_v46  ;;  %1078 = vmatmul.msk.bf16.vlgmr.msra.gmra.mxu3 %vm259_vm0, %v1341_v62 }
  0x85   :  { %v294_v57 = vpop.f32.mrf.mxu1 }
  0x8c   :  { %v332_v58 = vpop.f32.mrf.mxu3 }
  0x8d   :  { %v296_v59 = vpop.f32.mrf.mxu1 }
  0x94   :  { %v334_v60 = vpop.f32.mrf.mxu3 }
  0x95   :  { %v299_v61 = vpop.f32.mrf.mxu1 }
  0x9c   :  { %v337_v63 = vpop.f32.mrf.mxu3 }
  0x9d   :  { %v301_v0 = vpop.f32.mrf.mxu1 }
  0xa0   :  { %v275_v1 = vpop.f32.mrf.mxu0 }
  0xa1   :  { %v1471_v17 = vadd.f32 %v294_v57, %v275_v1 }
  0xa3   :  { %v551_v30 = vmul.f32 %v1471_v17, %v1471_v17 }
  0xa4   :  { %v339_v2 = vpop.f32.mrf.mxu3 }
  0xa6   :  { %v351_v3 = vpop.f32.mrf.mxu1 }
  0xa7   :  { %v313_v4 = vpop.f32.mrf.mxu2 }
  0xa8   :  { %v277_v5 = vpop.f32.mrf.mxu0  ;;  %v1498_v29 = vadd.f32 %v332_v58, %v313_v4 }
  0xa9   :  { %v1468_v15 = vadd.f32 %v296_v59, %v277_v5 }
  0xaa   :  { %v552_v43 = vmul.f32 %v1498_v29, %v1498_v29 }
  0xab   :  { %v555_v27 = vmul.f32 %v1468_v15, %v1468_v15 }
  0xac   :  { %v370_v6 = vpop.f32.mrf.mxu3 }
  0xad   :  { %v1516_v36 = vadd.f32 %v370_v6, %v351_v3 }
  0xae   :  { %v353_v7 = vpop.f32.mrf.mxu1 }
  0xaf   :  { %v315_v8 = vpop.f32.mrf.mxu2  ;;  %v553_v46 = vmul.f32 %v1516_v36, %v1516_v36 }
  0xb0   :  { %v280_v16 = vpop.f32.mrf.mxu0  ;;  %v1491_v25 = vadd.f32 %v334_v60, %v315_v8 }
  0xb1   :  { %v1465_v13 = vadd.f32 %v299_v61, %v280_v16 }
  0xb2   :  { %v556_v38 = vmul.f32 %v1491_v25, %v1491_v25 }
  0xb3   :  { %v559_v23 = vmul.f32 %v1465_v13, %v1465_v13 }
  0xb4   :  { %v372_v9 = vpop.f32.mrf.mxu3 }
  0xb5   :  { %v1509_v33 = vadd.f32 %v372_v9, %v353_v7 }
  0xb6   :  { %v356_v10 = vpop.f32.mrf.mxu1 }
  0xb7   :  { %v318_v11 = vpop.f32.mrf.mxu2  ;;  %v557_v45 = vmul.f32 %v1509_v33, %v1509_v33 }
  0xb8   :  { %v282_v62 = vpop.f32.mrf.mxu0  ;;  %v1479_v22 = vadd.f32 %v337_v63, %v318_v11 }
  0xb9   :  { %v1463_v12 = vadd.f32 %v301_v0, %v282_v62 }
  0xba   :  { %v560_v34 = vmul.f32 %v1479_v22, %v1479_v22 }
  0xbb   :  { %447 = vmatpush.msrb.mxu1 %v1463_v12  ;;  %v563_v19 = vmul.f32 %v1463_v12, %v1463_v12 }
  0xbc   :  { %v375_v14 = vpop.f32.mrf.mxu3 }
  0xbd   :  { %448 = vmatpush.msrb.mxu1 %v1465_v13  ;;  %v1503_v31 = vadd.f32 %v375_v14, %v356_v10 }
  0xbe   :  { %v358_v20 = vpop.f32.mrf.mxu1 }
  0xbf   :  { %v320_v18 = vpop.f32.mrf.mxu2  ;;  %449 = vmatpush.msrb.mxu1 %v1468_v15  ;;  %v561_v44 = vmul.f32 %v1503_v31, %v1503_v31 }
  0xc0   :  { %v1476_v21 = vadd.f32 %v339_v2, %v320_v18  ;;  %v389_v37 = vpop.f32.mrf.mxu0 }
  0xc1   :  { %450 = vmatpush.msrb.mxu1 %v1471_v17 }
  0xc2   :  { %476 = vmatpush.msrb.mxu3 %v1476_v21  ;;  %1079 = vmatmul.msk.f32.vlgmr.msrb.gmra.mxu1 %vm422_vm1, %v1487_v24  ;;  %v564_v32 = vmul.f32 %v1476_v21, %v1476_v21 }
  0xc3   :  { %579 = vmatpush.msra.mxu1 %v563_v19 }
  0xc4   :  { %v377_v26 = vpop.f32.mrf.mxu3  ;;  %477 = vmatpush.msrb.mxu3 %v1479_v22 }
  0xc5   :  { %580 = vmatpush.msra.mxu1 %v559_v23  ;;  %v1496_v28 = vadd.f32 %v377_v26, %v358_v20 }
  0xc6   :  { %478 = vmatpush.msrb.mxu3 %v1491_v25  ;;  %v394_v35 = vpop.f32.mrf.mxu1 }
  0xc7   :  { %581 = vmatpush.msra.mxu1 %v555_v27  ;;  %505 = vmatpush.msra.mxu0 %v1496_v28  ;;  %v565_v40 = vmul.f32 %v1496_v28, %v1496_v28  ;;  %v408_v41 = vpop.f32.mrf.mxu2 }
  0xc8   :  { %479 = vmatpush.msrb.mxu3 %v1498_v29  ;;  %v391_v51 = vpop.f32.mrf.mxu0  ;;  %v1558_v55 = vadd.f32 %v408_v41, %v389_v37 }
  0xc9   :  { %582 = vmatpush.msra.mxu1 %v551_v30  ;;  %506 = vmatpush.msra.mxu0 %v1503_v31 }
  0xca   :  { %608 = vmatpush.msra.mxu3 %v564_v32  ;;  %1080 = vmatmul.msk.f32.gmra.mxu1 %vm422_vm1, %v1524_v39  ;;  %v554_v60 = vmul.f32 %v1558_v55, %v1558_v55 }
  0xcb   :  { %1083 = vmatmul.msk.f32.vlgmr.msrb.gmra.mxu3 %vm422_vm1, %v1487_v24  ;;  %507 = vmatpush.msra.mxu0 %v1509_v33 }
  0xcc   :  { %609 = vmatpush.msra.mxu3 %v560_v34  ;;  %v413_v42 = vpop.f32.mrf.mxu3 }
  0xcd   :  { %508 = vmatpush.msra.mxu0 %v1516_v36  ;;  %v1549_v53 = vadd.f32 %v413_v42, %v394_v35 }
  0xce   :  { %610 = vmatpush.msra.mxu3 %v556_v38  ;;  %1087 = vmatmul.msk.f32.vlgmr.msra.gmra.mxu0 %vm422_vm1, %v1487_v24  ;;  %v396_v48 = vpop.f32.mrf.mxu1 }
  0xcf   :  { %637 = vmatpush.msrb.mxu0 %v565_v40  ;;  %v410_v52 = vpop.f32.mrf.mxu2  ;;  %v562_v58 = vmul.f32 %v1549_v53, %v1549_v53 }
  0xd0   :  { %611 = vmatpush.msra.mxu3 %v552_v43  ;;  %v1554_v54 = vadd.f32 %v410_v52, %v391_v51 }
  0xd1   :  { %638 = vmatpush.msrb.mxu0 %v561_v44 }
  0xd2   :  { %1081 = vmatmul.msk.f32.gmra.mxu1 %vm422_vm1, %v420_v47  ;;  %v558_v59 = vmul.f32 %v1554_v54, %v1554_v54 }
  0xd3   :  { %639 = vmatpush.msrb.mxu0 %v557_v45  ;;  %1084 = vmatmul.msk.f32.gmra.mxu3 %vm422_vm1, %v1524_v39 }
  0xd4   :  { %v415_v49 = vpop.f32.mrf.mxu3 }
  0xd5   :  { %640 = vmatpush.msrb.mxu0 %v553_v46  ;;  %v1547_v50 = vadd.f32 %v415_v49, %v396_v48 }
  0xd6   :  { %1088 = vmatmul.msk.f32.gmra.mxu0 %vm422_vm1, %v1524_v39 }
  0xd7   :  { %534 = vmatpush.msra.mxu2 %v1547_v50  ;;  %v566_v57 = vmul.f32 %v1547_v50, %v1547_v50 }
  0xd9   :  { %535 = vmatpush.msra.mxu2 %v1549_v53 }
  0xda   :  { %1082 = vmatmul.msk.f32.gmra.mxu1 %vm422_vm1, %v421_v56 }
  0xdb   :  { %1085 = vmatmul.msk.f32.gmra.mxu3 %vm422_vm1, %v420_v47  ;;  %536 = vmatpush.msra.mxu2 %v1554_v54 }
  0xdd   :  { %537 = vmatpush.msra.mxu2 %v1558_v55 }
  0xde   :  { %1091 = vmatmul.msk.f32.vlgmr.msra.gmra.mxu2 %vm422_vm1, %v1487_v24  ;;  %1089 = vmatmul.msk.f32.gmra.mxu0 %vm422_vm1, %v420_v47 }
  0xdf   :  { %666 = vmatpush.msrb.mxu2 %v566_v57 }
  0xe1   :  { %667 = vmatpush.msrb.mxu2 %v562_v58 }
  0xe2   :  { %1095 = vmatmul.msk.f32.vlgmr.msra.gmra.mxu1 %vm422_vm1, %v1487_v24 }
  0xe3   :  { %1086 = vmatmul.msk.f32.gmra.mxu3 %vm422_vm1, %v421_v56  ;;  %668 = vmatpush.msrb.mxu2 %v558_v59 }
  0xe5   :  { %669 = vmatpush.msrb.mxu2 %v554_v60 }
  0xe6   :  { %1092 = vmatmul.msk.f32.gmra.mxu2 %vm422_vm1, %v1524_v39  ;;  %1090 = vmatmul.msk.f32.gmra.mxu0 %vm422_vm1, %v421_v56 }
  0xea   :  { %1096 = vmatmul.msk.f32.gmra.mxu1 %vm422_vm1, %v1524_v39 }
  0xeb   :  { %1099 = vmatmul.msk.f32.vlgmr.msra.gmra.mxu3 %vm422_vm1, %v1487_v24 }
  0xee   :  { %1093 = vmatmul.msk.f32.gmra.mxu2 %vm422_vm1, %v420_v47  ;;  %1103 = vmatmul.msk.f32.vlgmr.msrb.gmra.mxu0 %vm422_vm1, %v1487_v24 }
  0xf2   :  { %1097 = vmatmul.msk.f32.gmra.mxu1 %vm422_vm1, %v420_v47 }
  0xf3   :  { %1100 = vmatmul.msk.f32.gmra.mxu3 %vm422_vm1, %v1524_v39 }
  0xf6   :  { %1094 = vmatmul.msk.f32.gmra.mxu2 %vm422_vm1, %v421_v56  ;;  %1104 = vmatmul.msk.f32.gmra.mxu0 %vm422_vm1, %v1524_v39 }
  0xfa   :  { %1098 = vmatmul.msk.f32.gmra.mxu1 %vm422_vm1, %v421_v56 }
  0xfb   :  { %1101 = vmatmul.msk.f32.gmra.mxu3 %vm422_vm1, %v420_v47 }
  0xfe   :  { %1107 = vmatmul.msk.f32.vlgmr.msrb.gmra.mxu2 %vm422_vm1, %v1487_v24  ;;  %1105 = vmatmul.msk.f32.gmra.mxu0 %vm422_vm1, %v420_v47 }
 0x103   :  { %1102 = vmatmul.msk.f32.gmra.mxu3 %vm422_vm1, %v421_v56 }
 0x106   :  { %1108 = vmatmul.msk.f32.gmra.mxu2 %vm422_vm1, %v1524_v39  ;;  %1106 = vmatmul.msk.f32.gmra.mxu0 %vm422_vm1, %v421_v56 }
 0x10e   :  { %1109 = vmatmul.msk.f32.gmra.mxu2 %vm422_vm1, %v420_v47 }
 0x116   :  { %1110 = vmatmul.msk.f32.gmra.mxu2 %vm422_vm1, %v421_v56 }
 0x13f   :  { %v452_v61 = vpop.f32.mrf.mxu1 }
 0x147   :  { %v455_v1 = vpop.f32.mrf.mxu1 }
 0x14b   :  { %v510_v0 = vpop.f32.mrf.mxu0 }
 0x14e   :  { %v481_v63 = vpop.f32.mrf.mxu3 }
 0x14f   :  { %v683_v4 = vadd.f32 %v481_v63, %v452_v61  ;;  %v458_v5 = vpop.f32.mrf.mxu1 }
 0x151   :  { %v684_v7 = vadd.f32 %v683_v4, %v510_v0 }
 0x153   :  { %v513_v3 = vpop.f32.mrf.mxu0 }
 0x156   :  { %v484_v2 = vpop.f32.mrf.mxu3 }
 0x157   :  { %v688_v9 = vadd.f32 %v484_v2, %v455_v1  ;;  %v461_v62 = vpop.f32.mrf.mxu1 }
 0x159   :  { %v689_v11 = vadd.f32 %v688_v9, %v513_v3 }
 0x15b   :  { %v516_v16 = vpop.f32.mrf.mxu0 }
 0x15e   :  { %v487_v6 = vpop.f32.mrf.mxu3 }
 0x15f   :  { %v693_v20 = vadd.f32 %v487_v6, %v458_v5  ;;  %v584_v26 = vpop.f32.mrf.mxu1 }
 0x161   :  { %v539_v8 = vpop.f32.mrf.mxu2  ;;  %v694_v24 = vadd.f32 %v693_v20, %v516_v16 }
 0x162   :  { %v685_v10 = vadd.f32 %v684_v7, %v539_v8  ;;  %v1172_v7 = vmov 0  }
 0x163   :  { %v519_v23 = vpop.f32.mrf.mxu0  ;;  %1161 = vset.pattern.permute.xlu2 %v1172_v7  ;;  %1162 = vset.pattern.permute.xlu0 %v1172_v7 }
 0x164   :  { %686 = vadd.xlane.f32.xlu0 %v685_v10  ;;  %1163 = vset.pattern.permute.xlu1 %v1172_v7 }
 0x166   :  { %v490_v14 = vpop.f32.mrf.mxu3 }
 0x167   :  { %v698_v32 = vadd.f32 %v490_v14, %v461_v62  ;;  %v587_v42 = vpop.f32.mrf.mxu1 }
 0x169   :  { %v542_v18 = vpop.f32.mrf.mxu2  ;;  %v699_v37 = vadd.f32 %v698_v32, %v519_v23 }
 0x16a   :  { %v690_v19 = vadd.f32 %v689_v11, %v542_v18 }
 0x16b   :  { %v642_v35 = vpop.f32.mrf.mxu0 }
 0x16c   :  { %691 = vadd.xlane.f32.xlu0 %v690_v19 }
 0x16e   :  { %v613_v30 = vpop.f32.mrf.mxu3 }
 0x16f   :  { %v707_v40 = vadd.f32 %v613_v30, %v584_v26  ;;  %v590_v48 = vpop.f32.mrf.mxu1 }
 0x171   :  { %v545_v27 = vpop.f32.mrf.mxu2  ;;  %v708_v43 = vadd.f32 %v707_v40, %v642_v35 }
 0x172   :  { %v695_v34 = vadd.f32 %v694_v24, %v545_v27 }
 0x173   :  { %v645_v44 = vpop.f32.mrf.mxu0 }
 0x174   :  { %696 = vadd.xlane.f32.xlu1 %v695_v34 }
 0x176   :  { %v616_v41 = vpop.f32.mrf.mxu3 }
 0x177   :  { %v712_v47 = vadd.f32 %v616_v41, %v587_v42  ;;  %v593_v60 = vpop.f32.mrf.mxu1 }
 0x179   :  { %v548_v38 = vpop.f32.mrf.mxu2  ;;  %v713_v51 = vadd.f32 %v712_v47, %v645_v44 }
 0x17a   :  { %v700_v39 = vadd.f32 %v699_v37, %v548_v38 }
 0x17b   :  { %v648_v56 = vpop.f32.mrf.mxu0 }
 0x17c   :  { %701 = vadd.xlane.f32.xlu1 %v700_v39 }
 0x17e   :  { %v619_v49 = vpop.f32.mrf.mxu3 }
 0x17f   :  { %v717_v58 = vadd.f32 %v619_v49, %v590_v48  ;;  %v739_v48 = vld [vmem:[%s1684_s3] sm:$0xff] }
 0x181   :  { %v671_v45 = vpop.f32.mrf.mxu2  ;;  %v718_v59 = vadd.f32 %v717_v58, %v648_v56 }
 0x182   :  { %v709_v46 = vadd.f32 %v708_v43, %v671_v45 }
 0x183   :  { %v651_v2 = vpop.f32.mrf.mxu0 }
 0x184   :  { %710 = vadd.xlane.f32.xlu2 %v709_v46 }
 0x186   :  { %v622_v61 = vpop.f32.mrf.mxu3 }
 0x187   :  { %v722_v1 = vadd.f32 %v622_v61, %v593_v60 }
 0x189   :  { %v674_v52 = vpop.f32.mrf.mxu2  ;;  %v723_v3 = vadd.f32 %v722_v1, %v651_v2 }
 0x18a   :  { %v714_v57 = vadd.f32 %v713_v51, %v674_v52 }
 0x18c   :  { %715 = vadd.xlane.f32.xlu2 %v714_v57 }
 0x191   :  { %v677_v63 = vpop.f32.mrf.mxu2 }
 0x192   :  { %v719_v0 = vadd.f32 %v718_v59, %v677_v63 }
 0x194   :  { %720 = vadd.xlane.f32.xlu0 %v719_v0 }
 0x199   :  { %v680_v4 = vpop.f32.mrf.mxu2 }
 0x19a   :  { %v724_v5 = vadd.f32 %v723_v3, %v680_v4  ;;  %v791_v4 = vld [vmem:[%s1685_s4] sm:$0xff] }
 0x19c   :  { %725 = vadd.xlane.f32.xlu1 %v724_v5  ;;  %v740_v5 = vld [vmem:[%s1684_s3 + $0x8] sm:$0xff] }
 0x1d7   :  { %v687_v6 = vpop.xlane.xlu0 %686 }
 0x1d8   :  { %v703_v8 = vmul.f32 0.00048828125, %v687_v6 }
 0x1da   :  { %v731_v9 = vmul.f32 %v703_v8, %v703_v8 }
 0x1df   :  { %v692_v11 = vpop.xlane.xlu0 %691 }
 0x1e0   :  { %v704_v14 = vmul.f32 0.00048828125, %v692_v11 }
 0x1e2   :  { %v732_v23 = vmul.f32 %v704_v14, %v704_v14 }
 0x1e7   :  { %v697_v19 = vpop.xlane.xlu1 %696 }
 0x1e8   :  { %v1607_v30 = vmul.f32 0.00048828125, %v697_v19 }
 0x1ea   :  { %v733_v39 = vmul.f32 %v1607_v30, %v1607_v30 }
 0x1ef   :  { %v702_v37 = vpop.xlane.xlu1 %701 }
 0x1f0   :  { %v1611_v45 = vmul.f32 0.00048828125, %v702_v37 }
 0x1f2   :  { %v734_v57 = vmul.f32 %v1611_v45, %v1611_v45 }
 0x1f7   :  { %v711_v16 = vpop.xlane.xlu2 %710 }
 0x1f8   :  { %v727_v10 = vmul.f32 0.00048828125, %v711_v16 }
 0x1fa   :  { %v735_v62 = vsub.f32 %v727_v10, %v731_v9 }
 0x1fc   :  { %v743_v18 = vadd.f32 1e-05, %v735_v62 }
 0x1fe   :  { %1164 = vrsqrt.f32 %v743_v18  ;;  %vm753_vm3 = vweird.f32 %v743_v18 }
 0x1ff   :  { %v716_v20 = vpop.xlane.xlu2 %715 }
 0x200   :  { %v728_v24 = vmul.f32 0.00048828125, %v716_v20 }
 0x202   :  { %v736_v26 = vsub.f32 %v728_v24, %v732_v23 }
 0x204   :  { %v1165_v27 = vpop.eup %1164  ;;  %v744_v32 = vadd.f32 1e-05, %v736_v26 }
 0x205   :  { %v748_v34 = vmul.f32 %v1165_v27, %v743_v18  ;;  %vm754_vm2 = vweird.f32 %v1165_v27 }
 0x206   :  { %1166 = vrsqrt.f32 %v744_v32  ;;  %vm755_vm4 = vmor %vm753_vm3, %vm754_vm2  ;;  %vm763_vm6 = vweird.f32 %v744_v32 }
 0x207   :  { %v749_v35 = vmul.f32 %v1165_v27, %v748_v34  ;;  %v721_v38 = vpop.xlane.xlu0 %720 }
 0x208   :  { %v729_v40 = vmul.f32 0.00048828125, %v721_v38 }
 0x209   :  { %v750_v41 = vmul.f32 0.5, %v749_v35 }
 0x20a   :  { %v737_v42 = vsub.f32 %v729_v40, %v733_v39 }
 0x20b   :  { %v751_v43 = vsub.f32 1.5, %v750_v41  ;;  %v794_v41 = vld [vmem:[%s1685_s4 + $0x18] sm:$0xff] }
 0x20c   :  { %v1167_v44 = vpop.eup %1166  ;;  %v745_v46 = vadd.f32 1e-05, %v737_v42 }
 0x20d   :  { %v758_v47 = vmul.f32 %v1167_v44, %v744_v32  ;;  %v752_v49 = vmul.f32 %v1165_v27, %v751_v43  ;;  %vm764_vm5 = vweird.f32 %v1167_v44  ;;  %v741_v32 = vld [vmem:[%s1684_s3 + $0x10] sm:$0xff] }
 0x20e   :  { %1168 = vrsqrt.f32 %v745_v46  ;;  %vm765_vm7 = vmor %vm763_vm6, %vm764_vm5  ;;  %vm773_vm9 = vweird.f32 %v745_v46 }
 0x20f   :  { %v759_v51 = vmul.f32 %v1167_v44, %v758_v47  ;;  %v726_v52 = vpop.xlane.xlu1 %725  ;;  %v756_v56 = vsel %vm755_vm4, %v1165_v27, %v752_v49 }
 0x210   :  { %v730_v58 = vmul.f32 0.00048828125, %v726_v52  ;;  %v787_v59 = vmul.f32 %v756_v56, %v739_v48 }
 0x211   :  { %v760_v60 = vmul.f32 0.5, %v759_v51 }
 0x212   :  { %v738_v61 = vsub.f32 %v730_v58, %v734_v57  ;;  %805 = vperm.xlu2 %1161, %v787_v59   ;;  %v795_v2 = vmul.f32 %v787_v59, %v703_v8  ;;  %v792_v8 = vld [vmem:[%s1685_s4 + $0x8] sm:$0xff] }
 0x213   :  { %v761_v63 = vsub.f32 1.5, %v760_v60 }
 0x214   :  { %v1169_v0 = vpop.eup %1168  ;;  %v746_v1 = vadd.f32 1e-05, %v738_v61  ;;  %v799_v9 = vsub.f32 %v791_v4, %v795_v2 }
 0x215   :  { %v768_v3 = vmul.f32 %v1169_v0, %v745_v46  ;;  %v762_v6 = vmul.f32 %v1167_v44, %v761_v63  ;;  %vm774_vm8 = vweird.f32 %v1169_v0  ;;  %v793_v46 = vld [vmem:[%s1685_s4 + $0x10] sm:$0xff] }
 0x216   :  { %1170 = vrsqrt.f32 %v746_v1  ;;  %vm775_vm10 = vmor %vm773_vm9, %vm774_vm8  ;;  %vm783_vm12 = vweird.f32 %v746_v1 }
 0x217   :  { %v769_v7 = vmul.f32 %v1169_v0, %v768_v3  ;;  %v766_v16 = vsel %vm765_vm7, %v1167_v44, %v762_v6 }
 0x218   :  { %v788_v10 = vmul.f32 %v766_v16, %v740_v5 }
 0x219   :  { %v770_v11 = vmul.f32 0.5, %v769_v7 }
 0x21a   :  { %841 = vperm.xlu2 %1161, %v799_v9   ;;  %810 = vperm.xlu0 %1162, %v788_v10   ;;  %v796_v62 = vmul.f32 %v788_v10, %v704_v14  ;;  %v742_v14 = vld [vmem:[%s1684_s3 + $0x18] sm:$0xff] }
 0x21b   :  { %v771_v18 = vsub.f32 1.5, %v770_v11 }
 0x21c   :  { %v1171_v19 = vpop.eup %1170  ;;  %v800_v20 = vsub.f32 %v792_v8, %v796_v62 }
 0x21d   :  { %v778_v23 = vmul.f32 %v1171_v19, %v746_v1  ;;  %v772_v24 = vmul.f32 %v1169_v0, %v771_v18  ;;  %vm784_vm11 = vweird.f32 %v1171_v19 }
 0x21e   :  { %846 = vperm.xlu1 %1163, %v800_v20   ;;  %vm785_vm13 = vmor %vm783_vm12, %vm784_vm11 }
 0x21f   :  { %v779_v26 = vmul.f32 %v1171_v19, %v778_v23  ;;  %v776_v34 = vsel %vm775_vm10, %v1169_v0, %v772_v24 }
 0x220   :  { %v789_v37 = vmul.f32 %v776_v34, %v741_v32 }
 0x221   :  { %v780_v27 = vmul.f32 0.5, %v779_v26 }
 0x222   :  { %v797_v44 = vmul.f32 %v789_v37, %v1607_v30 }
 0x223   :  { %v781_v35 = vsub.f32 1.5, %v780_v27 }
 0x224   :  { %v801_v47 = vsub.f32 %v793_v46, %v797_v44 }
 0x225   :  { %v782_v38 = vmul.f32 %v1171_v19, %v781_v35 }
 0x226   :  { %815 = vperm.xlu1 %1163, %v789_v37  }
 0x227   :  { %v786_v39 = vsel %vm785_vm13, %v1171_v19, %v782_v38 }
 0x228   :  { %v790_v40 = vmul.f32 %v786_v39, %v742_v14 }
 0x22a   :  { %820 = vperm.xlu2 %1161, %v790_v40   ;;  %v798_v42 = vmul.f32 %v790_v40, %v1611_v45 }
 0x22c   :  { %v802_v43 = vsub.f32 %v794_v41, %v798_v42 }
 0x22e   :  { %856 = vperm.xlu1 %1163, %v802_v43  }
 0x232   :  { %851 = vperm.xlu2 %1161, %v801_v47  }
 0x26c   :  { %v806_v48 = vpop.permute.xlu2 %805 }
 0x26d   :  { %v823_v49 = vmul.f32 %v806_v48, %v1471_v17  ;;  %v824_v51 = vmul.f32 %v806_v48, %v1498_v29  ;;  %v825_v52 = vmul.f32 %v806_v48, %v1516_v36  ;;  %v826_v56 = vmul.f32 %v806_v48, %v1558_v55 }
 0x274   :  { %v842_v45 = vpop.permute.xlu2 %841 }
 0x275   :  { %v859_v57 = vadd.f32 %v842_v45, %v823_v49  ;;  %v860_v58 = vadd.f32 %v842_v45, %v824_v51  ;;  %v861_v30 = vadd.f32 %v842_v45, %v825_v52  ;;  %v862_v59 = vadd.f32 %v842_v45, %v826_v56 }
 0x277   :  { %v875_v60 = vmax.f32 %v859_v57, 0.0  ;;  %v876_v61 = vmax.f32 %v860_v58, 0.0  ;;  %v877_v63 = vmax.f32 %v861_v30, 0.0  ;;  %v878_v0 = vmax.f32 %v862_v59, 0.0 }
 0x279   :  { %v891_v1 = vpack.c.bf16 %v876_v61, %v875_v60  ;;  %v892_v2 = vpack.c.bf16 %v878_v0, %v877_v63 }
 0x27b   :  { %899 = vst [vmem:[%s1686_s5] sm:$0xff] %v891_v1 }
 0x27c   :  { %900 = vst [vmem:[%s1686_s5 + $0x8] sm:$0xff] %v892_v2 }
 0x284   :  { %v821_v4 = vpop.permute.xlu2 %820 }
 0x285   :  { %v835_v38 = vmul.f32 %v821_v4, %v1463_v12  ;;  %v836_v39 = vmul.f32 %v821_v4, %v1476_v21 }
 0x28c   :  { %v811_v17 = vpop.permute.xlu0 %810  ;;  %v852_v23 = vpop.permute.xlu2 %851 }
 0x28d   :  { %v827_v29 = vmul.f32 %v811_v17, %v1468_v15  ;;  %v828_v36 = vmul.f32 %v811_v17, %v1491_v25  ;;  %v829_v55 = vmul.f32 %v811_v17, %v1509_v33  ;;  %v830_v3 = vmul.f32 %v811_v17, %v1554_v54 }
 0x290   :  { %v847_v5 = vpop.permute.xlu1 %846 }
 0x291   :  { %v863_v6 = vadd.f32 %v847_v5, %v827_v29  ;;  %v864_v7 = vadd.f32 %v847_v5, %v828_v36  ;;  %v865_v16 = vadd.f32 %v847_v5, %v829_v55  ;;  %v866_v9 = vadd.f32 %v847_v5, %v830_v3 }
 0x293   :  { %v879_v10 = vmax.f32 %v863_v6, 0.0  ;;  %v880_v11 = vmax.f32 %v864_v7, 0.0  ;;  %v881_v8 = vmax.f32 %v865_v16, 0.0  ;;  %v882_v62 = vmax.f32 %v866_v9, 0.0 }
 0x295   :  { %v893_v18 = vpack.c.bf16 %v880_v11, %v879_v10  ;;  %v894_v19 = vpack.c.bf16 %v882_v62, %v881_v8 }
 0x297   :  { %901 = vst [vmem:[%s1686_s5 + $0x10] sm:$0xff] %v893_v18 }
 0x298   :  { %902 = vst [vmem:[%s1686_s5 + $0x18] sm:$0xff] %v894_v19  ;;  %v816_v15 = vpop.permute.xlu1 %815 }
 0x299   :  { %v831_v25 = vmul.f32 %v816_v15, %v1465_v13  ;;  %v832_v33 = vmul.f32 %v816_v15, %v1479_v22  ;;  %v833_v54 = vmul.f32 %v816_v15, %v1503_v31  ;;  %v834_v20 = vmul.f32 %v816_v15, %v1549_v53 }
 0x29a   :  { %v837_v22 = vmul.f32 %v821_v4, %v1496_v28  ;;  %v838_v31 = vmul.f32 %v821_v4, %v1547_v50 }
 0x29b   :  { %v867_v24 = vadd.f32 %v852_v23, %v831_v25  ;;  %v868_v26 = vadd.f32 %v852_v23, %v832_v33  ;;  %v869_v27 = vadd.f32 %v852_v23, %v833_v54  ;;  %v870_v32 = vadd.f32 %v852_v23, %v834_v20 }
 0x29d   :  { %v883_v34 = vmax.f32 %v867_v24, 0.0  ;;  %v884_v35 = vmax.f32 %v868_v26, 0.0  ;;  %v885_v37 = vmax.f32 %v869_v27, 0.0  ;;  %v886_v14 = vmax.f32 %v870_v32, 0.0 }
 0x29f   :  { %v895_v13 = vpack.c.bf16 %v884_v35, %v883_v34  ;;  %v896_v40 = vpack.c.bf16 %v886_v14, %v885_v37 }
 0x2a0   :  { %v857_v53 = vpop.permute.xlu1 %856 }
 0x2a1   :  { %903 = vst [vmem:[%s1686_s5 + $0x20] sm:$0xff] %v895_v13  ;;  %v871_v41 = vadd.f32 %v857_v53, %v835_v38  ;;  %v872_v42 = vadd.f32 %v857_v53, %v836_v39  ;;  %v873_v43 = vadd.f32 %v857_v53, %v837_v22  ;;  %v874_v44 = vadd.f32 %v857_v53, %v838_v31 }
 0x2a2   :  { %904 = vst [vmem:[%s1686_s5 + $0x28] sm:$0xff] %v896_v40 }
 0x2a3   :  { %v887_v12 = vmax.f32 %v871_v41, 0.0  ;;  %v888_v21 = vmax.f32 %v872_v42, 0.0  ;;  %v889_v46 = vmax.f32 %v873_v43, 0.0  ;;  %v890_v47 = vmax.f32 %v874_v44, 0.0 }
 0x2a5   :  { %v897_v28 = vpack.c.bf16 %v888_v21, %v887_v12  ;;  %v898_v48 = vpack.c.bf16 %v890_v47, %v889_v46 }
 0x2a7   :  { %905 = vst [vmem:[%s1686_s5 + $0x30] sm:$0xff] %v897_v28 }
 0x2a8   :  { %906 = vst [vmem:[%s1686_s5 + $0x38] sm:$0xff] %v898_v48 }

// kernel: generator_forward.12
= control target key start
LH: loop header
LB: loop body
LE: loop exit
PB: predicated region body
PF: predicated region fallthrough
CT: control target
= control target key end

     0   :  { %vm464_vm0 = vcmask 1043456   ;;  %vm460_vm1 = vcmask 588800   ;;  %vm739_vm2 = vcmask 130048   ;;  %s3081_s1 = inlined_call_operand.vmem [shape: bf16[72,2048], index: 1, kind: input, shape index: {}]   ;;  %s3082_s0 = inlined_call_operand.vmem [shape: bf16[16,72], index: 0, kind: input, shape index: {}]   ;;  %s3083_s2 = inlined_call_operand.vmem [shape: f32[16,16], index: 2, kind: input, shape index: {}]   ;;  %s3084_s3 = inlined_call_operand.vmem [shape: f32[16,1], index: 3, kind: input, shape index: {}]   ;;  %s3085_s4 = inlined_call_operand.vmem [shape: f32[16,1], index: 4, kind: input, shape index: {}]   ;;  %s3086_s5 = inlined_call_operand.vmem [shape: bf16[16,2048], index: 5, kind: output, shape index: {}]  }
   0x1   :  { %v87_v0 = vld [vmem:[%s3081_s1 + $0x200] sm:$0xff]  ;;  %v88_v1 = vld [vmem:[%s3081_s1 + $0x208] sm:$0xff]  ;;  %v89_v46 = vld [vmem:[%s3081_s1 + $0x210] sm:$0xff] }
   0x2   :  { %v300_v2 = vunpack.c.l.b16 %v87_v0  ;;  %v301_v3 = vunpack.c.h.b16 %v87_v0  ;;  %v302_v4 = vunpack.c.l.b16 %v88_v1  ;;  %v303_v5 = vunpack.c.h.b16 %v88_v1  ;;  %v1972_v6 = vld [vmem:[%s3081_s1 + $0x180] sm:$0xf]  ;;  %v2163_v12 = vld [vmem:[%s3081_s1 + $0x184] sm:$0xf]  ;;  %v1980_v14 = vld [vmem:[%s3081_s1 + $0x188] sm:$0xf] }
   0x3   :  { %v2171_v7 = vld [vmem:[%s3081_s1 + $0x1bc] sm:$0xf0]  ;;  %v1974_v13 = vld [vmem:[%s3081_s1 + $0x1c0] sm:$0xf0]  ;;  %v2172_v15 = vld [vmem:[%s3081_s1 + $0x1c4] sm:$0xf0]  ;;  %v304_v48 = vunpack.c.l.b16 %v89_v46  ;;  %v305_v49 = vunpack.c.h.b16 %v89_v46 }
   0x4   :  { %v380_v8 = vpack.c.b16 %v300_v2, %v300_v2  ;;  %v381_v9 = vpack.c.b16 %v301_v3, %v301_v3  ;;  %v382_v10 = vpack.c.b16 %v302_v4, %v302_v4  ;;  %v383_v11 = vpack.c.b16 %v303_v5, %v303_v5  ;;  %v2164_v16 = vld [vmem:[%s3081_s1 + $0x18c] sm:$0xf]  ;;  %v1908_v24 = vld [vmem:[%s3081_s1 + $0x100] sm:$0xf]  ;;  %v2147_v28 = vld [vmem:[%s3081_s1 + $0x104] sm:$0xf] }
   0x5   :  { %v1982_v17 = vld [vmem:[%s3081_s1 + $0x1c8] sm:$0xf0]  ;;  %v1973_v22 = vor.u32 %v2171_v7, %v1972_v6  ;;  %v1977_v23 = vor.u32 %v2163_v12, %v1974_v13  ;;  %v2155_v25 = vld [vmem:[%s3081_s1 + $0x13c] sm:$0xf0]  ;;  %v1981_v26 = vor.u32 %v2172_v15, %v1980_v14  ;;  %v1910_v29 = vld [vmem:[%s3081_s1 + $0x140] sm:$0xf0]  ;;  %v384_v1 = vpack.c.b16 %v304_v48, %v304_v48 }
   0x6   :  { %v466_v18 = vsel %vm464_vm0, %v380_v8, 0  ;;  %v469_v19 = vsel %vm464_vm0, %v381_v9, 0  ;;  %v472_v20 = vsel %vm464_vm0, %v382_v10, 0  ;;  %v475_v21 = vsel %vm464_vm0, %v383_v11, 0  ;;  %v1916_v30 = vld [vmem:[%s3081_s1 + $0x108] sm:$0xf] }
   0x7   :  { %516 = vmatpush.bf16.msra.mxu0 %v466_v18  ;;  %530 = vmatpush.bf16.msra.mxu1 %v469_v19  ;;  %v1985_v27 = vor.u32 %v2164_v16, %v1982_v17  ;;  %v2156_v31 = vld [vmem:[%s3081_s1 + $0x144] sm:$0xf0]  ;;  %v2148_v32 = vld [vmem:[%s3081_s1 + $0x10c] sm:$0xf]  ;;  %v1844_v34 = vld [vmem:[%s3081_s1 + $0x80] sm:$0xf]  ;;  %v1909_v35 = vor.u32 %v2155_v25, %v1908_v24  ;;  %v1913_v36 = vor.u32 %v2147_v28, %v1910_v29 }
   0x8   :  { %544 = vmatpush.bf16.msra.mxu2 %v472_v20  ;;  %558 = vmatpush.bf16.msra.mxu3 %v475_v21  ;;  %v1918_v33 = vld [vmem:[%s3081_s1 + $0x148] sm:$0xf0]  ;;  %v2139_v37 = vld [vmem:[%s3081_s1 + $0xbc] sm:$0xf0]  ;;  %v2131_v38 = vld [vmem:[%s3081_s1 + $0x84] sm:$0xf]  ;;  %v1917_v40 = vor.u32 %v2156_v31, %v1916_v30  ;;  %v385_v2 = vpack.c.b16 %v305_v49, %v305_v49 }
   0x9   :  { %v1846_v39 = vld [vmem:[%s3081_s1 + $0xc0] sm:$0xf0]  ;;  %v1921_v41 = vor.u32 %v2148_v32, %v1918_v33  ;;  %v1852_v42 = vld [vmem:[%s3081_s1 + $0x88] sm:$0xf]  ;;  %v2132_v44 = vld [vmem:[%s3081_s1 + $0x8c] sm:$0xf]  ;;  %v1845_v50 = vor.u32 %v2139_v37, %v1844_v34 }
   0xa   :  { %v2140_v43 = vld [vmem:[%s3081_s1 + $0xc4] sm:$0xf0]  ;;  %v1854_v45 = vld [vmem:[%s3081_s1 + $0xc8] sm:$0xf0]  ;;  %v90_v47 = vld [vmem:[%s3081_s1 + $0x218] sm:$0xff]  ;;  %v1849_v51 = vor.u32 %v2131_v38, %v1846_v39  ;;  %v478_v13 = vsel %vm464_vm0, %v384_v1, 0 }
   0xb   :  { %517 = vmatpush.bf16.msra.mxu0 %v1973_v22  ;;  %531 = vmatpush.bf16.msra.mxu1 %v1977_v23  ;;  %v1780_v52 = vld [vmem:[%s3081_s1] sm:$0xf]  ;;  %v306_v54 = vunpack.c.l.b16 %v90_v47  ;;  %v307_v55 = vunpack.c.h.b16 %v90_v47  ;;  %v1853_v56 = vor.u32 %v2140_v43, %v1852_v42  ;;  %v1857_v57 = vor.u32 %v2132_v44, %v1854_v45  ;;  %v2115_v58 = vld [vmem:[%s3081_s1 + $0x4] sm:$0xf]  ;;  %v1788_v60 = vld [vmem:[%s3081_s1 + $0x8] sm:$0xf] }
   0xc   :  { %545 = vmatpush.bf16.msra.mxu2 %v1981_v26  ;;  %559 = vmatpush.bf16.msra.mxu3 %v1985_v27  ;;  %v2123_v53 = vld [vmem:[%s3081_s1 + $0x3c] sm:$0xf0]  ;;  %v1782_v59 = vld [vmem:[%s3081_s1 + $0x40] sm:$0xf0]  ;;  %v2124_v61 = vld [vmem:[%s3081_s1 + $0x44] sm:$0xf0] }
   0xd   :  { %v2116_v62 = vld [vmem:[%s3081_s1 + $0xc] sm:$0xf]  ;;  %v1781_v0 = vor.u32 %v2123_v53, %v1780_v52  ;;  %v1785_v3 = vor.u32 %v2115_v58, %v1782_v59  ;;  %v386_v4 = vpack.c.b16 %v306_v54, %v306_v54  ;;  %v387_v5 = vpack.c.b16 %v307_v55, %v307_v55  ;;  %v1988_v8 = vld [vmem:[%s3081_s1 + $0x190] sm:$0xf]  ;;  %v2336_v9 = vld [vmem:[%s3082_s0] sm:$0xff] }
   0xe   :  { %v1790_v63 = vld [vmem:[%s3081_s1 + $0x48] sm:$0xf0]  ;;  %v1789_v6 = vor.u32 %v2124_v61, %v1788_v60  ;;  %v2173_v10 = vld [vmem:[%s3081_s1 + $0x1cc] sm:$0xf0]  ;;  %v2165_v11 = vld [vmem:[%s3081_s1 + $0x194] sm:$0xf] }
   0xf   :  { %518 = vmatpush.bf16.msra.mxu0 %v1909_v35  ;;  %532 = vmatpush.bf16.msra.mxu1 %v1913_v36  ;;  %v1793_v7 = vor.u32 %v2116_v62, %v1790_v63  ;;  %v1990_v12 = vld [vmem:[%s3081_s1 + $0x1d0] sm:$0xf0]  ;;  %v481_v14 = vsel %vm464_vm0, %v385_v2, 0  ;;  %v1996_v15 = vld [vmem:[%s3081_s1 + $0x198] sm:$0xf]  ;;  %v484_v17 = vsel %vm464_vm0, %v386_v4, 0  ;;  %v1989_v21 = vor.u32 %v2173_v10, %v1988_v8 }
  0x10   :  { %546 = vmatpush.bf16.msra.mxu2 %v1917_v40  ;;  %560 = vmatpush.bf16.msra.mxu3 %v1921_v41  ;;  %v2174_v16 = vld [vmem:[%s3081_s1 + $0x1d4] sm:$0xf0]  ;;  %v487_v18 = vsel %vm464_vm0, %v387_v5, 0  ;;  %v2166_v19 = vld [vmem:[%s3081_s1 + $0x19c] sm:$0xf]  ;;  %v1993_v22 = vor.u32 %v2165_v11, %v1990_v12  ;;  %v91_v30 = vld [vmem:[%s3081_s1 + $0x220] sm:$0xff] }
  0x11   :  { %v1998_v20 = vld [vmem:[%s3081_s1 + $0x1d8] sm:$0xf0]  ;;  %v1924_v23 = vld [vmem:[%s3081_s1 + $0x110] sm:$0xf]  ;;  %v2149_v25 = vld [vmem:[%s3081_s1 + $0x114] sm:$0xf]  ;;  %v1997_v26 = vor.u32 %v2174_v16, %v1996_v15  ;;  %v308_v39 = vunpack.c.l.b16 %v91_v30  ;;  %v309_v45 = vunpack.c.h.b16 %v91_v30 }
  0x12   :  { %v2157_v24 = vld [vmem:[%s3081_s1 + $0x14c] sm:$0xf0]  ;;  %v2001_v27 = vor.u32 %v2166_v19, %v1998_v20  ;;  %v1926_v28 = vld [vmem:[%s3081_s1 + $0x150] sm:$0xf0]  ;;  %v1932_v29 = vld [vmem:[%s3081_s1 + $0x118] sm:$0xf] }
  0x13   :  { %519 = vmatpush.bf16.msra.mxu0 %v1845_v50  ;;  %533 = vmatpush.bf16.msra.mxu1 %v1849_v51  ;;  %v2158_v31 = vld [vmem:[%s3081_s1 + $0x154] sm:$0xf0]  ;;  %v2150_v32 = vld [vmem:[%s3081_s1 + $0x11c] sm:$0xf]  ;;  %v92_v34 = vld [vmem:[%s3081_s1 + $0x228] sm:$0xff]  ;;  %v1925_v35 = vor.u32 %v2157_v24, %v1924_v23  ;;  %v1929_v36 = vor.u32 %v2149_v25, %v1926_v28  ;;  %v388_v55 = vpack.c.b16 %v308_v39, %v308_v39 }
  0x14   :  { %547 = vmatpush.bf16.msra.mxu2 %v1853_v56  ;;  %561 = vmatpush.bf16.msra.mxu3 %v1857_v57  ;;  %v1934_v33 = vld [vmem:[%s3081_s1 + $0x158] sm:$0xf0]  ;;  %v1860_v37 = vld [vmem:[%s3081_s1 + $0x90] sm:$0xf]  ;;  %v1933_v40 = vor.u32 %v2158_v31, %v1932_v29  ;;  %v2133_v42 = vld [vmem:[%s3081_s1 + $0x94] sm:$0xf]  ;;  %v310_v49 = vunpack.c.l.b16 %v92_v34  ;;  %v311_v50 = vunpack.c.h.b16 %v92_v34  ;;  %v389_v61 = vpack.c.b16 %v309_v45, %v309_v45 }
  0x15   :  { %v2141_v38 = vld [vmem:[%s3081_s1 + $0xcc] sm:$0xf0]  ;;  %v1937_v41 = vor.u32 %v2150_v32, %v1934_v33  ;;  %v1862_v43 = vld [vmem:[%s3081_s1 + $0xd0] sm:$0xf0]  ;;  %v1868_v44 = vld [vmem:[%s3081_s1 + $0x98] sm:$0xf] }
  0x16   :  { %v2142_v46 = vld [vmem:[%s3081_s1 + $0xd4] sm:$0xf0]  ;;  %v2134_v47 = vld [vmem:[%s3081_s1 + $0x9c] sm:$0xf]  ;;  %v1861_v51 = vor.u32 %v2141_v38, %v1860_v37  ;;  %v1865_v52 = vor.u32 %v2133_v42, %v1862_v43  ;;  %v1796_v53 = vld [vmem:[%s3081_s1 + $0x10] sm:$0xf]  ;;  %v390_v1 = vpack.c.b16 %v310_v49, %v310_v49  ;;  %v391_v2 = vpack.c.b16 %v311_v50, %v311_v50 }
  0x17   :  { %520 = vmatpush.bf16.msra.mxu0 %v1781_v0  ;;  %534 = vmatpush.bf16.msra.mxu1 %v1785_v3  ;;  %v1870_v48 = vld [vmem:[%s3081_s1 + $0xd8] sm:$0xf0]  ;;  %v2125_v54 = vld [vmem:[%s3081_s1 + $0x4c] sm:$0xf0]  ;;  %v1869_v56 = vor.u32 %v2142_v46, %v1868_v44  ;;  %v2117_v58 = vld [vmem:[%s3081_s1 + $0x14] sm:$0xf] }
  0x18   :  { %548 = vmatpush.bf16.msra.mxu2 %v1789_v6  ;;  %562 = vmatpush.bf16.msra.mxu3 %v1793_v7  ;;  %v1873_v57 = vor.u32 %v2134_v47, %v1870_v48  ;;  %v1798_v59 = vld [vmem:[%s3081_s1 + $0x50] sm:$0xf0]  ;;  %v1804_v60 = vld [vmem:[%s3081_s1 + $0x18] sm:$0xf]  ;;  %v2118_v63 = vld [vmem:[%s3081_s1 + $0x1c] sm:$0xf]  ;;  %v1797_v3 = vor.u32 %v2125_v54, %v1796_v53 }
  0x19   :  { %v2126_v62 = vld [vmem:[%s3081_s1 + $0x54] sm:$0xf0]  ;;  %v1806_v0 = vld [vmem:[%s3081_s1 + $0x58] sm:$0xf0]  ;;  %v1801_v4 = vor.u32 %v2117_v58, %v1798_v59  ;;  %v490_v7 = vsel %vm464_vm0, %v388_v55, 0  ;;  %v493_v8 = vsel %vm464_vm0, %v389_v61, 0 }
  0x1a   :  { %2034 = vmatmul.msk.bf16.vlgmr.msra.gmra.mxu0 %vm460_vm1, %v2336_v9  ;;  %2035 = vmatmul.msk.bf16.vlgmr.msra.gmra.mxu1 %vm460_vm1, %v2336_v9  ;;  %v1805_v5 = vor.u32 %v2126_v62, %v1804_v60  ;;  %v1809_v6 = vor.u32 %v2118_v63, %v1806_v0  ;;  %v496_v10 = vsel %vm464_vm0, %v390_v1, 0  ;;  %v499_v11 = vsel %vm464_vm0, %v391_v2, 0  ;;  %v2004_v12 = vld [vmem:[%s3081_s1 + $0x1a0] sm:$0xf]  ;;  %v2006_v15 = vld [vmem:[%s3081_s1 + $0x1e0] sm:$0xf0] }
  0x1b   :  { %572 = vmatpush.bf16.msrb.mxu0 %v478_v13  ;;  %586 = vmatpush.bf16.msrb.mxu1 %v481_v14  ;;  %v2175_v13 = vld [vmem:[%s3081_s1 + $0x1dc] sm:$0xf0]  ;;  %v2167_v14 = vld [vmem:[%s3081_s1 + $0x1a4] sm:$0xf]  ;;  %v2012_v16 = vld [vmem:[%s3081_s1 + $0x1a8] sm:$0xf] }
  0x1c   :  { %600 = vmatpush.bf16.msrb.mxu2 %v484_v17  ;;  %614 = vmatpush.bf16.msrb.mxu3 %v487_v18  ;;  %v2176_v17 = vld [vmem:[%s3081_s1 + $0x1e4] sm:$0xf0]  ;;  %v2168_v18 = vld [vmem:[%s3081_s1 + $0x1ac] sm:$0xf]  ;;  %v2005_v20 = vor.u32 %v2175_v13, %v2004_v12  ;;  %v2159_v23 = vld [vmem:[%s3081_s1 + $0x15c] sm:$0xf0] }
  0x1d   :  { %2036 = vmatmul.msk.bf16.vlgmr.msra.gmra.mxu2 %vm460_vm1, %v2336_v9  ;;  %2037 = vmatmul.msk.bf16.vlgmr.msra.gmra.mxu3 %vm460_vm1, %v2336_v9  ;;  %v2014_v19 = vld [vmem:[%s3081_s1 + $0x1e8] sm:$0xf0]  ;;  %v2013_v24 = vor.u32 %v2176_v17, %v2012_v16  ;;  %v1948_v28 = vld [vmem:[%s3081_s1 + $0x128] sm:$0xf]  ;;  %v1876_v32 = vld [vmem:[%s3081_s1 + $0xa0] sm:$0xf] }
  0x1e   :  { %v2017_v25 = vor.u32 %v2168_v18, %v2014_v19  ;;  %v2160_v29 = vld [vmem:[%s3081_s1 + $0x164] sm:$0xf0]  ;;  %v2152_v30 = vld [vmem:[%s3081_s1 + $0x12c] sm:$0xf]  ;;  %v93_v37 = vld [vmem:[%s3081_s1 + $0x230] sm:$0xff] }
  0x1f   :  { %573 = vmatpush.bf16.msrb.mxu0 %v1989_v21  ;;  %587 = vmatpush.bf16.msrb.mxu1 %v1993_v22  ;;  %v2009_v21 = vor.u32 %v2167_v14, %v2006_v15  ;;  %v1940_v22 = vld [vmem:[%s3081_s1 + $0x120] sm:$0xf]  ;;  %v1950_v31 = vld [vmem:[%s3081_s1 + $0x168] sm:$0xf0]  ;;  %v1949_v38 = vor.u32 %v2160_v29, %v1948_v28  ;;  %v94_v42 = vld [vmem:[%s3081_s1 + $0x238] sm:$0xff]  ;;  %v312_v46 = vunpack.c.l.b16 %v93_v37  ;;  %v313_v47 = vunpack.c.h.b16 %v93_v37 }
  0x20   :  { %601 = vmatpush.bf16.msrb.mxu2 %v1997_v26  ;;  %615 = vmatpush.bf16.msrb.mxu3 %v2001_v27  ;;  %v2151_v26 = vld [vmem:[%s3081_s1 + $0x124] sm:$0xf]  ;;  %v1941_v33 = vor.u32 %v2159_v23, %v1940_v22  ;;  %v1953_v39 = vor.u32 %v2152_v30, %v1950_v31  ;;  %v2144_v43 = vld [vmem:[%s3081_s1 + $0xe4] sm:$0xf0]  ;;  %v2136_v44 = vld [vmem:[%s3081_s1 + $0xac] sm:$0xf]  ;;  %v315_v53 = vunpack.c.h.b16 %v94_v42 }
  0x21   :  { %v1942_v27 = vld [vmem:[%s3081_s1 + $0x160] sm:$0xf0]  ;;  %v1886_v45 = vld [vmem:[%s3081_s1 + $0xe8] sm:$0xf0]  ;;  %v1812_v50 = vld [vmem:[%s3081_s1 + $0x20] sm:$0xf]  ;;  %v392_v63 = vpack.c.b16 %v312_v46, %v312_v46  ;;  %v393_v0 = vpack.c.b16 %v313_v47, %v313_v47 }
  0x22   :  { %v1945_v34 = vor.u32 %v2151_v26, %v1942_v27  ;;  %v1889_v55 = vor.u32 %v2136_v44, %v1886_v45  ;;  %v1820_v58 = vld [vmem:[%s3081_s1 + $0x28] sm:$0xf]  ;;  %v2120_v60 = vld [vmem:[%s3081_s1 + $0x2c] sm:$0xf]  ;;  %v2028_v13 = vld [vmem:[%s3081_s1 + $0x1b8] sm:$0xf] }
  0x23   :  { %574 = vmatpush.bf16.msrb.mxu0 %v1925_v35  ;;  %588 = vmatpush.bf16.msrb.mxu1 %v1929_v36  ;;  %v2143_v35 = vld [vmem:[%s3081_s1 + $0xdc] sm:$0xf0]  ;;  %v2135_v36 = vld [vmem:[%s3081_s1 + $0xa4] sm:$0xf]  ;;  %v2128_v59 = vld [vmem:[%s3081_s1 + $0x64] sm:$0xf0] }
  0x24   :  { %602 = vmatpush.bf16.msrb.mxu2 %v1933_v40  ;;  %616 = vmatpush.bf16.msrb.mxu3 %v1937_v41  ;;  %v1878_v40 = vld [vmem:[%s3081_s1 + $0xe0] sm:$0xf0]  ;;  %v1884_v41 = vld [vmem:[%s3081_s1 + $0xa8] sm:$0xf]  ;;  %v1877_v48 = vor.u32 %v2143_v35, %v1876_v32  ;;  %v1822_v61 = vld [vmem:[%s3081_s1 + $0x68] sm:$0xf0] }
  0x25   :  { %v1881_v49 = vor.u32 %v2135_v36, %v1878_v40  ;;  %v1885_v54 = vor.u32 %v2144_v43, %v1884_v41  ;;  %v505_v12 = vsel %vm464_vm0, %v393_v0, 0  ;;  %v2178_v14 = vld [vmem:[%s3081_s1 + $0x1f4] sm:$0xf0]  ;;  %v2170_v17 = vld [vmem:[%s3081_s1 + $0x1bc] sm:$0xf] }
  0x26   :  { %v2030_v18 = vld [vmem:[%s3081_s1 + $0x1f8] sm:$0xf0]  ;;  %v2161_v22 = vld [vmem:[%s3081_s1 + $0x16c] sm:$0xf0]  ;;  %v2029_v23 = vor.u32 %v2178_v14, %v2028_v13  ;;  %v1958_v26 = vld [vmem:[%s3081_s1 + $0x170] sm:$0xf0] }
  0x27   :  { %575 = vmatpush.bf16.msrb.mxu0 %v1861_v51  ;;  %589 = vmatpush.bf16.msrb.mxu1 %v1865_v52  ;;  %v2127_v51 = vld [vmem:[%s3081_s1 + $0x5c] sm:$0xf0]  ;;  %v314_v52 = vunpack.c.l.b16 %v94_v42  ;;  %v1964_v27 = vld [vmem:[%s3081_s1 + $0x138] sm:$0xf]  ;;  %v2154_v29 = vld [vmem:[%s3081_s1 + $0x13c] sm:$0xf] }
  0x28   :  { %603 = vmatpush.bf16.msrb.mxu2 %v1869_v56  ;;  %617 = vmatpush.bf16.msrb.mxu3 %v1873_v57  ;;  %v2119_v56 = vld [vmem:[%s3081_s1 + $0x24] sm:$0xf]  ;;  %v1813_v62 = vor.u32 %v2127_v51, %v1812_v50  ;;  %v2162_v28 = vld [vmem:[%s3081_s1 + $0x174] sm:$0xf0]  ;;  %v1966_v30 = vld [vmem:[%s3081_s1 + $0x178] sm:$0xf0] }
  0x29   :  { %v1814_v57 = vld [vmem:[%s3081_s1 + $0x60] sm:$0xf0]  ;;  %v394_v2 = vpack.c.b16 %v314_v52, %v314_v52  ;;  %v1965_v35 = vor.u32 %v2162_v28, %v1964_v27  ;;  %v1969_v36 = vor.u32 %v2154_v29, %v1966_v30  ;;  %v2137_v37 = vld [vmem:[%s3081_s1 + $0xb4] sm:$0xf]  ;;  %v2146_v40 = vld [vmem:[%s3081_s1 + $0xf4] sm:$0xf0] }
  0x2a   :  { %v1817_v1 = vor.u32 %v2119_v56, %v1814_v57  ;;  %v2138_v41 = vld [vmem:[%s3081_s1 + $0xbc] sm:$0xf]  ;;  %v1828_v45 = vld [vmem:[%s3081_s1 + $0x30] sm:$0xf]  ;;  %v1830_v50 = vld [vmem:[%s3081_s1 + $0x70] sm:$0xf0] }
  0x2b   :  { %576 = vmatpush.bf16.msrb.mxu0 %v1797_v3  ;;  %590 = vmatpush.bf16.msrb.mxu1 %v1801_v4  ;;  %v395_v3 = vpack.c.b16 %v315_v53, %v315_v53  ;;  %v1821_v4 = vor.u32 %v2128_v59, %v1820_v58  ;;  %v508_v15 = vsel %vm464_vm0, %v394_v2, 0  ;;  %v1902_v42 = vld [vmem:[%s3081_s1 + $0xf8] sm:$0xf0]  ;;  %v2129_v46 = vld [vmem:[%s3081_s1 + $0x6c] sm:$0xf0] }
  0x2c   :  { %604 = vmatpush.bf16.msrb.mxu2 %v1805_v5  ;;  %618 = vmatpush.bf16.msrb.mxu3 %v1809_v6  ;;  %v1825_v5 = vor.u32 %v2120_v60, %v1822_v61  ;;  %v2020_v6 = vld [vmem:[%s3081_s1 + $0x1b0] sm:$0xf]  ;;  %v1836_v51 = vld [vmem:[%s3081_s1 + $0x38] sm:$0xf]  ;;  %v2122_v53 = vld [vmem:[%s3081_s1 + $0x3c] sm:$0xf] }
  0x2d   :  { %v511_v16 = vsel %vm464_vm0, %v395_v3, 0  ;;  %v2130_v52 = vld [vmem:[%s3081_s1 + $0x74] sm:$0xf0] }
  0x2e   :  { %2038 = vmatmul.msk.bf16.vlgmr.msrb.gmra.mxu0 %vm460_vm1, %v2336_v9  ;;  %2039 = vmatmul.msk.bf16.vlgmr.msrb.gmra.mxu1 %vm460_vm1, %v2336_v9  ;;  %v1837_v57 = vor.u32 %v2130_v52, %v1836_v51 }
  0x2f   :  { %628 = vmatpush.bf16.msra.mxu0 %v490_v7  ;;  %642 = vmatpush.bf16.msra.mxu1 %v493_v8  ;;  %v2177_v7 = vld [vmem:[%s3081_s1 + $0x1ec] sm:$0xf0]  ;;  %v2169_v8 = vld [vmem:[%s3081_s1 + $0x1b4] sm:$0xf] }
  0x30   :  { %656 = vmatpush.bf16.msra.mxu2 %v496_v10  ;;  %670 = vmatpush.bf16.msra.mxu3 %v499_v11  ;;  %v2022_v10 = vld [vmem:[%s3081_s1 + $0x1f0] sm:$0xf0]  ;;  %v502_v11 = vsel %vm464_vm0, %v392_v63, 0  ;;  %v2021_v19 = vor.u32 %v2177_v7, %v2020_v6 }
  0x31   :  { %2040 = vmatmul.msk.bf16.vlgmr.msrb.gmra.mxu2 %vm460_vm1, %v2336_v9  ;;  %2041 = vmatmul.msk.bf16.vlgmr.msrb.gmra.mxu3 %vm460_vm1, %v2336_v9 }
  0x33   :  { %629 = vmatpush.bf16.msra.mxu0 %v2005_v20  ;;  %643 = vmatpush.bf16.msra.mxu1 %v2009_v21  ;;  %v2025_v20 = vor.u32 %v2169_v8, %v2022_v10  ;;  %v1956_v21 = vld [vmem:[%s3081_s1 + $0x130] sm:$0xf] }
  0x34   :  { %657 = vmatpush.bf16.msra.mxu2 %v2013_v24  ;;  %671 = vmatpush.bf16.msra.mxu3 %v2017_v25  ;;  %v2033_v24 = vor.u32 %v2170_v17, %v2030_v18  ;;  %v2153_v25 = vld [vmem:[%s3081_s1 + $0x134] sm:$0xf]  ;;  %v1957_v31 = vor.u32 %v2161_v22, %v1956_v21 }
  0x35   :  { %v1961_v32 = vor.u32 %v2153_v25, %v1958_v26 }
  0x37   :  { %630 = vmatpush.bf16.msra.mxu0 %v1941_v33  ;;  %644 = vmatpush.bf16.msra.mxu1 %v1945_v34  ;;  %v1892_v33 = vld [vmem:[%s3081_s1 + $0xb0] sm:$0xf] }
  0x38   :  { %658 = vmatpush.bf16.msra.mxu2 %v1949_v38  ;;  %672 = vmatpush.bf16.msra.mxu3 %v1953_v39  ;;  %v2145_v34 = vld [vmem:[%s3081_s1 + $0xec] sm:$0xf0]  ;;  %v1894_v38 = vld [vmem:[%s3081_s1 + $0xf0] sm:$0xf0]  ;;  %v1900_v39 = vld [vmem:[%s3081_s1 + $0xb8] sm:$0xf] }
  0x39   :  { %v1893_v43 = vor.u32 %v2145_v34, %v1892_v33  ;;  %v1897_v44 = vor.u32 %v2137_v37, %v1894_v38  ;;  %v1901_v47 = vor.u32 %v2146_v40, %v1900_v39 }
  0x3b   :  { %631 = vmatpush.bf16.msra.mxu0 %v1877_v48  ;;  %645 = vmatpush.bf16.msra.mxu1 %v1881_v49  ;;  %v1905_v48 = vor.u32 %v2138_v41, %v1902_v42  ;;  %v2121_v49 = vld [vmem:[%s3081_s1 + $0x34] sm:$0xf] }
  0x3c   :  { %659 = vmatpush.bf16.msra.mxu2 %v1885_v54  ;;  %673 = vmatpush.bf16.msra.mxu3 %v1889_v55  ;;  %v1838_v54 = vld [vmem:[%s3081_s1 + $0x78] sm:$0xf0]  ;;  %v1829_v55 = vor.u32 %v2129_v46, %v1828_v45  ;;  %v1833_v56 = vor.u32 %v2121_v49, %v1830_v50 }
  0x3d   :  { %v1841_v58 = vor.u32 %v2122_v53, %v1838_v54 }
  0x3f   :  { %632 = vmatpush.bf16.msra.mxu0 %v1813_v62  ;;  %646 = vmatpush.bf16.msra.mxu1 %v1817_v1 }
  0x40   :  { %660 = vmatpush.bf16.msra.mxu2 %v1821_v4  ;;  %674 = vmatpush.bf16.msra.mxu3 %v1825_v5  ;;  %v2721_v4 = vld [vmem:[%s3083_s2 + $0x8] sm:$0xff] }
  0x42   :  { %2042 = vmatmul.msk.bf16.vlgmr.msra.gmra.mxu0 %vm460_vm1, %v2336_v9  ;;  %2043 = vmatmul.msk.bf16.vlgmr.msra.gmra.mxu1 %vm460_vm1, %v2336_v9 }
  0x43   :  { %684 = vmatpush.bf16.msrb.mxu0 %v502_v11  ;;  %698 = vmatpush.bf16.msrb.mxu1 %v505_v12 }
  0x44   :  { %712 = vmatpush.bf16.msrb.mxu2 %v508_v15  ;;  %726 = vmatpush.bf16.msrb.mxu3 %v511_v16 }
  0x45   :  { %2044 = vmatmul.msk.bf16.vlgmr.msra.gmra.mxu2 %vm460_vm1, %v2336_v9  ;;  %2045 = vmatmul.msk.bf16.vlgmr.msra.gmra.mxu3 %vm460_vm1, %v2336_v9 }
  0x47   :  { %685 = vmatpush.bf16.msrb.mxu0 %v2021_v19  ;;  %699 = vmatpush.bf16.msrb.mxu1 %v2025_v20 }
  0x48   :  { %713 = vmatpush.bf16.msrb.mxu2 %v2029_v23  ;;  %727 = vmatpush.bf16.msrb.mxu3 %v2033_v24 }
  0x4b   :  { %686 = vmatpush.bf16.msrb.mxu0 %v1957_v31  ;;  %700 = vmatpush.bf16.msrb.mxu1 %v1961_v32 }
  0x4c   :  { %714 = vmatpush.bf16.msrb.mxu2 %v1965_v35  ;;  %728 = vmatpush.bf16.msrb.mxu3 %v1969_v36 }
  0x4f   :  { %687 = vmatpush.bf16.msrb.mxu0 %v1893_v43  ;;  %701 = vmatpush.bf16.msrb.mxu1 %v1897_v44 }
  0x50   :  { %715 = vmatpush.bf16.msrb.mxu2 %v1901_v47  ;;  %729 = vmatpush.bf16.msrb.mxu3 %v1905_v48 }
  0x53   :  { %688 = vmatpush.bf16.msrb.mxu0 %v1829_v55  ;;  %702 = vmatpush.bf16.msrb.mxu1 %v1833_v56 }
  0x54   :  { %716 = vmatpush.bf16.msrb.mxu2 %v1837_v57  ;;  %730 = vmatpush.bf16.msrb.mxu3 %v1841_v58 }
  0x56   :  { %2046 = vmatmul.msk.bf16.vlgmr.msrb.gmra.mxu0 %vm460_vm1, %v2336_v9  ;;  %2047 = vmatmul.msk.bf16.vlgmr.msrb.gmra.mxu1 %vm460_vm1, %v2336_v9 }
  0x57   :  { %2048 = vmatmul.msk.bf16.vlgmr.msrb.gmra.mxu2 %vm460_vm1, %v2336_v9  ;;  %2049 = vmatmul.msk.bf16.vlgmr.msrb.gmra.mxu3 %vm460_vm1, %v2336_v9  ;;  %v2696_v9 = vld [vmem:[%s3083_s2] sm:$0xff] }
  0x97   :  { %v2679_v59 = vpop.f32.mrf.mxu0  ;;  %v2681_v60 = vpop.f32.mrf.mxu1 }
  0x98   :  { %v1114_v29 = vmul.f32 %v2679_v59, %v2679_v59  ;;  %v1115_v30 = vmul.f32 %v2681_v60, %v2681_v60 }
  0x9f   :  { %v2687_v63 = vpop.f32.mrf.mxu0  ;;  %v2689_v0 = vpop.f32.mrf.mxu1 }
  0xa0   :  { %v2683_v61 = vpop.f32.mrf.mxu2  ;;  %v2685_v62 = vpop.f32.mrf.mxu3  ;;  %760 = vmatpush.msra.mxu0 %v2687_v63  ;;  %783 = vmatpush.msra.mxu1 %v2689_v0  ;;  %v1130_v27 = vmul.f32 %v2687_v63, %v2687_v63  ;;  %v1131_v28 = vmul.f32 %v2689_v0, %v2689_v0 }
  0xa1   :  { %v1116_v39 = vmul.f32 %v2683_v61, %v2683_v61  ;;  %v1117_v40 = vmul.f32 %v2685_v62, %v2685_v62 }
  0xa2   :  { %761 = vmatpush.msra.mxu0 %v2679_v59  ;;  %784 = vmatpush.msra.mxu1 %v2681_v60 }
  0xa3   :  { %2050 = vmatmul.msk.f32.vlgmr.msra.gmra.mxu0 %vm739_vm2, %v2696_v9  ;;  %2052 = vmatmul.msk.f32.vlgmr.msra.gmra.mxu1 %vm739_vm2, %v2696_v9 }
  0xa8   :  { %v2704_v1 = vpop.f32.mrf.mxu2  ;;  %v2706_v2 = vpop.f32.mrf.mxu3 }
  0xa9   :  { %806 = vmatpush.msra.mxu2 %v2704_v1  ;;  %829 = vmatpush.msra.mxu3 %v2706_v2  ;;  %v1132_v37 = vmul.f32 %v2704_v1, %v2704_v1  ;;  %v1133_v38 = vmul.f32 %v2706_v2, %v2706_v2 }
  0xab   :  { %807 = vmatpush.msra.mxu2 %v2683_v61  ;;  %830 = vmatpush.msra.mxu3 %v2685_v62  ;;  %v2712_v3 = vpop.f32.mrf.mxu0  ;;  %v2723_v5 = vpop.f32.mrf.mxu1 }
  0xac   :  { %2054 = vmatmul.msk.f32.vlgmr.msra.gmra.mxu2 %vm739_vm2, %v2696_v9  ;;  %2056 = vmatmul.msk.f32.vlgmr.msra.gmra.mxu3 %vm739_vm2, %v2696_v9  ;;  %v1118_v35 = vmul.f32 %v2712_v3, %v2712_v3  ;;  %v1119_v36 = vmul.f32 %v2723_v5, %v2723_v5 }
  0xad   :  { %2051 = vmatmul.msk.f32.gmra.mxu0 %vm739_vm2, %v2721_v4  ;;  %2053 = vmatmul.msk.f32.gmra.mxu1 %vm739_vm2, %v2721_v4 }
  0xb3   :  { %v2733_v8 = vpop.f32.mrf.mxu0  ;;  %v2740_v10 = vpop.f32.mrf.mxu1 }
  0xb4   :  { %v2729_v6 = vpop.f32.mrf.mxu2  ;;  %v2731_v7 = vpop.f32.mrf.mxu3  ;;  %2055 = vmatmul.msk.f32.gmra.mxu2 %vm739_vm2, %v2721_v4  ;;  %2057 = vmatmul.msk.f32.gmra.mxu3 %vm739_vm2, %v2721_v4  ;;  %v1134_v31 = vmul.f32 %v2733_v8, %v2733_v8  ;;  %v1135_v34 = vmul.f32 %v2740_v10, %v2740_v10 }
  0xb5   :  { %852 = vmatpush.msrb.mxu0 %v2733_v8  ;;  %875 = vmatpush.msrb.mxu1 %v2740_v10  ;;  %v1120_v43 = vmul.f32 %v2729_v6, %v2729_v6  ;;  %v1121_v44 = vmul.f32 %v2731_v7, %v2731_v7 }
  0xb7   :  { %853 = vmatpush.msrb.mxu0 %v2712_v3  ;;  %876 = vmatpush.msrb.mxu1 %v2723_v5 }
  0xb8   :  { %2058 = vmatmul.msk.f32.vlgmr.msrb.gmra.mxu0 %vm739_vm2, %v2696_v9  ;;  %2060 = vmatmul.msk.f32.vlgmr.msrb.gmra.mxu1 %vm739_vm2, %v2696_v9 }
  0xbc   :  { %v2749_v11 = vpop.f32.mrf.mxu2  ;;  %v2751_v12 = vpop.f32.mrf.mxu3 }
  0xbd   :  { %898 = vmatpush.msrb.mxu2 %v2749_v11  ;;  %921 = vmatpush.msrb.mxu3 %v2751_v12  ;;  %v1136_v41 = vmul.f32 %v2749_v11, %v2749_v11  ;;  %v1137_v42 = vmul.f32 %v2751_v12, %v2751_v12 }
  0xbf   :  { %899 = vmatpush.msrb.mxu2 %v2729_v6  ;;  %v2756_v13 = vpop.f32.mrf.mxu0  ;;  %922 = vmatpush.msrb.mxu3 %v2731_v7  ;;  %v2761_v14 = vpop.f32.mrf.mxu1 }
  0xc0   :  { %2062 = vmatmul.msk.f32.vlgmr.msrb.gmra.mxu2 %vm739_vm2, %v2696_v9  ;;  %2064 = vmatmul.msk.f32.vlgmr.msrb.gmra.mxu3 %vm739_vm2, %v2696_v9  ;;  %v1122_v47 = vmul.f32 %v2756_v13, %v2756_v13  ;;  %v1123_v48 = vmul.f32 %v2761_v14, %v2761_v14 }
  0xc1   :  { %2059 = vmatmul.msk.f32.gmra.mxu0 %vm739_vm2, %v2721_v4  ;;  %2061 = vmatmul.msk.f32.gmra.mxu1 %vm739_vm2, %v2721_v4 }
  0xc7   :  { %v2773_v17 = vpop.f32.mrf.mxu0  ;;  %v2777_v18 = vpop.f32.mrf.mxu1 }
  0xc8   :  { %v2769_v15 = vpop.f32.mrf.mxu2  ;;  %v2771_v16 = vpop.f32.mrf.mxu3  ;;  %2063 = vmatmul.msk.f32.gmra.mxu2 %vm739_vm2, %v2721_v4  ;;  %944 = vmatpush.msra.mxu0 %v2773_v17  ;;  %v1138_v45 = vmul.f32 %v2773_v17, %v2773_v17  ;;  %v1139_v46 = vmul.f32 %v2777_v18, %v2777_v18 }
  0xc9   :  { %2065 = vmatmul.msk.f32.gmra.mxu3 %vm739_vm2, %v2721_v4  ;;  %967 = vmatpush.msra.mxu1 %v2777_v18  ;;  %v1124_v51 = vmul.f32 %v2769_v15, %v2769_v15  ;;  %v1125_v52 = vmul.f32 %v2771_v16, %v2771_v16 }
  0xca   :  { %945 = vmatpush.msra.mxu0 %v2756_v13 }
  0xcb   :  { %968 = vmatpush.msra.mxu1 %v2761_v14  ;;  %2066 = vmatmul.msk.f32.vlgmr.msra.gmra.mxu0 %vm739_vm2, %v2696_v9 }
  0xcc   :  { %2068 = vmatmul.msk.f32.vlgmr.msra.gmra.mxu1 %vm739_vm2, %v2696_v9 }
  0xd0   :  { %v2789_v19 = vpop.f32.mrf.mxu2  ;;  %v2791_v20 = vpop.f32.mrf.mxu3 }
  0xd1   :  { %990 = vmatpush.msra.mxu2 %v2789_v19  ;;  %1013 = vmatpush.msra.mxu3 %v2791_v20  ;;  %v1140_v49 = vmul.f32 %v2789_v19, %v2789_v19  ;;  %v1141_v50 = vmul.f32 %v2791_v20, %v2791_v20 }
  0xd3   :  { %v2795_v21 = vpop.f32.mrf.mxu0  ;;  %v2797_v22 = vpop.f32.mrf.mxu1  ;;  %991 = vmatpush.msra.mxu2 %v2769_v15  ;;  %1014 = vmatpush.msra.mxu3 %v2771_v16 }
  0xd4   :  { %2070 = vmatmul.msk.f32.vlgmr.msra.gmra.mxu2 %vm739_vm2, %v2696_v9  ;;  %2072 = vmatmul.msk.f32.vlgmr.msra.gmra.mxu3 %vm739_vm2, %v2696_v9  ;;  %v1126_v55 = vmul.f32 %v2795_v21, %v2795_v21  ;;  %v1127_v56 = vmul.f32 %v2797_v22, %v2797_v22 }
  0xd5   :  { %2067 = vmatmul.msk.f32.gmra.mxu0 %vm739_vm2, %v2721_v4  ;;  %2069 = vmatmul.msk.f32.gmra.mxu1 %vm739_vm2, %v2721_v4 }
  0xda   :  { %v2809_v23 = vpop.f32.mrf.mxu2  ;;  %v2811_v24 = vpop.f32.mrf.mxu3 }
  0xdb   :  { %v2813_v25 = vpop.f32.mrf.mxu0  ;;  %v2815_v26 = vpop.f32.mrf.mxu1 }
  0xdc   :  { %2071 = vmatmul.msk.f32.gmra.mxu2 %vm739_vm2, %v2721_v4  ;;  %1036 = vmatpush.msrb.mxu0 %v2813_v25  ;;  %v1142_v53 = vmul.f32 %v2813_v25, %v2813_v25  ;;  %v1143_v54 = vmul.f32 %v2815_v26, %v2815_v26 }
  0xdd   :  { %1059 = vmatpush.msrb.mxu1 %v2815_v26  ;;  %2073 = vmatmul.msk.f32.gmra.mxu3 %vm739_vm2, %v2721_v4 }
  0xde   :  { %1037 = vmatpush.msrb.mxu0 %v2795_v21 }
  0xdf   :  { %1060 = vmatpush.msrb.mxu1 %v2797_v22  ;;  %2074 = vmatmul.msk.f32.vlgmr.msrb.gmra.mxu0 %vm739_vm2, %v2696_v9 }
  0xe0   :  { %2076 = vmatmul.msk.f32.vlgmr.msrb.gmra.mxu1 %vm739_vm2, %v2696_v9  ;;  %1160 = vmatpush.msra.mxu0 %v1130_v27  ;;  %v1128_v27 = vmul.f32 %v2809_v23, %v2809_v23 }
  0xe1   :  { %1183 = vmatpush.msra.mxu1 %v1131_v28  ;;  %v1129_v28 = vmul.f32 %v2811_v24, %v2811_v24 }
  0xe2   :  { %v2839_v32 = vpop.f32.mrf.mxu2  ;;  %v2841_v33 = vpop.f32.mrf.mxu3  ;;  %1161 = vmatpush.msra.mxu0 %v1114_v29 }
  0xe3   :  { %1184 = vmatpush.msra.mxu1 %v1115_v30  ;;  %1082 = vmatpush.msrb.mxu2 %v2839_v32  ;;  %v1144_v57 = vmul.f32 %v2839_v32, %v2839_v32  ;;  %v1145_v58 = vmul.f32 %v2841_v33, %v2841_v33 }
  0xe4   :  { %1105 = vmatpush.msrb.mxu3 %v2841_v33  ;;  %1252 = vmatpush.msrb.mxu0 %v1134_v31 }
  0xe5   :  { %1275 = vmatpush.msrb.mxu1 %v1135_v34  ;;  %1083 = vmatpush.msrb.mxu2 %v2809_v23 }
  0xe6   :  { %1106 = vmatpush.msrb.mxu3 %v2811_v24  ;;  %1253 = vmatpush.msrb.mxu0 %v1118_v35 }
  0xe7   :  { %1276 = vmatpush.msrb.mxu1 %v1119_v36  ;;  %2078 = vmatmul.msk.f32.vlgmr.msrb.gmra.mxu2 %vm739_vm2, %v2696_v9 }
  0xe8   :  { %2080 = vmatmul.msk.f32.vlgmr.msrb.gmra.mxu3 %vm739_vm2, %v2696_v9  ;;  %1206 = vmatpush.msra.mxu2 %v1132_v37 }
  0xe9   :  { %1229 = vmatpush.msra.mxu3 %v1133_v38  ;;  %2075 = vmatmul.msk.f32.gmra.mxu0 %vm739_vm2, %v2721_v4 }
  0xea   :  { %2077 = vmatmul.msk.f32.gmra.mxu1 %vm739_vm2, %v2721_v4  ;;  %1207 = vmatpush.msra.mxu2 %v1116_v39 }
  0xeb   :  { %1230 = vmatpush.msra.mxu3 %v1117_v40 }
  0xec   :  { %1298 = vmatpush.msrb.mxu2 %v1136_v41 }
  0xed   :  { %1321 = vmatpush.msrb.mxu3 %v1137_v42 }
  0xee   :  { %1299 = vmatpush.msrb.mxu2 %v1120_v43 }
  0xef   :  { %1322 = vmatpush.msrb.mxu3 %v1121_v44  ;;  %2079 = vmatmul.msk.f32.gmra.mxu2 %vm739_vm2, %v2721_v4 }
  0xf0   :  { %2081 = vmatmul.msk.f32.gmra.mxu3 %vm739_vm2, %v2721_v4 }
  0xf1   :  { %2082 = vmatmul.msk.f32.vlgmr.msra.gmra.mxu0 %vm739_vm2, %v2696_v9 }
  0xf2   :  { %2084 = vmatmul.msk.f32.vlgmr.msra.gmra.mxu1 %vm739_vm2, %v2696_v9  ;;  %1344 = vmatpush.msra.mxu0 %v1138_v45 }
  0xf3   :  { %1367 = vmatpush.msra.mxu1 %v1139_v46 }
  0xf4   :  { %1345 = vmatpush.msra.mxu0 %v1122_v47 }
  0xf5   :  { %1368 = vmatpush.msra.mxu1 %v1123_v48 }
  0xf7   :  { %2086 = vmatmul.msk.f32.vlgmr.msra.gmra.mxu2 %vm739_vm2, %v2696_v9 }
  0xf8   :  { %2088 = vmatmul.msk.f32.vlgmr.msra.gmra.mxu3 %vm739_vm2, %v2696_v9  ;;  %1390 = vmatpush.msra.mxu2 %v1140_v49 }
  0xf9   :  { %1413 = vmatpush.msra.mxu3 %v1141_v50  ;;  %2083 = vmatmul.msk.f32.gmra.mxu0 %vm739_vm2, %v2721_v4 }
  0xfa   :  { %2085 = vmatmul.msk.f32.gmra.mxu1 %vm739_vm2, %v2721_v4  ;;  %1391 = vmatpush.msra.mxu2 %v1124_v51 }
  0xfb   :  { %1414 = vmatpush.msra.mxu3 %v1125_v52 }
  0xff   :  { %2087 = vmatmul.msk.f32.gmra.mxu2 %vm739_vm2, %v2721_v4 }
 0x100   :  { %2089 = vmatmul.msk.f32.gmra.mxu3 %vm739_vm2, %v2721_v4 }
 0x101   :  { %2090 = vmatmul.msk.f32.vlgmr.msrb.gmra.mxu0 %vm739_vm2, %v2696_v9 }
 0x102   :  { %2092 = vmatmul.msk.f32.vlgmr.msrb.gmra.mxu1 %vm739_vm2, %v2696_v9  ;;  %1436 = vmatpush.msrb.mxu0 %v1142_v53 }
 0x103   :  { %1459 = vmatpush.msrb.mxu1 %v1143_v54 }
 0x104   :  { %1437 = vmatpush.msrb.mxu0 %v1126_v55 }
 0x105   :  { %1460 = vmatpush.msrb.mxu1 %v1127_v56 }
 0x107   :  { %2094 = vmatmul.msk.f32.vlgmr.msrb.gmra.mxu2 %vm739_vm2, %v2696_v9 }
 0x108   :  { %2096 = vmatmul.msk.f32.vlgmr.msrb.gmra.mxu3 %vm739_vm2, %v2696_v9  ;;  %1482 = vmatpush.msrb.mxu2 %v1144_v57 }
 0x109   :  { %1505 = vmatpush.msrb.mxu3 %v1145_v58  ;;  %2091 = vmatmul.msk.f32.gmra.mxu0 %vm739_vm2, %v2721_v4 }
 0x10a   :  { %1483 = vmatpush.msrb.mxu2 %v1128_v27  ;;  %2093 = vmatmul.msk.f32.gmra.mxu1 %vm739_vm2, %v2721_v4 }
 0x10b   :  { %1506 = vmatpush.msrb.mxu3 %v1129_v28 }
 0x10f   :  { %2095 = vmatmul.msk.f32.gmra.mxu2 %vm739_vm2, %v2721_v4 }
 0x110   :  { %2097 = vmatmul.msk.f32.gmra.mxu3 %vm739_vm2, %v2721_v4 }
 0x111   :  { %2098 = vmatmul.msk.f32.vlgmr.msra.gmra.mxu0 %vm739_vm2, %v2696_v9 }
 0x112   :  { %2100 = vmatmul.msk.f32.vlgmr.msra.gmra.mxu1 %vm739_vm2, %v2696_v9 }
 0x117   :  { %2102 = vmatmul.msk.f32.vlgmr.msra.gmra.mxu2 %vm739_vm2, %v2696_v9 }
 0x118   :  { %2104 = vmatmul.msk.f32.vlgmr.msra.gmra.mxu3 %vm739_vm2, %v2696_v9 }
 0x119   :  { %2099 = vmatmul.msk.f32.gmra.mxu0 %vm739_vm2, %v2721_v4 }
 0x11a   :  { %2101 = vmatmul.msk.f32.gmra.mxu1 %vm739_vm2, %v2721_v4 }
 0x11f   :  { %2103 = vmatmul.msk.f32.gmra.mxu2 %vm739_vm2, %v2721_v4 }
 0x120   :  { %2105 = vmatmul.msk.f32.gmra.mxu3 %vm739_vm2, %v2721_v4  ;;  %v763_v29 = vpop.f32.mrf.mxu0  ;;  %v786_v30 = vpop.f32.mrf.mxu1 }
 0x121   :  { %2106 = vmatmul.msk.f32.vlgmr.msrb.gmra.mxu0 %vm739_vm2, %v2696_v9  ;;  %v1514_v40 = vadd.f32 %v786_v30, %v763_v29 }
 0x122   :  { %2108 = vmatmul.msk.f32.vlgmr.msrb.gmra.mxu1 %vm739_vm2, %v2696_v9 }
 0x127   :  { %2110 = vmatmul.msk.f32.vlgmr.msrb.gmra.mxu2 %vm739_vm2, %v2696_v9 }
 0x128   :  { %2112 = vmatmul.msk.f32.vlgmr.msrb.gmra.mxu3 %vm739_vm2, %v2696_v9 }
 0x129   :  { %2107 = vmatmul.msk.f32.gmra.mxu0 %vm739_vm2, %v2721_v4 }
 0x12a   :  { %2109 = vmatmul.msk.f32.gmra.mxu1 %vm739_vm2, %v2721_v4  ;;  %v766_v31 = vpop.f32.mrf.mxu0  ;;  %v789_v34 = vpop.f32.mrf.mxu1 }
 0x12b   :  { %v1531_v44 = vadd.f32 %v789_v34, %v766_v31 }
 0x12f   :  { %2111 = vmatmul.msk.f32.gmra.mxu2 %vm739_vm2, %v2721_v4  ;;  %v809_v35 = vpop.f32.mrf.mxu2  ;;  %v832_v36 = vpop.f32.mrf.mxu3 }
 0x130   :  { %2113 = vmatmul.msk.f32.gmra.mxu3 %vm739_vm2, %v2721_v4  ;;  %v1515_v41 = vadd.f32 %v1514_v40, %v809_v35 }
 0x132   :  { %v1516_v45 = vadd.f32 %v1515_v41, %v832_v36 }
 0x135   :  { %v855_v37 = vpop.f32.mrf.mxu0  ;;  %v878_v9 = vpop.f32.mrf.mxu1 }
 0x136   :  { %v1517_v48 = vadd.f32 %v1516_v45, %v855_v37 }
 0x137   :  { %v812_v38 = vpop.f32.mrf.mxu2  ;;  %v835_v39 = vpop.f32.mrf.mxu3 }
 0x138   :  { %v1532_v49 = vadd.f32 %v1531_v44, %v812_v38  ;;  %v1518_v51 = vadd.f32 %v1517_v48, %v878_v9 }
 0x13a   :  { %v1533_v52 = vadd.f32 %v1532_v49, %v835_v39 }
 0x13e   :  { %v858_v42 = vpop.f32.mrf.mxu0  ;;  %v881_v43 = vpop.f32.mrf.mxu1 }
 0x13f   :  { %v1534_v56 = vadd.f32 %v1533_v52, %v858_v42 }
 0x141   :  { %v1535_v28 = vadd.f32 %v1534_v56, %v881_v43 }
 0x143   :  { %v901_v46 = vpop.f32.mrf.mxu2  ;;  %v924_v47 = vpop.f32.mrf.mxu3 }
 0x144   :  { %v1519_v55 = vadd.f32 %v1518_v51, %v901_v46 }
 0x146   :  { %v1520_v57 = vadd.f32 %v1519_v55, %v924_v47 }
 0x148   :  { %v947_v50 = vpop.f32.mrf.mxu0 }
 0x149   :  { %v970_v4 = vpop.f32.mrf.mxu1  ;;  %v1521_v29 = vadd.f32 %v1520_v57, %v947_v50 }
 0x14b   :  { %v904_v53 = vpop.f32.mrf.mxu2  ;;  %v1522_v35 = vadd.f32 %v1521_v29, %v970_v4 }
 0x14c   :  { %v927_v54 = vpop.f32.mrf.mxu3  ;;  %v1536_v30 = vadd.f32 %v1535_v28, %v904_v53 }
 0x14e   :  { %v1537_v36 = vadd.f32 %v1536_v30, %v927_v54 }
 0x152   :  { %v950_v58 = vpop.f32.mrf.mxu0  ;;  %v973_v27 = vpop.f32.mrf.mxu1 }
 0x153   :  { %v1538_v41 = vadd.f32 %v1537_v36, %v950_v58 }
 0x155   :  { %v1539_v45 = vadd.f32 %v1538_v41, %v973_v27 }
 0x157   :  { %v993_v31 = vpop.f32.mrf.mxu2  ;;  %v1016_v34 = vpop.f32.mrf.mxu3 }
 0x158   :  { %v1523_v38 = vadd.f32 %v1522_v35, %v993_v31 }
 0x15a   :  { %v1524_v39 = vadd.f32 %v1523_v38, %v1016_v34 }
 0x15c   :  { %v1039_v37 = vpop.f32.mrf.mxu0 }
 0x15d   :  { %v1062_v40 = vpop.f32.mrf.mxu1  ;;  %v1525_v46 = vadd.f32 %v1524_v39, %v1039_v37 }
 0x15f   :  { %v996_v9 = vpop.f32.mrf.mxu2  ;;  %v1526_v49 = vadd.f32 %v1525_v46, %v1062_v40 }
 0x160   :  { %v1019_v44 = vpop.f32.mrf.mxu3  ;;  %v1540_v42 = vadd.f32 %v1539_v45, %v996_v9 }
 0x162   :  { %v1541_v43 = vadd.f32 %v1540_v42, %v1019_v44 }
 0x166   :  { %v1042_v47 = vpop.f32.mrf.mxu0 }
 0x167   :  { %v1065_v48 = vpop.f32.mrf.mxu1  ;;  %v1542_v53 = vadd.f32 %v1541_v43, %v1042_v47 }
 0x169   :  { %v1543_v56 = vadd.f32 %v1542_v53, %v1065_v48 }
 0x16a   :  { %v1085_v50 = vpop.f32.mrf.mxu2 }
 0x16b   :  { %v1527_v51 = vadd.f32 %v1526_v49, %v1085_v50  ;;  %v1108_v52 = vpop.f32.mrf.mxu3 }
 0x16d   :  { %v1528_v4 = vadd.f32 %v1527_v51, %v1108_v52 }
 0x16e   :  { %v1163_v54 = vpop.f32.mrf.mxu0 }
 0x16f   :  { %1529 = vadd.xlane.f32.xlu0 %v1528_v4  ;;  %v1186_v55 = vpop.f32.mrf.mxu1 }
 0x170   :  { %v1550_v36 = vadd.f32 %v1186_v55, %v1163_v54 }
 0x172   :  { %v1088_v57 = vpop.f32.mrf.mxu2 }
 0x173   :  { %v1544_v58 = vadd.f32 %v1543_v56, %v1088_v57  ;;  %v1111_v28 = vpop.f32.mrf.mxu3 }
 0x175   :  { %v1545_v29 = vadd.f32 %v1544_v58, %v1111_v28 }
 0x176   :  { %v1166_v27 = vpop.f32.mrf.mxu0 }
 0x177   :  { %1546 = vadd.xlane.f32.xlu0 %v1545_v29  ;;  %v1189_v30 = vpop.f32.mrf.mxu1 }
 0x178   :  { %v1567_v44 = vadd.f32 %v1189_v30, %v1166_v27 }
 0x17a   :  { %v1209_v31 = vpop.f32.mrf.mxu2 }
 0x17b   :  { %v1232_v34 = vpop.f32.mrf.mxu3  ;;  %v1551_v38 = vadd.f32 %v1550_v36, %v1209_v31 }
 0x17d   :  { %v1552_v9 = vadd.f32 %v1551_v38, %v1232_v34 }
 0x17e   :  { %v1255_v35 = vpop.f32.mrf.mxu0 }
 0x17f   :  { %v1278_v37 = vpop.f32.mrf.mxu1  ;;  %v1553_v46 = vadd.f32 %v1552_v9, %v1255_v35 }
 0x181   :  { %v1554_v49 = vadd.f32 %v1553_v46, %v1278_v37 }
 0x182   :  { %v1212_v40 = vpop.f32.mrf.mxu2 }
 0x183   :  { %v1235_v41 = vpop.f32.mrf.mxu3  ;;  %v1568_v42 = vadd.f32 %v1567_v44, %v1212_v40 }
 0x185   :  { %v1569_v43 = vadd.f32 %v1568_v42, %v1235_v41 }
 0x186   :  { %v1258_v39 = vpop.f32.mrf.mxu0 }
 0x187   :  { %v1281_v45 = vpop.f32.mrf.mxu1  ;;  %v1570_v53 = vadd.f32 %v1569_v43, %v1258_v39 }
 0x189   :  { %v1571_v56 = vadd.f32 %v1570_v53, %v1281_v45 }
 0x18a   :  { %v1301_v47 = vpop.f32.mrf.mxu2 }
 0x18b   :  { %v1324_v48 = vpop.f32.mrf.mxu3  ;;  %v1555_v51 = vadd.f32 %v1554_v49, %v1301_v47 }
 0x18d   :  { %v1556_v54 = vadd.f32 %v1555_v51, %v1324_v48 }
 0x18e   :  { %v1347_v50 = vpop.f32.mrf.mxu0 }
 0x18f   :  { %v1370_v52 = vpop.f32.mrf.mxu1  ;;  %v1557_v58 = vadd.f32 %v1556_v54, %v1347_v50 }
 0x191   :  { %v1558_v30 = vadd.f32 %v1557_v58, %v1370_v52  ;;  %v2187_v58 = vmov 0  }
 0x192   :  { %v1304_v4 = vpop.f32.mrf.mxu2  ;;  %2180 = vset.pattern.permute.xlu2 %v2187_v58  ;;  %2181 = vset.pattern.permute.xlu0 %v2187_v58 }
 0x193   :  { %v1327_v55 = vpop.f32.mrf.mxu3  ;;  %v1572_v28 = vadd.f32 %v1571_v56, %v1304_v4  ;;  %2182 = vset.pattern.permute.xlu1 %v2187_v58 }
 0x195   :  { %v1573_v31 = vadd.f32 %v1572_v28, %v1327_v55 }
 0x196   :  { %v1350_v57 = vpop.f32.mrf.mxu0 }
 0x197   :  { %v1373_v29 = vpop.f32.mrf.mxu1  ;;  %v1574_v36 = vadd.f32 %v1573_v31, %v1350_v57 }
 0x199   :  { %v1575_v41 = vadd.f32 %v1574_v36, %v1373_v29 }
 0x19a   :  { %v1393_v27 = vpop.f32.mrf.mxu2 }
 0x19b   :  { %v1416_v34 = vpop.f32.mrf.mxu3  ;;  %v1559_v35 = vadd.f32 %v1558_v30, %v1393_v27 }
 0x19d   :  { %v1560_v38 = vadd.f32 %v1559_v35, %v1416_v34 }
 0x19e   :  { %v1439_v37 = vpop.f32.mrf.mxu0 }
 0x19f   :  { %v1462_v39 = vpop.f32.mrf.mxu1  ;;  %v1561_v44 = vadd.f32 %v1560_v38, %v1439_v37 }
 0x1a1   :  { %v1562_v42 = vadd.f32 %v1561_v44, %v1462_v39 }
 0x1a2   :  { %v1396_v40 = vpop.f32.mrf.mxu2 }
 0x1a3   :  { %v1419_v9 = vpop.f32.mrf.mxu3  ;;  %v1576_v46 = vadd.f32 %v1575_v41, %v1396_v40 }
 0x1a5   :  { %v1577_v45 = vadd.f32 %v1576_v46, %v1419_v9 }
 0x1a6   :  { %v1442_v47 = vpop.f32.mrf.mxu0 }
 0x1a7   :  { %v1578_v50 = vadd.f32 %v1577_v45, %v1442_v47  ;;  %v1465_v52 = vpop.f32.mrf.mxu1 }
 0x1a9   :  { %v1579_v53 = vadd.f32 %v1578_v50, %v1465_v52 }
 0x1aa   :  { %v1485_v48 = vpop.f32.mrf.mxu2 }
 0x1ab   :  { %v1563_v49 = vadd.f32 %v1562_v42, %v1485_v48  ;;  %v1508_v43 = vpop.f32.mrf.mxu3 }
 0x1ad   :  { %v1564_v51 = vadd.f32 %v1563_v49, %v1508_v43  ;;  %v1590_v49 = vld [vmem:[%s3084_s3] sm:$0xff] }
 0x1af   :  { %1565 = vadd.xlane.f32.xlu1 %v1564_v51 }
 0x1b2   :  { %v1488_v4 = vpop.f32.mrf.mxu2 }
 0x1b3   :  { %v1580_v54 = vadd.f32 %v1579_v53, %v1488_v4  ;;  %v1511_v55 = vpop.f32.mrf.mxu3  ;;  %v1616_v4 = vld [vmem:[%s3085_s4] sm:$0xff] }
 0x1b5   :  { %v1581_v56 = vadd.f32 %v1580_v54, %v1511_v55 }
 0x1b7   :  { %1582 = vadd.xlane.f32.xlu1 %v1581_v56 }
 0x1e2   :  { %v1530_v57 = vpop.xlane.xlu0 %1529 }
 0x1e3   :  { %v1548_v28 = vmul.f32 0.00012207031, %v1530_v57  ;;  %v1591_v57 = vld [vmem:[%s3084_s3 + $0x8] sm:$0xff] }
 0x1e5   :  { %v1586_v27 = vmul.f32 %v1548_v28, %v1548_v28 }
 0x1ea   :  { %v1547_v31 = vpop.xlane.xlu0 %1546 }
 0x1eb   :  { %v1549_v35 = vmul.f32 0.00012207031, %v1547_v31 }
 0x1ed   :  { %v1587_v38 = vmul.f32 %v1549_v35, %v1549_v35 }
 0x222   :  { %v1566_v29 = vpop.xlane.xlu1 %1565 }
 0x223   :  { %v1584_v30 = vmul.f32 0.00012207031, %v1566_v29 }
 0x225   :  { %v1588_v34 = vsub.f32 %v1584_v30, %v1586_v27  ;;  %v1617_v30 = vld [vmem:[%s3085_s4 + $0x8] sm:$0xff] }
 0x227   :  { %v1592_v36 = vadd.f32 1e-05, %v1588_v34 }
 0x229   :  { %2183 = vrsqrt.f32 %v1592_v36  ;;  %vm1600_vm4 = vweird.f32 %v1592_v36 }
 0x22a   :  { %v1583_v37 = vpop.xlane.xlu1 %1582 }
 0x22b   :  { %v1585_v40 = vmul.f32 0.00012207031, %v1583_v37 }
 0x22d   :  { %v1589_v41 = vsub.f32 %v1585_v40, %v1587_v38 }
 0x22f   :  { %v2184_v9 = vpop.eup %2183  ;;  %v1593_v39 = vadd.f32 1e-05, %v1589_v41 }
 0x230   :  { %v1595_v44 = vmul.f32 %v2184_v9, %v1592_v36  ;;  %vm1601_vm3 = vweird.f32 %v2184_v9 }
 0x231   :  { %2185 = vrsqrt.f32 %v1593_v39  ;;  %vm1602_vm5 = vmor %vm1600_vm4, %vm1601_vm3  ;;  %vm1610_vm7 = vweird.f32 %v1593_v39 }
 0x232   :  { %v1596_v46 = vmul.f32 %v2184_v9, %v1595_v44 }
 0x234   :  { %v1597_v42 = vmul.f32 0.5, %v1596_v46 }
 0x236   :  { %v1598_v45 = vsub.f32 1.5, %v1597_v42 }
 0x237   :  { %v2186_v47 = vpop.eup %2185 }
 0x238   :  { %v1605_v48 = vmul.f32 %v2186_v47, %v1593_v39  ;;  %v1599_v43 = vmul.f32 %v2184_v9, %v1598_v45  ;;  %vm1611_vm6 = vweird.f32 %v2186_v47 }
 0x239   :  { %vm1612_vm8 = vmor %vm1610_vm7, %vm1611_vm6 }
 0x23a   :  { %v1606_v50 = vmul.f32 %v2186_v47, %v1605_v48  ;;  %v1603_v51 = vsel %vm1602_vm5, %v2184_v9, %v1599_v43 }
 0x23b   :  { %v1614_v52 = vmul.f32 %v1603_v51, %v1590_v49 }
 0x23c   :  { %v1607_v53 = vmul.f32 0.5, %v1606_v50 }
 0x23d   :  { %1624 = vperm.xlu2 %2180, %v1614_v52   ;;  %v1618_v54 = vmul.f32 %v1614_v52, %v1548_v28 }
 0x23e   :  { %v1608_v55 = vsub.f32 1.5, %v1607_v53 }
 0x23f   :  { %v1620_v56 = vsub.f32 %v1616_v4, %v1618_v54 }
 0x240   :  { %v1609_v58 = vmul.f32 %v2186_v47, %v1608_v55 }
 0x241   :  { %1666 = vperm.xlu0 %2181, %v1620_v56  }
 0x242   :  { %v1613_v29 = vsel %vm1612_vm8, %v2186_v47, %v1609_v58 }
 0x243   :  { %v1615_v27 = vmul.f32 %v1613_v29, %v1591_v57 }
 0x245   :  { %1629 = vperm.xlu2 %2180, %v1615_v27   ;;  %v1619_v31 = vmul.f32 %v1615_v27, %v1549_v35 }
 0x247   :  { %v1621_v28 = vsub.f32 %v1617_v30, %v1619_v31 }
 0x249   :  { %1671 = vperm.xlu1 %2182, %v1621_v28  }
 0x297   :  { %v1625_v34 = vpop.permute.xlu2 %1624 }
 0x298   :  { %v1632_v36 = vmul.f32 %v1625_v34, %v2679_v59  ;;  %v1633_v37 = vmul.f32 %v1625_v34, %v2681_v60  ;;  %v1634_v38 = vmul.f32 %v1625_v34, %v2683_v61  ;;  %v1635_v40 = vmul.f32 %v1625_v34, %v2685_v62 }
 0x299   :  { %v1636_v9 = vmul.f32 %v1625_v34, %v2712_v3  ;;  %v1637_v39 = vmul.f32 %v1625_v34, %v2723_v5  ;;  %v1638_v44 = vmul.f32 %v1625_v34, %v2729_v6  ;;  %v1639_v35 = vmul.f32 %v1625_v34, %v2731_v7 }
 0x29a   :  { %v1640_v46 = vmul.f32 %v1625_v34, %v2756_v13  ;;  %v1641_v42 = vmul.f32 %v1625_v34, %v2761_v14  ;;  %v1642_v59 = vmul.f32 %v1625_v34, %v2769_v15  ;;  %v1643_v60 = vmul.f32 %v1625_v34, %v2771_v16 }
 0x29b   :  { %v1644_v61 = vmul.f32 %v1625_v34, %v2795_v21  ;;  %v1645_v62 = vmul.f32 %v1625_v34, %v2797_v22  ;;  %v1646_v3 = vmul.f32 %v1625_v34, %v2809_v23  ;;  %v1647_v5 = vmul.f32 %v1625_v34, %v2811_v24 }
 0x29f   :  { %v1630_v41 = vpop.permute.xlu2 %1629 }
 0x2a0   :  { %v1648_v6 = vmul.f32 %v1630_v41, %v2687_v63  ;;  %v1649_v7 = vmul.f32 %v1630_v41, %v2689_v0  ;;  %v1650_v13 = vmul.f32 %v1630_v41, %v2704_v1  ;;  %v1651_v14 = vmul.f32 %v1630_v41, %v2706_v2 }
 0x2a1   :  { %v1652_v15 = vmul.f32 %v1630_v41, %v2733_v8  ;;  %v1653_v16 = vmul.f32 %v1630_v41, %v2740_v10  ;;  %v1654_v21 = vmul.f32 %v1630_v41, %v2749_v11  ;;  %v1655_v22 = vmul.f32 %v1630_v41, %v2751_v12 }
 0x2a2   :  { %v1656_v23 = vmul.f32 %v1630_v41, %v2773_v17  ;;  %v1657_v24 = vmul.f32 %v1630_v41, %v2777_v18  ;;  %v1658_v63 = vmul.f32 %v1630_v41, %v2789_v19  ;;  %v1659_v0 = vmul.f32 %v1630_v41, %v2791_v20 }
 0x2a3   :  { %v3018_v1 = vmul.f32 %v1630_v41, %v2813_v25  ;;  %v3021_v2 = vmul.f32 %v1630_v41, %v2815_v26  ;;  %v3024_v8 = vmul.f32 %v1630_v41, %v2839_v32  ;;  %v3027_v10 = vmul.f32 %v1630_v41, %v2841_v33 }
 0x2b3   :  { %v1667_v11 = vpop.permute.xlu0 %1666 }
 0x2b4   :  { %v1674_v12 = vadd.f32 %v1667_v11, %v1632_v36  ;;  %v1675_v17 = vadd.f32 %v1667_v11, %v1633_v37  ;;  %v1676_v18 = vadd.f32 %v1667_v11, %v1634_v38  ;;  %v1677_v45 = vadd.f32 %v1667_v11, %v1635_v40 }
 0x2b5   :  { %v1678_v19 = vadd.f32 %v1667_v11, %v1636_v9  ;;  %v1679_v47 = vadd.f32 %v1667_v11, %v1637_v39  ;;  %v1680_v20 = vadd.f32 %v1667_v11, %v1638_v44  ;;  %v1681_v48 = vadd.f32 %v1667_v11, %v1639_v35 }
 0x2b6   :  { %v1682_v25 = vadd.f32 %v1667_v11, %v1640_v46  ;;  %v1683_v49 = vadd.f32 %v1667_v11, %v1641_v42  ;;  %v1684_v43 = vadd.f32 %v1667_v11, %v1642_v59  ;;  %v1685_v26 = vadd.f32 %v1667_v11, %v1643_v60 }
 0x2b7   :  { %v1686_v50 = vadd.f32 %v1667_v11, %v1644_v61  ;;  %v1687_v51 = vadd.f32 %v1667_v11, %v1645_v62  ;;  %v1688_v32 = vadd.f32 %v1667_v11, %v1646_v3  ;;  %v1689_v52 = vadd.f32 %v1667_v11, %v1647_v5 }
 0x2b8   :  { %v1706_v53 = vmax.f32 %v1674_v12, 0.0  ;;  %v1707_v33 = vmax.f32 %v1675_v17, 0.0  ;;  %v1708_v4 = vmax.f32 %v1676_v18, 0.0  ;;  %v1709_v54 = vmax.f32 %v1677_v45, 0.0 }
 0x2b9   :  { %v1710_v55 = vmax.f32 %v1678_v19, 0.0  ;;  %v1711_v56 = vmax.f32 %v1679_v47, 0.0  ;;  %v1712_v57 = vmax.f32 %v1680_v20, 0.0  ;;  %v1713_v58 = vmax.f32 %v1681_v48, 0.0 }
 0x2ba   :  { %v1714_v29 = vmax.f32 %v1682_v25, 0.0  ;;  %v1715_v27 = vmax.f32 %v1683_v49, 0.0  ;;  %v1716_v30 = vmax.f32 %v1684_v43, 0.0  ;;  %v1717_v31 = vmax.f32 %v1685_v26, 0.0 }
 0x2bb   :  { %v1718_v28 = vmax.f32 %v1686_v50, 0.0  ;;  %v1719_v34 = vmax.f32 %v1687_v51, 0.0  ;;  %v1720_v36 = vmax.f32 %v1688_v32, 0.0  ;;  %v1721_v37 = vmax.f32 %v1689_v52, 0.0  ;;  %v1672_v38 = vpop.permute.xlu1 %1671 }
 0x2bc   :  { %v1738_v40 = vpack.c.bf16 %v1707_v33, %v1706_v53  ;;  %v1739_v41 = vpack.c.bf16 %v1709_v54, %v1708_v4  ;;  %v1740_v9 = vpack.c.bf16 %v1711_v56, %v1710_v55  ;;  %v1741_v39 = vpack.c.bf16 %v1713_v58, %v1712_v57 }
 0x2bd   :  { %v1742_v44 = vpack.c.bf16 %v1715_v27, %v1714_v29  ;;  %v1743_v35 = vpack.c.bf16 %v1717_v31, %v1716_v30  ;;  %v1744_v46 = vpack.c.bf16 %v1719_v34, %v1718_v28  ;;  %v1745_v42 = vpack.c.bf16 %v1721_v37, %v1720_v36 }
 0x2be   :  { %1754 = vst [vmem:[%s3086_s5] sm:$0xff] %v1738_v40  ;;  %v1690_v59 = vadd.f32 %v1672_v38, %v1648_v6  ;;  %v1691_v60 = vadd.f32 %v1672_v38, %v1649_v7  ;;  %v1692_v61 = vadd.f32 %v1672_v38, %v1650_v13  ;;  %v1693_v62 = vadd.f32 %v1672_v38, %v1651_v14 }
 0x2bf   :  { %1755 = vst [vmem:[%s3086_s5 + $0x8] sm:$0xff] %v1739_v41  ;;  %v1694_v3 = vadd.f32 %v1672_v38, %v1652_v15  ;;  %v1695_v5 = vadd.f32 %v1672_v38, %v1653_v16  ;;  %v1696_v11 = vadd.f32 %v1672_v38, %v1654_v21  ;;  %v1697_v12 = vadd.f32 %v1672_v38, %v1655_v22 }
 0x2c0   :  { %1756 = vst [vmem:[%s3086_s5 + $0x10] sm:$0xff] %v1740_v9  ;;  %v1698_v17 = vadd.f32 %v1672_v38, %v1656_v23  ;;  %v1699_v18 = vadd.f32 %v1672_v38, %v1657_v24  ;;  %v1700_v45 = vadd.f32 %v1672_v38, %v1658_v63  ;;  %v1701_v19 = vadd.f32 %v1672_v38, %v1659_v0 }
 0x2c1   :  { %1757 = vst [vmem:[%s3086_s5 + $0x18] sm:$0xff] %v1741_v39  ;;  %v1702_v6 = vadd.f32 %v1672_v38, %v3018_v1  ;;  %v1703_v7 = vadd.f32 %v1672_v38, %v3021_v2  ;;  %v1704_v13 = vadd.f32 %v1672_v38, %v3024_v8  ;;  %v1705_v14 = vadd.f32 %v1672_v38, %v3027_v10 }
 0x2c2   :  { %1758 = vst [vmem:[%s3086_s5 + $0x20] sm:$0xff] %v1742_v44  ;;  %v1722_v15 = vmax.f32 %v1690_v59, 0.0  ;;  %v1723_v16 = vmax.f32 %v1691_v60, 0.0  ;;  %v1724_v21 = vmax.f32 %v1692_v61, 0.0  ;;  %v1725_v22 = vmax.f32 %v1693_v62, 0.0 }
 0x2c3   :  { %1759 = vst [vmem:[%s3086_s5 + $0x28] sm:$0xff] %v1743_v35  ;;  %v1726_v23 = vmax.f32 %v1694_v3, 0.0  ;;  %v1727_v24 = vmax.f32 %v1695_v5, 0.0  ;;  %v1728_v63 = vmax.f32 %v1696_v11, 0.0  ;;  %v1729_v0 = vmax.f32 %v1697_v12, 0.0 }
 0x2c4   :  { %1760 = vst [vmem:[%s3086_s5 + $0x30] sm:$0xff] %v1744_v46  ;;  %v1730_v1 = vmax.f32 %v1698_v17, 0.0  ;;  %v1731_v2 = vmax.f32 %v1699_v18, 0.0  ;;  %v1732_v8 = vmax.f32 %v1700_v45, 0.0  ;;  %v1733_v10 = vmax.f32 %v1701_v19, 0.0 }
 0x2c5   :  { %1761 = vst [vmem:[%s3086_s5 + $0x38] sm:$0xff] %v1745_v42  ;;  %v1734_v47 = vmax.f32 %v1702_v6, 0.0  ;;  %v1735_v20 = vmax.f32 %v1703_v7, 0.0  ;;  %v1746_v48 = vpack.c.bf16 %v1723_v16, %v1722_v15  ;;  %v1747_v25 = vpack.c.bf16 %v1725_v22, %v1724_v21 }
 0x2c6   :  { %v1748_v49 = vpack.c.bf16 %v1727_v24, %v1726_v23  ;;  %v1736_v43 = vmax.f32 %v1704_v13, 0.0  ;;  %v1737_v26 = vmax.f32 %v1705_v14, 0.0  ;;  %v1749_v50 = vpack.c.bf16 %v1729_v0, %v1728_v63 }
 0x2c7   :  { %v1750_v51 = vpack.c.bf16 %v1731_v2, %v1730_v1  ;;  %1762 = vst [vmem:[%s3086_s5 + $0x40] sm:$0xff] %v1746_v48  ;;  %v1751_v32 = vpack.c.bf16 %v1733_v10, %v1732_v8  ;;  %v1752_v52 = vpack.c.bf16 %v1735_v20, %v1734_v47 }
 0x2c8   :  { %1763 = vst [vmem:[%s3086_s5 + $0x48] sm:$0xff] %v1747_v25  ;;  %v1753_v53 = vpack.c.bf16 %v1737_v26, %v1736_v43 }
 0x2c9   :  { %1764 = vst [vmem:[%s3086_s5 + $0x50] sm:$0xff] %v1748_v49 }
 0x2ca   :  { %1765 = vst [vmem:[%s3086_s5 + $0x58] sm:$0xff] %v1749_v50 }
 0x2cb   :  { %1766 = vst [vmem:[%s3086_s5 + $0x60] sm:$0xff] %v1750_v51 }
 0x2cc   :  { %1767 = vst [vmem:[%s3086_s5 + $0x68] sm:$0xff] %v1751_v32 }
 0x2cd   :  { %1768 = vst [vmem:[%s3086_s5 + $0x70] sm:$0xff] %v1752_v52 }
 0x2ce   :  { %1769 = vst [vmem:[%s3086_s5 + $0x78] sm:$0xff] %v1753_v53 }

// kernel: generator_forward.13
= control target key start
LH: loop header
LB: loop body
LE: loop exit
PB: predicated region body
PF: predicated region fallthrough
CT: control target
= control target key end

     0   :  { %s1297_s9 = smov 0   ;;  %s1299_s10 = smov 0   ;;  %s1675_s0 = inlined_call_operand.vmem [shape: bf16[12,36], index: 0, kind: input, shape index: {}]   ;;  %s1676_s1 = inlined_call_operand.vmem [shape: bf16[36,8192], index: 1, kind: input, shape index: {}]   ;;  %s1677_s2 = inlined_call_operand.vmem [shape: f32[12,8192], index: 2, kind: output, shape index: {}]  }
   0x1   :  { %s1301_s11 = smov 0  }
   0x2 LB: > { %s972_s12 = sadd.s32 4294967295, %s1280_s11   ;;  %s1314_s13 = sadd.s32 1, %s1280_s11   ;;  %s1280_s11 = sphi %s1301_s11, %s1681_s11   ;;  %s1276_s10 = sphi %s1299_s10, %s1680_s10   ;;  %s1272_s9 = sphi %s1297_s9, %s1679_s9  }
   0x3   : > { %s37_s14 = ssub.s32 %s1280_s11, %s1314_s13  ;;  %s40_s15 = sadd.s32 1, %s1276_s10 }
   0x4   : > { %p38_p0 = scmp.eq.s32.totalorder %s37_s14, 0  ;;  %p47_p1 = scmp.ne.s32.totalorder %s1276_s10, %s1272_s9 }
   0x5   : > { %p48_p2 = scmp.eq.s32.totalorder %s1280_s11, 0  ;;  %p77_p3 = scmp.eq.s32.totalorder %s972_s12, 3 }
   0x6   : > { %s1325_s16 = scalar_select %p38_p0, %s1276_s10, %s40_s15  }
   0x7   : > { %p49_p4 = por %p48_p2, %p47_p1  ;;  %p1327_p5 = por %p77_p3, %p47_p1 }
   0x8   : > { %p975_p6 = scmp.ge.s32.totalorder %s1280_s11, 4 }
   0xa   : > { %102 = sbr.rel (%p975_p6) target bundleno = 59 (0x3b), region = 20 }
   0xf   : > { %105 = sbr.rel (!%p49_p4) target bundleno = 59 (0x3b), region = 24  ;;  %s107_s18 = sand.u32 (%p49_p4), 1, %s1276_s10  }
  0x10   : > { %s1133_s19 = sshll.u32 (%p49_p4), %s1280_s11, 6  ;;  %s1168_s20 = smul.u32 (%p49_p4), 320, %s107_s18 }
  0x11   : > { %s1337_s23 = scalar_lea.vmem (%p49_p4), %s1676_s1, %s1133_s19 }
  0x12   : > { %v125_v0 = vld [vmem:[%s1337_s23] sm:$0xff] (%p49_p4)  ;;  %v127_v1 = vld [vmem:[%s1337_s23 + $0x8] sm:$0xff] (%p49_p4)  ;;  %v129_v2 = vld [vmem:[%s1337_s23 + $0x10] sm:$0xff] (%p49_p4)  ;;  %s1342_s24 = scalar_lea.vmem (%p49_p4), [#allocation2], %s1168_s20 }
  0x13   : > { %126 = vst [vmem:[%s1342_s24] sm:$0xff] (%p49_p4), %v125_v0  ;;  %v131_v3 = vld [vmem:[%s1337_s23 + $0x18] sm:$0xff] (%p49_p4)  ;;  %v133_v4 = vld [vmem:[%s1337_s23 + $0x20] sm:$0xff] (%p49_p4)  ;;  %v135_v5 = vld [vmem:[%s1337_s23 + $0x28] sm:$0xff] (%p49_p4) }
  0x14   : > { %128 = vst [vmem:[%s1342_s24 + $0x8] sm:$0xff] %v127_v1  ;;  %v137_v6 = vld [vmem:[%s1337_s23 + $0x30] sm:$0xff]  ;;  %v139_v7 = vld [vmem:[%s1337_s23 + $0x38] sm:$0xff]  ;;  %v141_v8 = vld [vmem:[%s1337_s23 + $0x100] sm:$0xff] }
  0x15   : > { %130 = vst [vmem:[%s1342_s24 + $0x10] sm:$0xff] %v129_v2  ;;  %v143_v9 = vld [vmem:[%s1337_s23 + $0x108] sm:$0xff]  ;;  %v145_v10 = vld [vmem:[%s1337_s23 + $0x110] sm:$0xff]  ;;  %v147_v11 = vld [vmem:[%s1337_s23 + $0x118] sm:$0xff] }
  0x16   : > { %132 = vst [vmem:[%s1342_s24 + $0x18] sm:$0xff] %v131_v3  ;;  %v149_v12 = vld [vmem:[%s1337_s23 + $0x120] sm:$0xff]  ;;  %v151_v13 = vld [vmem:[%s1337_s23 + $0x128] sm:$0xff]  ;;  %v153_v14 = vld [vmem:[%s1337_s23 + $0x130] sm:$0xff] }
  0x17   : > { %134 = vst [vmem:[%s1342_s24 + $0x20] sm:$0xff] %v133_v4  ;;  %v155_v15 = vld [vmem:[%s1337_s23 + $0x138] sm:$0xff]  ;;  %v157_v16 = vld [vmem:[%s1337_s23 + $0x200] sm:$0xff]  ;;  %v159_v17 = vld [vmem:[%s1337_s23 + $0x208] sm:$0xff] }
  0x18   : > { %136 = vst [vmem:[%s1342_s24 + $0x28] sm:$0xff] %v135_v5  ;;  %v161_v18 = vld [vmem:[%s1337_s23 + $0x210] sm:$0xff]  ;;  %v163_v19 = vld [vmem:[%s1337_s23 + $0x218] sm:$0xff]  ;;  %v165_v20 = vld [vmem:[%s1337_s23 + $0x220] sm:$0xff] }
  0x19   : > { %138 = vst [vmem:[%s1342_s24 + $0x30] sm:$0xff] %v137_v6  ;;  %v167_v21 = vld [vmem:[%s1337_s23 + $0x228] sm:$0xff]  ;;  %v169_v22 = vld [vmem:[%s1337_s23 + $0x230] sm:$0xff]  ;;  %v171_v23 = vld [vmem:[%s1337_s23 + $0x238] sm:$0xff] }
  0x1a   : > { %140 = vst [vmem:[%s1342_s24 + $0x38] sm:$0xff] %v139_v7  ;;  %v173_v24 = vld [vmem:[%s1337_s23 + $0x300] sm:$0xff]  ;;  %v175_v25 = vld [vmem:[%s1337_s23 + $0x308] sm:$0xff]  ;;  %v177_v26 = vld [vmem:[%s1337_s23 + $0x310] sm:$0xff] }
  0x1b   : > { %142 = vst [vmem:[%s1342_s24 + $0x40] sm:$0xff] %v141_v8  ;;  %v179_v27 = vld [vmem:[%s1337_s23 + $0x318] sm:$0xff]  ;;  %v181_v28 = vld [vmem:[%s1337_s23 + $0x320] sm:$0xff]  ;;  %v183_v29 = vld [vmem:[%s1337_s23 + $0x328] sm:$0xff] }
  0x1c   : > { %144 = vst [vmem:[%s1342_s24 + $0x48] sm:$0xff] %v143_v9  ;;  %v185_v30 = vld [vmem:[%s1337_s23 + $0x330] sm:$0xff]  ;;  %v187_v31 = vld [vmem:[%s1337_s23 + $0x338] sm:$0xff]  ;;  %v189_v32 = vld [vmem:[%s1337_s23 + $0x400] sm:$0xff] }
  0x1d   : > { %146 = vst [vmem:[%s1342_s24 + $0x50] sm:$0xff] %v145_v10  ;;  %v191_v33 = vld [vmem:[%s1337_s23 + $0x408] sm:$0xff]  ;;  %v193_v34 = vld [vmem:[%s1337_s23 + $0x410] sm:$0xff]  ;;  %v195_v35 = vld [vmem:[%s1337_s23 + $0x418] sm:$0xff] }
  0x1e   : > { %148 = vst [vmem:[%s1342_s24 + $0x58] sm:$0xff] %v147_v11  ;;  %v197_v36 = vld [vmem:[%s1337_s23 + $0x420] sm:$0xff]  ;;  %v199_v37 = vld [vmem:[%s1337_s23 + $0x428] sm:$0xff]  ;;  %v201_v38 = vld [vmem:[%s1337_s23 + $0x430] sm:$0xff] }
  0x1f   : > { %150 = vst [vmem:[%s1342_s24 + $0x60] sm:$0xff] %v149_v12  ;;  %v203_v39 = vld [vmem:[%s1337_s23 + $0x438] sm:$0xff] }
  0x20   : > { %152 = vst [vmem:[%s1342_s24 + $0x68] sm:$0xff] %v151_v13 }
  0x21   : > { %154 = vst [vmem:[%s1342_s24 + $0x70] sm:$0xff] %v153_v14 }
  0x22   : > { %156 = vst [vmem:[%s1342_s24 + $0x78] sm:$0xff] %v155_v15 }
  0x23   : > { %158 = vst [vmem:[%s1342_s24 + $0x80] sm:$0xff] %v157_v16 }
  0x24   : > { %160 = vst [vmem:[%s1342_s24 + $0x88] sm:$0xff] %v159_v17 }
  0x25   : > { %162 = vst [vmem:[%s1342_s24 + $0x90] sm:$0xff] %v161_v18 }
  0x26   : > { %164 = vst [vmem:[%s1342_s24 + $0x98] sm:$0xff] %v163_v19 }
  0x27   : > { %166 = vst [vmem:[%s1342_s24 + $0xa0] sm:$0xff] %v165_v20 }
  0x28   : > { %168 = vst [vmem:[%s1342_s24 + $0xa8] sm:$0xff] %v167_v21 }
  0x29   : > { %170 = vst [vmem:[%s1342_s24 + $0xb0] sm:$0xff] %v169_v22 }
  0x2a   : > { %172 = vst [vmem:[%s1342_s24 + $0xb8] sm:$0xff] %v171_v23 }
  0x2b   : > { %174 = vst [vmem:[%s1342_s24 + $0xc0] sm:$0xff] %v173_v24 }
  0x2c   : > { %176 = vst [vmem:[%s1342_s24 + $0xc8] sm:$0xff] %v175_v25 }
  0x2d   : > { %178 = vst [vmem:[%s1342_s24 + $0xd0] sm:$0xff] %v177_v26 }
  0x2e   : > { %180 = vst [vmem:[%s1342_s24 + $0xd8] sm:$0xff] %v179_v27 }
  0x2f   : > { %182 = vst [vmem:[%s1342_s24 + $0xe0] sm:$0xff] %v181_v28 }
  0x30   : > { %184 = vst [vmem:[%s1342_s24 + $0xe8] sm:$0xff] %v183_v29 }
  0x31   : > { %186 = vst [vmem:[%s1342_s24 + $0xf0] sm:$0xff] %v185_v30 }
  0x32   : > { %188 = vst [vmem:[%s1342_s24 + $0xf8] sm:$0xff] %v187_v31 }
  0x33   : > { %190 = vst [vmem:[%s1342_s24 + $0x100] sm:$0xff] %v189_v32 }
  0x34   : > { %192 = vst [vmem:[%s1342_s24 + $0x108] sm:$0xff] %v191_v33 }
  0x35   : > { %194 = vst [vmem:[%s1342_s24 + $0x110] sm:$0xff] %v193_v34 }
  0x36   : > { %196 = vst [vmem:[%s1342_s24 + $0x118] sm:$0xff] %v195_v35 }
  0x37   : > { %198 = vst [vmem:[%s1342_s24 + $0x120] sm:$0xff] %v197_v36 }
  0x38   : > { %200 = vst [vmem:[%s1342_s24 + $0x128] sm:$0xff] %v199_v37 }
  0x39   : > { %202 = vst [vmem:[%s1342_s24 + $0x130] sm:$0xff] %v201_v38 }
  0x3a   : > { %204 = vst [vmem:[%s1342_s24 + $0x138] sm:$0xff] %v203_v39 }
  0x3b PF: > { %p978_p7 = scmp.ge.s32.totalorder %s1280_s11, 1  ;;  %p209_p8 = scmp.lt.s32.totalorder %s1280_s11, 5 }
  0x3d   : > { %p210_p9 = pnand %p978_p7, %p209_p8 }
  0x3e   : > { %s216_s25 = sand.u32 (!%p210_p9), 1, %s1272_s9  }
  0x3f   : > { %213 = sbr.rel (%p210_p9) target bundleno = 291 (0x123), region = 47  ;;  %s979_s4 = sshll.u32 (!%p210_p9), %s216_s25, 8 }
  0x40   : > { %s1169_s26 = smul.u32 (!%p210_p9), 320, %s216_s25  ;;  %s1558_s5 = scalar_lea.vmem (!%p210_p9), [#allocation3], %s979_s4 }
  0x42   : > { %s1426_s27 = scalar_lea.vmem (!%p210_p9), [#allocation2], %s1169_s26 }
  0x44   : > { %v273_v40 = vld [vmem:[%s1426_s27 + $0x100] sm:$0x33]  ;;  %v274_v41 = vld [vmem:[%s1426_s27 + $0x108] sm:$0x33]  ;;  %vm490_vm0 = vcmask 1041408   ;;  %vm486_vm1 = vcmask 293888  }
  0x45   : > { %v390_v42 = vunpack.c.l.b16 %v273_v40  ;;  %v391_v43 = vunpack.c.h.b16 %v273_v40  ;;  %v392_v44 = vunpack.c.l.b16 %v274_v41  ;;  %v393_v45 = vunpack.c.h.b16 %v274_v41  ;;  %v1050_v46 = vld [vmem:[%s1426_s27 + $0x80] sm:$0xf]  ;;  %v1151_v52 = vld [vmem:[%s1426_s27 + $0x84] sm:$0xf]  ;;  %v1058_v54 = vld [vmem:[%s1426_s27 + $0x88] sm:$0xf] }
  0x46   : > { %v1159_v47 = vld [vmem:[%s1426_s27 + $0xbc] sm:$0xf0]  ;;  %v1052_v53 = vld [vmem:[%s1426_s27 + $0xc0] sm:$0xf0]  ;;  %v1160_v55 = vld [vmem:[%s1426_s27 + $0xc4] sm:$0xf0] }
  0x47   : > { %v438_v48 = vpack.c.b16 %v390_v42, %v390_v42  ;;  %v439_v49 = vpack.c.b16 %v391_v43, %v391_v43  ;;  %v440_v50 = vpack.c.b16 %v392_v44, %v392_v44  ;;  %v441_v51 = vpack.c.b16 %v393_v45, %v393_v45  ;;  %v1152_v56 = vld [vmem:[%s1426_s27 + $0x8c] sm:$0xf]  ;;  %v986_v62 = vld [vmem:[%s1426_s27] sm:$0xf]  ;;  %v1135_v2 = vld [vmem:[%s1426_s27 + $0x4] sm:$0xf] }
  0x48   : > { %v1060_v57 = vld [vmem:[%s1426_s27 + $0xc8] sm:$0xf0]  ;;  %v1051_v63 = vor.u32 %v1159_v47, %v1050_v46  ;;  %v1055_v0 = vor.u32 %v1151_v52, %v1052_v53  ;;  %v1143_v1 = vld [vmem:[%s1426_s27 + $0x3c] sm:$0xf0]  ;;  %v276_v3 = vld [vmem:[%s1426_s27 + $0x118] sm:$0x33]  ;;  %v1059_v4 = vor.u32 %v1160_v55, %v1058_v54 }
  0x49   : > { %v492_v58 = vsel %vm490_vm0, %v438_v48, 0  ;;  %v495_v59 = vsel %vm490_vm0, %v439_v49, 0  ;;  %v498_v60 = vsel %vm490_vm0, %v440_v50, 0  ;;  %v501_v61 = vsel %vm490_vm0, %v441_v51, 0  ;;  %v988_v6 = vld [vmem:[%s1426_s27 + $0x40] sm:$0xf0] }
  0x4a   : > { %544 = vmatpush.bf16.msra.mxu0 %v492_v58  ;;  %558 = vmatpush.bf16.msra.mxu1 %v495_v59  ;;  %v1063_v5 = vor.u32 %v1152_v56, %v1060_v57  ;;  %v994_v7 = vld [vmem:[%s1426_s27 + $0x8] sm:$0xf]  ;;  %v396_v8 = vunpack.c.l.b16 %v276_v3  ;;  %v397_v9 = vunpack.c.h.b16 %v276_v3  ;;  %v275_v10 = vld [vmem:[%s1426_s27 + $0x110] sm:$0x33]  ;;  %v1136_v12 = vld [vmem:[%s1426_s27 + $0xc] sm:$0xf]  ;;  %v987_v18 = vor.u32 %v1143_v1, %v986_v62 }
  0x4b   : > { %572 = vmatpush.bf16.msra.mxu2 %v498_v60  ;;  %586 = vmatpush.bf16.msra.mxu3 %v501_v61  ;;  %v1144_v11 = vld [vmem:[%s1426_s27 + $0x44] sm:$0xf0]  ;;  %v996_v13 = vld [vmem:[%s1426_s27 + $0x48] sm:$0xf0]  ;;  %v394_v14 = vunpack.c.l.b16 %v275_v10  ;;  %v395_v15 = vunpack.c.h.b16 %v275_v10  ;;  %v991_v19 = vor.u32 %v1135_v2, %v988_v6  ;;  %v982_v20 = vld [vmem:[%s1675_s0] sm:$0xf] }
  0x4c   : > { %v444_v16 = vpack.c.b16 %v396_v8, %v396_v8  ;;  %v445_v17 = vpack.c.b16 %v397_v9, %v397_v9  ;;  %v1134_v21 = vld [vmem:[%s1675_s0] sm:$0x30]  ;;  %v995_v22 = vor.u32 %v1144_v11, %v994_v7  ;;  %v999_v23 = vor.u32 %v1136_v12, %v996_v13  ;;  %v1074_v26 = vld [vmem:[%s1426_s27 + $0x98] sm:$0xf]  ;;  %v1154_v28 = vld [vmem:[%s1426_s27 + $0x9c] sm:$0xf] }
  0x4d   : > { %v442_v24 = vpack.c.b16 %v394_v14, %v394_v14  ;;  %v443_v25 = vpack.c.b16 %v395_v15, %v395_v15  ;;  %v1162_v27 = vld [vmem:[%s1426_s27 + $0xd4] sm:$0xf0]  ;;  %v1461_v29 = vor.u32 %v1134_v21, %v982_v20  ;;  %v1076_v32 = vld [vmem:[%s1426_s27 + $0xd8] sm:$0xf0]  ;;  %v278_v33 = vld [vmem:[%s1426_s27 + $0x128] sm:$0x33] }
  0x4e   : > { %545 = vmatpush.bf16.msra.mxu0 %v1051_v63  ;;  %559 = vmatpush.bf16.msra.mxu1 %v1055_v0  ;;  %v510_v30 = vsel %vm490_vm0, %v444_v16, 0  ;;  %v513_v31 = vsel %vm490_vm0, %v445_v17, 0  ;;  %v400_v34 = vunpack.c.l.b16 %v278_v33  ;;  %v401_v35 = vunpack.c.h.b16 %v278_v33  ;;  %v277_v36 = vld [vmem:[%s1426_s27 + $0x120] sm:$0x33]  ;;  %v1066_v37 = vld [vmem:[%s1426_s27 + $0x90] sm:$0xf] }
  0x4f   : > { %573 = vmatpush.bf16.msra.mxu2 %v1059_v4  ;;  %587 = vmatpush.bf16.msra.mxu3 %v1063_v5  ;;  %v1161_v38 = vld [vmem:[%s1426_s27 + $0xcc] sm:$0xf0]  ;;  %v1153_v39 = vld [vmem:[%s1426_s27 + $0x94] sm:$0xf]  ;;  %v504_v40 = vsel %vm490_vm0, %v442_v24, 0  ;;  %v507_v41 = vsel %vm490_vm0, %v443_v25, 0  ;;  %v1075_v42 = vor.u32 %v1162_v27, %v1074_v26  ;;  %v1079_v43 = vor.u32 %v1154_v28, %v1076_v32 }
  0x50   : > { %v1068_v44 = vld [vmem:[%s1426_s27 + $0xd0] sm:$0xf0]  ;;  %v1010_v45 = vld [vmem:[%s1426_s27 + $0x18] sm:$0xf]  ;;  %v1138_v47 = vld [vmem:[%s1426_s27 + $0x1c] sm:$0xf]  ;;  %v398_v49 = vunpack.c.l.b16 %v277_v36  ;;  %v399_v50 = vunpack.c.h.b16 %v277_v36  ;;  %v448_v51 = vpack.c.b16 %v400_v34, %v400_v34  ;;  %v449_v52 = vpack.c.b16 %v401_v35, %v401_v35 }
  0x51   : > { %v1146_v46 = vld [vmem:[%s1426_s27 + $0x54] sm:$0xf0]  ;;  %v1012_v48 = vld [vmem:[%s1426_s27 + $0x58] sm:$0xf0]  ;;  %v1067_v53 = vor.u32 %v1161_v38, %v1066_v37  ;;  %v1071_v54 = vor.u32 %v1153_v39, %v1068_v44  ;;  %v1002_v55 = vld [vmem:[%s1426_s27 + $0x10] sm:$0xf] }
  0x52   : > { %546 = vmatpush.bf16.msra.mxu0 %v987_v18  ;;  %560 = vmatpush.bf16.msra.mxu1 %v991_v19  ;;  %v1011_v56 = vor.u32 %v1146_v46, %v1010_v45  ;;  %v1015_v57 = vor.u32 %v1138_v47, %v1012_v48  ;;  %v1145_v58 = vld [vmem:[%s1426_s27 + $0x4c] sm:$0xf0]  ;;  %v1137_v59 = vld [vmem:[%s1426_s27 + $0x14] sm:$0xf]  ;;  %v446_v61 = vpack.c.b16 %v398_v49, %v398_v49  ;;  %v1090_v63 = vld [vmem:[%s1426_s27 + $0xa8] sm:$0xf] }
  0x53   : > { %574 = vmatpush.bf16.msra.mxu2 %v995_v22  ;;  %588 = vmatpush.bf16.msra.mxu3 %v999_v23  ;;  %v1004_v60 = vld [vmem:[%s1426_s27 + $0x50] sm:$0xf0]  ;;  %v447_v62 = vpack.c.b16 %v399_v50, %v399_v50  ;;  %v1164_v0 = vld [vmem:[%s1426_s27 + $0xe4] sm:$0xf0]  ;;  %v522_v1 = vsel %vm490_vm0, %v448_v51, 0  ;;  %v525_v2 = vsel %vm490_vm0, %v449_v52, 0  ;;  %v1003_v5 = vor.u32 %v1145_v58, %v1002_v55 }
  0x54   : > { %v1156_v3 = vld [vmem:[%s1426_s27 + $0xac] sm:$0xf]  ;;  %v1007_v6 = vor.u32 %v1137_v59, %v1004_v60  ;;  %v280_v7 = vld [vmem:[%s1426_s27 + $0x138] sm:$0x33]  ;;  %v1082_v8 = vld [vmem:[%s1426_s27 + $0xa0] sm:$0xf]  ;;  %v1091_v13 = vor.u32 %v1164_v0, %v1090_v63 }
  0x55   : > { %1112 = vmatmul.msk.bf16.vlgmr.msra.gmra.mxu0 %vm486_vm1, %v1461_v29  ;;  %1113 = vmatmul.msk.bf16.vlgmr.msra.gmra.mxu1 %vm486_vm1, %v1461_v29  ;;  %v1092_v4 = vld [vmem:[%s1426_s27 + $0xe8] sm:$0xf0]  ;;  %v1163_v9 = vld [vmem:[%s1426_s27 + $0xdc] sm:$0xf0]  ;;  %v279_v10 = vld [vmem:[%s1426_s27 + $0x130] sm:$0x33]  ;;  %v404_v17 = vunpack.c.l.b16 %v280_v7  ;;  %v405_v18 = vunpack.c.h.b16 %v280_v7 }
  0x56   : > { %1114 = vmatmul.msk.bf16.vlgmr.msra.gmra.mxu2 %vm486_vm1, %v1461_v29  ;;  %1115 = vmatmul.msk.bf16.vlgmr.msra.gmra.mxu3 %vm486_vm1, %v1461_v29  ;;  %v516_v11 = vsel %vm490_vm0, %v446_v61, 0  ;;  %v519_v12 = vsel %vm490_vm0, %v447_v62, 0  ;;  %v1095_v14 = vor.u32 %v1156_v3, %v1092_v4  ;;  %v1155_v15 = vld [vmem:[%s1426_s27 + $0xa4] sm:$0xf]  ;;  %v1026_v19 = vld [vmem:[%s1426_s27 + $0x28] sm:$0xf]  ;;  %v402_v21 = vunpack.c.l.b16 %v279_v10 }
  0x57   : > { %628 = vmatpush.bf16.msrb.mxu2 %v510_v30  ;;  %642 = vmatpush.bf16.msrb.mxu3 %v513_v31  ;;  %v1084_v16 = vld [vmem:[%s1426_s27 + $0xe0] sm:$0xf0]  ;;  %v1148_v20 = vld [vmem:[%s1426_s27 + $0x64] sm:$0xf0]  ;;  %v403_v22 = vunpack.c.h.b16 %v279_v10  ;;  %v1083_v23 = vor.u32 %v1163_v9, %v1082_v8  ;;  %v1140_v25 = vld [vmem:[%s1426_s27 + $0x2c] sm:$0xf]  ;;  %v452_v32 = vpack.c.b16 %v404_v17, %v404_v17  ;;  %v453_v33 = vpack.c.b16 %v405_v18, %v405_v18 }
  0x58   : > { %600 = vmatpush.bf16.msrb.mxu0 %v504_v40  ;;  %614 = vmatpush.bf16.msrb.mxu1 %v507_v41  ;;  %v1087_v24 = vor.u32 %v1155_v15, %v1084_v16  ;;  %v1028_v26 = vld [vmem:[%s1426_s27 + $0x68] sm:$0xf0]  ;;  %v1018_v27 = vld [vmem:[%s1426_s27 + $0x20] sm:$0xf]  ;;  %v1139_v30 = vld [vmem:[%s1426_s27 + $0x24] sm:$0xf]  ;;  %v1027_v34 = vor.u32 %v1148_v20, %v1026_v19  ;;  %v450_v36 = vpack.c.b16 %v402_v21, %v402_v21 }
  0x59   : > { %v1147_v28 = vld [vmem:[%s1426_s27 + $0x5c] sm:$0xf0]  ;;  %v1020_v31 = vld [vmem:[%s1426_s27 + $0x60] sm:$0xf0]  ;;  %v1031_v35 = vor.u32 %v1140_v25, %v1028_v26  ;;  %v451_v37 = vpack.c.b16 %v403_v22, %v403_v22  ;;  %v1106_v40 = vld [vmem:[%s1426_s27 + $0xb8] sm:$0xf] }
  0x5a   : > { %v1019_v38 = vor.u32 %v1147_v28, %v1018_v27  ;;  %v1023_v39 = vor.u32 %v1139_v30, %v1020_v31  ;;  %v1166_v41 = vld [vmem:[%s1426_s27 + $0xf4] sm:$0xf0]  ;;  %v534_v44 = vsel %vm490_vm0, %v452_v32, 0  ;;  %v537_v45 = vsel %vm490_vm0, %v453_v33, 0  ;;  %v1098_v46 = vld [vmem:[%s1426_s27 + $0xb0] sm:$0xf] }
  0x5b   : > { %629 = vmatpush.bf16.msrb.mxu2 %v1075_v42  ;;  %643 = vmatpush.bf16.msrb.mxu3 %v1079_v43  ;;  %v1158_v42 = vld [vmem:[%s1426_s27 + $0xbc] sm:$0xf]  ;;  %v1165_v47 = vld [vmem:[%s1426_s27 + $0xec] sm:$0xf0]  ;;  %v528_v48 = vsel %vm490_vm0, %v450_v36, 0  ;;  %v531_v49 = vsel %vm490_vm0, %v451_v37, 0  ;;  %v1107_v52 = vor.u32 %v1166_v41, %v1106_v40 }
  0x5c   : > { %601 = vmatpush.bf16.msrb.mxu0 %v1067_v53  ;;  %615 = vmatpush.bf16.msrb.mxu1 %v1071_v54  ;;  %v1108_v43 = vld [vmem:[%s1426_s27 + $0xf8] sm:$0xf0]  ;;  %v1157_v50 = vld [vmem:[%s1426_s27 + $0xb4] sm:$0xf]  ;;  %v1042_v54 = vld [vmem:[%s1426_s27 + $0x38] sm:$0xf] }
  0x5d   : > { %v1100_v51 = vld [vmem:[%s1426_s27 + $0xf0] sm:$0xf0]  ;;  %v1111_v53 = vor.u32 %v1158_v42, %v1108_v43  ;;  %v1150_v55 = vld [vmem:[%s1426_s27 + $0x74] sm:$0xf0]  ;;  %v1142_v58 = vld [vmem:[%s1426_s27 + $0x3c] sm:$0xf] }
  0x5e   : > { %v1044_v59 = vld [vmem:[%s1426_s27 + $0x78] sm:$0xf0]  ;;  %v1034_v60 = vld [vmem:[%s1426_s27 + $0x30] sm:$0xf]  ;;  %v1141_v62 = vld [vmem:[%s1426_s27 + $0x34] sm:$0xf]  ;;  %v1043_v0 = vor.u32 %v1150_v55, %v1042_v54 }
  0x5f   : > { %630 = vmatpush.bf16.msrb.mxu2 %v1011_v56  ;;  %644 = vmatpush.bf16.msrb.mxu3 %v1015_v57  ;;  %v1099_v56 = vor.u32 %v1165_v47, %v1098_v46  ;;  %v1103_v57 = vor.u32 %v1157_v50, %v1100_v51  ;;  %v1149_v61 = vld [vmem:[%s1426_s27 + $0x6c] sm:$0xf0]  ;;  %v1036_v63 = vld [vmem:[%s1426_s27 + $0x70] sm:$0xf0]  ;;  %s1167_s6 = sshll.u32 (%p1327_p5), %s972_s12, 7 }
  0x60   : > { %602 = vmatpush.bf16.msrb.mxu0 %v1003_v5  ;;  %616 = vmatpush.bf16.msrb.mxu1 %v1007_v6  ;;  %v1039_v3 = vor.u32 %v1141_v62, %v1036_v63  ;;  %s1601_s9 = scalar_lea.vmem (%p1327_p5), %s1677_s2, %s1167_s6 }
  0x63   : > { %684 = vmatpush.bf16.msra.mxu2 %v522_v1  ;;  %698 = vmatpush.bf16.msra.mxu3 %v525_v2  ;;  %v1047_v1 = vor.u32 %v1142_v58, %v1044_v59  ;;  %v1035_v2 = vor.u32 %v1149_v61, %v1034_v60 }
  0x64   : > { %656 = vmatpush.bf16.msra.mxu0 %v516_v11  ;;  %670 = vmatpush.bf16.msra.mxu1 %v519_v12 }
  0x65   : > { %1116 = vmatmul.msk.bf16.vlgmr.msrb.gmra.mxu0 %vm486_vm1, %v1461_v29  ;;  %1117 = vmatmul.msk.bf16.vlgmr.msrb.gmra.mxu1 %vm486_vm1, %v1461_v29 }
  0x66   : > { %1118 = vmatmul.msk.bf16.vlgmr.msrb.gmra.mxu2 %vm486_vm1, %v1461_v29  ;;  %1119 = vmatmul.msk.bf16.vlgmr.msrb.gmra.mxu3 %vm486_vm1, %v1461_v29 }
  0x67   : > { %685 = vmatpush.bf16.msra.mxu2 %v1091_v13  ;;  %699 = vmatpush.bf16.msra.mxu3 %v1095_v14 }
  0x68   : > { %657 = vmatpush.bf16.msra.mxu0 %v1083_v23  ;;  %671 = vmatpush.bf16.msra.mxu1 %v1087_v24 }
  0x6b   : > { %686 = vmatpush.bf16.msra.mxu2 %v1027_v34  ;;  %700 = vmatpush.bf16.msra.mxu3 %v1031_v35 }
  0x6c   : > { %658 = vmatpush.bf16.msra.mxu0 %v1019_v38  ;;  %672 = vmatpush.bf16.msra.mxu1 %v1023_v39 }
  0x6f   : > { %740 = vmatpush.bf16.msrb.mxu2 %v534_v44  ;;  %754 = vmatpush.bf16.msrb.mxu3 %v537_v45 }
  0x70   : > { %712 = vmatpush.bf16.msrb.mxu0 %v528_v48  ;;  %726 = vmatpush.bf16.msrb.mxu1 %v531_v49 }
  0x73   : > { %741 = vmatpush.bf16.msrb.mxu2 %v1107_v52  ;;  %755 = vmatpush.bf16.msrb.mxu3 %v1111_v53 }
  0x74   : > { %713 = vmatpush.bf16.msrb.mxu0 %v1099_v56  ;;  %727 = vmatpush.bf16.msrb.mxu1 %v1103_v57 }
  0x75   : > { %1120 = vmatmul.msk.bf16.vlgmr.msra.gmra.mxu0 %vm486_vm1, %v1461_v29  ;;  %1121 = vmatmul.msk.bf16.vlgmr.msra.gmra.mxu1 %vm486_vm1, %v1461_v29 }
  0x76   : > { %1122 = vmatmul.msk.bf16.vlgmr.msra.gmra.mxu2 %vm486_vm1, %v1461_v29  ;;  %1123 = vmatmul.msk.bf16.vlgmr.msra.gmra.mxu3 %vm486_vm1, %v1461_v29 }
  0x77   : > { %742 = vmatpush.bf16.msrb.mxu2 %v1043_v0  ;;  %756 = vmatpush.bf16.msrb.mxu3 %v1047_v1 }
  0x78   : > { %714 = vmatpush.bf16.msrb.mxu0 %v1035_v2  ;;  %728 = vmatpush.bf16.msrb.mxu1 %v1039_v3 }
  0x85   : > { %1124 = vmatmul.msk.bf16.vlgmr.msrb.gmra.mxu0 %vm486_vm1, %v1461_v29  ;;  %1125 = vmatmul.msk.bf16.vlgmr.msrb.gmra.mxu1 %vm486_vm1, %v1461_v29 }
  0x86   : > { %1126 = vmatmul.msk.bf16.vlgmr.msrb.gmra.mxu2 %vm486_vm1, %v1461_v29  ;;  %1127 = vmatmul.msk.bf16.vlgmr.msrb.gmra.mxu3 %vm486_vm1, %v1461_v29 }
  0xd2   : > { %v548_v4 = vpop.f32.mrf.mxu0  ;;  %v562_v5 = vpop.f32.mrf.mxu1 }
  0xd3   : > { %1194 = vtanh.f32 %v548_v4 }
  0xd4   : > { %1196 = vtanh.f32 %v562_v5 }
  0xd9   : > { %v1195_v6 = vpop.eup %1194  ;;  %v576_v7 = vpop.f32.mrf.mxu2 }
  0xda   : > { %v590_v8 = vpop.f32.mrf.mxu3  ;;  %v1197_v9 = vpop.eup %1196  ;;  %795 = vst [vmem:[%s1558_s5] sm:$0xff] %v1195_v6  ;;  %1198 = vtanh.f32 %v576_v7 }
  0xdb   : > { %v550_v10 = vpop.f32.mrf.mxu0  ;;  %v564_v29 = vpop.f32.mrf.mxu1  ;;  %796 = vst [vmem:[%s1558_s5 + $0x8] sm:$0xff] %v1197_v9  ;;  %1200 = vtanh.f32 %v590_v8 }
  0xdc   : > { %1202 = vtanh.f32 %v550_v10 }
  0xdd   : > { %1204 = vtanh.f32 %v564_v29 }
  0xe0   : > { %v1199_v11 = vpop.eup %1198 }
  0xe1   : > { %v1201_v12 = vpop.eup %1200  ;;  %797 = vst [vmem:[%s1558_s5 + $0x10] sm:$0xff] %v1199_v11  ;;  %v578_v13 = vpop.f32.mrf.mxu2  ;;  %v849_v4 = vld [vmem:[%s1558_s5] sm:$0xff] (%p1327_p5) }
  0xe2   : > { %v592_v14 = vpop.f32.mrf.mxu3  ;;  %v1203_v15 = vpop.eup %1202  ;;  %798 = vst [vmem:[%s1558_s5 + $0x18] sm:$0xff] %v1201_v12  ;;  %1206 = vtanh.f32 %v578_v13  ;;  %v851_v5 = vld [vmem:[%s1558_s5 + $0x8] sm:$0xff] (%p1327_p5) }
  0xe3   : > { %v604_v16 = vpop.f32.mrf.mxu0  ;;  %v618_v17 = vpop.f32.mrf.mxu1  ;;  %811 = vst [vmem:[%s1558_s5 + $0x80] sm:$0xf] %v1203_v15  ;;  %1208 = vtanh.f32 %v592_v14 }
  0xe4   : > { %v1205_v18 = vpop.eup %1204  ;;  %1210 = vtanh.f32 %v604_v16  ;;  %850 = vst [vmem:[%s1601_s9] sm:$0xff] (%p1327_p5), %v849_v4 }
  0xe5   : > { %812 = vst [vmem:[%s1558_s5 + $0x88] sm:$0xf] %v1205_v18  ;;  %1212 = vtanh.f32 %v618_v17 }
  0xe6   : > { %852 = vst [vmem:[%s1601_s9 + $0x8] sm:$0xff] (%p1327_p5), %v851_v5 }
  0xe8   : > { %v1207_v19 = vpop.eup %1206  ;;  %v853_v6 = vld [vmem:[%s1558_s5 + $0x10] sm:$0xff] (%p1327_p5) }
  0xe9   : > { %v1209_v20 = vpop.eup %1208  ;;  %813 = vst [vmem:[%s1558_s5 + $0x90] sm:$0xf] %v1207_v19  ;;  %v632_v21 = vpop.f32.mrf.mxu2  ;;  %v855_v7 = vld [vmem:[%s1558_s5 + $0x18] sm:$0xff] (%p1327_p5) }
  0xea   : > { %v646_v22 = vpop.f32.mrf.mxu3  ;;  %v1211_v23 = vpop.eup %1210  ;;  %814 = vst [vmem:[%s1558_s5 + $0x98] sm:$0xf] %v1209_v20  ;;  %1214 = vtanh.f32 %v632_v21  ;;  %v881_v19 = vld [vmem:[%s1558_s5 + $0x80] sm:$0xff] (%p1327_p5) }
  0xeb   : > { %v606_v24 = vpop.f32.mrf.mxu0  ;;  %v620_v25 = vpop.f32.mrf.mxu1  ;;  %799 = vst [vmem:[%s1558_s5 + $0x20] sm:$0xff] %v1211_v23  ;;  %1216 = vtanh.f32 %v646_v22 }
  0xec   : > { %v1213_v26 = vpop.eup %1212  ;;  %1218 = vtanh.f32 %v606_v24  ;;  %854 = vst [vmem:[%s1601_s9 + $0x10] sm:$0xff] (%p1327_p5), %v853_v6  ;;  %v883_v20 = vld [vmem:[%s1558_s5 + $0x88] sm:$0xff] (%p1327_p5) }
  0xed   : > { %800 = vst [vmem:[%s1558_s5 + $0x28] sm:$0xff] %v1213_v26  ;;  %1220 = vtanh.f32 %v620_v25 }
  0xee   : > { %856 = vst [vmem:[%s1601_s9 + $0x18] sm:$0xff] (%p1327_p5), %v855_v7 }
  0xef   : > { %882 = vst [vmem:[%s1601_s9 + $0x200] sm:$0xff] (%p1327_p5), %v881_v19 }
  0xf0   : > { %v1215_v27 = vpop.eup %1214  ;;  %v885_v21 = vld [vmem:[%s1558_s5 + $0x90] sm:$0xff] (%p1327_p5)  ;;  %884 = vst [vmem:[%s1601_s9 + $0x208] sm:$0xff] (%p1327_p5), %v883_v20 }
  0xf1   : > { %v1217_v28 = vpop.eup %1216  ;;  %801 = vst [vmem:[%s1558_s5 + $0x30] sm:$0xff] %v1215_v27  ;;  %v634_v30 = vpop.f32.mrf.mxu2  ;;  %v887_v22 = vld [vmem:[%s1558_s5 + $0x98] sm:$0xff] (%p1327_p5) }
  0xf2   : > { %v648_v31 = vpop.f32.mrf.mxu3  ;;  %v1219_v32 = vpop.eup %1218  ;;  %802 = vst [vmem:[%s1558_s5 + $0x38] sm:$0xff] %v1217_v28  ;;  %1222 = vtanh.f32 %v634_v30  ;;  %v857_v8 = vld [vmem:[%s1558_s5 + $0x20] sm:$0xff] (%p1327_p5) }
  0xf3   : > { %v660_v33 = vpop.f32.mrf.mxu0  ;;  %v674_v34 = vpop.f32.mrf.mxu1  ;;  %815 = vst [vmem:[%s1558_s5 + $0xa0] sm:$0xf] %v1219_v32  ;;  %1224 = vtanh.f32 %v648_v31 }
  0xf4   : > { %v1221_v35 = vpop.eup %1220  ;;  %1226 = vtanh.f32 %v660_v33  ;;  %v859_v9 = vld [vmem:[%s1558_s5 + $0x28] sm:$0xff] (%p1327_p5)  ;;  %858 = vst [vmem:[%s1601_s9 + $0x20] sm:$0xff] (%p1327_p5), %v857_v8 }
  0xf5   : > { %816 = vst [vmem:[%s1558_s5 + $0xa8] sm:$0xf] %v1221_v35  ;;  %1228 = vtanh.f32 %v674_v34 }
  0xf6   : > { %860 = vst [vmem:[%s1601_s9 + $0x28] sm:$0xff] (%p1327_p5), %v859_v9 }
  0xf7   : > { %886 = vst [vmem:[%s1601_s9 + $0x210] sm:$0xff] (%p1327_p5), %v885_v21 }
  0xf8   : > { %v1223_v36 = vpop.eup %1222  ;;  %v861_v10 = vld [vmem:[%s1558_s5 + $0x30] sm:$0xff] (%p1327_p5)  ;;  %888 = vst [vmem:[%s1601_s9 + $0x218] sm:$0xff] (%p1327_p5), %v887_v22 }
  0xf9   : > { %v1225_v37 = vpop.eup %1224  ;;  %817 = vst [vmem:[%s1558_s5 + $0xb0] sm:$0xf] %v1223_v36  ;;  %v688_v38 = vpop.f32.mrf.mxu2  ;;  %v863_v29 = vld [vmem:[%s1558_s5 + $0x38] sm:$0xff] (%p1327_p5) }
  0xfa   : > { %v702_v39 = vpop.f32.mrf.mxu3  ;;  %v1227_v40 = vpop.eup %1226  ;;  %818 = vst [vmem:[%s1558_s5 + $0xb8] sm:$0xf] %v1225_v37  ;;  %1230 = vtanh.f32 %v688_v38  ;;  %v889_v23 = vld [vmem:[%s1558_s5 + $0xa0] sm:$0xff] (%p1327_p5) }
  0xfb   : > { %v662_v41 = vpop.f32.mrf.mxu0  ;;  %v676_v42 = vpop.f32.mrf.mxu1  ;;  %803 = vst [vmem:[%s1558_s5 + $0x40] sm:$0xff] %v1227_v40  ;;  %1232 = vtanh.f32 %v702_v39 }
  0xfc   : > { %v1229_v43 = vpop.eup %1228  ;;  %1234 = vtanh.f32 %v662_v41  ;;  %862 = vst [vmem:[%s1601_s9 + $0x30] sm:$0xff] (%p1327_p5), %v861_v10  ;;  %v891_v24 = vld [vmem:[%s1558_s5 + $0xa8] sm:$0xff] (%p1327_p5) }
  0xfd   : > { %804 = vst [vmem:[%s1558_s5 + $0x48] sm:$0xff] %v1229_v43  ;;  %1236 = vtanh.f32 %v676_v42 }
  0xfe   : > { %864 = vst [vmem:[%s1601_s9 + $0x38] sm:$0xff] (%p1327_p5), %v863_v29 }
  0xff   : > { %890 = vst [vmem:[%s1601_s9 + $0x220] sm:$0xff] (%p1327_p5), %v889_v23 }
 0x100   : > { %v1231_v44 = vpop.eup %1230  ;;  %v893_v25 = vld [vmem:[%s1558_s5 + $0xb0] sm:$0xff] (%p1327_p5)  ;;  %892 = vst [vmem:[%s1601_s9 + $0x228] sm:$0xff] (%p1327_p5), %v891_v24 }
 0x101   : > { %v1233_v45 = vpop.eup %1232  ;;  %805 = vst [vmem:[%s1558_s5 + $0x50] sm:$0xff] %v1231_v44  ;;  %v690_v46 = vpop.f32.mrf.mxu2  ;;  %v895_v26 = vld [vmem:[%s1558_s5 + $0xb8] sm:$0xff] (%p1327_p5) }
 0x102   : > { %v704_v47 = vpop.f32.mrf.mxu3  ;;  %v1235_v48 = vpop.eup %1234  ;;  %806 = vst [vmem:[%s1558_s5 + $0x58] sm:$0xff] %v1233_v45  ;;  %1238 = vtanh.f32 %v690_v46  ;;  %v865_v11 = vld [vmem:[%s1558_s5 + $0x40] sm:$0xff] (%p1327_p5) }
 0x103   : > { %v716_v49 = vpop.f32.mrf.mxu0  ;;  %v730_v50 = vpop.f32.mrf.mxu1  ;;  %819 = vst [vmem:[%s1558_s5 + $0xc0] sm:$0xf] %v1235_v48  ;;  %1240 = vtanh.f32 %v704_v47 }
 0x104   : > { %v1237_v51 = vpop.eup %1236  ;;  %1242 = vtanh.f32 %v716_v49  ;;  %v867_v12 = vld [vmem:[%s1558_s5 + $0x48] sm:$0xff] (%p1327_p5)  ;;  %866 = vst [vmem:[%s1601_s9 + $0x40] sm:$0xff] (%p1327_p5), %v865_v11 }
 0x105   : > { %820 = vst [vmem:[%s1558_s5 + $0xc8] sm:$0xf] %v1237_v51  ;;  %1244 = vtanh.f32 %v730_v50 }
 0x106   : > { %868 = vst [vmem:[%s1601_s9 + $0x48] sm:$0xff] (%p1327_p5), %v867_v12 }
 0x107   : > { %894 = vst [vmem:[%s1601_s9 + $0x230] sm:$0xff] (%p1327_p5), %v893_v25 }
 0x108   : > { %v1239_v52 = vpop.eup %1238  ;;  %v869_v13 = vld [vmem:[%s1558_s5 + $0x50] sm:$0xff] (%p1327_p5)  ;;  %896 = vst [vmem:[%s1601_s9 + $0x238] sm:$0xff] (%p1327_p5), %v895_v26 }
 0x109   : > { %v1241_v53 = vpop.eup %1240  ;;  %821 = vst [vmem:[%s1558_s5 + $0xd0] sm:$0xf] %v1239_v52  ;;  %v744_v54 = vpop.f32.mrf.mxu2  ;;  %v871_v14 = vld [vmem:[%s1558_s5 + $0x58] sm:$0xff] (%p1327_p5) }
 0x10a   : > { %v758_v55 = vpop.f32.mrf.mxu3  ;;  %v1243_v56 = vpop.eup %1242  ;;  %822 = vst [vmem:[%s1558_s5 + $0xd8] sm:$0xf] %v1241_v53  ;;  %1246 = vtanh.f32 %v744_v54  ;;  %v897_v27 = vld [vmem:[%s1558_s5 + $0xc0] sm:$0xff] (%p1327_p5) }
 0x10b   : > { %v718_v57 = vpop.f32.mrf.mxu0  ;;  %v732_v58 = vpop.f32.mrf.mxu1  ;;  %807 = vst [vmem:[%s1558_s5 + $0x60] sm:$0xff] %v1243_v56  ;;  %1248 = vtanh.f32 %v758_v55 }
 0x10c   : > { %v1245_v59 = vpop.eup %1244  ;;  %1250 = vtanh.f32 %v718_v57  ;;  %870 = vst [vmem:[%s1601_s9 + $0x50] sm:$0xff] (%p1327_p5), %v869_v13  ;;  %v899_v28 = vld [vmem:[%s1558_s5 + $0xc8] sm:$0xff] (%p1327_p5) }
 0x10d   : > { %808 = vst [vmem:[%s1558_s5 + $0x68] sm:$0xff] %v1245_v59  ;;  %1252 = vtanh.f32 %v732_v58 }
 0x10e   : > { %872 = vst [vmem:[%s1601_s9 + $0x58] sm:$0xff] (%p1327_p5), %v871_v14 }
 0x10f   : > { %898 = vst [vmem:[%s1601_s9 + $0x240] sm:$0xff] (%p1327_p5), %v897_v27 }
 0x110   : > { %v1247_v60 = vpop.eup %1246  ;;  %v901_v30 = vld [vmem:[%s1558_s5 + $0xd0] sm:$0xff] (%p1327_p5)  ;;  %900 = vst [vmem:[%s1601_s9 + $0x248] sm:$0xff] (%p1327_p5), %v899_v28 }
 0x111   : > { %v1249_v61 = vpop.eup %1248  ;;  %809 = vst [vmem:[%s1558_s5 + $0x70] sm:$0xff] %v1247_v60  ;;  %v746_v62 = vpop.f32.mrf.mxu2  ;;  %v903_v31 = vld [vmem:[%s1558_s5 + $0xd8] sm:$0xff] (%p1327_p5) }
 0x112   : > { %v760_v63 = vpop.f32.mrf.mxu3  ;;  %v1251_v0 = vpop.eup %1250  ;;  %810 = vst [vmem:[%s1558_s5 + $0x78] sm:$0xff] %v1249_v61  ;;  %1254 = vtanh.f32 %v746_v62  ;;  %v873_v15 = vld [vmem:[%s1558_s5 + $0x60] sm:$0xff] (%p1327_p5) }
 0x113   : > { %v1253_v1 = vpop.eup %1252  ;;  %823 = vst [vmem:[%s1558_s5 + $0xe0] sm:$0xf] %v1251_v0  ;;  %1256 = vtanh.f32 %v760_v63 }
 0x114   : > { %824 = vst [vmem:[%s1558_s5 + $0xe8] sm:$0xf] %v1253_v1  ;;  %v875_v16 = vld [vmem:[%s1558_s5 + $0x68] sm:$0xff] (%p1327_p5) }
 0x115   : > { %874 = vst [vmem:[%s1601_s9 + $0x60] sm:$0xff] (%p1327_p5), %v873_v15 }
 0x116   : > { %833 = sbr.rel (!%p1327_p5) target bundleno = 291 (0x123), region = 55  ;;  %876 = vst [vmem:[%s1601_s9 + $0x68] sm:$0xff] (%p1327_p5), %v875_v16 }
 0x117   : > { %902 = vst [vmem:[%s1601_s9 + $0x250] sm:$0xff] (%p1327_p5), %v901_v30 }
 0x118   : > { %v1255_v2 = vpop.eup %1254  ;;  %v877_v17 = vld [vmem:[%s1558_s5 + $0x70] sm:$0xff] (%p1327_p5)  ;;  %904 = vst [vmem:[%s1601_s9 + $0x258] sm:$0xff] (%p1327_p5), %v903_v31 }
 0x119   : > { %v1257_v3 = vpop.eup %1256  ;;  %825 = vst [vmem:[%s1558_s5 + $0xf0] sm:$0xf] %v1255_v2  ;;  %v879_v18 = vld [vmem:[%s1558_s5 + $0x78] sm:$0xff] (%p1327_p5) }
 0x11a   : > { %826 = vst [vmem:[%s1558_s5 + $0xf8] sm:$0xf] %v1257_v3  ;;  %v905_v32 = vld [vmem:[%s1558_s5 + $0xe0] sm:$0xff] (%p1327_p5) }
 0x11b   : > { %878 = vst [vmem:[%s1601_s9 + $0x70] sm:$0xff] %v877_v17  ;;  %v907_v33 = vld [vmem:[%s1558_s5 + $0xe8] sm:$0xff] }
 0x11c   : > { %880 = vst [vmem:[%s1601_s9 + $0x78] sm:$0xff] %v879_v18 }
 0x11d   : > { %906 = vst [vmem:[%s1601_s9 + $0x260] sm:$0xff] %v905_v32 }
 0x11e   : > { %908 = vst [vmem:[%s1601_s9 + $0x268] sm:$0xff] %v907_v33 }
 0x120   : > { %v909_v34 = vld [vmem:[%s1558_s5 + $0xf0] sm:$0xff] }
 0x121   : > { %v911_v35 = vld [vmem:[%s1558_s5 + $0xf8] sm:$0xff]  ;;  %910 = vst [vmem:[%s1601_s9 + $0x270] sm:$0xff] %v909_v34 }
 0x122   : > { %912 = vst [vmem:[%s1601_s9 + $0x278] sm:$0xff] %v911_v35 }
 0x123 PF: > { %p9_p10 = scmp.ge.s32.totalorder %s1314_s13, 6   ;;  %s1679_s9 = smov %s1276_s10 }
 0x124   : > { %s1680_s10 = smov %s1325_s16  ;;  %s1681_s11 = smov %s1314_s13 }
 0x125   :  { %11 = sbr.rel (!%p9_p10) target bundleno = 2 (0x2), region = 109 }

</bundles_post_ra>
